<compile_context>
chip_gen: v7x
topology: tpu7x:2x2x1
jax: 0.10.0
libtpu: 0.0.40
codegen_flags: <defaults>
</compile_context>

<pallas_src>
import functools

import jax
import jax.numpy as jnp
from jax.experimental import pallas as pl
from jax.experimental.pallas import tpu as pltpu

_VMEM_LIMIT_BYTES = 32 * 1024 * 1024   # explicit scoped-VMEM budget, safe on v5e/v6e/v7x


# ------------- fused conv(5x5) + bias + ReLU + maxpool(2x2) + batchnorm ------------- #

def _stage_kernel(a_ref, w_ref, b_ref, g_ref, beta_ref, o_ref, acc_ref, *, eps):
    """One conv stage, fully fused.

    Grid axis 0 iterates over the four 2x2-pool parities.  `a_ref` holds the
    im2col patch slab for the current parity, so the 2x2 max-pool is a running
    elementwise max of the four conv matmul results (bias and ReLU commute with
    the max, so they are applied once at the end).  The last step adds bias,
    applies ReLU and training-mode batch-norm, and writes the pooled+normalized
    activation.  Nothing intermediate leaves VMEM.
    """
    p = pl.program_id(0)

    @pl.when(p == 0)
    def _init():
        acc_ref[...] = jnp.full(acc_ref.shape, -jnp.inf, acc_ref.dtype)

    prod = jnp.dot(a_ref[0], w_ref[...], preferred_element_type=jnp.float32)
    acc_ref[...] = jnp.maximum(acc_ref[...], prod)                  # 2x2 max-pool

    @pl.when(p == pl.num_programs(0) - 1)
    def _finalize():
        x = jnp.maximum(acc_ref[...] + b_ref[...], 0.0)             # bias + ReLU
        m = x.shape[0]
        mean = jnp.sum(x, axis=0, keepdims=True) * (1.0 / m)
        d = x - mean
        var = jnp.sum(d * d, axis=0, keepdims=True) * (1.0 / m)     # biased var (train mode)
        inv = jax.lax.rsqrt(var + eps)
        o_ref[...] = (d * inv * g_ref[...] + beta_ref[...]).astype(o_ref.dtype)


def _parity_patches(x, kh, kw):
    """x: (N, H, W, C) -> (4, N*Hp*Wp, kh*kw*C) im2col slabs, one per 2x2-pool parity.

    slab[2*pi+pj] row r holds the conv receptive field of output pixel
    (2*ph+pi, 2*pw+pj) for pooled location r = (n, ph, pw).  Patch order along
    K is (kh, kw, Cin), matching the weight reordering below.
    """
    n, h, w, c = x.shape
    ho, wo = h - kh + 1, w - kw + 1
    hp, wp = ho // 2, wo // 2                                   # floor-mode pooling
    slabs = []
    for pi in (0, 1):
        for pj in (0, 1):
            pats = [x[:, pi + di: pi + di + 2 * hp: 2, pj + dj: pj + dj + 2 * wp: 2, :]
                    for di in range(kh) for dj in range(kw)]
            stk = jnp.stack(pats, axis=3)                       # (N, Hp, Wp, kh*kw, C)
            slabs.append(stk.reshape(n * hp * wp, kh * kw * c))
    return jnp.stack(slabs, axis=0), (n, hp, wp)


def conv_relu_pool_bn(x, w, b, gamma, beta, eps=1e-5):
    """Fused Conv2d(valid, stride 1) + ReLU + MaxPool2d(2) + BatchNorm2d (train mode).

    x: (N, H, W, Cin) f32; w: PyTorch layout (Cout, Cin, KH, KW).  Returns
    (N, Hp, Wp, Cout).  K is left unpadded (e.g. 25 for conv1).
    """
    cout, cin, kh, kw = w.shape
    slabs, (n, hp, wp) = _parity_patches(x, kh, kw)             # (4, M, K)
    _, m, k = slabs.shape
    w2 = jnp.transpose(w, (2, 3, 1, 0)).reshape(k, cout)        # (K, Cout), matches patch order

    out = pl.pallas_call(
        functools.partial(_stage_kernel, eps=eps),
        out_shape=jax.ShapeDtypeStruct((m, cout), jnp.float32),
        grid=(4,),
        in_specs=[
            pl.BlockSpec((1, m, k), lambda p: (p, 0, 0)),       # one parity slab per step
            pl.BlockSpec((k, cout), lambda p: (0, 0)),          # weights stay VMEM-resident
            pl.BlockSpec((1, cout), lambda p: (0, 0)),
            pl.BlockSpec((1, cout), lambda p: (0, 0)),
            pl.BlockSpec((1, cout), lambda p: (0, 0)),
        ],
        out_specs=pl.BlockSpec((m, cout), lambda p: (0, 0)),    # resident, written on last step
        scratch_shapes=[pltpu.VMEM((m, cout), jnp.float32)],
        compiler_params=pltpu.CompilerParams(
            dimension_semantics=("arbitrary",),                 # parity axis is a reduction
            vmem_limit_bytes=_VMEM_LIMIT_BYTES,
        ),
    )(slabs, w2, b.reshape(1, cout), gamma.reshape(1, cout), beta.reshape(1, cout))
    return out.reshape(n, hp, wp, cout)


# ------------------------------ fused fc1 + ReLU + fc2 ------------------------------ #

def _fc_kernel(x_ref, w1_ref, b1_ref, w2_ref, b2_ref, o_ref):
    h = jnp.dot(x_ref[...], w1_ref[...], preferred_element_type=jnp.float32) + b1_ref[...]
    h = jnp.maximum(h, 0.0)
    o_ref[...] = (jnp.dot(h, w2_ref[...], preferred_element_type=jnp.float32)
                  + b2_ref[...]).astype(o_ref.dtype)


def fc_head(x, w1, b1, w2, b2):
    """relu(x @ w1.T + b1) @ w2.T + b2 in one pallas_call (fc weights co-reside in VMEM).

    fc2's single output column is zero-padded to a lane-dense 128-wide slab for
    the in-kernel store, then sliced back out.
    """
    n, _ = x.shape
    hdim = w1.shape[0]
    nout = w2.shape[0]
    npad = 128
    w2p = jnp.pad(w2.T, ((0, 0), (0, npad - nout)))             # (hdim, 128)
    b2p = jnp.pad(b2, (0, npad - nout)).reshape(1, npad)
    out = pl.pallas_call(
        _fc_kernel,
        out_shape=jax.ShapeDtypeStruct((n, npad), jnp.float32),
        compiler_params=pltpu.CompilerParams(vmem_limit_bytes=_VMEM_LIMIT_BYTES),
    )(x, w1.T, b1.reshape(1, hdim), w2p, b2p)
    return out[:, :nout]


# ------------------------------------ network ------------------------------------ #

def net_forward(x_nchw, params):
    x = jnp.transpose(x_nchw, (0, 2, 3, 1))                     # NCHW -> NHWC

    x = conv_relu_pool_bn(x, params["w1"], params["b1"], params["g1"], params["be1"])  # (N,23,23, 32)
    x = conv_relu_pool_bn(x, params["w2"], params["b2"], params["g2"], params["be2"])  # (N, 9, 9, 64)
    x = conv_relu_pool_bn(x, params["w3"], params["b3"], params["g3"], params["be3"])  # (N, 2, 2,128)

    n = x.shape[0]
    x = jnp.transpose(x, (0, 3, 1, 2)).reshape(n, -1)           # flatten in (C,H,W) order -> (N,512)

    return fc_head(x, params["fc1_w"], params["fc1_b"], params["fc2_w"], params["fc2_b"])


def init_params(key):
    ks = jax.random.split(key, 8)

    def nrm(k, shape, scale):
        return jax.random.normal(k, shape, jnp.float32) * scale

    return {
        "w1": nrm(ks[0], (32, 1, 5, 5), 0.2),    "b1": jnp.zeros((32,), jnp.float32),
        "w2": nrm(ks[1], (64, 32, 5, 5), 0.05),  "b2": jnp.zeros((64,), jnp.float32),
        "w3": nrm(ks[2], (128, 64, 5, 5), 0.03), "b3": jnp.zeros((128,), jnp.float32),
        "g1": jnp.ones((32,), jnp.float32),  "be1": jnp.zeros((32,), jnp.float32),
        "g2": jnp.ones((64,), jnp.float32),  "be2": jnp.zeros((64,), jnp.float32),
        "g3": jnp.ones((128,), jnp.float32), "be3": jnp.zeros((128,), jnp.float32),
        "fc1_w": nrm(ks[3], (512, 512), 0.04), "fc1_b": jnp.zeros((512,), jnp.float32),
        "fc2_w": nrm(ks[4], (1, 512), 0.04),   "fc2_b": jnp.zeros((1,), jnp.float32),
    }


if __name__ == "__main__":
    key = jax.random.PRNGKey(0)
    k_in, k_par = jax.random.split(key)
    params = init_params(k_par)

    # Spatial size is fixed at 50x50 by the module's construction (_to_linear = 512).
    x = jax.random.normal(k_in, (2, 1, 50, 50), jnp.float32)

    fwd = jax.jit(net_forward)
    out = fwd(x, params)
    jax.block_until_ready(out)
    assert out.shape == (2, 1), out.shape
    print("KERNEL_OK")
</pallas_src>

<mosaic_0001>
module attributes {stable_mosaic.version = 11 : i64} {
  func.func @_stage_kernel(%arg0: i32, %arg1: memref<1x1058x25xf32, #tpu.memory_space<vmem>>, %arg2: memref<25x32xf32, #tpu.memory_space<vmem>>, %arg3: memref<1x32xf32, #tpu.memory_space<vmem>>, %arg4: memref<1x32xf32, #tpu.memory_space<vmem>>, %arg5: memref<1x32xf32, #tpu.memory_space<vmem>>, %arg6: memref<1058x32xf32, #tpu.memory_space<vmem>>, %arg7: memref<1058x32xf32, #tpu.memory_space<vmem>>) attributes {dimension_semantics = [#tpu.dimension_semantics<arbitrary>], iteration_bounds = array<i64: 4>, scalar_prefetch = 0 : i64, scratch_operands = 1 : i64, tpu.core_type = #tpu.core_type<tc>, window_params = [{transform_indices = @transform_0, window_bounds = array<i64: 1, 1058, 25>}, {pipeline_mode = #tpu.pipeline_mode<synchronous>, transform_indices = @transform_1, window_bounds = array<i64: 25, 32>}, {pipeline_mode = #tpu.pipeline_mode<synchronous>, transform_indices = @transform_2, window_bounds = array<i64: 1, 32>}, {pipeline_mode = #tpu.pipeline_mode<synchronous>, transform_indices = @transform_3, window_bounds = array<i64: 1, 32>}, {pipeline_mode = #tpu.pipeline_mode<synchronous>, transform_indices = @transform_4, window_bounds = array<i64: 1, 32>}, {pipeline_mode = #tpu.pipeline_mode<synchronous>, transform_indices = @transform_5, window_bounds = array<i64: 1058, 32>}]} {
    %c0_i32 = arith.constant 0 : i32
    %0 = arith.cmpi eq, %arg0, %c0_i32 : i32
    %1 = arith.extui %0 : i1 to i32
    %c0_i32_0 = arith.constant 0 : i32
    %2 = arith.cmpi ne, %1, %c0_i32_0 : i32
    scf.if %2 {
      %cst_10 = arith.constant 0xFF800000 : f32
      %13 = vector.broadcast %cst_10 : f32 to vector<1058x32xf32>
      %c0_11 = arith.constant 0 : index
      %c0_12 = arith.constant 0 : index
      %14 = vector.load %arg7[%c0_11, %c0_12] : memref<1058x32xf32, #tpu.memory_space<vmem>>, vector<1058x32xf32>
      tpu.vector_store %arg7[%c0_11, %c0_12], %13 {strides = array<i32>} : memref<1058x32xf32, #tpu.memory_space<vmem>>, vector<1058x32xf32>,
    } else {
    }
    %c0 = arith.constant 0 : index
    %c0_1 = arith.constant 0 : index
    %c0_2 = arith.constant 0 : index
    %3 = vector.load %arg1[%c0, %c0_1, %c0_2] : memref<1x1058x25xf32, #tpu.memory_space<vmem>>, vector<1x1058x25xf32>
    %4 = vector.shape_cast %3 : vector<1x1058x25xf32> to vector<1058x25xf32>
    %c0_3 = arith.constant 0 : index
    %c0_4 = arith.constant 0 : index
    %5 = vector.load %arg2[%c0_3, %c0_4] : memref<25x32xf32, #tpu.memory_space<vmem>>, vector<25x32xf32>
    %cst = arith.constant dense<0.000000e+00> : vector<1058x32xf32>
    %6 = tpu.matmul %4, %5, %cst {dimension_numbers = #tpu.dot_dimension_numbers<[1], [0], [0], [1], [0, 0, 1, 1], [], []>} : vector<1058x25xf32>, vector<25x32xf32>, vector<1058x32xf32> -> vector<1058x32xf32>
    %c0_5 = arith.constant 0 : index
    %c0_6 = arith.constant 0 : index
    %7 = vector.load %arg7[%c0_5, %c0_6] : memref<1058x32xf32, #tpu.memory_space<vmem>>, vector<1058x32xf32>
    %8 = arith.maximumf %7, %6 : vector<1058x32xf32>
    %c0_7 = arith.constant 0 : index
    %c0_8 = arith.constant 0 : index
    %9 = vector.load %arg7[%c0_7, %c0_8] : memref<1058x32xf32, #tpu.memory_space<vmem>>, vector<1058x32xf32>
    tpu.vector_store %arg7[%c0_7, %c0_8], %8 {strides = array<i32>} : memref<1058x32xf32, #tpu.memory_space<vmem>>, vector<1058x32xf32>,
    %c3_i32 = arith.constant 3 : i32
    %10 = arith.cmpi eq, %arg0, %c3_i32 : i32
    %11 = arith.extui %10 : i1 to i32
    %c0_i32_9 = arith.constant 0 : i32
    %12 = arith.cmpi ne, %11, %c0_i32_9 : i32
    scf.if %12 {
      %c0_10 = arith.constant 0 : index
      %c0_11 = arith.constant 0 : index
      %13 = vector.load %arg7[%c0_10, %c0_11] : memref<1058x32xf32, #tpu.memory_space<vmem>>, vector<1058x32xf32>
      %c0_12 = arith.constant 0 : index
      %c0_13 = arith.constant 0 : index
      %14 = vector.load %arg3[%c0_12, %c0_13] : memref<1x32xf32, #tpu.memory_space<vmem>>, vector<1x32xf32>
      %15 = vector.broadcast %14 : vector<1x32xf32> to vector<1058x32xf32>
      %16 = arith.addf %13, %15 : vector<1058x32xf32>
      %cst_14 = arith.constant 0.000000e+00 : f32
      %17 = vector.broadcast %cst_14 : f32 to vector<1058x32xf32>
      %18 = arith.maximumf %16, %17 : vector<1058x32xf32>
      %cst_15 = arith.constant dense<0.000000e+00> : vector<32xf32>
      %19 = vector.multi_reduction <add>, %18, %cst_15 [0] : vector<1058x32xf32> to vector<32xf32>
      %20 = vector.shape_cast %19 : vector<32xf32> to vector<1x32xf32>
      %cst_16 = arith.constant 9.45179606E-4 : f32
      %21 = vector.broadcast %cst_16 : f32 to vector<1x32xf32>
      %22 = arith.mulf %20, %21 : vector<1x32xf32>
      %23 = vector.broadcast %22 : vector<1x32xf32> to vector<1058x32xf32>
      %24 = arith.subf %18, %23 : vector<1058x32xf32>
      %25 = arith.mulf %24, %24 : vector<1058x32xf32>
      %cst_17 = arith.constant dense<0.000000e+00> : vector<32xf32>
      %26 = vector.multi_reduction <add>, %25, %cst_17 [0] : vector<1058x32xf32> to vector<32xf32>
      %27 = vector.shape_cast %26 : vector<32xf32> to vector<1x32xf32>
      %cst_18 = arith.constant 9.45179606E-4 : f32
      %28 = vector.broadcast %cst_18 : f32 to vector<1x32xf32>
      %29 = arith.mulf %27, %28 : vector<1x32xf32>
      %cst_19 = arith.constant 9.99999974E-6 : f32
      %30 = vector.broadcast %cst_19 : f32 to vector<1x32xf32>
      %31 = arith.addf %29, %30 : vector<1x32xf32>
      %32 = math.rsqrt %31 : vector<1x32xf32>
      %33 = vector.broadcast %32 : vector<1x32xf32> to vector<1058x32xf32>
      %34 = arith.mulf %24, %33 : vector<1058x32xf32>
      %c0_20 = arith.constant 0 : index
      %c0_21 = arith.constant 0 : index
      %35 = vector.load %arg4[%c0_20, %c0_21] : memref<1x32xf32, #tpu.memory_space<vmem>>, vector<1x32xf32>
      %36 = vector.broadcast %35 : vector<1x32xf32> to vector<1058x32xf32>
      %37 = arith.mulf %34, %36 : vector<1058x32xf32>
      %c0_22 = arith.constant 0 : index
      %c0_23 = arith.constant 0 : index
      %38 = vector.load %arg5[%c0_22, %c0_23] : memref<1x32xf32, #tpu.memory_space<vmem>>, vector<1x32xf32>
      %39 = vector.broadcast %38 : vector<1x32xf32> to vector<1058x32xf32>
      %40 = arith.addf %37, %39 : vector<1058x32xf32>
      %c0_24 = arith.constant 0 : index
      %c0_25 = arith.constant 0 : index
      %41 = vector.load %arg6[%c0_24, %c0_25] : memref<1058x32xf32, #tpu.memory_space<vmem>>, vector<1058x32xf32>
      tpu.vector_store %arg6[%c0_24, %c0_25], %40 {strides = array<i32>} : memref<1058x32xf32, #tpu.memory_space<vmem>>, vector<1058x32xf32>,
    } else {
    }
    return
  }
  func.func @transform_0(%arg0: i32) -> (i32, i32, i32) {
    %c0_i32 = arith.constant 0 : i32
    %c0_i32_0 = arith.constant 0 : i32
    %c0_i32_1 = arith.constant 0 : i32
    return %arg0, %c0_i32, %c0_i32_0 : i32, i32, i32
  }
  func.func @transform_1(%arg0: i32) -> (i32, i32) {
    %c0_i32 = arith.constant 0 : i32
    %c0_i32_0 = arith.constant 0 : i32
    %c0_i32_1 = arith.constant 0 : i32
    return %c0_i32, %c0_i32_0 : i32, i32
  }
  func.func @transform_2(%arg0: i32) -> (i32, i32) {
    %c0_i32 = arith.constant 0 : i32
    %c0_i32_0 = arith.constant 0 : i32
    %c0_i32_1 = arith.constant 0 : i32
    return %c0_i32, %c0_i32_0 : i32, i32
  }
  func.func @transform_3(%arg0: i32) -> (i32, i32) {
    %c0_i32 = arith.constant 0 : i32
    %c0_i32_0 = arith.constant 0 : i32
    %c0_i32_1 = arith.constant 0 : i32
    return %c0_i32, %c0_i32_0 : i32, i32
  }
  func.func @transform_4(%arg0: i32) -> (i32, i32) {
    %c0_i32 = arith.constant 0 : i32
    %c0_i32_0 = arith.constant 0 : i32
    %c0_i32_1 = arith.constant 0 : i32
    return %c0_i32, %c0_i32_0 : i32, i32
  }
  func.func @transform_5(%arg0: i32) -> (i32, i32) {
    %c0_i32 = arith.constant 0 : i32
    %c0_i32_0 = arith.constant 0 : i32
    %c0_i32_1 = arith.constant 0 : i32
    return %c0_i32, %c0_i32_0 : i32, i32
  }
}

module attributes {stable_mosaic.version = 11 : i64} {
  func.func @_stage_kernel(%arg0: i32, %arg1: memref<1x162x800xf32, #tpu.memory_space<vmem>>, %arg2: memref<800x64xf32, #tpu.memory_space<vmem>>, %arg3: memref<1x64xf32, #tpu.memory_space<vmem>>, %arg4: memref<1x64xf32, #tpu.memory_space<vmem>>, %arg5: memref<1x64xf32, #tpu.memory_space<vmem>>, %arg6: memref<162x64xf32, #tpu.memory_space<vmem>>, %arg7: memref<162x64xf32, #tpu.memory_space<vmem>>) attributes {dimension_semantics = [#tpu.dimension_semantics<arbitrary>], iteration_bounds = array<i64: 4>, scalar_prefetch = 0 : i64, scratch_operands = 1 : i64, tpu.core_type = #tpu.core_type<tc>, window_params = [{transform_indices = @transform_0, window_bounds = array<i64: 1, 162, 800>}, {pipeline_mode = #tpu.pipeline_mode<synchronous>, transform_indices = @transform_1, window_bounds = array<i64: 800, 64>}, {pipeline_mode = #tpu.pipeline_mode<synchronous>, transform_indices = @transform_2, window_bounds = array<i64: 1, 64>}, {pipeline_mode = #tpu.pipeline_mode<synchronous>, transform_indices = @transform_3, window_bounds = array<i64: 1, 64>}, {pipeline_mode = #tpu.pipeline_mode<synchronous>, transform_indices = @transform_4, window_bounds = array<i64: 1, 64>}, {pipeline_mode = #tpu.pipeline_mode<synchronous>, transform_indices = @transform_5, window_bounds = array<i64: 162, 64>}]} {
    %c0_i32 = arith.constant 0 : i32
    %0 = arith.cmpi eq, %arg0, %c0_i32 : i32
    %1 = arith.extui %0 : i1 to i32
    %c0_i32_0 = arith.constant 0 : i32
    %2 = arith.cmpi ne, %1, %c0_i32_0 : i32
    scf.if %2 {
      %cst_10 = arith.constant 0xFF800000 : f32
      %13 = vector.broadcast %cst_10 : f32 to vector<162x64xf32>
      %c0_11 = arith.constant 0 : index
      %c0_12 = arith.constant 0 : index
      %14 = vector.load %arg7[%c0_11, %c0_12] : memref<162x64xf32, #tpu.memory_space<vmem>>, vector<162x64xf32>
      tpu.vector_store %arg7[%c0_11, %c0_12], %13 {strides = array<i32>} : memref<162x64xf32, #tpu.memory_space<vmem>>, vector<162x64xf32>,
    } else {
    }
    %c0 = arith.constant 0 : index
    %c0_1 = arith.constant 0 : index
    %c0_2 = arith.constant 0 : index
    %3 = vector.load %arg1[%c0, %c0_1, %c0_2] : memref<1x162x800xf32, #tpu.memory_space<vmem>>, vector<1x162x800xf32>
    %4 = vector.shape_cast %3 : vector<1x162x800xf32> to vector<162x800xf32>
    %c0_3 = arith.constant 0 : index
    %c0_4 = arith.constant 0 : index
    %5 = vector.load %arg2[%c0_3, %c0_4] : memref<800x64xf32, #tpu.memory_space<vmem>>, vector<800x64xf32>
    %cst = arith.constant dense<0.000000e+00> : vector<162x64xf32>
    %6 = tpu.matmul %4, %5, %cst {dimension_numbers = #tpu.dot_dimension_numbers<[1], [0], [0], [1], [0, 0, 1, 1], [], []>} : vector<162x800xf32>, vector<800x64xf32>, vector<162x64xf32> -> vector<162x64xf32>
    %c0_5 = arith.constant 0 : index
    %c0_6 = arith.constant 0 : index
    %7 = vector.load %arg7[%c0_5, %c0_6] : memref<162x64xf32, #tpu.memory_space<vmem>>, vector<162x64xf32>
    %8 = arith.maximumf %7, %6 : vector<162x64xf32>
    %c0_7 = arith.constant 0 : index
    %c0_8 = arith.constant 0 : index
    %9 = vector.load %arg7[%c0_7, %c0_8] : memref<162x64xf32, #tpu.memory_space<vmem>>, vector<162x64xf32>
    tpu.vector_store %arg7[%c0_7, %c0_8], %8 {strides = array<i32>} : memref<162x64xf32, #tpu.memory_space<vmem>>, vector<162x64xf32>,
    %c3_i32 = arith.constant 3 : i32
    %10 = arith.cmpi eq, %arg0, %c3_i32 : i32
    %11 = arith.extui %10 : i1 to i32
    %c0_i32_9 = arith.constant 0 : i32
    %12 = arith.cmpi ne, %11, %c0_i32_9 : i32
    scf.if %12 {
      %c0_10 = arith.constant 0 : index
      %c0_11 = arith.constant 0 : index
      %13 = vector.load %arg7[%c0_10, %c0_11] : memref<162x64xf32, #tpu.memory_space<vmem>>, vector<162x64xf32>
      %c0_12 = arith.constant 0 : index
      %c0_13 = arith.constant 0 : index
      %14 = vector.load %arg3[%c0_12, %c0_13] : memref<1x64xf32, #tpu.memory_space<vmem>>, vector<1x64xf32>
      %15 = vector.broadcast %14 : vector<1x64xf32> to vector<162x64xf32>
      %16 = arith.addf %13, %15 : vector<162x64xf32>
      %cst_14 = arith.constant 0.000000e+00 : f32
      %17 = vector.broadcast %cst_14 : f32 to vector<162x64xf32>
      %18 = arith.maximumf %16, %17 : vector<162x64xf32>
      %cst_15 = arith.constant dense<0.000000e+00> : vector<64xf32>
      %19 = vector.multi_reduction <add>, %18, %cst_15 [0] : vector<162x64xf32> to vector<64xf32>
      %20 = vector.shape_cast %19 : vector<64xf32> to vector<1x64xf32>
      %cst_16 = arith.constant 0.00617283955 : f32
      %21 = vector.broadcast %cst_16 : f32 to vector<1x64xf32>
      %22 = arith.mulf %20, %21 : vector<1x64xf32>
      %23 = vector.broadcast %22 : vector<1x64xf32> to vector<162x64xf32>
      %24 = arith.subf %18, %23 : vector<162x64xf32>
      %25 = arith.mulf %24, %24 : vector<162x64xf32>
      %cst_17 = arith.constant dense<0.000000e+00> : vector<64xf32>
      %26 = vector.multi_reduction <add>, %25, %cst_17 [0] : vector<162x64xf32> to vector<64xf32>
      %27 = vector.shape_cast %26 : vector<64xf32> to vector<1x64xf32>
      %cst_18 = arith.constant 0.00617283955 : f32
      %28 = vector.broadcast %cst_18 : f32 to vector<1x64xf32>
      %29 = arith.mulf %27, %28 : vector<1x64xf32>
      %cst_19 = arith.constant 9.99999974E-6 : f32
      %30 = vector.broadcast %cst_19 : f32 to vector<1x64xf32>
      %31 = arith.addf %29, %30 : vector<1x64xf32>
      %32 = math.rsqrt %31 : vector<1x64xf32>
      %33 = vector.broadcast %32 : vector<1x64xf32> to vector<162x64xf32>
      %34 = arith.mulf %24, %33 : vector<162x64xf32>
      %c0_20 = arith.constant 0 : index
      %c0_21 = arith.constant 0 : index
      %35 = vector.load %arg4[%c0_20, %c0_21] : memref<1x64xf32, #tpu.memory_space<vmem>>, vector<1x64xf32>
      %36 = vector.broadcast %35 : vector<1x64xf32> to vector<162x64xf32>
      %37 = arith.mulf %34, %36 : vector<162x64xf32>
      %c0_22 = arith.constant 0 : index
      %c0_23 = arith.constant 0 : index
      %38 = vector.load %arg5[%c0_22, %c0_23] : memref<1x64xf32, #tpu.memory_space<vmem>>, vector<1x64xf32>
      %39 = vector.broadcast %38 : vector<1x64xf32> to vector<162x64xf32>
      %40 = arith.addf %37, %39 : vector<162x64xf32>
      %c0_24 = arith.constant 0 : index
      %c0_25 = arith.constant 0 : index
      %41 = vector.load %arg6[%c0_24, %c0_25] : memref<162x64xf32, #tpu.memory_space<vmem>>, vector<162x64xf32>
      tpu.vector_store %arg6[%c0_24, %c0_25], %40 {strides = array<i32>} : memref<162x64xf32, #tpu.memory_space<vmem>>, vector<162x64xf32>,
    } else {
    }
    return
  }
  func.func @transform_0(%arg0: i32) -> (i32, i32, i32) {
    %c0_i32 = arith.constant 0 : i32
    %c0_i32_0 = arith.constant 0 : i32
    %c0_i32_1 = arith.constant 0 : i32
    return %arg0, %c0_i32, %c0_i32_0 : i32, i32, i32
  }
  func.func @transform_1(%arg0: i32) -> (i32, i32) {
    %c0_i32 = arith.constant 0 : i32
    %c0_i32_0 = arith.constant 0 : i32
    %c0_i32_1 = arith.constant 0 : i32
    return %c0_i32, %c0_i32_0 : i32, i32
  }
  func.func @transform_2(%arg0: i32) -> (i32, i32) {
    %c0_i32 = arith.constant 0 : i32
    %c0_i32_0 = arith.constant 0 : i32
    %c0_i32_1 = arith.constant 0 : i32
    return %c0_i32, %c0_i32_0 : i32, i32
  }
  func.func @transform_3(%arg0: i32) -> (i32, i32) {
    %c0_i32 = arith.constant 0 : i32
    %c0_i32_0 = arith.constant 0 : i32
    %c0_i32_1 = arith.constant 0 : i32
    return %c0_i32, %c0_i32_0 : i32, i32
  }
  func.func @transform_4(%arg0: i32) -> (i32, i32) {
    %c0_i32 = arith.constant 0 : i32
    %c0_i32_0 = arith.constant 0 : i32
    %c0_i32_1 = arith.constant 0 : i32
    return %c0_i32, %c0_i32_0 : i32, i32
  }
  func.func @transform_5(%arg0: i32) -> (i32, i32) {
    %c0_i32 = arith.constant 0 : i32
    %c0_i32_0 = arith.constant 0 : i32
    %c0_i32_1 = arith.constant 0 : i32
    return %c0_i32, %c0_i32_0 : i32, i32
  }
}

module attributes {stable_mosaic.version = 11 : i64} {
  func.func @_stage_kernel(%arg0: i32, %arg1: memref<1x8x1600xf32, #tpu.memory_space<vmem>>, %arg2: memref<1600x128xf32, #tpu.memory_space<vmem>>, %arg3: memref<1x128xf32, #tpu.memory_space<vmem>>, %arg4: memref<1x128xf32, #tpu.memory_space<vmem>>, %arg5: memref<1x128xf32, #tpu.memory_space<vmem>>, %arg6: memref<8x128xf32, #tpu.memory_space<vmem>>, %arg7: memref<8x128xf32, #tpu.memory_space<vmem>>) attributes {dimension_semantics = [#tpu.dimension_semantics<arbitrary>], iteration_bounds = array<i64: 4>, scalar_prefetch = 0 : i64, scratch_operands = 1 : i64, tpu.core_type = #tpu.core_type<tc>, window_params = [{transform_indices = @transform_0, window_bounds = array<i64: 1, 8, 1600>}, {pipeline_mode = #tpu.pipeline_mode<synchronous>, transform_indices = @transform_1, window_bounds = array<i64: 1600, 128>}, {pipeline_mode = #tpu.pipeline_mode<synchronous>, transform_indices = @transform_2, window_bounds = array<i64: 1, 128>}, {pipeline_mode = #tpu.pipeline_mode<synchronous>, transform_indices = @transform_3, window_bounds = array<i64: 1, 128>}, {pipeline_mode = #tpu.pipeline_mode<synchronous>, transform_indices = @transform_4, window_bounds = array<i64: 1, 128>}, {pipeline_mode = #tpu.pipeline_mode<synchronous>, transform_indices = @transform_5, window_bounds = array<i64: 8, 128>}]} {
    %c0_i32 = arith.constant 0 : i32
    %0 = arith.cmpi eq, %arg0, %c0_i32 : i32
    %1 = arith.extui %0 : i1 to i32
    %c0_i32_0 = arith.constant 0 : i32
    %2 = arith.cmpi ne, %1, %c0_i32_0 : i32
    scf.if %2 {
      %cst_10 = arith.constant 0xFF800000 : f32
      %13 = vector.broadcast %cst_10 : f32 to vector<8x128xf32>
      %c0_11 = arith.constant 0 : index
      %c0_12 = arith.constant 0 : index
      %14 = vector.load %arg7[%c0_11, %c0_12] : memref<8x128xf32, #tpu.memory_space<vmem>>, vector<8x128xf32>
      tpu.vector_store %arg7[%c0_11, %c0_12], %13 {strides = array<i32>} : memref<8x128xf32, #tpu.memory_space<vmem>>, vector<8x128xf32>,
    } else {
    }
    %c0 = arith.constant 0 : index
    %c0_1 = arith.constant 0 : index
    %c0_2 = arith.constant 0 : index
    %3 = vector.load %arg1[%c0, %c0_1, %c0_2] : memref<1x8x1600xf32, #tpu.memory_space<vmem>>, vector<1x8x1600xf32>
    %4 = vector.shape_cast %3 : vector<1x8x1600xf32> to vector<8x1600xf32>
    %c0_3 = arith.constant 0 : index
    %c0_4 = arith.constant 0 : index
    %5 = vector.load %arg2[%c0_3, %c0_4] : memref<1600x128xf32, #tpu.memory_space<vmem>>, vector<1600x128xf32>
    %cst = arith.constant dense<0.000000e+00> : vector<8x128xf32>
    %6 = tpu.matmul %4, %5, %cst {dimension_numbers = #tpu.dot_dimension_numbers<[1], [0], [0], [1], [0, 0, 1, 1], [], []>} : vector<8x1600xf32>, vector<1600x128xf32>, vector<8x128xf32> -> vector<8x128xf32>
    %c0_5 = arith.constant 0 : index
    %c0_6 = arith.constant 0 : index
    %7 = vector.load %arg7[%c0_5, %c0_6] : memref<8x128xf32, #tpu.memory_space<vmem>>, vector<8x128xf32>
    %8 = arith.maximumf %7, %6 : vector<8x128xf32>
    %c0_7 = arith.constant 0 : index
    %c0_8 = arith.constant 0 : index
    %9 = vector.load %arg7[%c0_7, %c0_8] : memref<8x128xf32, #tpu.memory_space<vmem>>, vector<8x128xf32>
    tpu.vector_store %arg7[%c0_7, %c0_8], %8 {strides = array<i32>} : memref<8x128xf32, #tpu.memory_space<vmem>>, vector<8x128xf32>,
    %c3_i32 = arith.constant 3 : i32
    %10 = arith.cmpi eq, %arg0, %c3_i32 : i32
    %11 = arith.extui %10 : i1 to i32
    %c0_i32_9 = arith.constant 0 : i32
    %12 = arith.cmpi ne, %11, %c0_i32_9 : i32
    scf.if %12 {
      %c0_10 = arith.constant 0 : index
      %c0_11 = arith.constant 0 : index
      %13 = vector.load %arg7[%c0_10, %c0_11] : memref<8x128xf32, #tpu.memory_space<vmem>>, vector<8x128xf32>
      %c0_12 = arith.constant 0 : index
      %c0_13 = arith.constant 0 : index
      %14 = vector.load %arg3[%c0_12, %c0_13] : memref<1x128xf32, #tpu.memory_space<vmem>>, vector<1x128xf32>
      %15 = vector.broadcast %14 : vector<1x128xf32> to vector<8x128xf32>
      %16 = arith.addf %13, %15 : vector<8x128xf32>
      %cst_14 = arith.constant 0.000000e+00 : f32
      %17 = vector.broadcast %cst_14 : f32 to vector<8x128xf32>
      %18 = arith.maximumf %16, %17 : vector<8x128xf32>
      %cst_15 = arith.constant dense<0.000000e+00> : vector<128xf32>
      %19 = vector.multi_reduction <add>, %18, %cst_15 [0] : vector<8x128xf32> to vector<128xf32>
      %20 = vector.shape_cast %19 : vector<128xf32> to vector<1x128xf32>
      %cst_16 = arith.constant 1.250000e-01 : f32
      %21 = vector.broadcast %cst_16 : f32 to vector<1x128xf32>
      %22 = arith.mulf %20, %21 : vector<1x128xf32>
      %23 = vector.broadcast %22 : vector<1x128xf32> to vector<8x128xf32>
      %24 = arith.subf %18, %23 : vector<8x128xf32>
      %25 = arith.mulf %24, %24 : vector<8x128xf32>
      %cst_17 = arith.constant dense<0.000000e+00> : vector<128xf32>
      %26 = vector.multi_reduction <add>, %25, %cst_17 [0] : vector<8x128xf32> to vector<128xf32>
      %27 = vector.shape_cast %26 : vector<128xf32> to vector<1x128xf32>
      %cst_18 = arith.constant 1.250000e-01 : f32
      %28 = vector.broadcast %cst_18 : f32 to vector<1x128xf32>
      %29 = arith.mulf %27, %28 : vector<1x128xf32>
      %cst_19 = arith.constant 9.99999974E-6 : f32
      %30 = vector.broadcast %cst_19 : f32 to vector<1x128xf32>
      %31 = arith.addf %29, %30 : vector<1x128xf32>
      %32 = math.rsqrt %31 : vector<1x128xf32>
      %33 = vector.broadcast %32 : vector<1x128xf32> to vector<8x128xf32>
      %34 = arith.mulf %24, %33 : vector<8x128xf32>
      %c0_20 = arith.constant 0 : index
      %c0_21 = arith.constant 0 : index
      %35 = vector.load %arg4[%c0_20, %c0_21] : memref<1x128xf32, #tpu.memory_space<vmem>>, vector<1x128xf32>
      %36 = vector.broadcast %35 : vector<1x128xf32> to vector<8x128xf32>
      %37 = arith.mulf %34, %36 : vector<8x128xf32>
      %c0_22 = arith.constant 0 : index
      %c0_23 = arith.constant 0 : index
      %38 = vector.load %arg5[%c0_22, %c0_23] : memref<1x128xf32, #tpu.memory_space<vmem>>, vector<1x128xf32>
      %39 = vector.broadcast %38 : vector<1x128xf32> to vector<8x128xf32>
      %40 = arith.addf %37, %39 : vector<8x128xf32>
      %c0_24 = arith.constant 0 : index
      %c0_25 = arith.constant 0 : index
      %41 = vector.load %arg6[%c0_24, %c0_25] : memref<8x128xf32, #tpu.memory_space<vmem>>, vector<8x128xf32>
      tpu.vector_store %arg6[%c0_24, %c0_25], %40 {strides = array<i32>} : memref<8x128xf32, #tpu.memory_space<vmem>>, vector<8x128xf32>,
    } else {
    }
    return
  }
  func.func @transform_0(%arg0: i32) -> (i32, i32, i32) {
    %c0_i32 = arith.constant 0 : i32
    %c0_i32_0 = arith.constant 0 : i32
    %c0_i32_1 = arith.constant 0 : i32
    return %arg0, %c0_i32, %c0_i32_0 : i32, i32, i32
  }
  func.func @transform_1(%arg0: i32) -> (i32, i32) {
    %c0_i32 = arith.constant 0 : i32
    %c0_i32_0 = arith.constant 0 : i32
    %c0_i32_1 = arith.constant 0 : i32
    return %c0_i32, %c0_i32_0 : i32, i32
  }
  func.func @transform_2(%arg0: i32) -> (i32, i32) {
    %c0_i32 = arith.constant 0 : i32
    %c0_i32_0 = arith.constant 0 : i32
    %c0_i32_1 = arith.constant 0 : i32
    return %c0_i32, %c0_i32_0 : i32, i32
  }
  func.func @transform_3(%arg0: i32) -> (i32, i32) {
    %c0_i32 = arith.constant 0 : i32
    %c0_i32_0 = arith.constant 0 : i32
    %c0_i32_1 = arith.constant 0 : i32
    return %c0_i32, %c0_i32_0 : i32, i32
  }
  func.func @transform_4(%arg0: i32) -> (i32, i32) {
    %c0_i32 = arith.constant 0 : i32
    %c0_i32_0 = arith.constant 0 : i32
    %c0_i32_1 = arith.constant 0 : i32
    return %c0_i32, %c0_i32_0 : i32, i32
  }
  func.func @transform_5(%arg0: i32) -> (i32, i32) {
    %c0_i32 = arith.constant 0 : i32
    %c0_i32_0 = arith.constant 0 : i32
    %c0_i32_1 = arith.constant 0 : i32
    return %c0_i32, %c0_i32_0 : i32, i32
  }
}

module attributes {stable_mosaic.version = 11 : i64} {
  func.func @_fc_kernel(%arg0: memref<2x512xf32, #tpu.memory_space<vmem>>, %arg1: memref<512x512xf32, #tpu.memory_space<vmem>>, %arg2: memref<1x512xf32, #tpu.memory_space<vmem>>, %arg3: memref<512x128xf32, #tpu.memory_space<vmem>>, %arg4: memref<1x128xf32, #tpu.memory_space<vmem>>, %arg5: memref<2x128xf32, #tpu.memory_space<vmem>>) attributes {dimension_semantics = [], scalar_prefetch = 0 : i64, scratch_operands = 0 : i64, tpu.core_type = #tpu.core_type<tc>} {
    %c0 = arith.constant 0 : index
    %c0_0 = arith.constant 0 : index
    %0 = vector.load %arg0[%c0, %c0_0] : memref<2x512xf32, #tpu.memory_space<vmem>>, vector<2x512xf32>
    %c0_1 = arith.constant 0 : index
    %c0_2 = arith.constant 0 : index
    %1 = vector.load %arg1[%c0_1, %c0_2] : memref<512x512xf32, #tpu.memory_space<vmem>>, vector<512x512xf32>
    %cst = arith.constant dense<0.000000e+00> : vector<2x512xf32>
    %2 = tpu.matmul %0, %1, %cst {dimension_numbers = #tpu.dot_dimension_numbers<[1], [0], [0], [1], [0, 0, 1, 1], [], []>} : vector<2x512xf32>, vector<512x512xf32>, vector<2x512xf32> -> vector<2x512xf32>
    %c0_3 = arith.constant 0 : index
    %c0_4 = arith.constant 0 : index
    %3 = vector.load %arg2[%c0_3, %c0_4] : memref<1x512xf32, #tpu.memory_space<vmem>>, vector<1x512xf32>
    %4 = vector.broadcast %3 : vector<1x512xf32> to vector<2x512xf32>
    %5 = arith.addf %2, %4 : vector<2x512xf32>
    %cst_5 = arith.constant 0.000000e+00 : f32
    %6 = vector.broadcast %cst_5 : f32 to vector<2x512xf32>
    %7 = arith.maximumf %5, %6 : vector<2x512xf32>
    %c0_6 = arith.constant 0 : index
    %c0_7 = arith.constant 0 : index
    %8 = vector.load %arg3[%c0_6, %c0_7] : memref<512x128xf32, #tpu.memory_space<vmem>>, vector<512x128xf32>
    %cst_8 = arith.constant dense<0.000000e+00> : vector<2x128xf32>
    %9 = tpu.matmul %7, %8, %cst_8 {dimension_numbers = #tpu.dot_dimension_numbers<[1], [0], [0], [1], [0, 0, 1, 1], [], []>} : vector<2x512xf32>, vector<512x128xf32>, vector<2x128xf32> -> vector<2x128xf32>
    %c0_9 = arith.constant 0 : index
    %c0_10 = arith.constant 0 : index
    %10 = vector.load %arg4[%c0_9, %c0_10] : memref<1x128xf32, #tpu.memory_space<vmem>>, vector<1x128xf32>
    %11 = vector.broadcast %10 : vector<1x128xf32> to vector<2x128xf32>
    %12 = arith.addf %9, %11 : vector<2x128xf32>
    %c0_11 = arith.constant 0 : index
    %c0_12 = arith.constant 0 : index
    %13 = vector.load %arg5[%c0_11, %c0_12] : memref<2x128xf32, #tpu.memory_space<vmem>>, vector<2x128xf32>
    tpu.vector_store %arg5[%c0_11, %c0_12], %12 {strides = array<i32>} : memref<2x128xf32, #tpu.memory_space<vmem>>, vector<2x128xf32>,
    return
  }
}

</mosaic_0001>

<bundles_post_ra>
// kernel: net_forward.4
= control target key start
LH: loop header
LB: loop body
LE: loop exit
PB: predicated region body
PF: predicated region fallthrough
CT: control target
= control target key end

     0   :  { %10 = vsyncpa [#allocation4], 0  ;;  %s8909_s0 = inlined_call_operand.vmem [shape: f32[4,1058,25], index: 0, kind: input, shape index: {}]   ;;  %s8910_s1 = inlined_call_operand.vmem [shape: f32[25,32], index: 1, kind: input, shape index: {}]   ;;  %s8911_s2 = inlined_call_operand.hbm [shape: f32[1,32], index: 2, kind: input, shape index: {}]   ;;  %s8912_s3 = inlined_call_operand.hbm [shape: f32[1,32], index: 3, kind: input, shape index: {}]   ;;  %s8913_s4 = inlined_call_operand.hbm [shape: f32[1,32], index: 4, kind: input, shape index: {}]   ;;  %s8914_s5 = inlined_call_operand.vmem [shape: f32[1058,32], index: 5, kind: output, shape index: {}]  }
   0x1   :  { %11 = vsyncpa [#allocation6], 0  ;;  %s4781_s18 = smov 0  }
   0x2 LB: > { %s4787_s19 = sadd.s32 4294967295, %s4741_s18   ;;  %p3887_p0 = scmp.ge.s32.totalorder %s4741_s18, 1  ;;  %s4741_s18 = sphi %s4781_s18, %s17_s18  }
   0x3   : > { %p153_p1 = scmp.lt.s32.totalorder %s4741_s18, 5  ;;  %p8915_p3 = scmp.eq.s32.totalorder %s4787_s19, 0 }
   0x4   : > { %s4743_s21 = smov [#allocation5]   ;;  %s4744_s23 = smov [#allocation3]  }
   0x5   : > { %p4793_p4 = pnand %p3887_p0, %p153_p1  ;;  %s180_s22 = sshll.u32 %s4743_s21, 4  ;;  %s181_s22 = int_to_ptr.vmem [resolvable:$true] %s180_s22 }
   0x6   : > { %s169_s24 = sshll.u32 %s4744_s23, 4  ;;  %s4745_s25 = smov [#allocation7]   ;;  %s4805_s24 = int_to_ptr.vmem [resolvable:$true] %s169_s24 }
   0x7   : > { %s9162_s20 = scalar_select %p4793_p4, 1, 0 }
   0x8   : > { %p4606_p5 = pneg %p4793_p4  ;;  %s191_s26 = sshll.u32 %s4745_s25, 4  ;;  %s4807_s26 = int_to_ptr.vmem [resolvable:$true] %s191_s26 }
   0x9   : > { %s4643_s30 = scalar_lea.hbm %s8912_s3, 16 }
   0xa   : > { %p4801_p6 = pnand %p8915_p3, %p4606_p5  ;;  %p4644_p7 = scmp.ne.s32.totalorder %s8912_s3, %s4643_s30 }
   0xb   : > { %p4650_p11 = scmp.lt.u32.totalorder %s4643_s30, %s8912_s3 }
   0xc   : > { %p4817_p8 = pneg %p4801_p6 }
   0xe   : > { %p4646_p9 = pnand %p4817_p8, %p4644_p7 }
  0x10   : > { %p4647_p10 = pneg %p4646_p9 }
  0x12   : > { %p4652_p12 = pnand %p4650_p11, %p4647_p10 }
  0x14   : > { %4655 = shalt.err (!%p4652_p12)
}
  0x15   : > { %s4656_s11 = scalar_lea.vmem %s181_s22, 16  ;;  %s4663_s12 = scalar_lea.vmem %s181_s22, 32 }
  0x16   : > { %p4657_p13 = scmp.ne.s32.totalorder %s181_s22, %s4656_s11  ;;  %p4664_p5 = scmp.lt.s32.totalorder %s181_s22, %s181_s22 }
  0x17   : > { %p4665_p2 = scmp.lt.s32.totalorder %s4663_s12, %s4656_s11 }
  0x18   : > { %p4659_p0 = pnand %p4657_p13, %p4817_p8 }
  0x19   : > { %p4666_p3 = por %p4665_p2, %p4664_p5 }
  0x1a   : > { %p4660_p1 = pneg %p4659_p0 }
  0x1c   : > { %p4667_p4 = pnand %p4666_p3, %p4660_p1 }
  0x1e   : > { %4670 = shalt.err (!%p4667_p4)
}
  0x1f   : > { %4612 = dma.hbm_to_vmem [thread:$0]  (!%p4801_p6), %s8912_s3, 16, %s181_s22, [#allocation6]  }
  0x20   : > { %s4671_s17 = scalar_lea.hbm %s8911_s2, 16 }
  0x21   : > { %p4672_p7 = scmp.ne.s32.totalorder %s8911_s2, %s4671_s17  ;;  %p4678_p3 = scmp.lt.u32.totalorder %s4671_s17, %s8911_s2 }
  0x23   : > { %p4674_p9 = pnand %p4672_p7, %p4817_p8 }
  0x25   : > { %p4675_p2 = pneg %p4674_p9 }
  0x27   : > { %p4680_p4 = pnand %p4678_p3, %p4675_p2 }
  0x29   : > { %4683 = shalt.err (!%p4680_p4)
}
  0x2a   : > { %s4684_s22 = scalar_lea.vmem %s4805_s24, 16  ;;  %s4691_s29 = scalar_lea.vmem %s4805_s24, 32 }
  0x2b   : > { %p4685_p10 = scmp.ne.s32.totalorder %s4805_s24, %s4684_s22  ;;  %p4692_p13 = scmp.lt.s32.totalorder %s4805_s24, %s4805_s24 }
  0x2c   : > { %p4693_p0 = scmp.lt.s32.totalorder %s4691_s29, %s4684_s22 }
  0x2d   : > { %p4687_p11 = pnand %p4685_p10, %p4817_p8 }
  0x2e   : > { %p4694_p1 = por %p4693_p0, %p4692_p13 }
  0x2f   : > { %p4688_p12 = pneg %p4687_p11 }
  0x31   : > { %p4695_p5 = pnand %p4694_p1, %p4688_p12 }
  0x33   : > { %4698 = shalt.err (!%p4695_p5)
}
  0x34   : > { %4609 = dma.hbm_to_vmem [thread:$0]  (!%p4801_p6), %s8911_s2, 16, %s4805_s24, [#allocation4]  }
  0x35   : > { %s4699_s10 = scalar_lea.hbm %s8913_s4, 16 }
  0x36   : > { %p4700_p7 = scmp.ne.s32.totalorder %s8913_s4, %s4699_s10  ;;  %p4706_p3 = scmp.lt.u32.totalorder %s4699_s10, %s8913_s4 }
  0x38   : > { %p4702_p9 = pnand %p4700_p7, %p4817_p8 }
  0x3a   : > { %p4703_p2 = pneg %p4702_p9 }
  0x3c   : > { %p4708_p4 = pnand %p4706_p3, %p4703_p2 }
  0x3e   : > { %4711 = shalt.err (!%p4708_p4)
}
  0x3f   : > { %s4712_s24 = scalar_lea.vmem %s4807_s26, 16  ;;  %s4719_s15 = scalar_lea.vmem %s4807_s26, 32 }
  0x40   : > { %p4713_p10 = scmp.ne.s32.totalorder %s4807_s26, %s4712_s24  ;;  %p4720_p13 = scmp.lt.s32.totalorder %s4807_s26, %s4807_s26 }
  0x41   : > { %p4721_p0 = scmp.lt.s32.totalorder %s4719_s15, %s4712_s24 }
  0x42   : > { %p4715_p11 = pnand %p4713_p10, %p4817_p8 }
  0x43   : > { %p4722_p1 = por %p4721_p0, %p4720_p13 }
  0x44   : > { %p4716_p12 = pneg %p4715_p11 }
  0x46   : > { %p4723_p5 = pnand %p4722_p1, %p4716_p12 }
  0x48   : > { %4726 = shalt.err (!%p4723_p5)
}
  0x49   : > { %4615 = dma.hbm_to_vmem [thread:$0]  (!%p4801_p6), %s8913_s4, 16, %s4807_s26, [#allocation6]  }
  0x4a   : > { %p9165_p7 = scmp.ne.s32.totalorder %s9162_s20, 0 }
  0x4b   : > { %p9166_p8 = scmp.eq.s32.totalorder (!%p9165_p7), %s4787_s19, 0 }
  0x4c   : > { %212 = sbr.rel (%p9165_p7) target bundleno = 1347 (0x543), region = 40 }
  0x53   : > { %4732 = dma.done.wait (%p9166_p8), [#allocation4], 16   ;;  %p9167_p9 = pmov %p9166_p8 }
  0x54   : > { %p9168_p2 = pmov %p9166_p8 }
  0x55   : > { %4734 = vsyncadd (%p9167_p9), [#allocation4], 4294967280 }
  0x56   : > { %4736 = dma.done.wait (%p9168_p2), [#allocation6], 32   ;;  %p9169_p3 = pmov %p9168_p2 }
  0x57   : > { %p243_p4 = scmp.lt.s32.totalorder %s4787_s19, 3  ;;  %p9170_p6 = scmp.ne.s32.totalorder %s4787_s19, 0 }
  0x58   : > { %4738 = vsyncadd (%p9169_p3), [#allocation6], 4294967264  ;;  %vm252_vm0 = vcmask (!%p9170_p6), 261120   ;;  %vm385_vm1 = vcmask (!%p9170_p6), 254976   ;;  %v4746_v0 = vmov (!%p9170_p6), -inf  }
  0x59   : > { %s244_s27 = scalar_select %p243_p4, %s4787_s19, 3 }
  0x5a   : > { %251 = sbr.rel (%p9170_p6) target bundleno = 157 (0x9d), region = 56  ;;  %253 = vst.msk [vmem:[#allocation2] sm:$0xff] (!%p9170_p6), %vm252_vm0, %v4746_v0  ;;  %254 = vst.msk [vmem:[#allocation2 + $0x8] sm:$0xff] (!%p9170_p6), %vm252_vm0, %v4746_v0 }
  0x5b   : > { %s4593_s26 = smul.u32 1064, %s244_s27  ;;  %255 = vst.msk [vmem:[#allocation2 + $0x10] sm:$0xff] (!%p9170_p6), %vm252_vm0, %v4746_v0  ;;  %256 = vst.msk [vmem:[#allocation2 + $0x18] sm:$0xff] (!%p9170_p6), %vm252_vm0, %v4746_v0 }
  0x5c   : > { %257 = vst.msk [vmem:[#allocation2 + $0x20] sm:$0xff] (!%p9170_p6), %vm252_vm0, %v4746_v0  ;;  %258 = vst.msk [vmem:[#allocation2 + $0x28] sm:$0xff] (!%p9170_p6), %vm252_vm0, %v4746_v0 }
  0x5d   : > { %s4896_s21 = scalar_lea.vmem %s8909_s0, %s4593_s26  ;;  %259 = vst.msk [vmem:[#allocation2 + $0x30] sm:$0xff] (!%p9170_p6), %vm252_vm0, %v4746_v0  ;;  %260 = vst.msk [vmem:[#allocation2 + $0x38] sm:$0xff] (!%p9170_p6), %vm252_vm0, %v4746_v0 }
  0x5e   : > { %261 = vst.msk [vmem:[#allocation2 + $0x40] sm:$0xff] (!%p9170_p6), %vm252_vm0, %v4746_v0  ;;  %262 = vst.msk [vmem:[#allocation2 + $0x48] sm:$0xff] (!%p9170_p6), %vm252_vm0, %v4746_v0 }
  0x5f   : > { %263 = vst.msk [vmem:[#allocation2 + $0x50] sm:$0xff] (!%p9170_p6), %vm252_vm0, %v4746_v0  ;;  %264 = vst.msk [vmem:[#allocation2 + $0x58] sm:$0xff] (!%p9170_p6), %vm252_vm0, %v4746_v0 }
  0x60   : > { %265 = vst.msk [vmem:[#allocation2 + $0x60] sm:$0xff] (!%p9170_p6), %vm252_vm0, %v4746_v0  ;;  %266 = vst.msk [vmem:[#allocation2 + $0x68] sm:$0xff] (!%p9170_p6), %vm252_vm0, %v4746_v0 }
  0x61   : > { %267 = vst.msk [vmem:[#allocation2 + $0x70] sm:$0xff] %vm252_vm0, %v4746_v0  ;;  %268 = vst.msk [vmem:[#allocation2 + $0x78] sm:$0xff] %vm252_vm0, %v4746_v0 }
  0x62   : > { %269 = vst.msk [vmem:[#allocation2 + $0x80] sm:$0xff] %vm252_vm0, %v4746_v0  ;;  %270 = vst.msk [vmem:[#allocation2 + $0x88] sm:$0xff] %vm252_vm0, %v4746_v0 }
  0x63   : > { %271 = vst.msk [vmem:[#allocation2 + $0x90] sm:$0xff] %vm252_vm0, %v4746_v0  ;;  %272 = vst.msk [vmem:[#allocation2 + $0x98] sm:$0xff] %vm252_vm0, %v4746_v0 }
  0x64   : > { %273 = vst.msk [vmem:[#allocation2 + $0xa0] sm:$0xff] %vm252_vm0, %v4746_v0  ;;  %274 = vst.msk [vmem:[#allocation2 + $0xa8] sm:$0xff] %vm252_vm0, %v4746_v0 }
  0x65   : > { %275 = vst.msk [vmem:[#allocation2 + $0xb0] sm:$0xff] %vm252_vm0, %v4746_v0  ;;  %276 = vst.msk [vmem:[#allocation2 + $0xb8] sm:$0xff] %vm252_vm0, %v4746_v0 }
  0x66   : > { %277 = vst.msk [vmem:[#allocation2 + $0xc0] sm:$0xff] %vm252_vm0, %v4746_v0  ;;  %278 = vst.msk [vmem:[#allocation2 + $0xc8] sm:$0xff] %vm252_vm0, %v4746_v0 }
  0x67   : > { %279 = vst.msk [vmem:[#allocation2 + $0xd0] sm:$0xff] %vm252_vm0, %v4746_v0  ;;  %280 = vst.msk [vmem:[#allocation2 + $0xd8] sm:$0xff] %vm252_vm0, %v4746_v0 }
  0x68   : > { %281 = vst.msk [vmem:[#allocation2 + $0xe0] sm:$0xff] %vm252_vm0, %v4746_v0  ;;  %282 = vst.msk [vmem:[#allocation2 + $0xe8] sm:$0xff] %vm252_vm0, %v4746_v0 }
  0x69   : > { %283 = vst.msk [vmem:[#allocation2 + $0xf0] sm:$0xff] %vm252_vm0, %v4746_v0  ;;  %284 = vst.msk [vmem:[#allocation2 + $0xf8] sm:$0xff] %vm252_vm0, %v4746_v0 }
  0x6a   : > { %285 = vst.msk [vmem:[#allocation2 + $0x100] sm:$0xff] %vm252_vm0, %v4746_v0  ;;  %286 = vst.msk [vmem:[#allocation2 + $0x108] sm:$0xff] %vm252_vm0, %v4746_v0 }
  0x6b   : > { %287 = vst.msk [vmem:[#allocation2 + $0x110] sm:$0xff] %vm252_vm0, %v4746_v0  ;;  %288 = vst.msk [vmem:[#allocation2 + $0x118] sm:$0xff] %vm252_vm0, %v4746_v0 }
  0x6c   : > { %289 = vst.msk [vmem:[#allocation2 + $0x120] sm:$0xff] %vm252_vm0, %v4746_v0  ;;  %290 = vst.msk [vmem:[#allocation2 + $0x128] sm:$0xff] %vm252_vm0, %v4746_v0 }
  0x6d   : > { %291 = vst.msk [vmem:[#allocation2 + $0x130] sm:$0xff] %vm252_vm0, %v4746_v0  ;;  %292 = vst.msk [vmem:[#allocation2 + $0x138] sm:$0xff] %vm252_vm0, %v4746_v0 }
  0x6e   : > { %293 = vst.msk [vmem:[#allocation2 + $0x140] sm:$0xff] %vm252_vm0, %v4746_v0  ;;  %294 = vst.msk [vmem:[#allocation2 + $0x148] sm:$0xff] %vm252_vm0, %v4746_v0 }
  0x6f   : > { %295 = vst.msk [vmem:[#allocation2 + $0x150] sm:$0xff] %vm252_vm0, %v4746_v0  ;;  %296 = vst.msk [vmem:[#allocation2 + $0x158] sm:$0xff] %vm252_vm0, %v4746_v0 }
  0x70   : > { %297 = vst.msk [vmem:[#allocation2 + $0x160] sm:$0xff] %vm252_vm0, %v4746_v0  ;;  %298 = vst.msk [vmem:[#allocation2 + $0x168] sm:$0xff] %vm252_vm0, %v4746_v0 }
  0x71   : > { %299 = vst.msk [vmem:[#allocation2 + $0x170] sm:$0xff] %vm252_vm0, %v4746_v0  ;;  %300 = vst.msk [vmem:[#allocation2 + $0x178] sm:$0xff] %vm252_vm0, %v4746_v0 }
  0x72   : > { %301 = vst.msk [vmem:[#allocation2 + $0x180] sm:$0xff] %vm252_vm0, %v4746_v0  ;;  %302 = vst.msk [vmem:[#allocation2 + $0x188] sm:$0xff] %vm252_vm0, %v4746_v0 }
  0x73   : > { %303 = vst.msk [vmem:[#allocation2 + $0x190] sm:$0xff] %vm252_vm0, %v4746_v0  ;;  %304 = vst.msk [vmem:[#allocation2 + $0x198] sm:$0xff] %vm252_vm0, %v4746_v0 }
  0x74   : > { %305 = vst.msk [vmem:[#allocation2 + $0x1a0] sm:$0xff] %vm252_vm0, %v4746_v0  ;;  %306 = vst.msk [vmem:[#allocation2 + $0x1a8] sm:$0xff] %vm252_vm0, %v4746_v0 }
  0x75   : > { %307 = vst.msk [vmem:[#allocation2 + $0x1b0] sm:$0xff] %vm252_vm0, %v4746_v0  ;;  %308 = vst.msk [vmem:[#allocation2 + $0x1b8] sm:$0xff] %vm252_vm0, %v4746_v0 }
  0x76   : > { %309 = vst.msk [vmem:[#allocation2 + $0x1c0] sm:$0xff] %vm252_vm0, %v4746_v0  ;;  %310 = vst.msk [vmem:[#allocation2 + $0x1c8] sm:$0xff] %vm252_vm0, %v4746_v0 }
  0x77   : > { %311 = vst.msk [vmem:[#allocation2 + $0x1d0] sm:$0xff] %vm252_vm0, %v4746_v0  ;;  %312 = vst.msk [vmem:[#allocation2 + $0x1d8] sm:$0xff] %vm252_vm0, %v4746_v0 }
  0x78   : > { %313 = vst.msk [vmem:[#allocation2 + $0x1e0] sm:$0xff] %vm252_vm0, %v4746_v0  ;;  %314 = vst.msk [vmem:[#allocation2 + $0x1e8] sm:$0xff] %vm252_vm0, %v4746_v0 }
  0x79   : > { %315 = vst.msk [vmem:[#allocation2 + $0x1f0] sm:$0xff] %vm252_vm0, %v4746_v0  ;;  %316 = vst.msk [vmem:[#allocation2 + $0x1f8] sm:$0xff] %vm252_vm0, %v4746_v0 }
  0x7a   : > { %317 = vst.msk [vmem:[#allocation2 + $0x200] sm:$0xff] %vm252_vm0, %v4746_v0  ;;  %318 = vst.msk [vmem:[#allocation2 + $0x208] sm:$0xff] %vm252_vm0, %v4746_v0 }
  0x7b   : > { %319 = vst.msk [vmem:[#allocation2 + $0x210] sm:$0xff] %vm252_vm0, %v4746_v0  ;;  %320 = vst.msk [vmem:[#allocation2 + $0x218] sm:$0xff] %vm252_vm0, %v4746_v0 }
  0x7c   : > { %321 = vst.msk [vmem:[#allocation2 + $0x220] sm:$0xff] %vm252_vm0, %v4746_v0  ;;  %322 = vst.msk [vmem:[#allocation2 + $0x228] sm:$0xff] %vm252_vm0, %v4746_v0 }
  0x7d   : > { %323 = vst.msk [vmem:[#allocation2 + $0x230] sm:$0xff] %vm252_vm0, %v4746_v0  ;;  %324 = vst.msk [vmem:[#allocation2 + $0x238] sm:$0xff] %vm252_vm0, %v4746_v0 }
  0x7e   : > { %325 = vst.msk [vmem:[#allocation2 + $0x240] sm:$0xff] %vm252_vm0, %v4746_v0  ;;  %326 = vst.msk [vmem:[#allocation2 + $0x248] sm:$0xff] %vm252_vm0, %v4746_v0 }
  0x7f   : > { %327 = vst.msk [vmem:[#allocation2 + $0x250] sm:$0xff] %vm252_vm0, %v4746_v0  ;;  %328 = vst.msk [vmem:[#allocation2 + $0x258] sm:$0xff] %vm252_vm0, %v4746_v0 }
  0x80   : > { %329 = vst.msk [vmem:[#allocation2 + $0x260] sm:$0xff] %vm252_vm0, %v4746_v0  ;;  %330 = vst.msk [vmem:[#allocation2 + $0x268] sm:$0xff] %vm252_vm0, %v4746_v0 }
  0x81   : > { %331 = vst.msk [vmem:[#allocation2 + $0x270] sm:$0xff] %vm252_vm0, %v4746_v0  ;;  %332 = vst.msk [vmem:[#allocation2 + $0x278] sm:$0xff] %vm252_vm0, %v4746_v0 }
  0x82   : > { %333 = vst.msk [vmem:[#allocation2 + $0x280] sm:$0xff] %vm252_vm0, %v4746_v0  ;;  %334 = vst.msk [vmem:[#allocation2 + $0x288] sm:$0xff] %vm252_vm0, %v4746_v0 }
  0x83   : > { %335 = vst.msk [vmem:[#allocation2 + $0x290] sm:$0xff] %vm252_vm0, %v4746_v0  ;;  %336 = vst.msk [vmem:[#allocation2 + $0x298] sm:$0xff] %vm252_vm0, %v4746_v0 }
  0x84   : > { %337 = vst.msk [vmem:[#allocation2 + $0x2a0] sm:$0xff] %vm252_vm0, %v4746_v0  ;;  %338 = vst.msk [vmem:[#allocation2 + $0x2a8] sm:$0xff] %vm252_vm0, %v4746_v0 }
  0x85   : > { %339 = vst.msk [vmem:[#allocation2 + $0x2b0] sm:$0xff] %vm252_vm0, %v4746_v0  ;;  %340 = vst.msk [vmem:[#allocation2 + $0x2b8] sm:$0xff] %vm252_vm0, %v4746_v0 }
  0x86   : > { %341 = vst.msk [vmem:[#allocation2 + $0x2c0] sm:$0xff] %vm252_vm0, %v4746_v0  ;;  %342 = vst.msk [vmem:[#allocation2 + $0x2c8] sm:$0xff] %vm252_vm0, %v4746_v0 }
  0x87   : > { %343 = vst.msk [vmem:[#allocation2 + $0x2d0] sm:$0xff] %vm252_vm0, %v4746_v0  ;;  %344 = vst.msk [vmem:[#allocation2 + $0x2d8] sm:$0xff] %vm252_vm0, %v4746_v0 }
  0x88   : > { %345 = vst.msk [vmem:[#allocation2 + $0x2e0] sm:$0xff] %vm252_vm0, %v4746_v0  ;;  %346 = vst.msk [vmem:[#allocation2 + $0x2e8] sm:$0xff] %vm252_vm0, %v4746_v0 }
  0x89   : > { %347 = vst.msk [vmem:[#allocation2 + $0x2f0] sm:$0xff] %vm252_vm0, %v4746_v0  ;;  %348 = vst.msk [vmem:[#allocation2 + $0x2f8] sm:$0xff] %vm252_vm0, %v4746_v0 }
  0x8a   : > { %349 = vst.msk [vmem:[#allocation2 + $0x300] sm:$0xff] %vm252_vm0, %v4746_v0  ;;  %350 = vst.msk [vmem:[#allocation2 + $0x308] sm:$0xff] %vm252_vm0, %v4746_v0 }
  0x8b   : > { %351 = vst.msk [vmem:[#allocation2 + $0x310] sm:$0xff] %vm252_vm0, %v4746_v0  ;;  %352 = vst.msk [vmem:[#allocation2 + $0x318] sm:$0xff] %vm252_vm0, %v4746_v0 }
  0x8c   : > { %353 = vst.msk [vmem:[#allocation2 + $0x320] sm:$0xff] %vm252_vm0, %v4746_v0  ;;  %354 = vst.msk [vmem:[#allocation2 + $0x328] sm:$0xff] %vm252_vm0, %v4746_v0 }
  0x8d   : > { %355 = vst.msk [vmem:[#allocation2 + $0x330] sm:$0xff] %vm252_vm0, %v4746_v0  ;;  %356 = vst.msk [vmem:[#allocation2 + $0x338] sm:$0xff] %vm252_vm0, %v4746_v0 }
  0x8e   : > { %357 = vst.msk [vmem:[#allocation2 + $0x340] sm:$0xff] %vm252_vm0, %v4746_v0  ;;  %358 = vst.msk [vmem:[#allocation2 + $0x348] sm:$0xff] %vm252_vm0, %v4746_v0 }
  0x8f   : > { %359 = vst.msk [vmem:[#allocation2 + $0x350] sm:$0xff] %vm252_vm0, %v4746_v0  ;;  %360 = vst.msk [vmem:[#allocation2 + $0x358] sm:$0xff] %vm252_vm0, %v4746_v0 }
  0x90   : > { %361 = vst.msk [vmem:[#allocation2 + $0x360] sm:$0xff] %vm252_vm0, %v4746_v0  ;;  %362 = vst.msk [vmem:[#allocation2 + $0x368] sm:$0xff] %vm252_vm0, %v4746_v0 }
  0x91   : > { %363 = vst.msk [vmem:[#allocation2 + $0x370] sm:$0xff] %vm252_vm0, %v4746_v0  ;;  %364 = vst.msk [vmem:[#allocation2 + $0x378] sm:$0xff] %vm252_vm0, %v4746_v0 }
  0x92   : > { %365 = vst.msk [vmem:[#allocation2 + $0x380] sm:$0xff] %vm252_vm0, %v4746_v0  ;;  %366 = vst.msk [vmem:[#allocation2 + $0x388] sm:$0xff] %vm252_vm0, %v4746_v0 }
  0x93   : > { %367 = vst.msk [vmem:[#allocation2 + $0x390] sm:$0xff] %vm252_vm0, %v4746_v0  ;;  %368 = vst.msk [vmem:[#allocation2 + $0x398] sm:$0xff] %vm252_vm0, %v4746_v0 }
  0x94   : > { %369 = vst.msk [vmem:[#allocation2 + $0x3a0] sm:$0xff] %vm252_vm0, %v4746_v0  ;;  %370 = vst.msk [vmem:[#allocation2 + $0x3a8] sm:$0xff] %vm252_vm0, %v4746_v0 }
  0x95   : > { %371 = vst.msk [vmem:[#allocation2 + $0x3b0] sm:$0xff] %vm252_vm0, %v4746_v0  ;;  %372 = vst.msk [vmem:[#allocation2 + $0x3b8] sm:$0xff] %vm252_vm0, %v4746_v0 }
  0x96   : > { %373 = vst.msk [vmem:[#allocation2 + $0x3c0] sm:$0xff] %vm252_vm0, %v4746_v0  ;;  %374 = vst.msk [vmem:[#allocation2 + $0x3c8] sm:$0xff] %vm252_vm0, %v4746_v0 }
  0x97   : > { %375 = vst.msk [vmem:[#allocation2 + $0x3d0] sm:$0xff] %vm252_vm0, %v4746_v0  ;;  %376 = vst.msk [vmem:[#allocation2 + $0x3d8] sm:$0xff] %vm252_vm0, %v4746_v0 }
  0x98   : > { %377 = vst.msk [vmem:[#allocation2 + $0x3e0] sm:$0xff] %vm252_vm0, %v4746_v0  ;;  %378 = vst.msk [vmem:[#allocation2 + $0x3e8] sm:$0xff] %vm252_vm0, %v4746_v0 }
  0x99   : > { %379 = vst.msk [vmem:[#allocation2 + $0x3f0] sm:$0xff] %vm252_vm0, %v4746_v0  ;;  %380 = vst.msk [vmem:[#allocation2 + $0x3f8] sm:$0xff] %vm252_vm0, %v4746_v0 }
  0x9a   : > { %381 = vst.msk [vmem:[#allocation2 + $0x400] sm:$0xff] %vm252_vm0, %v4746_v0  ;;  %382 = vst.msk [vmem:[#allocation2 + $0x408] sm:$0xff] %vm252_vm0, %v4746_v0 }
  0x9b   : > { %383 = vst.msk [vmem:[#allocation2 + $0x410] sm:$0xff] %vm252_vm0, %v4746_v0  ;;  %384 = vst.msk [vmem:[#allocation2 + $0x418] sm:$0xff] %vm252_vm0, %v4746_v0 }
  0x9c   : > { %386 = vst.msk [vmem:[#allocation2 + $0x420] sm:$0x3] %vm385_vm1, %v4746_v0 }
  0x9d PF: > { %v520_v1 = vld [vmem:[%s8910_s1] sm:$0xff]  ;;  %v521_v2 = vld [vmem:[%s8910_s1 + $0x8] sm:$0xff]  ;;  %v522_v3 = vld [vmem:[%s8910_s1 + $0x10] sm:$0xff]  ;;  %vm924_vm2 = vcmask 1040384   ;;  %v4747_v4 = vmov 0.0|0.0   ;;  %vm4748_vm3 = vmmov 0  }
  0x9e   : > { %4582 = vmatprep.subr.bf16.mxu0 %v4747_v4  ;;  %v4583_v5 = vpack.c.bf16 %v521_v2, %v520_v1  ;;  %4589 = vmatprep.subr.bf16.mxu1 %v4747_v4  ;;  %v523_v6 = vld [vmem:[%s8910_s1 + $0x18] sm:$0x1]  ;;  %v4749_v7 = vmov 0.0   ;;  %vm4750_vm4 = vmmov 1   ;;  %v387_v9 = vld [vmem:[%s4896_s21] sm:$0xff]  ;;  %vm524_vm6 = vcmask 203776  }
  0x9f   : > { %4183 = vmatprep.mubr.msk.f32.mxu0 %vm4748_vm3, %v4749_v7  ;;  %4384 = vmatprep.mubr.msk.f32.mxu1 %vm4748_vm3, %v4749_v7  ;;  %v4586_v8 = vpack.c.bf16 %v523_v6, %v522_v3  ;;  %vm4587_vm5 = vmpackc.low %vm924_vm2, %vm4750_vm4  ;;  %v454_v10 = vld [vmem:[%s4896_s21 + $0x218] sm:$0xff]  ;;  %v388_v11 = vld [vmem:[%s4896_s21 + $0x8] sm:$0xff]  ;;  %vm1924_vm7 = vcmask 261120   ;;  %vm2057_vm8 = vcmask 254976   ;;  %p4032_p10 = scmp.ne.s32.totalorder %s4787_s19, 3 }
  0xa0   : > { %4584 = vmatpush3.bf16.msra.mxu0 %v4583_v5  ;;  %4591 = vmatpush3.bf16.msra.mxu1 %v4583_v5  ;;  %v455_v12 = vld [vmem:[%s4896_s21 + $0x220] sm:$0xff]  ;;  %v389_v13 = vld [vmem:[%s4896_s21 + $0x10] sm:$0xff]  ;;  %v456_v14 = vld [vmem:[%s4896_s21 + $0x228] sm:$0xff] }
  0xa1   : > { %4585 = vmatprep.subr.bf16.mxu0 %v4747_v4  ;;  %4590 = vmatprep.subr.bf16.mxu1 %v4747_v4  ;;  %v390_v15 = vld [vmem:[%s4896_s21 + $0x18] sm:$0xff]  ;;  %v457_v16 = vld [vmem:[%s4896_s21 + $0x230] sm:$0xff]  ;;  %v391_v17 = vld [vmem:[%s4896_s21 + $0x20] sm:$0xff] }
  0xa2   : > { %v458_v18 = vld [vmem:[%s4896_s21 + $0x238] sm:$0xff]  ;;  %v392_v19 = vld [vmem:[%s4896_s21 + $0x28] sm:$0xff]  ;;  %v459_v20 = vld [vmem:[%s4896_s21 + $0x240] sm:$0xff] }
  0xa3   : > { %v393_v21 = vld [vmem:[%s4896_s21 + $0x30] sm:$0xff]  ;;  %v460_v22 = vld [vmem:[%s4896_s21 + $0x248] sm:$0xff]  ;;  %v394_v23 = vld [vmem:[%s4896_s21 + $0x38] sm:$0xff] }
  0xa4   : > { %4588 = vmatpush3.bf16.msk.msra.mxu0 %vm4587_vm5, %v4586_v8  ;;  %4592 = vmatpush3.bf16.msk.msra.mxu1 %vm4587_vm5, %v4586_v8  ;;  %v461_v24 = vld [vmem:[%s4896_s21 + $0x250] sm:$0xff]  ;;  %v395_v25 = vld [vmem:[%s4896_s21 + $0x40] sm:$0xff]  ;;  %v462_v26 = vld [vmem:[%s4896_s21 + $0x258] sm:$0xff] }
  0xa5   : > { %v396_v27 = vld [vmem:[%s4896_s21 + $0x48] sm:$0xff]  ;;  %v463_v28 = vld [vmem:[%s4896_s21 + $0x260] sm:$0xff]  ;;  %v397_v29 = vld [vmem:[%s4896_s21 + $0x50] sm:$0xff] }
  0xa6   : > { %v464_v30 = vld [vmem:[%s4896_s21 + $0x268] sm:$0xff]  ;;  %v398_v31 = vld [vmem:[%s4896_s21 + $0x58] sm:$0xff]  ;;  %v465_v32 = vld [vmem:[%s4896_s21 + $0x270] sm:$0xff] }
  0xa7   : > { %4184 = vmatmul.mubr.msk.f32.vlgmr.msra.gmra.mrb[0].mxu0 %vm524_vm6, %v387_v9  ;;  %4385 = vmatmul.mubr.msk.f32.vlgmr.msra.gmra.mrb[0].mxu1 %vm524_vm6, %v454_v10  ;;  %v399_v33 = vld [vmem:[%s4896_s21 + $0x60] sm:$0xff]  ;;  %v466_v34 = vld [vmem:[%s4896_s21 + $0x278] sm:$0xff]  ;;  %v400_v35 = vld [vmem:[%s4896_s21 + $0x68] sm:$0xff] }
  0xa8   : > { %4186 = vmatprep.mubr.msk.f32.mxu0 %vm4748_vm3, %v4749_v7  ;;  %4387 = vmatprep.mubr.msk.f32.mxu1 %vm4748_vm3, %v4749_v7  ;;  %v467_v36 = vld [vmem:[%s4896_s21 + $0x280] sm:$0xff]  ;;  %v401_v37 = vld [vmem:[%s4896_s21 + $0x70] sm:$0xff]  ;;  %v468_v38 = vld [vmem:[%s4896_s21 + $0x288] sm:$0xff] }
  0xa9   : > { %v402_v39 = vld [vmem:[%s4896_s21 + $0x78] sm:$0xff]  ;;  %v469_v40 = vld [vmem:[%s4896_s21 + $0x290] sm:$0xff]  ;;  %v403_v41 = vld [vmem:[%s4896_s21 + $0x80] sm:$0xff] }
  0xaa   : > { %v470_v42 = vld [vmem:[%s4896_s21 + $0x298] sm:$0xff]  ;;  %v404_v43 = vld [vmem:[%s4896_s21 + $0x88] sm:$0xff]  ;;  %v471_v44 = vld [vmem:[%s4896_s21 + $0x2a0] sm:$0xff] }
  0xab   : > { %4187 = vmatmul.mubr.msk.f32.gmra.mrb[2].mxu0 %vm524_vm6, %v388_v11  ;;  %4388 = vmatmul.mubr.msk.f32.gmra.mrb[2].mxu1 %vm524_vm6, %v455_v12  ;;  %v405_v45 = vld [vmem:[%s4896_s21 + $0x90] sm:$0xff]  ;;  %v472_v46 = vld [vmem:[%s4896_s21 + $0x2a8] sm:$0xff]  ;;  %v406_v47 = vld [vmem:[%s4896_s21 + $0x98] sm:$0xff] }
  0xac   : > { %4189 = vmatprep.mubr.msk.f32.mxu0 %vm4748_vm3, %v4749_v7  ;;  %4390 = vmatprep.mubr.msk.f32.mxu1 %vm4748_vm3, %v4749_v7  ;;  %v473_v48 = vld [vmem:[%s4896_s21 + $0x2b0] sm:$0xff]  ;;  %v407_v49 = vld [vmem:[%s4896_s21 + $0xa0] sm:$0xff]  ;;  %v474_v50 = vld [vmem:[%s4896_s21 + $0x2b8] sm:$0xff] }
  0xad   : > { %v408_v51 = vld [vmem:[%s4896_s21 + $0xa8] sm:$0xff]  ;;  %v475_v52 = vld [vmem:[%s4896_s21 + $0x2c0] sm:$0xff]  ;;  %v409_v53 = vld [vmem:[%s4896_s21 + $0xb0] sm:$0xff] }
  0xae   : > { %v476_v54 = vld [vmem:[%s4896_s21 + $0x2c8] sm:$0xff]  ;;  %v410_v55 = vld [vmem:[%s4896_s21 + $0xb8] sm:$0xff]  ;;  %v477_v56 = vld [vmem:[%s4896_s21 + $0x2d0] sm:$0xff] }
  0xaf   : > { %4190 = vmatmul.mubr.msk.f32.gmra.mrb[4].mxu0 %vm524_vm6, %v389_v13  ;;  %4391 = vmatmul.mubr.msk.f32.gmra.mrb[4].mxu1 %vm524_vm6, %v456_v14  ;;  %v411_v57 = vld [vmem:[%s4896_s21 + $0xc0] sm:$0xff]  ;;  %v478_v58 = vld [vmem:[%s4896_s21 + $0x2d8] sm:$0xff]  ;;  %v412_v59 = vld [vmem:[%s4896_s21 + $0xc8] sm:$0xff] }
  0xb0   : > { %4192 = vmatprep.mubr.msk.f32.mxu0 %vm4748_vm3, %v4749_v7  ;;  %4393 = vmatprep.mubr.msk.f32.mxu1 %vm4748_vm3, %v4749_v7  ;;  %v479_v60 = vld [vmem:[%s4896_s21 + $0x2e0] sm:$0xff]  ;;  %v413_v61 = vld [vmem:[%s4896_s21 + $0xd0] sm:$0xff]  ;;  %v480_v62 = vld [vmem:[%s4896_s21 + $0x2e8] sm:$0xff] }
  0xb1   : > { %v414_v63 = vld [vmem:[%s4896_s21 + $0xd8] sm:$0xff]  ;;  %v481_v0 = vld [vmem:[%s4896_s21 + $0x2f0] sm:$0xff]  ;;  %v415_v1 = vld [vmem:[%s4896_s21 + $0xe0] sm:$0xff] }
  0xb2   : > { %v482_v2 = vld [vmem:[%s4896_s21 + $0x2f8] sm:$0xff]  ;;  %v416_v3 = vld [vmem:[%s4896_s21 + $0xe8] sm:$0xff]  ;;  %v483_v4 = vld [vmem:[%s4896_s21 + $0x300] sm:$0xff] }
  0xb3   : > { %4193 = vmatmul.mubr.msk.f32.gmra.mrb[6].mxu0 %vm524_vm6, %v390_v15  ;;  %4394 = vmatmul.mubr.msk.f32.gmra.mrb[6].mxu1 %vm524_vm6, %v457_v16  ;;  %v417_v5 = vld [vmem:[%s4896_s21 + $0xf0] sm:$0xff]  ;;  %v484_v6 = vld [vmem:[%s4896_s21 + $0x308] sm:$0xff]  ;;  %v418_v8 = vld [vmem:[%s4896_s21 + $0xf8] sm:$0xff] }
  0xb4   : > { %4195 = vmatprep.mubr.msk.f32.mxu0 %vm4748_vm3, %v4749_v7  ;;  %4396 = vmatprep.mubr.msk.f32.mxu1 %vm4748_vm3, %v4749_v7  ;;  %v485_v9 = vld [vmem:[%s4896_s21 + $0x310] sm:$0xff]  ;;  %v419_v10 = vld [vmem:[%s4896_s21 + $0x100] sm:$0xff]  ;;  %v486_v11 = vld [vmem:[%s4896_s21 + $0x318] sm:$0xff] }
  0xb5   : > { %v420_v12 = vld [vmem:[%s4896_s21 + $0x108] sm:$0xff]  ;;  %v487_v13 = vld [vmem:[%s4896_s21 + $0x320] sm:$0xff]  ;;  %v421_v14 = vld [vmem:[%s4896_s21 + $0x110] sm:$0xff] }
  0xb6   : > { %v488_v15 = vld [vmem:[%s4896_s21 + $0x328] sm:$0xff]  ;;  %v422_v16 = vld [vmem:[%s4896_s21 + $0x118] sm:$0xff] }
  0xb7   : > { %4196 = vmatmul.mubr.msk.f32.gmra.mrb[8].mxu0 %vm524_vm6, %v391_v17  ;;  %4397 = vmatmul.mubr.msk.f32.gmra.mrb[8].mxu1 %vm524_vm6, %v458_v18  ;;  %v489_v17 = vld [vmem:[%s4896_s21 + $0x330] sm:$0xff]  ;;  %v423_v18 = vld [vmem:[%s4896_s21 + $0x120] sm:$0xff] }
  0xb8   : > { %4198 = vmatprep.mubr.msk.f32.mxu0 %vm4748_vm3, %v4749_v7  ;;  %4399 = vmatprep.mubr.msk.f32.mxu1 %vm4748_vm3, %v4749_v7 }
  0xbb   : > { %4199 = vmatmul.mubr.msk.f32.gmra.mrb[10].mxu0 %vm524_vm6, %v392_v19  ;;  %4400 = vmatmul.mubr.msk.f32.gmra.mrb[10].mxu1 %vm524_vm6, %v459_v20  ;;  %v490_v19 = vld [vmem:[%s4896_s21 + $0x338] sm:$0xff]  ;;  %v424_v20 = vld [vmem:[%s4896_s21 + $0x128] sm:$0xff] }
  0xbc   : > { %4201 = vmatprep.mubr.msk.f32.mxu0 %vm4748_vm3, %v4749_v7  ;;  %4402 = vmatprep.mubr.msk.f32.mxu1 %vm4748_vm3, %v4749_v7 }
  0xbf   : > { %4202 = vmatmul.mubr.msk.f32.gmra.mrb[12].mxu0 %vm524_vm6, %v393_v21  ;;  %4403 = vmatmul.mubr.msk.f32.gmra.mrb[12].mxu1 %vm524_vm6, %v460_v22  ;;  %v491_v21 = vld [vmem:[%s4896_s21 + $0x340] sm:$0xff]  ;;  %v425_v22 = vld [vmem:[%s4896_s21 + $0x130] sm:$0xff] }
  0xc0   : > { %4204 = vmatprep.mubr.msk.f32.mxu0 %vm4748_vm3, %v4749_v7  ;;  %4405 = vmatprep.mubr.msk.f32.mxu1 %vm4748_vm3, %v4749_v7 }
  0xc3   : > { %4205 = vmatmul.mubr.msk.f32.gmra.mrb[14].mxu0 %vm524_vm6, %v394_v23  ;;  %4406 = vmatmul.mubr.msk.f32.gmra.mrb[14].mxu1 %vm524_vm6, %v461_v24  ;;  %v492_v23 = vld [vmem:[%s4896_s21 + $0x348] sm:$0xff]  ;;  %v426_v24 = vld [vmem:[%s4896_s21 + $0x138] sm:$0xff] }
  0xc4   : > { %4207 = vmatprep.mubr.msk.f32.mxu0 %vm4748_vm3, %v4749_v7  ;;  %4408 = vmatprep.mubr.msk.f32.mxu1 %vm4748_vm3, %v4749_v7 }
  0xc7   : > { %4208 = vmatmul.mubr.msk.f32.gmra.mrb[16].mxu0 %vm524_vm6, %v395_v25  ;;  %4409 = vmatmul.mubr.msk.f32.gmra.mrb[16].mxu1 %vm524_vm6, %v462_v26  ;;  %v493_v25 = vld [vmem:[%s4896_s21 + $0x350] sm:$0xff]  ;;  %v427_v26 = vld [vmem:[%s4896_s21 + $0x140] sm:$0xff] }
  0xc8   : > { %4210 = vmatprep.mubr.msk.f32.mxu0 %vm4748_vm3, %v4749_v7  ;;  %4411 = vmatprep.mubr.msk.f32.mxu1 %vm4748_vm3, %v4749_v7 }
  0xcb   : > { %4211 = vmatmul.mubr.msk.f32.gmra.mrb[18].mxu0 %vm524_vm6, %v396_v27  ;;  %4412 = vmatmul.mubr.msk.f32.gmra.mrb[18].mxu1 %vm524_vm6, %v463_v28  ;;  %v494_v27 = vld [vmem:[%s4896_s21 + $0x358] sm:$0xff]  ;;  %v428_v28 = vld [vmem:[%s4896_s21 + $0x148] sm:$0xff] }
  0xcc   : > { %4213 = vmatprep.mubr.msk.f32.mxu0 %vm4748_vm3, %v4749_v7  ;;  %4414 = vmatprep.mubr.msk.f32.mxu1 %vm4748_vm3, %v4749_v7 }
  0xcf   : > { %4214 = vmatmul.mubr.msk.f32.gmra.mrb[20].mxu0 %vm524_vm6, %v397_v29  ;;  %4415 = vmatmul.mubr.msk.f32.gmra.mrb[20].mxu1 %vm524_vm6, %v464_v30  ;;  %v495_v29 = vld [vmem:[%s4896_s21 + $0x360] sm:$0xff]  ;;  %v429_v30 = vld [vmem:[%s4896_s21 + $0x150] sm:$0xff] }
  0xd0   : > { %4216 = vmatprep.mubr.msk.f32.mxu0 %vm4748_vm3, %v4749_v7  ;;  %4417 = vmatprep.mubr.msk.f32.mxu1 %vm4748_vm3, %v4749_v7 }
  0xd3   : > { %4217 = vmatmul.mubr.msk.f32.gmra.mrb[22].mxu0 %vm524_vm6, %v398_v31  ;;  %4418 = vmatmul.mubr.msk.f32.gmra.mrb[22].mxu1 %vm524_vm6, %v465_v32  ;;  %v496_v31 = vld [vmem:[%s4896_s21 + $0x368] sm:$0xff]  ;;  %v430_v32 = vld [vmem:[%s4896_s21 + $0x158] sm:$0xff] }
  0xd4   : > { %4219 = vmatprep.mubr.msk.f32.mxu0 %vm4748_vm3, %v4749_v7  ;;  %4420 = vmatprep.mubr.msk.f32.mxu1 %vm4748_vm3, %v4749_v7 }
  0xd7   : > { %4220 = vmatmul.mubr.msk.f32.gmra.mrb[24].mxu0 %vm524_vm6, %v399_v33  ;;  %4421 = vmatmul.mubr.msk.f32.gmra.mrb[24].mxu1 %vm524_vm6, %v466_v34  ;;  %v497_v33 = vld [vmem:[%s4896_s21 + $0x370] sm:$0xff]  ;;  %v431_v34 = vld [vmem:[%s4896_s21 + $0x160] sm:$0xff] }
  0xd8   : > { %4222 = vmatprep.mubr.msk.f32.mxu0 %vm4748_vm3, %v4749_v7  ;;  %4423 = vmatprep.mubr.msk.f32.mxu1 %vm4748_vm3, %v4749_v7 }
  0xdb   : > { %4223 = vmatmul.mubr.msk.f32.gmra.mrb[26].mxu0 %vm524_vm6, %v400_v35  ;;  %4424 = vmatmul.mubr.msk.f32.gmra.mrb[26].mxu1 %vm524_vm6, %v467_v36  ;;  %v498_v35 = vld [vmem:[%s4896_s21 + $0x378] sm:$0xff]  ;;  %v432_v36 = vld [vmem:[%s4896_s21 + $0x168] sm:$0xff] }
  0xdc   : > { %4225 = vmatprep.mubr.msk.f32.mxu0 %vm4748_vm3, %v4749_v7  ;;  %4426 = vmatprep.mubr.msk.f32.mxu1 %vm4748_vm3, %v4749_v7 }
  0xdf   : > { %4226 = vmatmul.mubr.msk.f32.gmra.mrb[28].mxu0 %vm524_vm6, %v401_v37  ;;  %4427 = vmatmul.mubr.msk.f32.gmra.mrb[28].mxu1 %vm524_vm6, %v468_v38  ;;  %v499_v37 = vld [vmem:[%s4896_s21 + $0x380] sm:$0xff]  ;;  %v433_v38 = vld [vmem:[%s4896_s21 + $0x170] sm:$0xff] }
  0xe0   : > { %4228 = vmatprep.mubr.msk.f32.mxu0 %vm4748_vm3, %v4749_v7  ;;  %4429 = vmatprep.mubr.msk.f32.mxu1 %vm4748_vm3, %v4749_v7 }
  0xe3   : > { %4229 = vmatmul.mubr.msk.f32.gmra.mrb[30].mxu0 %vm524_vm6, %v402_v39  ;;  %4430 = vmatmul.mubr.msk.f32.gmra.mrb[30].mxu1 %vm524_vm6, %v469_v40  ;;  %v500_v39 = vld [vmem:[%s4896_s21 + $0x388] sm:$0xff]  ;;  %v434_v40 = vld [vmem:[%s4896_s21 + $0x178] sm:$0xff] }
  0xe4   : > { %4231 = vmatprep.mubr.msk.f32.mxu0 %vm4748_vm3, %v4749_v7  ;;  %4432 = vmatprep.mubr.msk.f32.mxu1 %vm4748_vm3, %v4749_v7 }
  0xe7   : > { %4232 = vmatmul.mubr.msk.f32.gmra.mrb[32].mxu0 %vm524_vm6, %v403_v41  ;;  %4433 = vmatmul.mubr.msk.f32.gmra.mrb[32].mxu1 %vm524_vm6, %v470_v42  ;;  %v501_v41 = vld [vmem:[%s4896_s21 + $0x390] sm:$0xff]  ;;  %v435_v42 = vld [vmem:[%s4896_s21 + $0x180] sm:$0xff] }
  0xe8   : > { %4234 = vmatprep.mubr.msk.f32.mxu0 %vm4748_vm3, %v4749_v7  ;;  %4435 = vmatprep.mubr.msk.f32.mxu1 %vm4748_vm3, %v4749_v7 }
  0xeb   : > { %4235 = vmatmul.mubr.msk.f32.gmra.mrb[34].mxu0 %vm524_vm6, %v404_v43  ;;  %4436 = vmatmul.mubr.msk.f32.gmra.mrb[34].mxu1 %vm524_vm6, %v471_v44  ;;  %v502_v43 = vld [vmem:[%s4896_s21 + $0x398] sm:$0xff]  ;;  %v436_v44 = vld [vmem:[%s4896_s21 + $0x188] sm:$0xff] }
  0xec   : > { %4237 = vmatprep.mubr.msk.f32.mxu0 %vm4748_vm3, %v4749_v7  ;;  %4438 = vmatprep.mubr.msk.f32.mxu1 %vm4748_vm3, %v4749_v7 }
  0xef   : > { %4238 = vmatmul.mubr.msk.f32.gmra.mrb[36].mxu0 %vm524_vm6, %v405_v45  ;;  %4439 = vmatmul.mubr.msk.f32.gmra.mrb[36].mxu1 %vm524_vm6, %v472_v46  ;;  %v503_v45 = vld [vmem:[%s4896_s21 + $0x3a0] sm:$0xff]  ;;  %v437_v46 = vld [vmem:[%s4896_s21 + $0x190] sm:$0xff] }
  0xf0   : > { %4240 = vmatprep.mubr.msk.f32.mxu0 %vm4748_vm3, %v4749_v7  ;;  %4441 = vmatprep.mubr.msk.f32.mxu1 %vm4748_vm3, %v4749_v7 }
  0xf3   : > { %4241 = vmatmul.mubr.msk.f32.gmra.mrb[38].mxu0 %vm524_vm6, %v406_v47  ;;  %4442 = vmatmul.mubr.msk.f32.gmra.mrb[38].mxu1 %vm524_vm6, %v473_v48  ;;  %v504_v47 = vld [vmem:[%s4896_s21 + $0x3a8] sm:$0xff]  ;;  %v438_v48 = vld [vmem:[%s4896_s21 + $0x198] sm:$0xff] }
  0xf4   : > { %4243 = vmatprep.mubr.msk.f32.mxu0 %vm4748_vm3, %v4749_v7  ;;  %4444 = vmatprep.mubr.msk.f32.mxu1 %vm4748_vm3, %v4749_v7 }
  0xf7   : > { %4244 = vmatmul.mubr.msk.f32.gmra.mrb[40].mxu0 %vm524_vm6, %v407_v49  ;;  %4445 = vmatmul.mubr.msk.f32.gmra.mrb[40].mxu1 %vm524_vm6, %v474_v50  ;;  %v505_v49 = vld [vmem:[%s4896_s21 + $0x3b0] sm:$0xff]  ;;  %v439_v50 = vld [vmem:[%s4896_s21 + $0x1a0] sm:$0xff] }
  0xf8   : > { %4246 = vmatprep.mubr.msk.f32.mxu0 %vm4748_vm3, %v4749_v7  ;;  %4447 = vmatprep.mubr.msk.f32.mxu1 %vm4748_vm3, %v4749_v7 }
  0xfb   : > { %4247 = vmatmul.mubr.msk.f32.gmra.mrb[42].mxu0 %vm524_vm6, %v408_v51  ;;  %4448 = vmatmul.mubr.msk.f32.gmra.mrb[42].mxu1 %vm524_vm6, %v475_v52  ;;  %v506_v51 = vld [vmem:[%s4896_s21 + $0x3b8] sm:$0xff]  ;;  %v1658_v52 = vld [vmem:[#allocation2] sm:$0xff] }
  0xfc   : > { %4249 = vmatprep.mubr.msk.f32.mxu0 %vm4748_vm3, %v4749_v7  ;;  %4450 = vmatprep.mubr.msk.f32.mxu1 %vm4748_vm3, %v4749_v7 }
  0xff   : > { %4250 = vmatmul.mubr.msk.f32.gmra.mrb[44].mxu0 %vm524_vm6, %v409_v53  ;;  %4451 = vmatmul.mubr.msk.f32.gmra.mrb[44].mxu1 %vm524_vm6, %v476_v54  ;;  %v440_v53 = vld [vmem:[%s4896_s21 + $0x1a8] sm:$0xff]  ;;  %v1725_v54 = vld [vmem:[#allocation2 + $0x218] sm:$0xff] }
 0x100   : > { %4252 = vmatprep.mubr.msk.f32.mxu0 %vm4748_vm3, %v4749_v7  ;;  %4453 = vmatprep.mubr.msk.f32.mxu1 %vm4748_vm3, %v4749_v7 }
 0x103   : > { %4253 = vmatmul.mubr.msk.f32.gmra.mrb[46].mxu0 %vm524_vm6, %v410_v55  ;;  %4454 = vmatmul.mubr.msk.f32.gmra.mrb[46].mxu1 %vm524_vm6, %v477_v56  ;;  %v507_v55 = vld [vmem:[%s4896_s21 + $0x3c0] sm:$0xff] }
 0x104   : > { %4255 = vmatprep.mubr.msk.f32.mxu0 %vm4748_vm3, %v4749_v7  ;;  %4456 = vmatprep.mubr.msk.f32.mxu1 %vm4748_vm3, %v4749_v7 }
 0x107   : > { %4256 = vmatmul.mubr.msk.f32.gmra.mrb[48].mxu0 %vm524_vm6, %v411_v57  ;;  %4457 = vmatmul.mubr.msk.f32.gmra.mrb[48].mxu1 %vm524_vm6, %v478_v58 }
 0x108   : > { %4258 = vmatprep.mubr.msk.f32.mxu0 %vm4748_vm3, %v4749_v7  ;;  %4459 = vmatprep.mubr.msk.f32.mxu1 %vm4748_vm3, %v4749_v7 }
 0x10b   : > { %4259 = vmatmul.mubr.msk.f32.gmra.mrb[50].mxu0 %vm524_vm6, %v412_v59  ;;  %4460 = vmatmul.mubr.msk.f32.gmra.mrb[50].mxu1 %vm524_vm6, %v479_v60 }
 0x10c   : > { %4261 = vmatprep.mubr.msk.f32.mxu0 %vm4748_vm3, %v4749_v7  ;;  %4462 = vmatprep.mubr.msk.f32.mxu1 %vm4748_vm3, %v4749_v7 }
 0x10f   : > { %4262 = vmatmul.mubr.msk.f32.gmra.mrb[52].mxu0 %vm524_vm6, %v413_v61  ;;  %4463 = vmatmul.mubr.msk.f32.gmra.mrb[52].mxu1 %vm524_vm6, %v480_v62  ;;  %v1659_v61 = vld [vmem:[#allocation2 + $0x8] sm:$0xff] }
 0x110   : > { %4264 = vmatprep.mubr.msk.f32.mxu0 %vm4748_vm3, %v4749_v7  ;;  %4465 = vmatprep.mubr.msk.f32.mxu1 %vm4748_vm3, %v4749_v7 }
 0x113   : > { %4265 = vmatmul.mubr.msk.f32.gmra.mrb[54].mxu0 %vm524_vm6, %v414_v63  ;;  %4466 = vmatmul.mubr.msk.f32.gmra.mrb[54].mxu1 %vm524_vm6, %v481_v0  ;;  %v441_v63 = vld [vmem:[%s4896_s21 + $0x1b0] sm:$0xff]  ;;  %v1726_v0 = vld [vmem:[#allocation2 + $0x220] sm:$0xff] }
 0x114   : > { %4267 = vmatprep.mubr.msk.f32.mxu0 %vm4748_vm3, %v4749_v7  ;;  %4468 = vmatprep.mubr.msk.f32.mxu1 %vm4748_vm3, %v4749_v7 }
 0x117   : > { %4268 = vmatmul.mubr.msk.f32.gmra.mrb[56].mxu0 %vm524_vm6, %v415_v1  ;;  %4469 = vmatmul.mubr.msk.f32.gmra.mrb[56].mxu1 %vm524_vm6, %v482_v2  ;;  %v508_v1 = vld [vmem:[%s4896_s21 + $0x3c8] sm:$0xff] }
 0x118   : > { %4270 = vmatprep.mubr.msk.f32.mxu0 %vm4748_vm3, %v4749_v7  ;;  %4471 = vmatprep.mubr.msk.f32.mxu1 %vm4748_vm3, %v4749_v7 }
 0x11b   : > { %4271 = vmatmul.mubr.msk.f32.gmra.mrb[58].mxu0 %vm524_vm6, %v416_v3  ;;  %4472 = vmatmul.mubr.msk.f32.gmra.mrb[58].mxu1 %vm524_vm6, %v483_v4 }
 0x11c   : > { %4273 = vmatprep.mubr.msk.f32.mxu0 %vm4748_vm3, %v4749_v7  ;;  %4474 = vmatprep.mubr.msk.f32.mxu1 %vm4748_vm3, %v4749_v7 }
 0x11f   : > { %4274 = vmatmul.mubr.msk.f32.gmra.mrb[60].mxu0 %vm524_vm6, %v417_v5  ;;  %4475 = vmatmul.mubr.msk.f32.gmra.mrb[60].mxu1 %vm524_vm6, %v484_v6 }
 0x120   : > { %4276 = vmatprep.mubr.msk.f32.mxu0 %vm4748_vm3, %v4749_v7  ;;  %4477 = vmatprep.mubr.msk.f32.mxu1 %vm4748_vm3, %v4749_v7 }
 0x123   : > { %4277 = vmatmul.mubr.msk.f32.gmra.mrb[62].mxu0 %vm524_vm6, %v418_v8  ;;  %4478 = vmatmul.mubr.msk.f32.gmra.mrb[62].mxu1 %vm524_vm6, %v485_v9  ;;  %v1660_v8 = vld [vmem:[#allocation2 + $0x10] sm:$0xff] }
 0x124   : > { %4279 = vmatprep.mubr.msk.f32.mxu0 %vm4748_vm3, %v4749_v7  ;;  %4480 = vmatprep.mubr.msk.f32.mxu1 %vm4748_vm3, %v4749_v7 }
 0x127   : > { %4280 = vmatmul.mubr.msk.f32.gmra.mrb[64].mxu0 %vm524_vm6, %v419_v10  ;;  %4481 = vmatmul.mubr.msk.f32.gmra.mrb[64].mxu1 %vm524_vm6, %v486_v11  ;;  %v442_v10 = vld [vmem:[%s4896_s21 + $0x1b8] sm:$0xff]  ;;  %v1727_v11 = vld [vmem:[#allocation2 + $0x228] sm:$0xff] }
 0x128   : > { %4282 = vmatprep.mubr.msk.f32.mxu0 %vm4748_vm3, %v4749_v7  ;;  %4483 = vmatprep.mubr.msk.f32.mxu1 %vm4748_vm3, %v4749_v7 }
 0x12b   : > { %4283 = vmatmul.mubr.msk.f32.gmra.mrb[66].mxu0 %vm524_vm6, %v420_v12  ;;  %4484 = vmatmul.mubr.msk.f32.gmra.mrb[66].mxu1 %vm524_vm6, %v487_v13  ;;  %v509_v12 = vld [vmem:[%s4896_s21 + $0x3d0] sm:$0xff] }
 0x12c   : > { %4285 = vmatprep.mubr.msk.f32.mxu0 %vm4748_vm3, %v4749_v7  ;;  %4486 = vmatprep.mubr.msk.f32.mxu1 %vm4748_vm3, %v4749_v7 }
 0x12f   : > { %4286 = vmatmul.mubr.msk.f32.gmra.mrb[68].mxu0 %vm524_vm6, %v421_v14  ;;  %4487 = vmatmul.mubr.msk.f32.gmra.mrb[68].mxu1 %vm524_vm6, %v488_v15 }
 0x130   : > { %4288 = vmatprep.mubr.msk.f32.mxu0 %vm4748_vm3, %v4749_v7  ;;  %4489 = vmatprep.mubr.msk.f32.mxu1 %vm4748_vm3, %v4749_v7 }
 0x133   : > { %4289 = vmatmul.mubr.msk.f32.gmra.mrb[70].mxu0 %vm524_vm6, %v422_v16  ;;  %4490 = vmatmul.mubr.msk.f32.gmra.mrb[70].mxu1 %vm524_vm6, %v489_v17 }
 0x134   : > { %4291 = vmatprep.mubr.msk.f32.mxu0 %vm4748_vm3, %v4749_v7  ;;  %4492 = vmatprep.mubr.msk.f32.mxu1 %vm4748_vm3, %v4749_v7 }
 0x137   : > { %4292 = vmatmul.mubr.msk.f32.gmra.mrb[72].mxu0 %vm524_vm6, %v423_v18  ;;  %4493 = vmatmul.mubr.msk.f32.gmra.mrb[72].mxu1 %vm524_vm6, %v490_v19  ;;  %v1661_v18 = vld [vmem:[#allocation2 + $0x18] sm:$0xff] }
 0x138   : > { %4294 = vmatprep.mubr.msk.f32.mxu0 %vm4748_vm3, %v4749_v7  ;;  %4495 = vmatprep.mubr.msk.f32.mxu1 %vm4748_vm3, %v4749_v7 }
 0x13b   : > { %4295 = vmatmul.mubr.msk.f32.gmra.mrb[74].mxu0 %vm524_vm6, %v424_v20  ;;  %4496 = vmatmul.mubr.msk.f32.gmra.mrb[74].mxu1 %vm524_vm6, %v491_v21  ;;  %v443_v20 = vld [vmem:[%s4896_s21 + $0x1c0] sm:$0xff]  ;;  %v1728_v21 = vld [vmem:[#allocation2 + $0x230] sm:$0xff] }
 0x13c   : > { %4297 = vmatprep.mubr.msk.f32.mxu0 %vm4748_vm3, %v4749_v7  ;;  %4498 = vmatprep.mubr.msk.f32.mxu1 %vm4748_vm3, %v4749_v7 }
 0x13f   : > { %4298 = vmatmul.mubr.msk.f32.gmra.mrb[76].mxu0 %vm524_vm6, %v425_v22  ;;  %4499 = vmatmul.mubr.msk.f32.gmra.mrb[76].mxu1 %vm524_vm6, %v492_v23  ;;  %v510_v22 = vld [vmem:[%s4896_s21 + $0x3d8] sm:$0xff] }
 0x140   : > { %4300 = vmatprep.mubr.msk.f32.mxu0 %vm4748_vm3, %v4749_v7  ;;  %4501 = vmatprep.mubr.msk.f32.mxu1 %vm4748_vm3, %v4749_v7 }
 0x143   : > { %4301 = vmatmul.mubr.msk.f32.gmra.mrb[78].mxu0 %vm524_vm6, %v426_v24  ;;  %4502 = vmatmul.mubr.msk.f32.gmra.mrb[78].mxu1 %vm524_vm6, %v493_v25 }
 0x144   : > { %4303 = vmatprep.mubr.msk.f32.mxu0 %vm4748_vm3, %v4749_v7  ;;  %4504 = vmatprep.mubr.msk.f32.mxu1 %vm4748_vm3, %v4749_v7 }
 0x147   : > { %4304 = vmatmul.mubr.msk.f32.gmra.mrb[80].mxu0 %vm524_vm6, %v427_v26  ;;  %4505 = vmatmul.mubr.msk.f32.gmra.mrb[80].mxu1 %vm524_vm6, %v494_v27 }
 0x148   : > { %4306 = vmatprep.mubr.msk.f32.mxu0 %vm4748_vm3, %v4749_v7  ;;  %4507 = vmatprep.mubr.msk.f32.mxu1 %vm4748_vm3, %v4749_v7 }
 0x14b   : > { %4307 = vmatmul.mubr.msk.f32.gmra.mrb[82].mxu0 %vm524_vm6, %v428_v28  ;;  %4508 = vmatmul.mubr.msk.f32.gmra.mrb[82].mxu1 %vm524_vm6, %v495_v29  ;;  %v1662_v28 = vld [vmem:[#allocation2 + $0x20] sm:$0xff] }
 0x14c   : > { %4309 = vmatprep.mubr.msk.f32.mxu0 %vm4748_vm3, %v4749_v7  ;;  %4510 = vmatprep.mubr.msk.f32.mxu1 %vm4748_vm3, %v4749_v7 }
 0x14f   : > { %4310 = vmatmul.mubr.msk.f32.gmra.mrb[84].mxu0 %vm524_vm6, %v429_v30  ;;  %4511 = vmatmul.mubr.msk.f32.gmra.mrb[84].mxu1 %vm524_vm6, %v496_v31  ;;  %v444_v30 = vld [vmem:[%s4896_s21 + $0x1c8] sm:$0xff]  ;;  %v1729_v31 = vld [vmem:[#allocation2 + $0x238] sm:$0xff] }
 0x150   : > { %4312 = vmatprep.mubr.msk.f32.mxu0 %vm4748_vm3, %v4749_v7  ;;  %4513 = vmatprep.mubr.msk.f32.mxu1 %vm4748_vm3, %v4749_v7 }
 0x153   : > { %4313 = vmatmul.mubr.msk.f32.gmra.mrb[86].mxu0 %vm524_vm6, %v430_v32  ;;  %4514 = vmatmul.mubr.msk.f32.gmra.mrb[86].mxu1 %vm524_vm6, %v497_v33  ;;  %v511_v32 = vld [vmem:[%s4896_s21 + $0x3e0] sm:$0xff] }
 0x154   : > { %4315 = vmatprep.mubr.msk.f32.mxu0 %vm4748_vm3, %v4749_v7  ;;  %4516 = vmatprep.mubr.msk.f32.mxu1 %vm4748_vm3, %v4749_v7 }
 0x157   : > { %4316 = vmatmul.mubr.msk.f32.gmra.mrb[88].mxu0 %vm524_vm6, %v431_v34  ;;  %4517 = vmatmul.mubr.msk.f32.gmra.mrb[88].mxu1 %vm524_vm6, %v498_v35 }
 0x158   : > { %4318 = vmatprep.mubr.msk.f32.mxu0 %vm4748_vm3, %v4749_v7  ;;  %4519 = vmatprep.mubr.msk.f32.mxu1 %vm4748_vm3, %v4749_v7 }
 0x15b   : > { %4319 = vmatmul.mubr.msk.f32.gmra.mrb[90].mxu0 %vm524_vm6, %v432_v36  ;;  %4520 = vmatmul.mubr.msk.f32.gmra.mrb[90].mxu1 %vm524_vm6, %v499_v37 }
 0x15c   : > { %4321 = vmatprep.mubr.msk.f32.mxu0 %vm4748_vm3, %v4749_v7  ;;  %4522 = vmatprep.mubr.msk.f32.mxu1 %vm4748_vm3, %v4749_v7 }
 0x15f   : > { %4322 = vmatmul.mubr.msk.f32.gmra.mrb[92].mxu0 %vm524_vm6, %v433_v38  ;;  %4523 = vmatmul.mubr.msk.f32.gmra.mrb[92].mxu1 %vm524_vm6, %v500_v39  ;;  %v1663_v38 = vld [vmem:[#allocation2 + $0x28] sm:$0xff] }
 0x160   : > { %4324 = vmatprep.mubr.msk.f32.mxu0 %vm4748_vm3, %v4749_v7  ;;  %4525 = vmatprep.mubr.msk.f32.mxu1 %vm4748_vm3, %v4749_v7 }
 0x163   : > { %4325 = vmatmul.mubr.msk.f32.gmra.mrb[94].mxu0 %vm524_vm6, %v434_v40  ;;  %4526 = vmatmul.mubr.msk.f32.gmra.mrb[94].mxu1 %vm524_vm6, %v501_v41  ;;  %v445_v40 = vld [vmem:[%s4896_s21 + $0x1d0] sm:$0xff]  ;;  %v1730_v41 = vld [vmem:[#allocation2 + $0x240] sm:$0xff] }
 0x164   : > { %4327 = vmatprep.mubr.msk.f32.mxu0 %vm4748_vm3, %v4749_v7  ;;  %4528 = vmatprep.mubr.msk.f32.mxu1 %vm4748_vm3, %v4749_v7 }
 0x167   : > { %4328 = vmatmul.mubr.msk.f32.gmra.mrb[96].mxu0 %vm524_vm6, %v435_v42  ;;  %4529 = vmatmul.mubr.msk.f32.gmra.mrb[96].mxu1 %vm524_vm6, %v502_v43  ;;  %v512_v42 = vld [vmem:[%s4896_s21 + $0x3e8] sm:$0xff] }
 0x168   : > { %4330 = vmatprep.mubr.msk.f32.mxu0 %vm4748_vm3, %v4749_v7  ;;  %4531 = vmatprep.mubr.msk.f32.mxu1 %vm4748_vm3, %v4749_v7 }
 0x16b   : > { %4331 = vmatmul.mubr.msk.f32.gmra.mrb[98].mxu0 %vm524_vm6, %v436_v44  ;;  %4532 = vmatmul.mubr.msk.f32.gmra.mrb[98].mxu1 %vm524_vm6, %v503_v45 }
 0x16c   : > { %4333 = vmatprep.mubr.msk.f32.mxu0 %vm4748_vm3, %v4749_v7  ;;  %4534 = vmatprep.mubr.msk.f32.mxu1 %vm4748_vm3, %v4749_v7 }
 0x16f   : > { %4334 = vmatmul.mubr.msk.f32.gmra.mrb[100].mxu0 %vm524_vm6, %v437_v46  ;;  %4535 = vmatmul.mubr.msk.f32.gmra.mrb[100].mxu1 %vm524_vm6, %v504_v47 }
 0x170   : > { %4336 = vmatprep.mubr.msk.f32.mxu0 %vm4748_vm3, %v4749_v7  ;;  %4537 = vmatprep.mubr.msk.f32.mxu1 %vm4748_vm3, %v4749_v7 }
 0x173   : > { %4337 = vmatmul.mubr.msk.f32.gmra.mrb[102].mxu0 %vm524_vm6, %v438_v48  ;;  %4538 = vmatmul.mubr.msk.f32.gmra.mrb[102].mxu1 %vm524_vm6, %v505_v49  ;;  %v1664_v48 = vld [vmem:[#allocation2 + $0x30] sm:$0xff] }
 0x174   : > { %4339 = vmatprep.mubr.msk.f32.mxu0 %vm4748_vm3, %v4749_v7  ;;  %4540 = vmatprep.mubr.msk.f32.mxu1 %vm4748_vm3, %v4749_v7 }
 0x177   : > { %4340 = vmatmul.mubr.msk.f32.gmra.mrb[104].mxu0 %vm524_vm6, %v439_v50  ;;  %4541 = vmatmul.mubr.msk.f32.gmra.mrb[104].mxu1 %vm524_vm6, %v506_v51  ;;  %v446_v50 = vld [vmem:[%s4896_s21 + $0x1d8] sm:$0xff]  ;;  %v1731_v51 = vld [vmem:[#allocation2 + $0x248] sm:$0xff] }
 0x178   : > { %4342 = vmatprep.mubr.msk.f32.mxu0 %vm4748_vm3, %v4749_v7  ;;  %4543 = vmatprep.mubr.msk.f32.mxu1 %vm4748_vm3, %v4749_v7 }
 0x17a   : > { %v994_v56 = vpop.f32.mrb[0].mxu0  ;;  %v1329_v57 = vpop.f32.mrb[0].mxu1 }
 0x17b   : > { %v1791_v58 = vmax.f32 %v1658_v52, %v994_v56  ;;  %v4185_v59 = vpop.f32.mrb[1].mxu0  ;;  %4343 = vmatmul.mubr.msk.f32.gmra.mrb[106].mxu0 %vm524_vm6, %v440_v53  ;;  %v1858_v60 = vmax.f32 %v1725_v54, %v1329_v57  ;;  %v4386_v62 = vpop.f32.mrb[1].mxu1  ;;  %4544 = vmatmul.mubr.msk.f32.gmra.mrb[106].mxu1 %vm524_vm6, %v507_v55  ;;  %v513_v52 = vld [vmem:[%s4896_s21 + $0x3f0] sm:$0xff] }
 0x17c   : > { %4345 = vmatprep.mubr.msk.f32.mxu0 %vm4748_vm3, %v4749_v7  ;;  %4546 = vmatprep.mubr.msk.f32.mxu1 %vm4748_vm3, %v4749_v7  ;;  %v514_v62 = vld [vmem:[%s4896_s21 + $0x3f8] sm:$0xff] }
 0x17d   : > { %1925 = vst.msk [vmem:[#allocation2] sm:$0xff] %vm1924_vm7, %v1791_v58  ;;  %1992 = vst.msk [vmem:[#allocation2 + $0x218] sm:$0xff] %vm1924_vm7, %v1858_v60  ;;  %v1665_v58 = vld [vmem:[#allocation2 + $0x38] sm:$0xff]  ;;  %v447_v60 = vld [vmem:[%s4896_s21 + $0x1e0] sm:$0xff] }
 0x17e   : > { %v999_v2 = vpop.f32.mrb[2].mxu0  ;;  %v1334_v3 = vpop.f32.mrb[2].mxu1 }
 0x17f   : > { %v1792_v4 = vmax.f32 %v1659_v61, %v999_v2  ;;  %v4188_v5 = vpop.f32.mrb[3].mxu0  ;;  %4346 = vmatmul.mubr.msk.f32.gmra.mrb[108].mxu0 %vm524_vm6, %v441_v63  ;;  %v1859_v6 = vmax.f32 %v1726_v0, %v1334_v3  ;;  %v4389_v9 = vpop.f32.mrb[3].mxu1  ;;  %4547 = vmatmul.mubr.msk.f32.gmra.mrb[108].mxu1 %vm524_vm6, %v508_v1  ;;  %v1732_v61 = vld [vmem:[#allocation2 + $0x250] sm:$0xff] }
 0x180   : > { %4348 = vmatprep.mubr.msk.f32.mxu0 %vm4748_vm3, %v4749_v7  ;;  %4549 = vmatprep.mubr.msk.f32.mxu1 %vm4748_vm3, %v4749_v7  ;;  %v515_v9 = vld [vmem:[%s4896_s21 + $0x400] sm:$0xff] }
 0x181   : > { %1926 = vst.msk [vmem:[#allocation2 + $0x8] sm:$0xff] %vm1924_vm7, %v1792_v4  ;;  %1993 = vst.msk [vmem:[#allocation2 + $0x220] sm:$0xff] %vm1924_vm7, %v1859_v6  ;;  %v1666_v4 = vld [vmem:[#allocation2 + $0x40] sm:$0xff]  ;;  %v448_v6 = vld [vmem:[%s4896_s21 + $0x1e8] sm:$0xff] }
 0x182   : > { %v1004_v13 = vpop.f32.mrb[4].mxu0  ;;  %v1339_v14 = vpop.f32.mrb[4].mxu1 }
 0x183   : > { %v1793_v15 = vmax.f32 %v1660_v8, %v1004_v13  ;;  %v4191_v16 = vpop.f32.mrb[5].mxu0  ;;  %4349 = vmatmul.mubr.msk.f32.gmra.mrb[110].mxu0 %vm524_vm6, %v442_v10  ;;  %v1860_v17 = vmax.f32 %v1727_v11, %v1339_v14  ;;  %v4392_v19 = vpop.f32.mrb[5].mxu1  ;;  %4550 = vmatmul.mubr.msk.f32.gmra.mrb[110].mxu1 %vm524_vm6, %v509_v12  ;;  %v1733_v8 = vld [vmem:[#allocation2 + $0x258] sm:$0xff] }
 0x184   : > { %4351 = vmatprep.mubr.msk.f32.mxu0 %vm4748_vm3, %v4749_v7  ;;  %4552 = vmatprep.mubr.msk.f32.mxu1 %vm4748_vm3, %v4749_v7  ;;  %v516_v19 = vld [vmem:[%s4896_s21 + $0x408] sm:$0xff] }
 0x185   : > { %1927 = vst.msk [vmem:[#allocation2 + $0x10] sm:$0xff] %vm1924_vm7, %v1793_v15  ;;  %1994 = vst.msk [vmem:[#allocation2 + $0x228] sm:$0xff] %vm1924_vm7, %v1860_v17  ;;  %v1667_v15 = vld [vmem:[#allocation2 + $0x48] sm:$0xff]  ;;  %v449_v17 = vld [vmem:[%s4896_s21 + $0x1f0] sm:$0xff] }
 0x186   : > { %v1009_v23 = vpop.f32.mrb[6].mxu0  ;;  %v1344_v24 = vpop.f32.mrb[6].mxu1 }
 0x187   : > { %v1794_v25 = vmax.f32 %v1661_v18, %v1009_v23  ;;  %v4194_v26 = vpop.f32.mrb[7].mxu0  ;;  %4352 = vmatmul.mubr.msk.f32.gmra.mrb[112].mxu0 %vm524_vm6, %v443_v20  ;;  %v1861_v27 = vmax.f32 %v1728_v21, %v1344_v24  ;;  %v4395_v29 = vpop.f32.mrb[7].mxu1  ;;  %4553 = vmatmul.mubr.msk.f32.gmra.mrb[112].mxu1 %vm524_vm6, %v510_v22  ;;  %v1734_v18 = vld [vmem:[#allocation2 + $0x260] sm:$0xff] }
 0x188   : > { %4354 = vmatprep.mubr.msk.f32.mxu0 %vm4748_vm3, %v4749_v7  ;;  %4555 = vmatprep.mubr.msk.f32.mxu1 %vm4748_vm3, %v4749_v7  ;;  %v517_v29 = vld [vmem:[%s4896_s21 + $0x410] sm:$0xff] }
 0x189   : > { %1928 = vst.msk [vmem:[#allocation2 + $0x18] sm:$0xff] %vm1924_vm7, %v1794_v25  ;;  %1995 = vst.msk [vmem:[#allocation2 + $0x230] sm:$0xff] %vm1924_vm7, %v1861_v27  ;;  %v1668_v25 = vld [vmem:[#allocation2 + $0x50] sm:$0xff]  ;;  %v450_v27 = vld [vmem:[%s4896_s21 + $0x1f8] sm:$0xff] }
 0x18a   : > { %v1014_v33 = vpop.f32.mrb[8].mxu0  ;;  %v1349_v34 = vpop.f32.mrb[8].mxu1 }
 0x18b   : > { %v1795_v35 = vmax.f32 %v1662_v28, %v1014_v33  ;;  %v4197_v36 = vpop.f32.mrb[9].mxu0  ;;  %4355 = vmatmul.mubr.msk.f32.gmra.mrb[114].mxu0 %vm524_vm6, %v444_v30  ;;  %v1862_v37 = vmax.f32 %v1729_v31, %v1349_v34  ;;  %v4398_v39 = vpop.f32.mrb[9].mxu1  ;;  %4556 = vmatmul.mubr.msk.f32.gmra.mrb[114].mxu1 %vm524_vm6, %v511_v32  ;;  %v1735_v28 = vld [vmem:[#allocation2 + $0x268] sm:$0xff] }
 0x18c   : > { %4357 = vmatprep.mubr.msk.f32.mxu0 %vm4748_vm3, %v4749_v7  ;;  %4558 = vmatprep.mubr.msk.f32.mxu1 %vm4748_vm3, %v4749_v7  ;;  %v518_v39 = vld [vmem:[%s4896_s21 + $0x418] sm:$0xff] }
 0x18d   : > { %1929 = vst.msk [vmem:[#allocation2 + $0x20] sm:$0xff] %vm1924_vm7, %v1795_v35  ;;  %1996 = vst.msk [vmem:[#allocation2 + $0x238] sm:$0xff] %vm1924_vm7, %v1862_v37  ;;  %v1669_v35 = vld [vmem:[#allocation2 + $0x58] sm:$0xff]  ;;  %v451_v37 = vld [vmem:[%s4896_s21 + $0x200] sm:$0xff] }
 0x18e   : > { %v1019_v43 = vpop.f32.mrb[10].mxu0  ;;  %v1354_v44 = vpop.f32.mrb[10].mxu1 }
 0x18f   : > { %v1796_v45 = vmax.f32 %v1663_v38, %v1019_v43  ;;  %v4200_v46 = vpop.f32.mrb[11].mxu0  ;;  %4358 = vmatmul.mubr.msk.f32.gmra.mrb[116].mxu0 %vm524_vm6, %v445_v40  ;;  %v1863_v47 = vmax.f32 %v1730_v41, %v1354_v44  ;;  %v4401_v49 = vpop.f32.mrb[11].mxu1  ;;  %4559 = vmatmul.mubr.msk.f32.gmra.mrb[116].mxu1 %vm524_vm6, %v512_v42  ;;  %v1736_v38 = vld [vmem:[#allocation2 + $0x270] sm:$0xff] }
 0x190   : > { %4360 = vmatprep.mubr.msk.f32.mxu0 %vm4748_vm3, %v4749_v7  ;;  %4561 = vmatprep.mubr.msk.f32.mxu1 %vm4748_vm3, %v4749_v7  ;;  %v519_v49 = vld [vmem:[%s4896_s21 + $0x420] sm:$0x3] }
 0x191   : > { %1930 = vst.msk [vmem:[#allocation2 + $0x28] sm:$0xff] %vm1924_vm7, %v1796_v45  ;;  %1997 = vst.msk [vmem:[#allocation2 + $0x240] sm:$0xff] %vm1924_vm7, %v1863_v47  ;;  %v1670_v45 = vld [vmem:[#allocation2 + $0x60] sm:$0xff]  ;;  %v452_v47 = vld [vmem:[%s4896_s21 + $0x208] sm:$0xff] }
 0x192   : > { %v1024_v53 = vpop.f32.mrb[12].mxu0  ;;  %v1359_v54 = vpop.f32.mrb[12].mxu1 }
 0x193   : > { %v1797_v55 = vmax.f32 %v1664_v48, %v1024_v53  ;;  %v4203_v56 = vpop.f32.mrb[13].mxu0  ;;  %4361 = vmatmul.mubr.msk.f32.gmra.mrb[118].mxu0 %vm524_vm6, %v446_v50  ;;  %v1864_v57 = vmax.f32 %v1731_v51, %v1359_v54  ;;  %v4404_v59 = vpop.f32.mrb[13].mxu1  ;;  %4562 = vmatmul.mubr.msk.f32.gmra.mrb[118].mxu1 %vm524_vm6, %v513_v52  ;;  %v1737_v48 = vld [vmem:[#allocation2 + $0x278] sm:$0xff] }
 0x194   : > { %4363 = vmatprep.mubr.msk.f32.mxu0 %vm4748_vm3, %v4749_v7  ;;  %4564 = vmatprep.mubr.msk.f32.mxu1 %vm4748_vm3, %v4749_v7  ;;  %v1671_v56 = vld [vmem:[#allocation2 + $0x68] sm:$0xff] }
 0x195   : > { %1931 = vst.msk [vmem:[#allocation2 + $0x30] sm:$0xff] %vm1924_vm7, %v1797_v55  ;;  %1998 = vst.msk [vmem:[#allocation2 + $0x248] sm:$0xff] %vm1924_vm7, %v1864_v57  ;;  %v453_v57 = vld [vmem:[%s4896_s21 + $0x210] sm:$0xff] }
 0x196   : > { %v1029_v63 = vpop.f32.mrb[14].mxu0  ;;  %v1364_v0 = vpop.f32.mrb[14].mxu1 }
 0x197   : > { %v1798_v1 = vmax.f32 %v1665_v58, %v1029_v63  ;;  %v4206_v2 = vpop.f32.mrb[15].mxu0  ;;  %4364 = vmatmul.mubr.msk.f32.gmra.mrb[120].mxu0 %vm524_vm6, %v447_v60  ;;  %v1865_v3 = vmax.f32 %v1732_v61, %v1364_v0  ;;  %v4407_v5 = vpop.f32.mrb[15].mxu1  ;;  %4565 = vmatmul.mubr.msk.f32.gmra.mrb[120].mxu1 %vm524_vm6, %v514_v62  ;;  %v1738_v58 = vld [vmem:[#allocation2 + $0x280] sm:$0xff] }
 0x198   : > { %4366 = vmatprep.mubr.msk.f32.mxu0 %vm4748_vm3, %v4749_v7  ;;  %4567 = vmatprep.mubr.msk.f32.mxu1 %vm4748_vm3, %v4749_v7  ;;  %v1739_v2 = vld [vmem:[#allocation2 + $0x288] sm:$0xff] }
 0x199   : > { %1932 = vst.msk [vmem:[#allocation2 + $0x38] sm:$0xff] %vm1924_vm7, %v1798_v1  ;;  %1999 = vst.msk [vmem:[#allocation2 + $0x250] sm:$0xff] %vm1924_vm7, %v1865_v3  ;;  %v1672_v1 = vld [vmem:[#allocation2 + $0x70] sm:$0xff] }
 0x19a   : > { %v1034_v10 = vpop.f32.mrb[16].mxu0  ;;  %v1369_v11 = vpop.f32.mrb[16].mxu1 }
 0x19b   : > { %v1799_v12 = vmax.f32 %v1666_v4, %v1034_v10  ;;  %v4209_v13 = vpop.f32.mrb[17].mxu0  ;;  %4367 = vmatmul.mubr.msk.f32.gmra.mrb[122].mxu0 %vm524_vm6, %v448_v6  ;;  %v1866_v14 = vmax.f32 %v1733_v8, %v1369_v11  ;;  %v4410_v16 = vpop.f32.mrb[17].mxu1  ;;  %4568 = vmatmul.mubr.msk.f32.gmra.mrb[122].mxu1 %vm524_vm6, %v515_v9  ;;  %v1673_v9 = vld [vmem:[#allocation2 + $0x78] sm:$0xff]  ;;  %v1740_v10 = vld [vmem:[#allocation2 + $0x290] sm:$0xff] }
 0x19c   : > { %4369 = vmatprep.mubr.msk.f32.mxu0 %vm4748_vm3, %v4749_v7  ;;  %4570 = vmatprep.mubr.msk.f32.mxu1 %vm4748_vm3, %v4749_v7 }
 0x19d   : > { %1933 = vst.msk [vmem:[#allocation2 + $0x40] sm:$0xff] %vm1924_vm7, %v1799_v12  ;;  %2000 = vst.msk [vmem:[#allocation2 + $0x258] sm:$0xff] %vm1924_vm7, %v1866_v14 }
 0x19e   : > { %v1039_v20 = vpop.f32.mrb[18].mxu0  ;;  %v1374_v21 = vpop.f32.mrb[18].mxu1 }
 0x19f   : > { %v1800_v22 = vmax.f32 %v1667_v15, %v1039_v20  ;;  %v4212_v23 = vpop.f32.mrb[19].mxu0  ;;  %4370 = vmatmul.mubr.msk.f32.gmra.mrb[124].mxu0 %vm524_vm6, %v449_v17  ;;  %v1867_v24 = vmax.f32 %v1734_v18, %v1374_v21  ;;  %v4413_v26 = vpop.f32.mrb[19].mxu1  ;;  %4571 = vmatmul.mubr.msk.f32.gmra.mrb[124].mxu1 %vm524_vm6, %v516_v19  ;;  %v1674_v17 = vld [vmem:[#allocation2 + $0x80] sm:$0xff]  ;;  %v1741_v18 = vld [vmem:[#allocation2 + $0x298] sm:$0xff] }
 0x1a0   : > { %4372 = vmatprep.mubr.msk.f32.mxu0 %vm4748_vm3, %v4749_v7  ;;  %4573 = vmatprep.mubr.msk.f32.mxu1 %vm4748_vm3, %v4749_v7  ;;  %v1742_v26 = vld [vmem:[#allocation2 + $0x2a0] sm:$0xff] }
 0x1a1   : > { %1934 = vst.msk [vmem:[#allocation2 + $0x48] sm:$0xff] %vm1924_vm7, %v1800_v22  ;;  %2001 = vst.msk [vmem:[#allocation2 + $0x260] sm:$0xff] %vm1924_vm7, %v1867_v24 }
 0x1a2   : > { %v1044_v30 = vpop.f32.mrb[20].mxu0  ;;  %v1379_v31 = vpop.f32.mrb[20].mxu1 }
 0x1a3   : > { %v1801_v32 = vmax.f32 %v1668_v25, %v1044_v30  ;;  %v4215_v33 = vpop.f32.mrb[21].mxu0  ;;  %4373 = vmatmul.mubr.msk.f32.gmra.mrb[126].mxu0 %vm524_vm6, %v450_v27  ;;  %v1868_v34 = vmax.f32 %v1735_v28, %v1379_v31  ;;  %v4416_v36 = vpop.f32.mrb[21].mxu1  ;;  %4574 = vmatmul.mubr.msk.f32.gmra.mrb[126].mxu1 %vm524_vm6, %v517_v29  ;;  %v1675_v25 = vld [vmem:[#allocation2 + $0x88] sm:$0xff] }
 0x1a4   : > { %4375 = vmatprep.mubr.msk.f32.mxu0 %vm4748_vm3, %v4749_v7  ;;  %4576 = vmatprep.mubr.msk.f32.mxu1 %vm4748_vm3, %v4749_v7  ;;  %v1676_v33 = vld [vmem:[#allocation2 + $0x90] sm:$0xff] }
 0x1a5   : > { %1935 = vst.msk [vmem:[#allocation2 + $0x50] sm:$0xff] %vm1924_vm7, %v1801_v32  ;;  %2002 = vst.msk [vmem:[#allocation2 + $0x268] sm:$0xff] %vm1924_vm7, %v1868_v34  ;;  %v1743_v34 = vld [vmem:[#allocation2 + $0x2a8] sm:$0xff] }
 0x1a6   : > { %v1049_v40 = vpop.f32.mrb[22].mxu0  ;;  %v1384_v41 = vpop.f32.mrb[22].mxu1 }
 0x1a7   : > { %v1802_v42 = vmax.f32 %v1669_v35, %v1049_v40  ;;  %v4218_v43 = vpop.f32.mrb[23].mxu0  ;;  %4376 = vmatmul.mubr.msk.f32.gmra.mrb[128].mxu0 %vm524_vm6, %v451_v37  ;;  %v1869_v44 = vmax.f32 %v1736_v38, %v1384_v41  ;;  %v4419_v46 = vpop.f32.mrb[23].mxu1  ;;  %4577 = vmatmul.mubr.msk.f32.gmra.mrb[128].mxu1 %vm524_vm6, %v518_v39  ;;  %v1677_v41 = vld [vmem:[#allocation2 + $0x98] sm:$0xff] }
 0x1a8   : > { %4378 = vmatprep.mubr.msk.f32.mxu0 %vm4748_vm3, %v4749_v7  ;;  %4579 = vmatprep.mubr.msk.f32.mxu1 %vm4748_vm3, %v4749_v7 }
 0x1a9   : > { %1936 = vst.msk [vmem:[#allocation2 + $0x58] sm:$0xff] %vm1924_vm7, %v1802_v42  ;;  %2003 = vst.msk [vmem:[#allocation2 + $0x270] sm:$0xff] %vm1924_vm7, %v1869_v44  ;;  %v1744_v42 = vld [vmem:[#allocation2 + $0x2b0] sm:$0xff] }
 0x1aa   : > { %v1054_v50 = vpop.f32.mrb[24].mxu0  ;;  %v1389_v51 = vpop.f32.mrb[24].mxu1 }
 0x1ab   : > { %v1803_v52 = vmax.f32 %v1670_v45, %v1054_v50  ;;  %v4221_v53 = vpop.f32.mrb[25].mxu0  ;;  %4379 = vmatmul.mubr.msk.f32.gmra.mrb[130].mxu0 %vm524_vm6, %v452_v47  ;;  %v1870_v54 = vmax.f32 %v1737_v48, %v1389_v51  ;;  %v4422_v55 = vpop.f32.mrb[25].mxu1  ;;  %4580 = vmatmul.mubr.msk.f32.gmra.mrb[130].mxu1 %vm524_vm6, %v519_v49  ;;  %v1678_v49 = vld [vmem:[#allocation2 + $0xa0] sm:$0xff]  ;;  %v1745_v50 = vld [vmem:[#allocation2 + $0x2b8] sm:$0xff] }
 0x1ac   : > { %4381 = vmatprep.mubr.msk.f32.mxu0 %vm4748_vm3, %v4749_v7 }
 0x1ad   : > { %1937 = vst.msk [vmem:[#allocation2 + $0x60] sm:$0xff] %vm1924_vm7, %v1803_v52  ;;  %2004 = vst.msk [vmem:[#allocation2 + $0x278] sm:$0xff] %vm1924_vm7, %v1870_v54 }
 0x1ae   : > { %v1059_v59 = vpop.f32.mrb[26].mxu0  ;;  %v1394_v60 = vpop.f32.mrb[26].mxu1 }
 0x1af   : > { %v1804_v61 = vmax.f32 %v1671_v56, %v1059_v59  ;;  %v4224_v62 = vpop.f32.mrb[27].mxu0  ;;  %4382 = vmatmul.mubr.msk.f32.gmra.mrb[132].mxu0 %vm524_vm6, %v453_v57  ;;  %v1871_v63 = vmax.f32 %v1738_v58, %v1394_v60  ;;  %v4425_v0 = vpop.f32.mrb[27].mxu1  ;;  %v1679_v57 = vld [vmem:[#allocation2 + $0xa8] sm:$0xff]  ;;  %v1746_v58 = vld [vmem:[#allocation2 + $0x2c0] sm:$0xff] }
 0x1b1   : > { %1938 = vst.msk [vmem:[#allocation2 + $0x68] sm:$0xff] %vm1924_vm7, %v1804_v61  ;;  %2005 = vst.msk [vmem:[#allocation2 + $0x280] sm:$0xff] %vm1924_vm7, %v1871_v63 }
 0x1b2   : > { %v1064_v7 = vpop.f32.mrb[28].mxu0  ;;  %v1399_v3 = vpop.f32.mrb[28].mxu1 }
 0x1b3   : > { %v1805_v4 = vmax.f32 %v1672_v1, %v1064_v7  ;;  %v4227_v5 = vpop.f32.mrb[29].mxu0  ;;  %v1872_v6 = vmax.f32 %v1739_v2, %v1399_v3  ;;  %v4428_v8 = vpop.f32.mrb[29].mxu1  ;;  %v1680_v1 = vld [vmem:[#allocation2 + $0xb0] sm:$0xff]  ;;  %v1747_v2 = vld [vmem:[#allocation2 + $0x2c8] sm:$0xff] }
 0x1b5   : > { %1939 = vst.msk [vmem:[#allocation2 + $0x70] sm:$0xff] %vm1924_vm7, %v1805_v4  ;;  %2006 = vst.msk [vmem:[#allocation2 + $0x288] sm:$0xff] %vm1924_vm7, %v1872_v6 }
 0x1b6   : > { %v1069_v11 = vpop.f32.mrb[30].mxu0  ;;  %v1404_v12 = vpop.f32.mrb[30].mxu1 }
 0x1b7   : > { %v1806_v13 = vmax.f32 %v1673_v9, %v1069_v11  ;;  %v4230_v14 = vpop.f32.mrb[31].mxu0  ;;  %v1873_v15 = vmax.f32 %v1740_v10, %v1404_v12  ;;  %v4431_v16 = vpop.f32.mrb[31].mxu1  ;;  %v1681_v9 = vld [vmem:[#allocation2 + $0xb8] sm:$0xff]  ;;  %v1748_v10 = vld [vmem:[#allocation2 + $0x2d0] sm:$0xff] }
 0x1b9   : > { %1940 = vst.msk [vmem:[#allocation2 + $0x78] sm:$0xff] %vm1924_vm7, %v1806_v13  ;;  %2007 = vst.msk [vmem:[#allocation2 + $0x290] sm:$0xff] %vm1924_vm7, %v1873_v15 }
 0x1ba   : > { %v1074_v19 = vpop.f32.mrb[32].mxu0  ;;  %v1409_v20 = vpop.f32.mrb[32].mxu1 }
 0x1bb   : > { %v1807_v21 = vmax.f32 %v1674_v17, %v1074_v19  ;;  %v4233_v22 = vpop.f32.mrb[33].mxu0  ;;  %v1874_v23 = vmax.f32 %v1741_v18, %v1409_v20  ;;  %v4434_v24 = vpop.f32.mrb[33].mxu1  ;;  %v1682_v17 = vld [vmem:[#allocation2 + $0xc0] sm:$0xff]  ;;  %v1749_v18 = vld [vmem:[#allocation2 + $0x2d8] sm:$0xff] }
 0x1bd   : > { %1941 = vst.msk [vmem:[#allocation2 + $0x80] sm:$0xff] %vm1924_vm7, %v1807_v21  ;;  %2008 = vst.msk [vmem:[#allocation2 + $0x298] sm:$0xff] %vm1924_vm7, %v1874_v23 }
 0x1be   : > { %v1079_v27 = vpop.f32.mrb[34].mxu0  ;;  %v1414_v28 = vpop.f32.mrb[34].mxu1 }
 0x1bf   : > { %v1808_v29 = vmax.f32 %v1675_v25, %v1079_v27  ;;  %v4236_v30 = vpop.f32.mrb[35].mxu0  ;;  %v1875_v31 = vmax.f32 %v1742_v26, %v1414_v28  ;;  %v4437_v32 = vpop.f32.mrb[35].mxu1  ;;  %v1683_v25 = vld [vmem:[#allocation2 + $0xc8] sm:$0xff]  ;;  %v1750_v26 = vld [vmem:[#allocation2 + $0x2e0] sm:$0xff] }
 0x1c1   : > { %1942 = vst.msk [vmem:[#allocation2 + $0x88] sm:$0xff] %vm1924_vm7, %v1808_v29  ;;  %2009 = vst.msk [vmem:[#allocation2 + $0x2a0] sm:$0xff] %vm1924_vm7, %v1875_v31 }
 0x1c2   : > { %v1084_v35 = vpop.f32.mrb[36].mxu0  ;;  %v1419_v36 = vpop.f32.mrb[36].mxu1 }
 0x1c3   : > { %v1809_v37 = vmax.f32 %v1676_v33, %v1084_v35  ;;  %v4239_v38 = vpop.f32.mrb[37].mxu0  ;;  %v1876_v39 = vmax.f32 %v1743_v34, %v1419_v36  ;;  %v4440_v40 = vpop.f32.mrb[37].mxu1  ;;  %v1684_v33 = vld [vmem:[#allocation2 + $0xd0] sm:$0xff]  ;;  %v1751_v34 = vld [vmem:[#allocation2 + $0x2e8] sm:$0xff] }
 0x1c5   : > { %1943 = vst.msk [vmem:[#allocation2 + $0x90] sm:$0xff] %vm1924_vm7, %v1809_v37  ;;  %2010 = vst.msk [vmem:[#allocation2 + $0x2a8] sm:$0xff] %vm1924_vm7, %v1876_v39 }
 0x1c6   : > { %v1089_v43 = vpop.f32.mrb[38].mxu0  ;;  %v1424_v44 = vpop.f32.mrb[38].mxu1 }
 0x1c7   : > { %v1810_v45 = vmax.f32 %v1677_v41, %v1089_v43  ;;  %v4242_v46 = vpop.f32.mrb[39].mxu0  ;;  %v1877_v47 = vmax.f32 %v1744_v42, %v1424_v44  ;;  %v4443_v48 = vpop.f32.mrb[39].mxu1  ;;  %v1685_v41 = vld [vmem:[#allocation2 + $0xd8] sm:$0xff]  ;;  %v1752_v42 = vld [vmem:[#allocation2 + $0x2f0] sm:$0xff] }
 0x1c9   : > { %1944 = vst.msk [vmem:[#allocation2 + $0x98] sm:$0xff] %vm1924_vm7, %v1810_v45  ;;  %2011 = vst.msk [vmem:[#allocation2 + $0x2b0] sm:$0xff] %vm1924_vm7, %v1877_v47 }
 0x1ca   : > { %v1094_v51 = vpop.f32.mrb[40].mxu0  ;;  %v1429_v52 = vpop.f32.mrb[40].mxu1 }
 0x1cb   : > { %v1811_v53 = vmax.f32 %v1678_v49, %v1094_v51  ;;  %v4245_v54 = vpop.f32.mrb[41].mxu0  ;;  %v1878_v55 = vmax.f32 %v1745_v50, %v1429_v52  ;;  %v4446_v56 = vpop.f32.mrb[41].mxu1  ;;  %v1686_v49 = vld [vmem:[#allocation2 + $0xe0] sm:$0xff]  ;;  %v1753_v50 = vld [vmem:[#allocation2 + $0x2f8] sm:$0xff] }
 0x1cd   : > { %1945 = vst.msk [vmem:[#allocation2 + $0xa0] sm:$0xff] %vm1924_vm7, %v1811_v53  ;;  %2012 = vst.msk [vmem:[#allocation2 + $0x2b8] sm:$0xff] %vm1924_vm7, %v1878_v55 }
 0x1ce   : > { %v1099_v59 = vpop.f32.mrb[42].mxu0  ;;  %v1434_v60 = vpop.f32.mrb[42].mxu1 }
 0x1cf   : > { %v1812_v61 = vmax.f32 %v1679_v57, %v1099_v59  ;;  %v4248_v62 = vpop.f32.mrb[43].mxu0  ;;  %v1879_v63 = vmax.f32 %v1746_v58, %v1434_v60  ;;  %v4449_v0 = vpop.f32.mrb[43].mxu1  ;;  %v1687_v57 = vld [vmem:[#allocation2 + $0xe8] sm:$0xff]  ;;  %v1754_v58 = vld [vmem:[#allocation2 + $0x300] sm:$0xff] }
 0x1d1   : > { %1946 = vst.msk [vmem:[#allocation2 + $0xa8] sm:$0xff] %vm1924_vm7, %v1812_v61  ;;  %2013 = vst.msk [vmem:[#allocation2 + $0x2c0] sm:$0xff] %vm1924_vm7, %v1879_v63 }
 0x1d2   : > { %v1104_v7 = vpop.f32.mrb[44].mxu0  ;;  %v1439_v3 = vpop.f32.mrb[44].mxu1 }
 0x1d3   : > { %v1813_v4 = vmax.f32 %v1680_v1, %v1104_v7  ;;  %v4251_v5 = vpop.f32.mrb[45].mxu0  ;;  %v1880_v6 = vmax.f32 %v1747_v2, %v1439_v3  ;;  %v4452_v8 = vpop.f32.mrb[45].mxu1  ;;  %v1688_v1 = vld [vmem:[#allocation2 + $0xf0] sm:$0xff]  ;;  %v1755_v2 = vld [vmem:[#allocation2 + $0x308] sm:$0xff] }
 0x1d5   : > { %1947 = vst.msk [vmem:[#allocation2 + $0xb0] sm:$0xff] %vm1924_vm7, %v1813_v4  ;;  %2014 = vst.msk [vmem:[#allocation2 + $0x2c8] sm:$0xff] %vm1924_vm7, %v1880_v6 }
 0x1d6   : > { %v1109_v11 = vpop.f32.mrb[46].mxu0  ;;  %v1444_v12 = vpop.f32.mrb[46].mxu1 }
 0x1d7   : > { %v1814_v13 = vmax.f32 %v1681_v9, %v1109_v11  ;;  %v4254_v14 = vpop.f32.mrb[47].mxu0  ;;  %v1881_v15 = vmax.f32 %v1748_v10, %v1444_v12  ;;  %v4455_v16 = vpop.f32.mrb[47].mxu1  ;;  %v1689_v9 = vld [vmem:[#allocation2 + $0xf8] sm:$0xff]  ;;  %v1756_v10 = vld [vmem:[#allocation2 + $0x310] sm:$0xff] }
 0x1d9   : > { %1948 = vst.msk [vmem:[#allocation2 + $0xb8] sm:$0xff] %vm1924_vm7, %v1814_v13  ;;  %2015 = vst.msk [vmem:[#allocation2 + $0x2d0] sm:$0xff] %vm1924_vm7, %v1881_v15 }
 0x1da   : > { %v1114_v19 = vpop.f32.mrb[48].mxu0  ;;  %v1449_v20 = vpop.f32.mrb[48].mxu1 }
 0x1db   : > { %v1815_v21 = vmax.f32 %v1682_v17, %v1114_v19  ;;  %v4257_v22 = vpop.f32.mrb[49].mxu0  ;;  %v1882_v23 = vmax.f32 %v1749_v18, %v1449_v20  ;;  %v4458_v24 = vpop.f32.mrb[49].mxu1  ;;  %v1690_v17 = vld [vmem:[#allocation2 + $0x100] sm:$0xff]  ;;  %v1757_v18 = vld [vmem:[#allocation2 + $0x318] sm:$0xff] }
 0x1dd   : > { %1949 = vst.msk [vmem:[#allocation2 + $0xc0] sm:$0xff] %vm1924_vm7, %v1815_v21  ;;  %2016 = vst.msk [vmem:[#allocation2 + $0x2d8] sm:$0xff] %vm1924_vm7, %v1882_v23 }
 0x1de   : > { %v1119_v27 = vpop.f32.mrb[50].mxu0  ;;  %v1454_v28 = vpop.f32.mrb[50].mxu1 }
 0x1df   : > { %v1816_v29 = vmax.f32 %v1683_v25, %v1119_v27  ;;  %v4260_v30 = vpop.f32.mrb[51].mxu0  ;;  %v1883_v31 = vmax.f32 %v1750_v26, %v1454_v28  ;;  %v4461_v32 = vpop.f32.mrb[51].mxu1  ;;  %v1691_v25 = vld [vmem:[#allocation2 + $0x108] sm:$0xff]  ;;  %v1758_v26 = vld [vmem:[#allocation2 + $0x320] sm:$0xff] }
 0x1e1   : > { %1950 = vst.msk [vmem:[#allocation2 + $0xc8] sm:$0xff] %vm1924_vm7, %v1816_v29  ;;  %2017 = vst.msk [vmem:[#allocation2 + $0x2e0] sm:$0xff] %vm1924_vm7, %v1883_v31 }
 0x1e2   : > { %v1124_v35 = vpop.f32.mrb[52].mxu0  ;;  %v1459_v36 = vpop.f32.mrb[52].mxu1 }
 0x1e3   : > { %v1817_v37 = vmax.f32 %v1684_v33, %v1124_v35  ;;  %v4263_v38 = vpop.f32.mrb[53].mxu0  ;;  %v1884_v39 = vmax.f32 %v1751_v34, %v1459_v36  ;;  %v4464_v40 = vpop.f32.mrb[53].mxu1  ;;  %v1692_v33 = vld [vmem:[#allocation2 + $0x110] sm:$0xff]  ;;  %v1759_v34 = vld [vmem:[#allocation2 + $0x328] sm:$0xff] }
 0x1e5   : > { %1951 = vst.msk [vmem:[#allocation2 + $0xd0] sm:$0xff] %vm1924_vm7, %v1817_v37  ;;  %2018 = vst.msk [vmem:[#allocation2 + $0x2e8] sm:$0xff] %vm1924_vm7, %v1884_v39 }
 0x1e6   : > { %v1129_v43 = vpop.f32.mrb[54].mxu0  ;;  %v1464_v44 = vpop.f32.mrb[54].mxu1 }
 0x1e7   : > { %v1818_v45 = vmax.f32 %v1685_v41, %v1129_v43  ;;  %v4266_v46 = vpop.f32.mrb[55].mxu0  ;;  %v1885_v47 = vmax.f32 %v1752_v42, %v1464_v44  ;;  %v4467_v48 = vpop.f32.mrb[55].mxu1  ;;  %v1693_v41 = vld [vmem:[#allocation2 + $0x118] sm:$0xff]  ;;  %v1760_v42 = vld [vmem:[#allocation2 + $0x330] sm:$0xff] }
 0x1e9   : > { %1952 = vst.msk [vmem:[#allocation2 + $0xd8] sm:$0xff] %vm1924_vm7, %v1818_v45  ;;  %2019 = vst.msk [vmem:[#allocation2 + $0x2f0] sm:$0xff] %vm1924_vm7, %v1885_v47 }
 0x1ea   : > { %v1134_v51 = vpop.f32.mrb[56].mxu0  ;;  %v1469_v52 = vpop.f32.mrb[56].mxu1 }
 0x1eb   : > { %v1819_v53 = vmax.f32 %v1686_v49, %v1134_v51  ;;  %v4269_v54 = vpop.f32.mrb[57].mxu0  ;;  %v1886_v55 = vmax.f32 %v1753_v50, %v1469_v52  ;;  %v4470_v56 = vpop.f32.mrb[57].mxu1  ;;  %v1694_v49 = vld [vmem:[#allocation2 + $0x120] sm:$0xff]  ;;  %v1761_v50 = vld [vmem:[#allocation2 + $0x338] sm:$0xff] }
 0x1ed   : > { %1953 = vst.msk [vmem:[#allocation2 + $0xe0] sm:$0xff] %vm1924_vm7, %v1819_v53  ;;  %2020 = vst.msk [vmem:[#allocation2 + $0x2f8] sm:$0xff] %vm1924_vm7, %v1886_v55 }
 0x1ee   : > { %v1139_v59 = vpop.f32.mrb[58].mxu0  ;;  %v1474_v60 = vpop.f32.mrb[58].mxu1 }
 0x1ef   : > { %v1820_v61 = vmax.f32 %v1687_v57, %v1139_v59  ;;  %v4272_v62 = vpop.f32.mrb[59].mxu0  ;;  %v1887_v63 = vmax.f32 %v1754_v58, %v1474_v60  ;;  %v4473_v0 = vpop.f32.mrb[59].mxu1  ;;  %v1695_v57 = vld [vmem:[#allocation2 + $0x128] sm:$0xff]  ;;  %v1762_v58 = vld [vmem:[#allocation2 + $0x340] sm:$0xff] }
 0x1f1   : > { %1954 = vst.msk [vmem:[#allocation2 + $0xe8] sm:$0xff] %vm1924_vm7, %v1820_v61  ;;  %2021 = vst.msk [vmem:[#allocation2 + $0x300] sm:$0xff] %vm1924_vm7, %v1887_v63 }
 0x1f2   : > { %v1144_v7 = vpop.f32.mrb[60].mxu0  ;;  %v1479_v3 = vpop.f32.mrb[60].mxu1 }
 0x1f3   : > { %v1821_v4 = vmax.f32 %v1688_v1, %v1144_v7  ;;  %v4275_v5 = vpop.f32.mrb[61].mxu0  ;;  %v1888_v6 = vmax.f32 %v1755_v2, %v1479_v3  ;;  %v4476_v8 = vpop.f32.mrb[61].mxu1  ;;  %v1696_v1 = vld [vmem:[#allocation2 + $0x130] sm:$0xff]  ;;  %v1763_v2 = vld [vmem:[#allocation2 + $0x348] sm:$0xff] }
 0x1f5   : > { %1955 = vst.msk [vmem:[#allocation2 + $0xf0] sm:$0xff] %vm1924_vm7, %v1821_v4  ;;  %2022 = vst.msk [vmem:[#allocation2 + $0x308] sm:$0xff] %vm1924_vm7, %v1888_v6 }
 0x1f6   : > { %v1149_v11 = vpop.f32.mrb[62].mxu0  ;;  %v1484_v12 = vpop.f32.mrb[62].mxu1 }
 0x1f7   : > { %v1822_v13 = vmax.f32 %v1689_v9, %v1149_v11  ;;  %v4278_v14 = vpop.f32.mrb[63].mxu0  ;;  %v1889_v15 = vmax.f32 %v1756_v10, %v1484_v12  ;;  %v4479_v16 = vpop.f32.mrb[63].mxu1  ;;  %v1697_v9 = vld [vmem:[#allocation2 + $0x138] sm:$0xff]  ;;  %v1764_v10 = vld [vmem:[#allocation2 + $0x350] sm:$0xff] }
 0x1f9   : > { %1956 = vst.msk [vmem:[#allocation2 + $0xf8] sm:$0xff] %vm1924_vm7, %v1822_v13  ;;  %2023 = vst.msk [vmem:[#allocation2 + $0x310] sm:$0xff] %vm1924_vm7, %v1889_v15 }
 0x1fa   : > { %v1154_v19 = vpop.f32.mrb[64].mxu0  ;;  %v1489_v20 = vpop.f32.mrb[64].mxu1 }
 0x1fb   : > { %v1823_v21 = vmax.f32 %v1690_v17, %v1154_v19  ;;  %v4281_v22 = vpop.f32.mrb[65].mxu0  ;;  %v1890_v23 = vmax.f32 %v1757_v18, %v1489_v20  ;;  %v4482_v24 = vpop.f32.mrb[65].mxu1  ;;  %v1698_v17 = vld [vmem:[#allocation2 + $0x140] sm:$0xff]  ;;  %v1765_v18 = vld [vmem:[#allocation2 + $0x358] sm:$0xff] }
 0x1fd   : > { %1957 = vst.msk [vmem:[#allocation2 + $0x100] sm:$0xff] %vm1924_vm7, %v1823_v21  ;;  %2024 = vst.msk [vmem:[#allocation2 + $0x318] sm:$0xff] %vm1924_vm7, %v1890_v23 }
 0x1fe   : > { %v1159_v27 = vpop.f32.mrb[66].mxu0  ;;  %v1494_v28 = vpop.f32.mrb[66].mxu1 }
 0x1ff   : > { %v1824_v29 = vmax.f32 %v1691_v25, %v1159_v27  ;;  %v4284_v30 = vpop.f32.mrb[67].mxu0  ;;  %v1891_v31 = vmax.f32 %v1758_v26, %v1494_v28  ;;  %v4485_v32 = vpop.f32.mrb[67].mxu1  ;;  %v1699_v25 = vld [vmem:[#allocation2 + $0x148] sm:$0xff]  ;;  %v1766_v26 = vld [vmem:[#allocation2 + $0x360] sm:$0xff] }
 0x201   : > { %1958 = vst.msk [vmem:[#allocation2 + $0x108] sm:$0xff] %vm1924_vm7, %v1824_v29  ;;  %2025 = vst.msk [vmem:[#allocation2 + $0x320] sm:$0xff] %vm1924_vm7, %v1891_v31 }
 0x202   : > { %v1164_v35 = vpop.f32.mrb[68].mxu0  ;;  %v1499_v36 = vpop.f32.mrb[68].mxu1 }
 0x203   : > { %v1825_v37 = vmax.f32 %v1692_v33, %v1164_v35  ;;  %v4287_v38 = vpop.f32.mrb[69].mxu0  ;;  %v1892_v39 = vmax.f32 %v1759_v34, %v1499_v36  ;;  %v4488_v40 = vpop.f32.mrb[69].mxu1  ;;  %v1700_v33 = vld [vmem:[#allocation2 + $0x150] sm:$0xff]  ;;  %v1767_v34 = vld [vmem:[#allocation2 + $0x368] sm:$0xff] }
 0x205   : > { %1959 = vst.msk [vmem:[#allocation2 + $0x110] sm:$0xff] %vm1924_vm7, %v1825_v37  ;;  %2026 = vst.msk [vmem:[#allocation2 + $0x328] sm:$0xff] %vm1924_vm7, %v1892_v39 }
 0x206   : > { %v1169_v43 = vpop.f32.mrb[70].mxu0  ;;  %v1504_v44 = vpop.f32.mrb[70].mxu1 }
 0x207   : > { %v1826_v45 = vmax.f32 %v1693_v41, %v1169_v43  ;;  %v4290_v46 = vpop.f32.mrb[71].mxu0  ;;  %v1893_v47 = vmax.f32 %v1760_v42, %v1504_v44  ;;  %v4491_v48 = vpop.f32.mrb[71].mxu1  ;;  %v1701_v41 = vld [vmem:[#allocation2 + $0x158] sm:$0xff]  ;;  %v1768_v42 = vld [vmem:[#allocation2 + $0x370] sm:$0xff] }
 0x209   : > { %1960 = vst.msk [vmem:[#allocation2 + $0x118] sm:$0xff] %vm1924_vm7, %v1826_v45  ;;  %2027 = vst.msk [vmem:[#allocation2 + $0x330] sm:$0xff] %vm1924_vm7, %v1893_v47 }
 0x20a   : > { %v1174_v51 = vpop.f32.mrb[72].mxu0  ;;  %v1509_v52 = vpop.f32.mrb[72].mxu1 }
 0x20b   : > { %v1827_v53 = vmax.f32 %v1694_v49, %v1174_v51  ;;  %v4293_v54 = vpop.f32.mrb[73].mxu0  ;;  %v1894_v55 = vmax.f32 %v1761_v50, %v1509_v52  ;;  %v4494_v56 = vpop.f32.mrb[73].mxu1  ;;  %v1702_v49 = vld [vmem:[#allocation2 + $0x160] sm:$0xff]  ;;  %v1769_v50 = vld [vmem:[#allocation2 + $0x378] sm:$0xff] }
 0x20d   : > { %1961 = vst.msk [vmem:[#allocation2 + $0x120] sm:$0xff] %vm1924_vm7, %v1827_v53  ;;  %2028 = vst.msk [vmem:[#allocation2 + $0x338] sm:$0xff] %vm1924_vm7, %v1894_v55 }
 0x20e   : > { %v1179_v59 = vpop.f32.mrb[74].mxu0  ;;  %v1514_v60 = vpop.f32.mrb[74].mxu1 }
 0x20f   : > { %v1828_v61 = vmax.f32 %v1695_v57, %v1179_v59  ;;  %v4296_v62 = vpop.f32.mrb[75].mxu0  ;;  %v1895_v63 = vmax.f32 %v1762_v58, %v1514_v60  ;;  %v4497_v0 = vpop.f32.mrb[75].mxu1  ;;  %v1703_v57 = vld [vmem:[#allocation2 + $0x168] sm:$0xff]  ;;  %v1770_v58 = vld [vmem:[#allocation2 + $0x380] sm:$0xff] }
 0x211   : > { %1962 = vst.msk [vmem:[#allocation2 + $0x128] sm:$0xff] %vm1924_vm7, %v1828_v61  ;;  %2029 = vst.msk [vmem:[#allocation2 + $0x340] sm:$0xff] %vm1924_vm7, %v1895_v63 }
 0x212   : > { %v1184_v7 = vpop.f32.mrb[76].mxu0  ;;  %v1519_v3 = vpop.f32.mrb[76].mxu1 }
 0x213   : > { %v1829_v4 = vmax.f32 %v1696_v1, %v1184_v7  ;;  %v4299_v5 = vpop.f32.mrb[77].mxu0  ;;  %v1896_v6 = vmax.f32 %v1763_v2, %v1519_v3  ;;  %v4500_v8 = vpop.f32.mrb[77].mxu1  ;;  %v1704_v1 = vld [vmem:[#allocation2 + $0x170] sm:$0xff]  ;;  %v1771_v2 = vld [vmem:[#allocation2 + $0x388] sm:$0xff] }
 0x215   : > { %1963 = vst.msk [vmem:[#allocation2 + $0x130] sm:$0xff] %vm1924_vm7, %v1829_v4  ;;  %2030 = vst.msk [vmem:[#allocation2 + $0x348] sm:$0xff] %vm1924_vm7, %v1896_v6 }
 0x216   : > { %v1189_v11 = vpop.f32.mrb[78].mxu0  ;;  %v1524_v12 = vpop.f32.mrb[78].mxu1 }
 0x217   : > { %v1830_v13 = vmax.f32 %v1697_v9, %v1189_v11  ;;  %v4302_v14 = vpop.f32.mrb[79].mxu0  ;;  %v1897_v15 = vmax.f32 %v1764_v10, %v1524_v12  ;;  %v4503_v16 = vpop.f32.mrb[79].mxu1  ;;  %v1705_v9 = vld [vmem:[#allocation2 + $0x178] sm:$0xff]  ;;  %v1772_v10 = vld [vmem:[#allocation2 + $0x390] sm:$0xff] }
 0x219   : > { %1964 = vst.msk [vmem:[#allocation2 + $0x138] sm:$0xff] %vm1924_vm7, %v1830_v13  ;;  %2031 = vst.msk [vmem:[#allocation2 + $0x350] sm:$0xff] %vm1924_vm7, %v1897_v15 }
 0x21a   : > { %v1194_v19 = vpop.f32.mrb[80].mxu0  ;;  %v1529_v20 = vpop.f32.mrb[80].mxu1 }
 0x21b   : > { %v1831_v21 = vmax.f32 %v1698_v17, %v1194_v19  ;;  %v4305_v22 = vpop.f32.mrb[81].mxu0  ;;  %v1898_v23 = vmax.f32 %v1765_v18, %v1529_v20  ;;  %v4506_v24 = vpop.f32.mrb[81].mxu1  ;;  %v1706_v17 = vld [vmem:[#allocation2 + $0x180] sm:$0xff]  ;;  %v1773_v18 = vld [vmem:[#allocation2 + $0x398] sm:$0xff] }
 0x21d   : > { %1965 = vst.msk [vmem:[#allocation2 + $0x140] sm:$0xff] %vm1924_vm7, %v1831_v21  ;;  %2032 = vst.msk [vmem:[#allocation2 + $0x358] sm:$0xff] %vm1924_vm7, %v1898_v23 }
 0x21e   : > { %v1199_v27 = vpop.f32.mrb[82].mxu0  ;;  %v1534_v28 = vpop.f32.mrb[82].mxu1 }
 0x21f   : > { %v1832_v29 = vmax.f32 %v1699_v25, %v1199_v27  ;;  %v4308_v30 = vpop.f32.mrb[83].mxu0  ;;  %v1899_v31 = vmax.f32 %v1766_v26, %v1534_v28  ;;  %v4509_v32 = vpop.f32.mrb[83].mxu1  ;;  %v1707_v25 = vld [vmem:[#allocation2 + $0x188] sm:$0xff]  ;;  %v1774_v26 = vld [vmem:[#allocation2 + $0x3a0] sm:$0xff] }
 0x221   : > { %1966 = vst.msk [vmem:[#allocation2 + $0x148] sm:$0xff] %vm1924_vm7, %v1832_v29  ;;  %2033 = vst.msk [vmem:[#allocation2 + $0x360] sm:$0xff] %vm1924_vm7, %v1899_v31 }
 0x222   : > { %v1204_v35 = vpop.f32.mrb[84].mxu0  ;;  %v1539_v36 = vpop.f32.mrb[84].mxu1 }
 0x223   : > { %v1833_v37 = vmax.f32 %v1700_v33, %v1204_v35  ;;  %v4311_v38 = vpop.f32.mrb[85].mxu0  ;;  %v1900_v39 = vmax.f32 %v1767_v34, %v1539_v36  ;;  %v4512_v40 = vpop.f32.mrb[85].mxu1  ;;  %v1708_v33 = vld [vmem:[#allocation2 + $0x190] sm:$0xff]  ;;  %v1775_v34 = vld [vmem:[#allocation2 + $0x3a8] sm:$0xff] }
 0x225   : > { %1967 = vst.msk [vmem:[#allocation2 + $0x150] sm:$0xff] %vm1924_vm7, %v1833_v37  ;;  %2034 = vst.msk [vmem:[#allocation2 + $0x368] sm:$0xff] %vm1924_vm7, %v1900_v39 }
 0x226   : > { %v1209_v43 = vpop.f32.mrb[86].mxu0  ;;  %v1544_v44 = vpop.f32.mrb[86].mxu1 }
 0x227   : > { %v1834_v45 = vmax.f32 %v1701_v41, %v1209_v43  ;;  %v4314_v46 = vpop.f32.mrb[87].mxu0  ;;  %v1901_v47 = vmax.f32 %v1768_v42, %v1544_v44  ;;  %v4515_v48 = vpop.f32.mrb[87].mxu1  ;;  %v1709_v41 = vld [vmem:[#allocation2 + $0x198] sm:$0xff]  ;;  %v1776_v42 = vld [vmem:[#allocation2 + $0x3b0] sm:$0xff] }
 0x229   : > { %1968 = vst.msk [vmem:[#allocation2 + $0x158] sm:$0xff] %vm1924_vm7, %v1834_v45  ;;  %2035 = vst.msk [vmem:[#allocation2 + $0x370] sm:$0xff] %vm1924_vm7, %v1901_v47 }
 0x22a   : > { %v1214_v51 = vpop.f32.mrb[88].mxu0  ;;  %v1549_v52 = vpop.f32.mrb[88].mxu1 }
 0x22b   : > { %v1835_v53 = vmax.f32 %v1702_v49, %v1214_v51  ;;  %v4317_v54 = vpop.f32.mrb[89].mxu0  ;;  %v1902_v55 = vmax.f32 %v1769_v50, %v1549_v52  ;;  %v4518_v56 = vpop.f32.mrb[89].mxu1  ;;  %v1710_v49 = vld [vmem:[#allocation2 + $0x1a0] sm:$0xff]  ;;  %v1777_v50 = vld [vmem:[#allocation2 + $0x3b8] sm:$0xff] }
 0x22d   : > { %1969 = vst.msk [vmem:[#allocation2 + $0x160] sm:$0xff] %vm1924_vm7, %v1835_v53  ;;  %2036 = vst.msk [vmem:[#allocation2 + $0x378] sm:$0xff] %vm1924_vm7, %v1902_v55 }
 0x22e   : > { %v1219_v59 = vpop.f32.mrb[90].mxu0  ;;  %v1554_v60 = vpop.f32.mrb[90].mxu1 }
 0x22f   : > { %v1836_v61 = vmax.f32 %v1703_v57, %v1219_v59  ;;  %v4320_v62 = vpop.f32.mrb[91].mxu0  ;;  %v1903_v63 = vmax.f32 %v1770_v58, %v1554_v60  ;;  %v4521_v0 = vpop.f32.mrb[91].mxu1  ;;  %v1711_v57 = vld [vmem:[#allocation2 + $0x1a8] sm:$0xff]  ;;  %v1778_v58 = vld [vmem:[#allocation2 + $0x3c0] sm:$0xff] }
 0x231   : > { %1970 = vst.msk [vmem:[#allocation2 + $0x168] sm:$0xff] %vm1924_vm7, %v1836_v61  ;;  %2037 = vst.msk [vmem:[#allocation2 + $0x380] sm:$0xff] %vm1924_vm7, %v1903_v63 }
 0x232   : > { %v1224_v7 = vpop.f32.mrb[92].mxu0  ;;  %v1559_v3 = vpop.f32.mrb[92].mxu1 }
 0x233   : > { %v1837_v4 = vmax.f32 %v1704_v1, %v1224_v7  ;;  %v4323_v5 = vpop.f32.mrb[93].mxu0  ;;  %v1904_v6 = vmax.f32 %v1771_v2, %v1559_v3  ;;  %v4524_v8 = vpop.f32.mrb[93].mxu1  ;;  %v1712_v1 = vld [vmem:[#allocation2 + $0x1b0] sm:$0xff]  ;;  %v1779_v2 = vld [vmem:[#allocation2 + $0x3c8] sm:$0xff] }
 0x235   : > { %1971 = vst.msk [vmem:[#allocation2 + $0x170] sm:$0xff] %vm1924_vm7, %v1837_v4  ;;  %2038 = vst.msk [vmem:[#allocation2 + $0x388] sm:$0xff] %vm1924_vm7, %v1904_v6 }
 0x236   : > { %v1229_v11 = vpop.f32.mrb[94].mxu0  ;;  %v1564_v12 = vpop.f32.mrb[94].mxu1 }
 0x237   : > { %v1838_v13 = vmax.f32 %v1705_v9, %v1229_v11  ;;  %v4326_v14 = vpop.f32.mrb[95].mxu0  ;;  %v1905_v15 = vmax.f32 %v1772_v10, %v1564_v12  ;;  %v4527_v16 = vpop.f32.mrb[95].mxu1  ;;  %v1713_v9 = vld [vmem:[#allocation2 + $0x1b8] sm:$0xff]  ;;  %v1780_v10 = vld [vmem:[#allocation2 + $0x3d0] sm:$0xff] }
 0x239   : > { %1972 = vst.msk [vmem:[#allocation2 + $0x178] sm:$0xff] %vm1924_vm7, %v1838_v13  ;;  %2039 = vst.msk [vmem:[#allocation2 + $0x390] sm:$0xff] %vm1924_vm7, %v1905_v15 }
 0x23a   : > { %v1234_v19 = vpop.f32.mrb[96].mxu0  ;;  %v1569_v20 = vpop.f32.mrb[96].mxu1 }
 0x23b   : > { %v1839_v21 = vmax.f32 %v1706_v17, %v1234_v19  ;;  %v4329_v22 = vpop.f32.mrb[97].mxu0  ;;  %v1906_v23 = vmax.f32 %v1773_v18, %v1569_v20  ;;  %v4530_v24 = vpop.f32.mrb[97].mxu1  ;;  %v1714_v17 = vld [vmem:[#allocation2 + $0x1c0] sm:$0xff]  ;;  %v1781_v18 = vld [vmem:[#allocation2 + $0x3d8] sm:$0xff] }
 0x23d   : > { %1973 = vst.msk [vmem:[#allocation2 + $0x180] sm:$0xff] %vm1924_vm7, %v1839_v21  ;;  %2040 = vst.msk [vmem:[#allocation2 + $0x398] sm:$0xff] %vm1924_vm7, %v1906_v23 }
 0x23e   : > { %v1239_v27 = vpop.f32.mrb[98].mxu0  ;;  %v1574_v28 = vpop.f32.mrb[98].mxu1 }
 0x23f   : > { %v1840_v29 = vmax.f32 %v1707_v25, %v1239_v27  ;;  %v4332_v30 = vpop.f32.mrb[99].mxu0  ;;  %v1907_v31 = vmax.f32 %v1774_v26, %v1574_v28  ;;  %v4533_v32 = vpop.f32.mrb[99].mxu1  ;;  %v1715_v25 = vld [vmem:[#allocation2 + $0x1c8] sm:$0xff]  ;;  %v1782_v26 = vld [vmem:[#allocation2 + $0x3e0] sm:$0xff] }
 0x241   : > { %1974 = vst.msk [vmem:[#allocation2 + $0x188] sm:$0xff] %vm1924_vm7, %v1840_v29  ;;  %2041 = vst.msk [vmem:[#allocation2 + $0x3a0] sm:$0xff] %vm1924_vm7, %v1907_v31 }
 0x242   : > { %v1244_v35 = vpop.f32.mrb[100].mxu0  ;;  %v1579_v36 = vpop.f32.mrb[100].mxu1 }
 0x243   : > { %v1841_v37 = vmax.f32 %v1708_v33, %v1244_v35  ;;  %v4335_v38 = vpop.f32.mrb[101].mxu0  ;;  %v1908_v39 = vmax.f32 %v1775_v34, %v1579_v36  ;;  %v4536_v40 = vpop.f32.mrb[101].mxu1  ;;  %v1716_v33 = vld [vmem:[#allocation2 + $0x1d0] sm:$0xff]  ;;  %v1783_v34 = vld [vmem:[#allocation2 + $0x3e8] sm:$0xff] }
 0x245   : > { %1975 = vst.msk [vmem:[#allocation2 + $0x190] sm:$0xff] %vm1924_vm7, %v1841_v37  ;;  %2042 = vst.msk [vmem:[#allocation2 + $0x3a8] sm:$0xff] %vm1924_vm7, %v1908_v39 }
 0x246   : > { %v1249_v43 = vpop.f32.mrb[102].mxu0  ;;  %v1584_v44 = vpop.f32.mrb[102].mxu1 }
 0x247   : > { %v1842_v45 = vmax.f32 %v1709_v41, %v1249_v43  ;;  %v4338_v46 = vpop.f32.mrb[103].mxu0  ;;  %v1909_v47 = vmax.f32 %v1776_v42, %v1584_v44  ;;  %v4539_v48 = vpop.f32.mrb[103].mxu1  ;;  %v1717_v41 = vld [vmem:[#allocation2 + $0x1d8] sm:$0xff]  ;;  %v1784_v42 = vld [vmem:[#allocation2 + $0x3f0] sm:$0xff] }
 0x249   : > { %1976 = vst.msk [vmem:[#allocation2 + $0x198] sm:$0xff] %vm1924_vm7, %v1842_v45  ;;  %2043 = vst.msk [vmem:[#allocation2 + $0x3b0] sm:$0xff] %vm1924_vm7, %v1909_v47 }
 0x24a   : > { %v1254_v51 = vpop.f32.mrb[104].mxu0  ;;  %v1589_v52 = vpop.f32.mrb[104].mxu1 }
 0x24b   : > { %v1843_v53 = vmax.f32 %v1710_v49, %v1254_v51  ;;  %v4341_v54 = vpop.f32.mrb[105].mxu0  ;;  %v1910_v55 = vmax.f32 %v1777_v50, %v1589_v52  ;;  %v4542_v56 = vpop.f32.mrb[105].mxu1  ;;  %v1718_v49 = vld [vmem:[#allocation2 + $0x1e0] sm:$0xff]  ;;  %v1785_v50 = vld [vmem:[#allocation2 + $0x3f8] sm:$0xff] }
 0x24d   : > { %1977 = vst.msk [vmem:[#allocation2 + $0x1a0] sm:$0xff] %vm1924_vm7, %v1843_v53  ;;  %2044 = vst.msk [vmem:[#allocation2 + $0x3b8] sm:$0xff] %vm1924_vm7, %v1910_v55 }
 0x24e   : > { %v1259_v59 = vpop.f32.mrb[106].mxu0  ;;  %v1594_v60 = vpop.f32.mrb[106].mxu1 }
 0x24f   : > { %v1844_v61 = vmax.f32 %v1711_v57, %v1259_v59  ;;  %v4344_v62 = vpop.f32.mrb[107].mxu0  ;;  %v1911_v63 = vmax.f32 %v1778_v58, %v1594_v60  ;;  %v4545_v0 = vpop.f32.mrb[107].mxu1  ;;  %v1719_v57 = vld [vmem:[#allocation2 + $0x1e8] sm:$0xff]  ;;  %v1786_v58 = vld [vmem:[#allocation2 + $0x400] sm:$0xff] }
 0x251   : > { %1978 = vst.msk [vmem:[#allocation2 + $0x1a8] sm:$0xff] %vm1924_vm7, %v1844_v61  ;;  %2045 = vst.msk [vmem:[#allocation2 + $0x3c0] sm:$0xff] %vm1924_vm7, %v1911_v63 }
 0x252   : > { %v1264_v7 = vpop.f32.mrb[108].mxu0  ;;  %v1599_v3 = vpop.f32.mrb[108].mxu1 }
 0x253   : > { %v1845_v4 = vmax.f32 %v1712_v1, %v1264_v7  ;;  %v4347_v5 = vpop.f32.mrb[109].mxu0  ;;  %v1912_v6 = vmax.f32 %v1779_v2, %v1599_v3  ;;  %v4548_v8 = vpop.f32.mrb[109].mxu1  ;;  %v1720_v1 = vld [vmem:[#allocation2 + $0x1f0] sm:$0xff]  ;;  %v1787_v2 = vld [vmem:[#allocation2 + $0x408] sm:$0xff] }
 0x255   : > { %1979 = vst.msk [vmem:[#allocation2 + $0x1b0] sm:$0xff] %vm1924_vm7, %v1845_v4  ;;  %2046 = vst.msk [vmem:[#allocation2 + $0x3c8] sm:$0xff] %vm1924_vm7, %v1912_v6 }
 0x256   : > { %v1269_v11 = vpop.f32.mrb[110].mxu0  ;;  %v1604_v12 = vpop.f32.mrb[110].mxu1 }
 0x257   : > { %v1846_v13 = vmax.f32 %v1713_v9, %v1269_v11  ;;  %v4350_v14 = vpop.f32.mrb[111].mxu0  ;;  %v1913_v15 = vmax.f32 %v1780_v10, %v1604_v12  ;;  %v4551_v16 = vpop.f32.mrb[111].mxu1  ;;  %v1721_v9 = vld [vmem:[#allocation2 + $0x1f8] sm:$0xff]  ;;  %v1788_v10 = vld [vmem:[#allocation2 + $0x410] sm:$0xff] }
 0x259   : > { %1980 = vst.msk [vmem:[#allocation2 + $0x1b8] sm:$0xff] %vm1924_vm7, %v1846_v13  ;;  %2047 = vst.msk [vmem:[#allocation2 + $0x3d0] sm:$0xff] %vm1924_vm7, %v1913_v15 }
 0x25a   : > { %v1274_v19 = vpop.f32.mrb[112].mxu0  ;;  %v1609_v20 = vpop.f32.mrb[112].mxu1 }
 0x25b   : > { %v1847_v21 = vmax.f32 %v1714_v17, %v1274_v19  ;;  %v4353_v22 = vpop.f32.mrb[113].mxu0  ;;  %v1914_v23 = vmax.f32 %v1781_v18, %v1609_v20  ;;  %v4554_v24 = vpop.f32.mrb[113].mxu1  ;;  %v1722_v17 = vld [vmem:[#allocation2 + $0x200] sm:$0xff]  ;;  %v1789_v18 = vld [vmem:[#allocation2 + $0x418] sm:$0xff] }
 0x25d   : > { %1981 = vst.msk [vmem:[#allocation2 + $0x1c0] sm:$0xff] %vm1924_vm7, %v1847_v21  ;;  %2048 = vst.msk [vmem:[#allocation2 + $0x3d8] sm:$0xff] %vm1924_vm7, %v1914_v23 }
 0x25e   : > { %v1279_v27 = vpop.f32.mrb[114].mxu0  ;;  %v1614_v28 = vpop.f32.mrb[114].mxu1 }
 0x25f   : > { %v1848_v29 = vmax.f32 %v1715_v25, %v1279_v27  ;;  %v4356_v30 = vpop.f32.mrb[115].mxu0  ;;  %v1915_v31 = vmax.f32 %v1782_v26, %v1614_v28  ;;  %v4557_v32 = vpop.f32.mrb[115].mxu1  ;;  %v1723_v25 = vld [vmem:[#allocation2 + $0x208] sm:$0xff]  ;;  %v1790_v26 = vld [vmem:[#allocation2 + $0x420] sm:$0x3] }
 0x261   : > { %1982 = vst.msk [vmem:[#allocation2 + $0x1c8] sm:$0xff] %vm1924_vm7, %v1848_v29  ;;  %2049 = vst.msk [vmem:[#allocation2 + $0x3e0] sm:$0xff] %vm1924_vm7, %v1915_v31 }
 0x262   : > { %v1284_v35 = vpop.f32.mrb[116].mxu0  ;;  %v1619_v36 = vpop.f32.mrb[116].mxu1 }
 0x263   : > { %v1849_v37 = vmax.f32 %v1716_v33, %v1284_v35  ;;  %v4359_v38 = vpop.f32.mrb[117].mxu0  ;;  %v1916_v39 = vmax.f32 %v1783_v34, %v1619_v36  ;;  %v4560_v40 = vpop.f32.mrb[117].mxu1  ;;  %v1724_v33 = vld [vmem:[#allocation2 + $0x210] sm:$0xff] }
 0x265   : > { %1983 = vst.msk [vmem:[#allocation2 + $0x1d0] sm:$0xff] %vm1924_vm7, %v1849_v37  ;;  %2050 = vst.msk [vmem:[#allocation2 + $0x3e8] sm:$0xff] %vm1924_vm7, %v1916_v39 }
 0x266   : > { %v1289_v43 = vpop.f32.mrb[118].mxu0  ;;  %v1624_v44 = vpop.f32.mrb[118].mxu1 }
 0x267   : > { %v1850_v45 = vmax.f32 %v1717_v41, %v1289_v43  ;;  %v4362_v46 = vpop.f32.mrb[119].mxu0  ;;  %v1917_v47 = vmax.f32 %v1784_v42, %v1624_v44  ;;  %v4563_v48 = vpop.f32.mrb[119].mxu1 }
 0x269   : > { %1984 = vst.msk [vmem:[#allocation2 + $0x1d8] sm:$0xff] %vm1924_vm7, %v1850_v45  ;;  %2051 = vst.msk [vmem:[#allocation2 + $0x3f0] sm:$0xff] %vm1924_vm7, %v1917_v47 }
 0x26a   : > { %v1294_v51 = vpop.f32.mrb[120].mxu0  ;;  %v1629_v52 = vpop.f32.mrb[120].mxu1 }
 0x26b   : > { %v1851_v53 = vmax.f32 %v1718_v49, %v1294_v51  ;;  %v4365_v54 = vpop.f32.mrb[121].mxu0  ;;  %v1918_v55 = vmax.f32 %v1785_v50, %v1629_v52  ;;  %v4566_v56 = vpop.f32.mrb[121].mxu1 }
 0x26d   : > { %1985 = vst.msk [vmem:[#allocation2 + $0x1e0] sm:$0xff] %vm1924_vm7, %v1851_v53  ;;  %2052 = vst.msk [vmem:[#allocation2 + $0x3f8] sm:$0xff] %vm1924_vm7, %v1918_v55 }
 0x26e   : > { %v1299_v59 = vpop.f32.mrb[122].mxu0  ;;  %v1634_v60 = vpop.f32.mrb[122].mxu1 }
 0x26f   : > { %v1852_v61 = vmax.f32 %v1719_v57, %v1299_v59  ;;  %v4368_v62 = vpop.f32.mrb[123].mxu0  ;;  %v1919_v63 = vmax.f32 %v1786_v58, %v1634_v60  ;;  %v4569_v0 = vpop.f32.mrb[123].mxu1 }
 0x271   : > { %1986 = vst.msk [vmem:[#allocation2 + $0x1e8] sm:$0xff] %vm1924_vm7, %v1852_v61  ;;  %2053 = vst.msk [vmem:[#allocation2 + $0x400] sm:$0xff] %vm1924_vm7, %v1919_v63 }
 0x272   : > { %v1304_v7 = vpop.f32.mrb[124].mxu0  ;;  %v1639_v3 = vpop.f32.mrb[124].mxu1 }
 0x273   : > { %v1853_v4 = vmax.f32 %v1720_v1, %v1304_v7  ;;  %v4371_v5 = vpop.f32.mrb[125].mxu0  ;;  %v1920_v6 = vmax.f32 %v1787_v2, %v1639_v3  ;;  %v4572_v8 = vpop.f32.mrb[125].mxu1 }
 0x275   : > { %1987 = vst.msk [vmem:[#allocation2 + $0x1f0] sm:$0xff] %vm1924_vm7, %v1853_v4  ;;  %2054 = vst.msk [vmem:[#allocation2 + $0x408] sm:$0xff] %vm1924_vm7, %v1920_v6 }
 0x276   : > { %v1309_v11 = vpop.f32.mrb[126].mxu0  ;;  %v1644_v12 = vpop.f32.mrb[126].mxu1 }
 0x277   : > { %v1854_v13 = vmax.f32 %v1721_v9, %v1309_v11  ;;  %v4374_v14 = vpop.f32.mrb[127].mxu0  ;;  %v1921_v15 = vmax.f32 %v1788_v10, %v1644_v12  ;;  %v4575_v16 = vpop.f32.mrb[127].mxu1 }
 0x279   : > { %1988 = vst.msk [vmem:[#allocation2 + $0x1f8] sm:$0xff] %vm1924_vm7, %v1854_v13  ;;  %2055 = vst.msk [vmem:[#allocation2 + $0x410] sm:$0xff] %vm1924_vm7, %v1921_v15 }
 0x27a   : > { %v1314_v19 = vpop.f32.mrb[128].mxu0  ;;  %v1649_v20 = vpop.f32.mrb[128].mxu1 }
 0x27b   : > { %v1855_v21 = vmax.f32 %v1722_v17, %v1314_v19  ;;  %v4377_v22 = vpop.f32.mrb[129].mxu0  ;;  %v1922_v23 = vmax.f32 %v1789_v18, %v1649_v20  ;;  %v4578_v24 = vpop.f32.mrb[129].mxu1 }
 0x27d   : > { %1989 = vst.msk [vmem:[#allocation2 + $0x200] sm:$0xff] %vm1924_vm7, %v1855_v21  ;;  %2056 = vst.msk [vmem:[#allocation2 + $0x418] sm:$0xff] %vm1924_vm7, %v1922_v23 }
 0x27e   : > { %v1319_v27 = vpop.f32.mrb[130].mxu0  ;;  %v1654_v28 = vpop.f32.mrb[130].mxu1 }
 0x27f   : > { %v1856_v29 = vmax.f32 %v1723_v25, %v1319_v27  ;;  %v4380_v30 = vpop.f32.mrb[131].mxu0  ;;  %v1923_v31 = vmax.f32 %v1790_v26, %v1654_v28  ;;  %v4581_v32 = vpop.f32.mrb[131].mxu1  ;;  %2062 = sbr.rel (%p4032_p10) target bundleno = 1347 (0x543), region = 60 }
 0x281   : > { %1990 = vst.msk [vmem:[#allocation2 + $0x208] sm:$0xff] %vm1924_vm7, %v1856_v29 }
 0x282   : > { %2058 = vst.msk [vmem:[#allocation2 + $0x420] sm:$0x3] %vm2057_vm8, %v1923_v31  ;;  %v1324_v34 = vpop.f32.mrb[132].mxu0 }
 0x283   : > { %v1857_v35 = vmax.f32 %v1724_v33, %v1324_v34  ;;  %v4383_v36 = vpop.f32.mrb[133].mxu0 }
 0x285   : > { %1991 = vst.msk [vmem:[#allocation2 + $0x210] sm:$0xff] %vm1924_vm7, %v1857_v35 }
 0x286   : > { %v2063_v37 = vld [vmem:[#allocation2] sm:$0xff]  ;;  %v2064_v38 = vld [vmem:[#allocation2 + $0x8] sm:$0xff]  ;;  %v2065_v40 = vld [vmem:[#allocation2 + $0x10] sm:$0xff] }
 0x287   : > { %v5845_v39 = vld [vmem:[#allocation3] ss:$0 sm:$0xff]  ;;  %v2066_v41 = vld [vmem:[#allocation2 + $0x18] sm:$0xff]  ;;  %v2067_v44 = vld [vmem:[#allocation2 + $0x20] sm:$0xff] }
 0x288   : > { %v5848_v42 = vadd.f32 %v5845_v39, %v2063_v37  ;;  %v5851_v43 = vadd.f32 %v5845_v39, %v2064_v38  ;;  %v5854_v45 = vadd.f32 %v5845_v39, %v2065_v40  ;;  %v5857_v46 = vadd.f32 %v5845_v39, %v2066_v41  ;;  %v2068_v47 = vld [vmem:[#allocation2 + $0x28] sm:$0xff]  ;;  %v2069_v51 = vld [vmem:[#allocation2 + $0x30] sm:$0xff]  ;;  %v2070_v55 = vld [vmem:[#allocation2 + $0x38] sm:$0xff] }
 0x289   : > { %v5860_v48 = vadd.f32 %v5845_v39, %v2067_v44  ;;  %v5866_v53 = vadd.f32 %v5845_v39, %v2068_v47  ;;  %v5870_v56 = vadd.f32 %v5845_v39, %v2069_v51  ;;  %v2071_v60 = vld [vmem:[#allocation2 + $0x40] sm:$0xff]  ;;  %v5883_v63 = vadd.f32 %v5845_v39, %v2070_v55  ;;  %v2072_v2 = vld [vmem:[#allocation2 + $0x48] sm:$0xff]  ;;  %v2073_v6 = vld [vmem:[#allocation2 + $0x50] sm:$0xff] }
 0x28a   : > { %v8958_v49 = vmax.f32 %v5848_v42, 0.0  ;;  %v8956_v50 = vmax.f32 %v5851_v43, 0.0  ;;  %v8954_v52 = vmax.f32 %v5854_v45, 0.0  ;;  %v8952_v54 = vmax.f32 %v5857_v46, 0.0  ;;  %v2074_v12 = vld [vmem:[#allocation2 + $0x58] sm:$0xff]  ;;  %v2075_v17 = vld [vmem:[#allocation2 + $0x60] sm:$0xff] }
 0x28b   : > { %v8950_v57 = vmax.f32 %v5860_v48, 0.0  ;;  %v8948_v0 = vmax.f32 %v5866_v53, 0.0  ;;  %v5890_v3 = vadd.f32 %v5845_v39, %v2071_v60  ;;  %v8946_v4 = vmax.f32 %v5870_v56, 0.0  ;;  %v2076_v22 = vld [vmem:[#allocation2 + $0x68] sm:$0xff]  ;;  %v2077_v27 = vld [vmem:[#allocation2 + $0x70] sm:$0xff]  ;;  %v2078_v32 = vld [vmem:[#allocation2 + $0x78] sm:$0xff] }
 0x28c   : > { %v2469_v58 = vsel %vm1924_vm7, %v8958_v49, 0.0  ;;  %v2470_v59 = vsel %vm1924_vm7, %v8956_v50, 0.0  ;;  %v2472_v62 = vsel %vm1924_vm7, %v8954_v52, 0.0  ;;  %v2474_v1 = vsel %vm1924_vm7, %v8952_v54, 0.0  ;;  %v2079_v37 = vld [vmem:[#allocation2 + $0x80] sm:$0xff]  ;;  %v2080_v47 = vld [vmem:[#allocation2 + $0x88] sm:$0xff] }
 0x28d   : > { %v2471_v61 = vadd.f32 %v2470_v59, %v2469_v58  ;;  %v2476_v5 = vsel %vm1924_vm7, %v8950_v57, 0.0  ;;  %v5897_v9 = vadd.f32 %v5845_v39, %v2072_v2  ;;  %v8944_v10 = vmax.f32 %v5883_v63, 0.0  ;;  %v2081_v60 = vld [vmem:[#allocation2 + $0x90] sm:$0xff] }
 0x28e   : > { %v2478_v11 = vsel %vm1924_vm7, %v8948_v0, 0.0  ;;  %v5904_v14 = vadd.f32 %v5845_v39, %v2073_v6  ;;  %v8942_v15 = vmax.f32 %v5890_v3, 0.0  ;;  %v2480_v16 = vsel %vm1924_vm7, %v8946_v4, 0.0 }
 0x28f   : > { %v2473_v7 = vadd.f32 %v2472_v62, %v2471_v61  ;;  %v5911_v19 = vadd.f32 %v5845_v39, %v2074_v12  ;;  %v8940_v20 = vmax.f32 %v5897_v9, 0.0  ;;  %v2482_v21 = vsel %vm1924_vm7, %v8944_v10, 0.0  ;;  %v2083_v12 = vld [vmem:[#allocation2 + $0xa0] sm:$0xff] }
 0x290   : > { %v5918_v24 = vadd.f32 %v5845_v39, %v2075_v17  ;;  %v8938_v25 = vmax.f32 %v5904_v14, 0.0  ;;  %v2484_v26 = vsel %vm1924_vm7, %v8942_v15, 0.0  ;;  %v5925_v29 = vadd.f32 %v5845_v39, %v2076_v22 }
 0x291   : > { %v2475_v8 = vadd.f32 %v2474_v1, %v2473_v7  ;;  %v8936_v30 = vmax.f32 %v5911_v19, 0.0  ;;  %v2486_v31 = vsel %vm1924_vm7, %v8940_v20, 0.0  ;;  %v5932_v34 = vadd.f32 %v5845_v39, %v2077_v27  ;;  %v2082_v7 = vld [vmem:[#allocation2 + $0x98] sm:$0xff] }
 0x292   : > { %v8934_v35 = vmax.f32 %v5918_v24, 0.0  ;;  %v2488_v36 = vsel %vm1924_vm7, %v8938_v25, 0.0  ;;  %v5939_v40 = vadd.f32 %v5845_v39, %v2078_v32  ;;  %v8932_v41 = vmax.f32 %v5925_v29, 0.0 }
 0x293   : > { %v2477_v13 = vadd.f32 %v2476_v5, %v2475_v8  ;;  %v2490_v44 = vsel %vm1924_vm7, %v8936_v30, 0.0  ;;  %v5946_v55 = vadd.f32 %v5845_v39, %v2079_v37  ;;  %v8930_v58 = vmax.f32 %v5932_v34, 0.0  ;;  %v2086_v37 = vld [vmem:[#allocation2 + $0xb8] sm:$0xff] }
 0x294   : > { %v2492_v59 = vsel %vm1924_vm7, %v8934_v35, 0.0  ;;  %v5953_v62 = vadd.f32 %v5845_v39, %v2080_v47  ;;  %v8928_v1 = vmax.f32 %v5939_v40, 0.0  ;;  %v2494_v2 = vsel %vm1924_vm7, %v8932_v41, 0.0 }
 0x295   : > { %v2479_v18 = vadd.f32 %v2478_v11, %v2477_v13  ;;  %v5960_v6 = vadd.f32 %v5845_v39, %v2081_v60  ;;  %v8926_v8 = vmax.f32 %v5946_v55, 0.0  ;;  %v2496_v11 = vsel %vm1924_vm7, %v8930_v58, 0.0 }
 0x296   : > { %v8924_v17 = vmax.f32 %v5953_v62, 0.0 }
 0x297   : > { %v2481_v23 = vadd.f32 %v2480_v16, %v2479_v18  ;;  %v5967_v16 = vadd.f32 %v5845_v39, %v2082_v7  ;;  %v2498_v18 = vsel %vm1924_vm7, %v8928_v1, 0.0  ;;  %v2500_v27 = vsel %vm1924_vm7, %v8926_v8, 0.0 }
 0x299   : > { %v2483_v28 = vadd.f32 %v2482_v21, %v2481_v23  ;;  %v2084_v21 = vld [vmem:[#allocation2 + $0xa8] sm:$0xff]  ;;  %v5974_v23 = vadd.f32 %v5845_v39, %v2083_v12 }
 0x29a   : > { %v5981_v32 = vadd.f32 %v5845_v39, %v2084_v21  ;;  %v2089_v21 = vld [vmem:[#allocation2 + $0xd0] sm:$0xff] }
 0x29b   : > { %v2485_v33 = vadd.f32 %v2484_v26, %v2483_v28  ;;  %v8922_v26 = vmax.f32 %v5960_v6, 0.0  ;;  %v2085_v28 = vld [vmem:[#allocation2 + $0xb0] sm:$0xff]  ;;  %v8918_v47 = vmax.f32 %v5974_v23, 0.0 }
 0x29d   : > { %v2487_v38 = vadd.f32 %v2486_v31, %v2485_v33  ;;  %v8920_v33 = vmax.f32 %v5967_v16, 0.0 }
 0x29f   : > { %v2489_v51 = vadd.f32 %v2488_v36, %v2487_v38  ;;  %v2502_v36 = vsel %vm1924_vm7, %v8924_v17, 0.0  ;;  %v2506_v7 = vsel %vm1924_vm7, %v8920_v33, 0.0 }
 0x2a1   : > { %v2491_v61 = vadd.f32 %v2490_v44, %v2489_v51  ;;  %v5988_v44 = vadd.f32 %v5845_v39, %v2085_v28  ;;  %v2504_v51 = vsel %vm1924_vm7, %v8922_v26, 0.0 }
 0x2a3   : > { %v2493_v5 = vadd.f32 %v2492_v59, %v2491_v61  ;;  %v2087_v59 = vld [vmem:[#allocation2 + $0xc0] sm:$0xff]  ;;  %v5995_v61 = vadd.f32 %v5845_v39, %v2086_v37 }
 0x2a4   : > { %v6002_v12 = vadd.f32 %v5845_v39, %v2087_v59 }
 0x2a5   : > { %v2495_v13 = vadd.f32 %v2494_v2, %v2493_v5  ;;  %v8917_v2 = vmax.f32 %v5981_v32, 0.0  ;;  %v2088_v5 = vld [vmem:[#allocation2 + $0xc8] sm:$0xff]  ;;  %v8921_v28 = vmax.f32 %v5995_v61, 0.0 }
 0x2a7   : > { %v2497_v22 = vadd.f32 %v2496_v11, %v2495_v13  ;;  %v8919_v13 = vmax.f32 %v5988_v44, 0.0 }
 0x2a9   : > { %v2499_v31 = vadd.f32 %v2498_v18, %v2497_v22  ;;  %v2508_v18 = vsel %vm1924_vm7, %v8918_v47, 0.0  ;;  %v2512_v59 = vsel %vm1924_vm7, %v8919_v13, 0.0 }
 0x2ab   : > { %v2501_v38 = vadd.f32 %v2500_v27, %v2499_v31  ;;  %v6009_v27 = vadd.f32 %v5845_v39, %v2088_v5  ;;  %v2510_v31 = vsel %vm1924_vm7, %v8917_v2, 0.0 }
 0x2ad   : > { %v2503_v60 = vadd.f32 %v2502_v36, %v2501_v38  ;;  %v2090_v36 = vld [vmem:[#allocation2 + $0xd8] sm:$0xff]  ;;  %v6016_v38 = vadd.f32 %v5845_v39, %v2089_v21 }
 0x2ae   : > { %v6023_v5 = vadd.f32 %v5845_v39, %v2090_v36 }
 0x2af   : > { %v2505_v11 = vadd.f32 %v2504_v51, %v2503_v60  ;;  %v8923_v51 = vmax.f32 %v6002_v12, 0.0  ;;  %v2091_v60 = vld [vmem:[#allocation2 + $0xe0] sm:$0xff]  ;;  %v8927_v47 = vmax.f32 %v6016_v38, 0.0 }
 0x2b0   : > { %v6030_v2 = vadd.f32 %v5845_v39, %v2091_v60  ;;  %v8929_v33 = vmax.f32 %v6023_v5, 0.0 }
 0x2b1   : > { %v2507_v22 = vadd.f32 %v2506_v7, %v2505_v11  ;;  %v8925_v11 = vmax.f32 %v6009_v27, 0.0 }
 0x2b2   : > { %v8931_v26 = vmax.f32 %v6030_v2, 0.0 }
 0x2b3   : > { %v2509_v37 = vadd.f32 %v2508_v18, %v2507_v22  ;;  %v2514_v18 = vsel %vm1924_vm7, %v8921_v28, 0.0  ;;  %v2092_v22 = vld [vmem:[#allocation2 + $0xe8] sm:$0xff] }
 0x2b4   : > { %v6037_v13 = vadd.f32 %v5845_v39, %v2092_v22 }
 0x2b5   : > { %v2511_v7 = vadd.f32 %v2510_v31, %v2509_v37  ;;  %v2516_v31 = vsel %vm1924_vm7, %v8923_v51, 0.0  ;;  %v2093_v37 = vld [vmem:[#allocation2 + $0xf0] sm:$0xff] }
 0x2b6   : > { %v6044_v28 = vadd.f32 %v5845_v39, %v2093_v37  ;;  %v8933_v17 = vmax.f32 %v6037_v13, 0.0 }
 0x2b7   : > { %v2513_v21 = vadd.f32 %v2512_v59, %v2511_v7  ;;  %v2518_v59 = vsel %vm1924_vm7, %v8925_v11, 0.0  ;;  %v2094_v7 = vld [vmem:[#allocation2 + $0xf8] sm:$0xff] }
 0x2b8   : > { %v6051_v51 = vadd.f32 %v5845_v39, %v2094_v7  ;;  %v8935_v8 = vmax.f32 %v6044_v28, 0.0 }
 0x2b9   : > { %v2515_v36 = vadd.f32 %v2514_v18, %v2513_v21  ;;  %v2520_v18 = vsel %vm1924_vm7, %v8927_v47, 0.0  ;;  %v2095_v21 = vld [vmem:[#allocation2 + $0x100] sm:$0xff] }
 0x2ba   : > { %v6058_v11 = vadd.f32 %v5845_v39, %v2095_v21  ;;  %v8937_v1 = vmax.f32 %v6051_v51, 0.0 }
 0x2bb   : > { %v2517_v60 = vadd.f32 %v2516_v31, %v2515_v36  ;;  %v2522_v31 = vsel %vm1924_vm7, %v8929_v33, 0.0  ;;  %v2096_v36 = vld [vmem:[#allocation2 + $0x108] sm:$0xff] }
 0x2bc   : > { %v6065_v47 = vadd.f32 %v5845_v39, %v2096_v36  ;;  %v8939_v58 = vmax.f32 %v6058_v11, 0.0 }
 0x2bd   : > { %v2519_v22 = vadd.f32 %v2518_v59, %v2517_v60  ;;  %v2524_v59 = vsel %vm1924_vm7, %v8931_v26, 0.0  ;;  %v2097_v60 = vld [vmem:[#allocation2 + $0x110] sm:$0xff] }
 0x2be   : > { %v6072_v33 = vadd.f32 %v5845_v39, %v2097_v60  ;;  %v8941_v41 = vmax.f32 %v6065_v47, 0.0 }
 0x2bf   : > { %v2521_v37 = vadd.f32 %v2520_v18, %v2519_v22  ;;  %v2526_v18 = vsel %vm1924_vm7, %v8933_v17, 0.0  ;;  %v2098_v22 = vld [vmem:[#allocation2 + $0x118] sm:$0xff] }
 0x2c0   : > { %v6079_v26 = vadd.f32 %v5845_v39, %v2098_v22  ;;  %v8943_v35 = vmax.f32 %v6072_v33, 0.0 }
 0x2c1   : > { %v2523_v7 = vadd.f32 %v2522_v31, %v2521_v37  ;;  %v2528_v31 = vsel %vm1924_vm7, %v8935_v8, 0.0  ;;  %v2099_v37 = vld [vmem:[#allocation2 + $0x120] sm:$0xff] }
 0x2c2   : > { %v6086_v17 = vadd.f32 %v5845_v39, %v2099_v37  ;;  %v8945_v30 = vmax.f32 %v6079_v26, 0.0 }
 0x2c3   : > { %v2525_v21 = vadd.f32 %v2524_v59, %v2523_v7  ;;  %v2530_v59 = vsel %vm1924_vm7, %v8937_v1, 0.0  ;;  %v2100_v7 = vld [vmem:[#allocation2 + $0x128] sm:$0xff] }
 0x2c4   : > { %v6093_v8 = vadd.f32 %v5845_v39, %v2100_v7  ;;  %v8947_v25 = vmax.f32 %v6086_v17, 0.0 }
 0x2c5   : > { %v2527_v36 = vadd.f32 %v2526_v18, %v2525_v21  ;;  %v2532_v18 = vsel %vm1924_vm7, %v8939_v58, 0.0  ;;  %v2101_v21 = vld [vmem:[#allocation2 + $0x130] sm:$0xff] }
 0x2c6   : > { %v6100_v1 = vadd.f32 %v5845_v39, %v2101_v21  ;;  %v8949_v20 = vmax.f32 %v6093_v8, 0.0 }
 0x2c7   : > { %v2529_v60 = vadd.f32 %v2528_v31, %v2527_v36  ;;  %v2534_v31 = vsel %vm1924_vm7, %v8941_v41, 0.0  ;;  %v2102_v36 = vld [vmem:[#allocation2 + $0x138] sm:$0xff] }
 0x2c8   : > { %v6107_v58 = vadd.f32 %v5845_v39, %v2102_v36  ;;  %v8951_v15 = vmax.f32 %v6100_v1, 0.0 }
 0x2c9   : > { %v2531_v22 = vadd.f32 %v2530_v59, %v2529_v60  ;;  %v2536_v59 = vsel %vm1924_vm7, %v8943_v35, 0.0  ;;  %v2103_v60 = vld [vmem:[#allocation2 + $0x140] sm:$0xff] }
 0x2ca   : > { %v6114_v41 = vadd.f32 %v5845_v39, %v2103_v60  ;;  %v8953_v10 = vmax.f32 %v6107_v58, 0.0 }
 0x2cb   : > { %v2533_v37 = vadd.f32 %v2532_v18, %v2531_v22  ;;  %v2538_v18 = vsel %vm1924_vm7, %v8945_v30, 0.0  ;;  %v2104_v22 = vld [vmem:[#allocation2 + $0x148] sm:$0xff] }
 0x2cc   : > { %v6121_v35 = vadd.f32 %v5845_v39, %v2104_v22  ;;  %v8955_v4 = vmax.f32 %v6114_v41, 0.0 }
 0x2cd   : > { %v2535_v7 = vadd.f32 %v2534_v31, %v2533_v37  ;;  %v2540_v31 = vsel %vm1924_vm7, %v8947_v25, 0.0  ;;  %v2105_v37 = vld [vmem:[#allocation2 + $0x150] sm:$0xff] }
 0x2ce   : > { %v6128_v30 = vadd.f32 %v5845_v39, %v2105_v37  ;;  %v8957_v0 = vmax.f32 %v6121_v35, 0.0 }
 0x2cf   : > { %v2537_v21 = vadd.f32 %v2536_v59, %v2535_v7  ;;  %v2542_v59 = vsel %vm1924_vm7, %v8949_v20, 0.0  ;;  %v2106_v7 = vld [vmem:[#allocation2 + $0x158] sm:$0xff] }
 0x2d0   : > { %v6135_v25 = vadd.f32 %v5845_v39, %v2106_v7  ;;  %v8959_v57 = vmax.f32 %v6128_v30, 0.0 }
 0x2d1   : > { %v2539_v36 = vadd.f32 %v2538_v18, %v2537_v21  ;;  %v2544_v18 = vsel %vm1924_vm7, %v8951_v15, 0.0  ;;  %v2107_v21 = vld [vmem:[#allocation2 + $0x160] sm:$0xff] }
 0x2d2   : > { %9171 = vst [vmem:[#allocation10_spill] sm:$0xff] %v6135_v25  ;;  %v6142_v20 = vadd.f32 %v5845_v39, %v2107_v21  ;;  %v8960_v54 = vmax.f32 %v6135_v25, 0.0 }
 0x2d3   : > { %v2541_v60 = vadd.f32 %v2540_v31, %v2539_v36  ;;  %v2546_v31 = vsel %vm1924_vm7, %v8953_v10, 0.0  ;;  %v2108_v36 = vld [vmem:[#allocation2 + $0x168] sm:$0xff] }
 0x2d4   : > { %9172 = vst [vmem:[#allocation11_spill] sm:$0xff] %v6142_v20  ;;  %v6149_v15 = vadd.f32 %v5845_v39, %v2108_v36  ;;  %v8962_v52 = vmax.f32 %v6142_v20, 0.0 }
 0x2d5   : > { %v2543_v22 = vadd.f32 %v2542_v59, %v2541_v60  ;;  %v2548_v59 = vsel %vm1924_vm7, %v8955_v4, 0.0  ;;  %v2109_v60 = vld [vmem:[#allocation2 + $0x170] sm:$0xff] }
 0x2d6   : > { %9173 = vst [vmem:[#allocation12_spill] sm:$0xff] %v6149_v15  ;;  %v6156_v10 = vadd.f32 %v5845_v39, %v2109_v60 }
 0x2d7   : > { %v2545_v37 = vadd.f32 %v2544_v18, %v2543_v22  ;;  %v2550_v18 = vsel %vm1924_vm7, %v8957_v0, 0.0  ;;  %v2110_v22 = vld [vmem:[#allocation2 + $0x178] sm:$0xff] }
 0x2d8   : > { %9174 = vst [vmem:[#allocation13_spill] sm:$0xff] %v6156_v10  ;;  %v6163_v4 = vadd.f32 %v5845_v39, %v2110_v22 }
 0x2d9   : > { %v2547_v7 = vadd.f32 %v2546_v31, %v2545_v37  ;;  %v2552_v31 = vsel %vm1924_vm7, %v8959_v57, 0.0  ;;  %v2111_v37 = vld [vmem:[#allocation2 + $0x180] sm:$0xff] }
 0x2da   : > { %9175 = vst [vmem:[#allocation14_spill] sm:$0xff] %v6163_v4  ;;  %v6170_v0 = vadd.f32 %v5845_v39, %v2111_v37 }
 0x2db   : > { %v2549_v21 = vadd.f32 %v2548_v59, %v2547_v7  ;;  %v2554_v59 = vsel %vm1924_vm7, %v8960_v54, 0.0  ;;  %v2112_v7 = vld [vmem:[#allocation2 + $0x188] sm:$0xff]  ;;  %v9178_v54 = vmax.f32 %v6149_v15, 0.0 }
 0x2dc   : > { %9176 = vst [vmem:[#allocation15_spill] sm:$0xff] %v6170_v0  ;;  %v6177_v57 = vadd.f32 %v5845_v39, %v2112_v7 }
 0x2dd   : > { %v2551_v36 = vadd.f32 %v2550_v18, %v2549_v21  ;;  %v2556_v18 = vsel %vm1924_vm7, %v8962_v52, 0.0  ;;  %v2113_v21 = vld [vmem:[#allocation2 + $0x190] sm:$0xff]  ;;  %v9180_v52 = vmax.f32 %v6156_v10, 0.0 }
 0x2de   : > { %9177 = vst [vmem:[#allocation16_spill] sm:$0xff] %v6177_v57  ;;  %v6184_v25 = vadd.f32 %v5845_v39, %v2113_v21 }
 0x2df   : > { %v2553_v60 = vadd.f32 %v2552_v31, %v2551_v36  ;;  %v2558_v31 = vsel %vm1924_vm7, %v9178_v54, 0.0  ;;  %v2114_v36 = vld [vmem:[#allocation2 + $0x198] sm:$0xff]  ;;  %v9182_v54 = vmax.f32 %v6163_v4, 0.0 }
 0x2e0   : > { %9179 = vst [vmem:[#allocation17_spill] sm:$0xff] %v6184_v25  ;;  %v6191_v20 = vadd.f32 %v5845_v39, %v2114_v36 }
 0x2e1   : > { %v2555_v22 = vadd.f32 %v2554_v59, %v2553_v60  ;;  %v2560_v59 = vsel %vm1924_vm7, %v9180_v52, 0.0  ;;  %v2115_v60 = vld [vmem:[#allocation2 + $0x1a0] sm:$0xff]  ;;  %v9184_v52 = vmax.f32 %v6170_v0, 0.0 }
 0x2e2   : > { %9181 = vst [vmem:[#allocation18_spill] sm:$0xff] %v6191_v20  ;;  %v6198_v15 = vadd.f32 %v5845_v39, %v2115_v60 }
 0x2e3   : > { %v2557_v37 = vadd.f32 %v2556_v18, %v2555_v22  ;;  %v2562_v18 = vsel %vm1924_vm7, %v9182_v54, 0.0  ;;  %v2116_v22 = vld [vmem:[#allocation2 + $0x1a8] sm:$0xff]  ;;  %v9186_v54 = vmax.f32 %v6177_v57, 0.0 }
 0x2e4   : > { %9183 = vst [vmem:[#allocation19_spill] sm:$0xff] %v6198_v15  ;;  %v6205_v10 = vadd.f32 %v5845_v39, %v2116_v22 }
 0x2e5   : > { %v2559_v7 = vadd.f32 %v2558_v31, %v2557_v37  ;;  %v2564_v31 = vsel %vm1924_vm7, %v9184_v52, 0.0  ;;  %v2117_v37 = vld [vmem:[#allocation2 + $0x1b0] sm:$0xff]  ;;  %v9188_v52 = vmax.f32 %v6184_v25, 0.0 }
 0x2e6   : > { %9185 = vst [vmem:[#allocation20_spill] sm:$0xff] %v6205_v10  ;;  %v6212_v4 = vadd.f32 %v5845_v39, %v2117_v37 }
 0x2e7   : > { %v2561_v21 = vadd.f32 %v2560_v59, %v2559_v7  ;;  %v2566_v59 = vsel %vm1924_vm7, %v9186_v54, 0.0  ;;  %v2118_v7 = vld [vmem:[#allocation2 + $0x1b8] sm:$0xff]  ;;  %v9190_v54 = vmax.f32 %v6191_v20, 0.0 }
 0x2e8   : > { %9187 = vst [vmem:[#allocation21_spill] sm:$0xff] %v6212_v4  ;;  %v6219_v0 = vadd.f32 %v5845_v39, %v2118_v7 }
 0x2e9   : > { %v2563_v36 = vadd.f32 %v2562_v18, %v2561_v21  ;;  %v2568_v18 = vsel %vm1924_vm7, %v9188_v52, 0.0  ;;  %v2119_v21 = vld [vmem:[#allocation2 + $0x1c0] sm:$0xff]  ;;  %v9192_v52 = vmax.f32 %v6198_v15, 0.0 }
 0x2ea   : > { %9189 = vst [vmem:[#allocation22_spill] sm:$0xff] %v6219_v0  ;;  %v6226_v57 = vadd.f32 %v5845_v39, %v2119_v21 }
 0x2eb   : > { %v2565_v60 = vadd.f32 %v2564_v31, %v2563_v36  ;;  %v2570_v31 = vsel %vm1924_vm7, %v9190_v54, 0.0  ;;  %v2120_v36 = vld [vmem:[#allocation2 + $0x1c8] sm:$0xff]  ;;  %v9194_v54 = vmax.f32 %v6205_v10, 0.0 }
 0x2ec   : > { %9191 = vst [vmem:[#allocation23_spill] sm:$0xff] %v6226_v57  ;;  %v6233_v25 = vadd.f32 %v5845_v39, %v2120_v36 }
 0x2ed   : > { %v2567_v22 = vadd.f32 %v2566_v59, %v2565_v60  ;;  %v2572_v59 = vsel %vm1924_vm7, %v9192_v52, 0.0  ;;  %v2121_v60 = vld [vmem:[#allocation2 + $0x1d0] sm:$0xff]  ;;  %v9196_v52 = vmax.f32 %v6212_v4, 0.0 }
 0x2ee   : > { %9193 = vst [vmem:[#allocation24_spill] sm:$0xff] %v6233_v25  ;;  %v6240_v20 = vadd.f32 %v5845_v39, %v2121_v60 }
 0x2ef   : > { %v2569_v37 = vadd.f32 %v2568_v18, %v2567_v22  ;;  %v2574_v18 = vsel %vm1924_vm7, %v9194_v54, 0.0  ;;  %v2122_v22 = vld [vmem:[#allocation2 + $0x1d8] sm:$0xff]  ;;  %v9198_v54 = vmax.f32 %v6219_v0, 0.0 }
 0x2f0   : > { %9195 = vst [vmem:[#allocation25_spill] sm:$0xff] %v6240_v20  ;;  %v6247_v15 = vadd.f32 %v5845_v39, %v2122_v22 }
 0x2f1   : > { %v2571_v7 = vadd.f32 %v2570_v31, %v2569_v37  ;;  %v2576_v31 = vsel %vm1924_vm7, %v9196_v52, 0.0  ;;  %v2123_v37 = vld [vmem:[#allocation2 + $0x1e0] sm:$0xff]  ;;  %v9200_v52 = vmax.f32 %v6226_v57, 0.0 }
 0x2f2   : > { %9197 = vst [vmem:[#allocation26_spill] sm:$0xff] %v6247_v15  ;;  %v6254_v10 = vadd.f32 %v5845_v39, %v2123_v37 }
 0x2f3   : > { %v2573_v21 = vadd.f32 %v2572_v59, %v2571_v7  ;;  %v2578_v59 = vsel %vm1924_vm7, %v9198_v54, 0.0  ;;  %v2124_v7 = vld [vmem:[#allocation2 + $0x1e8] sm:$0xff]  ;;  %v9202_v54 = vmax.f32 %v6233_v25, 0.0 }
 0x2f4   : > { %9199 = vst [vmem:[#allocation27_spill] sm:$0xff] %v6254_v10  ;;  %v6261_v4 = vadd.f32 %v5845_v39, %v2124_v7 }
 0x2f5   : > { %v2575_v36 = vadd.f32 %v2574_v18, %v2573_v21  ;;  %v2580_v18 = vsel %vm1924_vm7, %v9200_v52, 0.0  ;;  %v2125_v21 = vld [vmem:[#allocation2 + $0x1f0] sm:$0xff]  ;;  %v9204_v52 = vmax.f32 %v6240_v20, 0.0 }
 0x2f6   : > { %9201 = vst [vmem:[#allocation28_spill] sm:$0xff] %v6261_v4  ;;  %v6268_v0 = vadd.f32 %v5845_v39, %v2125_v21 }
 0x2f7   : > { %v2577_v60 = vadd.f32 %v2576_v31, %v2575_v36  ;;  %v2582_v31 = vsel %vm1924_vm7, %v9202_v54, 0.0  ;;  %v2126_v36 = vld [vmem:[#allocation2 + $0x1f8] sm:$0xff]  ;;  %v9206_v54 = vmax.f32 %v6247_v15, 0.0 }
 0x2f8   : > { %9203 = vst [vmem:[#allocation29_spill] sm:$0xff] %v6268_v0  ;;  %v6275_v57 = vadd.f32 %v5845_v39, %v2126_v36 }
 0x2f9   : > { %v2579_v22 = vadd.f32 %v2578_v59, %v2577_v60  ;;  %v2584_v59 = vsel %vm1924_vm7, %v9204_v52, 0.0  ;;  %v2127_v60 = vld [vmem:[#allocation2 + $0x200] sm:$0xff]  ;;  %v9208_v52 = vmax.f32 %v6254_v10, 0.0 }
 0x2fa   : > { %9205 = vst [vmem:[#allocation30_spill] sm:$0xff] %v6275_v57  ;;  %v6282_v25 = vadd.f32 %v5845_v39, %v2127_v60 }
 0x2fb   : > { %v2581_v37 = vadd.f32 %v2580_v18, %v2579_v22  ;;  %v2586_v18 = vsel %vm1924_vm7, %v9206_v54, 0.0  ;;  %v2128_v22 = vld [vmem:[#allocation2 + $0x208] sm:$0xff]  ;;  %v9210_v54 = vmax.f32 %v6261_v4, 0.0 }
 0x2fc   : > { %9207 = vst [vmem:[#allocation31_spill] sm:$0xff] %v6282_v25  ;;  %v6289_v20 = vadd.f32 %v5845_v39, %v2128_v22 }
 0x2fd   : > { %v2583_v7 = vadd.f32 %v2582_v31, %v2581_v37  ;;  %v2588_v31 = vsel %vm1924_vm7, %v9208_v52, 0.0  ;;  %v2129_v37 = vld [vmem:[#allocation2 + $0x210] sm:$0xff]  ;;  %v9212_v52 = vmax.f32 %v6268_v0, 0.0 }
 0x2fe   : > { %9209 = vst [vmem:[#allocation32_spill] sm:$0xff] %v6289_v20  ;;  %v6296_v15 = vadd.f32 %v5845_v39, %v2129_v37 }
 0x2ff   : > { %v2585_v21 = vadd.f32 %v2584_v59, %v2583_v7  ;;  %v2590_v59 = vsel %vm1924_vm7, %v9210_v54, 0.0  ;;  %v2130_v7 = vld [vmem:[#allocation2 + $0x218] sm:$0xff]  ;;  %v9214_v54 = vmax.f32 %v6275_v57, 0.0 }
 0x300   : > { %9211 = vst [vmem:[#allocation33_spill] sm:$0xff] %v6296_v15  ;;  %v6303_v10 = vadd.f32 %v5845_v39, %v2130_v7 }
 0x301   : > { %v2587_v36 = vadd.f32 %v2586_v18, %v2585_v21  ;;  %v2592_v18 = vsel %vm1924_vm7, %v9212_v52, 0.0  ;;  %v2131_v21 = vld [vmem:[#allocation2 + $0x220] sm:$0xff]  ;;  %v9216_v52 = vmax.f32 %v6282_v25, 0.0 }
 0x302   : > { %9213 = vst [vmem:[#allocation34_spill] sm:$0xff] %v6303_v10  ;;  %v6310_v4 = vadd.f32 %v5845_v39, %v2131_v21 }
 0x303   : > { %v2589_v60 = vadd.f32 %v2588_v31, %v2587_v36  ;;  %v2594_v31 = vsel %vm1924_vm7, %v9214_v54, 0.0  ;;  %v2132_v36 = vld [vmem:[#allocation2 + $0x228] sm:$0xff]  ;;  %v9218_v54 = vmax.f32 %v6289_v20, 0.0 }
 0x304   : > { %9215 = vst [vmem:[#allocation35_spill] sm:$0xff] %v6310_v4  ;;  %v6317_v0 = vadd.f32 %v5845_v39, %v2132_v36 }
 0x305   : > { %v2591_v22 = vadd.f32 %v2590_v59, %v2589_v60  ;;  %v2596_v59 = vsel %vm1924_vm7, %v9216_v52, 0.0  ;;  %v2133_v60 = vld [vmem:[#allocation2 + $0x230] sm:$0xff]  ;;  %v9220_v52 = vmax.f32 %v6296_v15, 0.0 }
 0x306   : > { %9217 = vst [vmem:[#allocation36_spill] sm:$0xff] %v6317_v0  ;;  %v6324_v57 = vadd.f32 %v5845_v39, %v2133_v60 }
 0x307   : > { %v2593_v37 = vadd.f32 %v2592_v18, %v2591_v22  ;;  %v2598_v18 = vsel %vm1924_vm7, %v9218_v54, 0.0  ;;  %v2134_v22 = vld [vmem:[#allocation2 + $0x238] sm:$0xff]  ;;  %v9222_v54 = vmax.f32 %v6303_v10, 0.0 }
 0x308   : > { %9219 = vst [vmem:[#allocation37_spill] sm:$0xff] %v6324_v57  ;;  %v6331_v25 = vadd.f32 %v5845_v39, %v2134_v22 }
 0x309   : > { %v2595_v7 = vadd.f32 %v2594_v31, %v2593_v37  ;;  %v2600_v31 = vsel %vm1924_vm7, %v9220_v52, 0.0  ;;  %v2135_v37 = vld [vmem:[#allocation2 + $0x240] sm:$0xff]  ;;  %v9224_v52 = vmax.f32 %v6310_v4, 0.0 }
 0x30a   : > { %9221 = vst [vmem:[#allocation38_spill] sm:$0xff] %v6331_v25  ;;  %v6338_v20 = vadd.f32 %v5845_v39, %v2135_v37 }
 0x30b   : > { %v2597_v21 = vadd.f32 %v2596_v59, %v2595_v7  ;;  %v2602_v59 = vsel %vm1924_vm7, %v9222_v54, 0.0  ;;  %v2136_v7 = vld [vmem:[#allocation2 + $0x248] sm:$0xff]  ;;  %v9226_v54 = vmax.f32 %v6317_v0, 0.0 }
 0x30c   : > { %9223 = vst [vmem:[#allocation39_spill] sm:$0xff] %v6338_v20  ;;  %v6345_v15 = vadd.f32 %v5845_v39, %v2136_v7 }
 0x30d   : > { %v2599_v36 = vadd.f32 %v2598_v18, %v2597_v21  ;;  %v2604_v18 = vsel %vm1924_vm7, %v9224_v52, 0.0  ;;  %v2137_v21 = vld [vmem:[#allocation2 + $0x250] sm:$0xff]  ;;  %v9228_v52 = vmax.f32 %v6324_v57, 0.0 }
 0x30e   : > { %9225 = vst [vmem:[#allocation40_spill] sm:$0xff] %v6345_v15  ;;  %v6352_v10 = vadd.f32 %v5845_v39, %v2137_v21 }
 0x30f   : > { %v2601_v60 = vadd.f32 %v2600_v31, %v2599_v36  ;;  %v2606_v31 = vsel %vm1924_vm7, %v9226_v54, 0.0  ;;  %v2138_v36 = vld [vmem:[#allocation2 + $0x258] sm:$0xff]  ;;  %v9230_v54 = vmax.f32 %v6331_v25, 0.0 }
 0x310   : > { %9227 = vst [vmem:[#allocation41_spill] sm:$0xff] %v6352_v10  ;;  %v6359_v4 = vadd.f32 %v5845_v39, %v2138_v36 }
 0x311   : > { %v2603_v22 = vadd.f32 %v2602_v59, %v2601_v60  ;;  %v2608_v59 = vsel %vm1924_vm7, %v9228_v52, 0.0  ;;  %v2139_v60 = vld [vmem:[#allocation2 + $0x260] sm:$0xff]  ;;  %v9232_v52 = vmax.f32 %v6338_v20, 0.0 }
 0x312   : > { %9229 = vst [vmem:[#allocation42_spill] sm:$0xff] %v6359_v4  ;;  %v6366_v0 = vadd.f32 %v5845_v39, %v2139_v60 }
 0x313   : > { %v2605_v37 = vadd.f32 %v2604_v18, %v2603_v22  ;;  %v2610_v18 = vsel %vm1924_vm7, %v9230_v54, 0.0  ;;  %v2140_v22 = vld [vmem:[#allocation2 + $0x268] sm:$0xff]  ;;  %v9234_v54 = vmax.f32 %v6345_v15, 0.0 }
 0x314   : > { %9231 = vst [vmem:[#allocation43_spill] sm:$0xff] %v6366_v0  ;;  %v6373_v57 = vadd.f32 %v5845_v39, %v2140_v22 }
 0x315   : > { %v2607_v7 = vadd.f32 %v2606_v31, %v2605_v37  ;;  %v2612_v31 = vsel %vm1924_vm7, %v9232_v52, 0.0  ;;  %v2141_v37 = vld [vmem:[#allocation2 + $0x270] sm:$0xff]  ;;  %v9236_v52 = vmax.f32 %v6352_v10, 0.0 }
 0x316   : > { %9233 = vst [vmem:[#allocation44_spill] sm:$0xff] %v6373_v57  ;;  %v6380_v25 = vadd.f32 %v5845_v39, %v2141_v37 }
 0x317   : > { %v2609_v21 = vadd.f32 %v2608_v59, %v2607_v7  ;;  %v2614_v59 = vsel %vm1924_vm7, %v9234_v54, 0.0  ;;  %v2142_v7 = vld [vmem:[#allocation2 + $0x278] sm:$0xff]  ;;  %v9238_v54 = vmax.f32 %v6359_v4, 0.0 }
 0x318   : > { %9235 = vst [vmem:[#allocation45_spill] sm:$0xff] %v6380_v25  ;;  %v6387_v20 = vadd.f32 %v5845_v39, %v2142_v7 }
 0x319   : > { %v2611_v36 = vadd.f32 %v2610_v18, %v2609_v21  ;;  %v2616_v18 = vsel %vm1924_vm7, %v9236_v52, 0.0  ;;  %v2143_v21 = vld [vmem:[#allocation2 + $0x280] sm:$0xff]  ;;  %v9240_v52 = vmax.f32 %v6366_v0, 0.0 }
 0x31a   : > { %9237 = vst [vmem:[#allocation46_spill] sm:$0xff] %v6387_v20  ;;  %v6394_v15 = vadd.f32 %v5845_v39, %v2143_v21 }
 0x31b   : > { %v2613_v60 = vadd.f32 %v2612_v31, %v2611_v36  ;;  %v2618_v31 = vsel %vm1924_vm7, %v9238_v54, 0.0  ;;  %v2144_v36 = vld [vmem:[#allocation2 + $0x288] sm:$0xff]  ;;  %v9242_v54 = vmax.f32 %v6373_v57, 0.0 }
 0x31c   : > { %9239 = vst [vmem:[#allocation47_spill] sm:$0xff] %v6394_v15  ;;  %v6401_v10 = vadd.f32 %v5845_v39, %v2144_v36 }
 0x31d   : > { %v2615_v22 = vadd.f32 %v2614_v59, %v2613_v60  ;;  %v2620_v59 = vsel %vm1924_vm7, %v9240_v52, 0.0  ;;  %v2145_v60 = vld [vmem:[#allocation2 + $0x290] sm:$0xff]  ;;  %v9244_v52 = vmax.f32 %v6380_v25, 0.0 }
 0x31e   : > { %9241 = vst [vmem:[#allocation48_spill] sm:$0xff] %v6401_v10  ;;  %v6408_v4 = vadd.f32 %v5845_v39, %v2145_v60 }
 0x31f   : > { %v2617_v37 = vadd.f32 %v2616_v18, %v2615_v22  ;;  %v2622_v18 = vsel %vm1924_vm7, %v9242_v54, 0.0  ;;  %v2146_v22 = vld [vmem:[#allocation2 + $0x298] sm:$0xff]  ;;  %v9246_v54 = vmax.f32 %v6387_v20, 0.0 }
 0x320   : > { %9243 = vst [vmem:[#allocation49_spill] sm:$0xff] %v6408_v4  ;;  %v6415_v0 = vadd.f32 %v5845_v39, %v2146_v22 }
 0x321   : > { %v2619_v7 = vadd.f32 %v2618_v31, %v2617_v37  ;;  %v2624_v31 = vsel %vm1924_vm7, %v9244_v52, 0.0  ;;  %v2147_v37 = vld [vmem:[#allocation2 + $0x2a0] sm:$0xff]  ;;  %v9248_v52 = vmax.f32 %v6394_v15, 0.0 }
 0x322   : > { %9245 = vst [vmem:[#allocation50_spill] sm:$0xff] %v6415_v0  ;;  %v6422_v57 = vadd.f32 %v5845_v39, %v2147_v37 }
 0x323   : > { %v2621_v21 = vadd.f32 %v2620_v59, %v2619_v7  ;;  %v2626_v59 = vsel %vm1924_vm7, %v9246_v54, 0.0  ;;  %v2148_v7 = vld [vmem:[#allocation2 + $0x2a8] sm:$0xff]  ;;  %v9250_v54 = vmax.f32 %v6401_v10, 0.0 }
 0x324   : > { %9247 = vst [vmem:[#allocation51_spill] sm:$0xff] %v6422_v57  ;;  %v6429_v25 = vadd.f32 %v5845_v39, %v2148_v7 }
 0x325   : > { %v2623_v36 = vadd.f32 %v2622_v18, %v2621_v21  ;;  %v2628_v18 = vsel %vm1924_vm7, %v9248_v52, 0.0  ;;  %v2149_v21 = vld [vmem:[#allocation2 + $0x2b0] sm:$0xff]  ;;  %v9252_v52 = vmax.f32 %v6408_v4, 0.0 }
 0x326   : > { %9249 = vst [vmem:[#allocation52_spill] sm:$0xff] %v6429_v25  ;;  %v6436_v20 = vadd.f32 %v5845_v39, %v2149_v21 }
 0x327   : > { %v2625_v60 = vadd.f32 %v2624_v31, %v2623_v36  ;;  %v2630_v31 = vsel %vm1924_vm7, %v9250_v54, 0.0  ;;  %v2150_v36 = vld [vmem:[#allocation2 + $0x2b8] sm:$0xff]  ;;  %v9254_v54 = vmax.f32 %v6415_v0, 0.0 }
 0x328   : > { %9251 = vst [vmem:[#allocation53_spill] sm:$0xff] %v6436_v20  ;;  %v6443_v15 = vadd.f32 %v5845_v39, %v2150_v36 }
 0x329   : > { %v2627_v22 = vadd.f32 %v2626_v59, %v2625_v60  ;;  %v2632_v59 = vsel %vm1924_vm7, %v9252_v52, 0.0  ;;  %v2151_v60 = vld [vmem:[#allocation2 + $0x2c0] sm:$0xff]  ;;  %v9256_v52 = vmax.f32 %v6422_v57, 0.0 }
 0x32a   : > { %9253 = vst [vmem:[#allocation54_spill] sm:$0xff] %v6443_v15  ;;  %v6450_v10 = vadd.f32 %v5845_v39, %v2151_v60 }
 0x32b   : > { %v2629_v37 = vadd.f32 %v2628_v18, %v2627_v22  ;;  %v2634_v18 = vsel %vm1924_vm7, %v9254_v54, 0.0  ;;  %v2152_v22 = vld [vmem:[#allocation2 + $0x2c8] sm:$0xff]  ;;  %v9258_v54 = vmax.f32 %v6429_v25, 0.0 }
 0x32c   : > { %9255 = vst [vmem:[#allocation55_spill] sm:$0xff] %v6450_v10  ;;  %v6457_v4 = vadd.f32 %v5845_v39, %v2152_v22 }
 0x32d   : > { %v2631_v7 = vadd.f32 %v2630_v31, %v2629_v37  ;;  %v2636_v31 = vsel %vm1924_vm7, %v9256_v52, 0.0  ;;  %v2153_v37 = vld [vmem:[#allocation2 + $0x2d0] sm:$0xff]  ;;  %v9260_v52 = vmax.f32 %v6436_v20, 0.0 }
 0x32e   : > { %9257 = vst [vmem:[#allocation56_spill] sm:$0xff] %v6457_v4  ;;  %v6464_v0 = vadd.f32 %v5845_v39, %v2153_v37 }
 0x32f   : > { %v2633_v21 = vadd.f32 %v2632_v59, %v2631_v7  ;;  %v2638_v59 = vsel %vm1924_vm7, %v9258_v54, 0.0  ;;  %v2154_v7 = vld [vmem:[#allocation2 + $0x2d8] sm:$0xff]  ;;  %v9262_v54 = vmax.f32 %v6443_v15, 0.0 }
 0x330   : > { %9259 = vst [vmem:[#allocation57_spill] sm:$0xff] %v6464_v0  ;;  %v6471_v57 = vadd.f32 %v5845_v39, %v2154_v7 }
 0x331   : > { %v2635_v36 = vadd.f32 %v2634_v18, %v2633_v21  ;;  %v2640_v18 = vsel %vm1924_vm7, %v9260_v52, 0.0  ;;  %v2155_v21 = vld [vmem:[#allocation2 + $0x2e0] sm:$0xff]  ;;  %v9264_v52 = vmax.f32 %v6450_v10, 0.0 }
 0x332   : > { %9261 = vst [vmem:[#allocation58_spill] sm:$0xff] %v6471_v57  ;;  %v6478_v25 = vadd.f32 %v5845_v39, %v2155_v21 }
 0x333   : > { %v2637_v60 = vadd.f32 %v2636_v31, %v2635_v36  ;;  %v2642_v31 = vsel %vm1924_vm7, %v9262_v54, 0.0  ;;  %v2156_v36 = vld [vmem:[#allocation2 + $0x2e8] sm:$0xff]  ;;  %v9266_v54 = vmax.f32 %v6457_v4, 0.0 }
 0x334   : > { %9263 = vst [vmem:[#allocation59_spill] sm:$0xff] %v6478_v25  ;;  %v6485_v20 = vadd.f32 %v5845_v39, %v2156_v36 }
 0x335   : > { %v2639_v22 = vadd.f32 %v2638_v59, %v2637_v60  ;;  %v2644_v59 = vsel %vm1924_vm7, %v9264_v52, 0.0  ;;  %v2157_v60 = vld [vmem:[#allocation2 + $0x2f0] sm:$0xff]  ;;  %v9268_v52 = vmax.f32 %v6464_v0, 0.0 }
 0x336   : > { %9265 = vst [vmem:[#allocation60_spill] sm:$0xff] %v6485_v20  ;;  %v6492_v15 = vadd.f32 %v5845_v39, %v2157_v60 }
 0x337   : > { %v2641_v37 = vadd.f32 %v2640_v18, %v2639_v22  ;;  %v2646_v18 = vsel %vm1924_vm7, %v9266_v54, 0.0  ;;  %v2158_v22 = vld [vmem:[#allocation2 + $0x2f8] sm:$0xff]  ;;  %v9270_v54 = vmax.f32 %v6471_v57, 0.0 }
 0x338   : > { %9267 = vst [vmem:[#allocation61_spill] sm:$0xff] %v6492_v15  ;;  %v6499_v10 = vadd.f32 %v5845_v39, %v2158_v22 }
 0x339   : > { %v2643_v7 = vadd.f32 %v2642_v31, %v2641_v37  ;;  %v2648_v31 = vsel %vm1924_vm7, %v9268_v52, 0.0  ;;  %v2159_v37 = vld [vmem:[#allocation2 + $0x300] sm:$0xff]  ;;  %v9272_v52 = vmax.f32 %v6478_v25, 0.0 }
 0x33a   : > { %9269 = vst [vmem:[#allocation62_spill] sm:$0xff] %v6499_v10  ;;  %v6506_v4 = vadd.f32 %v5845_v39, %v2159_v37 }
 0x33b   : > { %v2645_v21 = vadd.f32 %v2644_v59, %v2643_v7  ;;  %v2650_v59 = vsel %vm1924_vm7, %v9270_v54, 0.0  ;;  %v2160_v7 = vld [vmem:[#allocation2 + $0x308] sm:$0xff]  ;;  %v9274_v54 = vmax.f32 %v6485_v20, 0.0 }
 0x33c   : > { %9271 = vst [vmem:[#allocation63_spill] sm:$0xff] %v6506_v4  ;;  %v6513_v0 = vadd.f32 %v5845_v39, %v2160_v7 }
 0x33d   : > { %v2647_v36 = vadd.f32 %v2646_v18, %v2645_v21  ;;  %v2652_v18 = vsel %vm1924_vm7, %v9272_v52, 0.0  ;;  %v2161_v21 = vld [vmem:[#allocation2 + $0x310] sm:$0xff]  ;;  %v9276_v52 = vmax.f32 %v6492_v15, 0.0 }
 0x33e   : > { %9273 = vst [vmem:[#allocation64_spill] sm:$0xff] %v6513_v0  ;;  %v6520_v57 = vadd.f32 %v5845_v39, %v2161_v21 }
 0x33f   : > { %v2649_v60 = vadd.f32 %v2648_v31, %v2647_v36  ;;  %v2654_v31 = vsel %vm1924_vm7, %v9274_v54, 0.0  ;;  %v2162_v36 = vld [vmem:[#allocation2 + $0x318] sm:$0xff]  ;;  %v9278_v54 = vmax.f32 %v6499_v10, 0.0 }
 0x340   : > { %9275 = vst [vmem:[#allocation65_spill] sm:$0xff] %v6520_v57  ;;  %v6527_v25 = vadd.f32 %v5845_v39, %v2162_v36 }
 0x341   : > { %v2651_v22 = vadd.f32 %v2650_v59, %v2649_v60  ;;  %v2656_v59 = vsel %vm1924_vm7, %v9276_v52, 0.0  ;;  %v2163_v60 = vld [vmem:[#allocation2 + $0x320] sm:$0xff]  ;;  %v9280_v52 = vmax.f32 %v6506_v4, 0.0 }
 0x342   : > { %9277 = vst [vmem:[#allocation66_spill] sm:$0xff] %v6527_v25  ;;  %v6534_v20 = vadd.f32 %v5845_v39, %v2163_v60 }
 0x343   : > { %v2653_v37 = vadd.f32 %v2652_v18, %v2651_v22  ;;  %v2658_v18 = vsel %vm1924_vm7, %v9278_v54, 0.0  ;;  %v2164_v22 = vld [vmem:[#allocation2 + $0x328] sm:$0xff]  ;;  %v9282_v54 = vmax.f32 %v6513_v0, 0.0 }
 0x344   : > { %9279 = vst [vmem:[#allocation67_spill] sm:$0xff] %v6534_v20  ;;  %v6541_v15 = vadd.f32 %v5845_v39, %v2164_v22 }
 0x345   : > { %v2655_v7 = vadd.f32 %v2654_v31, %v2653_v37  ;;  %v2660_v31 = vsel %vm1924_vm7, %v9280_v52, 0.0  ;;  %v2165_v37 = vld [vmem:[#allocation2 + $0x330] sm:$0xff]  ;;  %v9284_v52 = vmax.f32 %v6520_v57, 0.0  ;;  %v6568_v57 = vld [vmem:[#allocation3] ss:$0 sm:$0xff] }
 0x346   : > { %9281 = vst [vmem:[#allocation68_spill] sm:$0xff] %v6541_v15  ;;  %v6548_v10 = vadd.f32 %v5845_v39, %v2165_v37 }
 0x347   : > { %v2657_v21 = vadd.f32 %v2656_v59, %v2655_v7  ;;  %v2662_v59 = vsel %vm1924_vm7, %v9282_v54, 0.0  ;;  %v2166_v7 = vld [vmem:[#allocation2 + $0x338] sm:$0xff]  ;;  %v9286_v54 = vmax.f32 %v6527_v25, 0.0 }
 0x348   : > { %9283 = vst [vmem:[#allocation69_spill] sm:$0xff] %v6548_v10  ;;  %v6555_v4 = vadd.f32 %v5845_v39, %v2166_v7 }
 0x349   : > { %v2659_v36 = vadd.f32 %v2658_v18, %v2657_v21  ;;  %v2664_v18 = vsel %vm1924_vm7, %v9284_v52, 0.0  ;;  %v2167_v21 = vld [vmem:[#allocation2 + $0x340] sm:$0xff]  ;;  %v9288_v52 = vmax.f32 %v6534_v20, 0.0 }
 0x34a   : > { %9285 = vst [vmem:[#allocation70_spill] sm:$0xff] %v6555_v4  ;;  %v6562_v0 = vadd.f32 %v5845_v39, %v2167_v21  ;;  %v2170_v21 = vld [vmem:[#allocation2 + $0x358] sm:$0xff]  ;;  %v2171_v20 = vld [vmem:[#allocation2 + $0x360] sm:$0xff] }
 0x34b   : > { %v2661_v60 = vadd.f32 %v2660_v31, %v2659_v36  ;;  %v2666_v31 = vsel %vm1924_vm7, %v9286_v54, 0.0  ;;  %v2168_v36 = vld [vmem:[#allocation2 + $0x348] sm:$0xff]  ;;  %v6585_v25 = vadd.f32 %v6568_v57, %v2170_v21 }
 0x34c   : > { %9287 = vst [vmem:[#allocation71_spill] sm:$0xff] %v6562_v0  ;;  %v6571_v50 = vadd.f32 %v6568_v57, %v2168_v36 }
 0x34d   : > { %v2663_v22 = vadd.f32 %v2662_v59, %v2661_v60  ;;  %v2668_v59 = vsel %vm1924_vm7, %v9288_v52, 0.0  ;;  %v2169_v60 = vld [vmem:[#allocation2 + $0x350] sm:$0xff] }
 0x34e   : > { %9289 = vst [vmem:[#allocation72_spill] sm:$0xff] %v6571_v50  ;;  %v6578_v49 = vadd.f32 %v6568_v57, %v2169_v60 }
 0x34f   : > { %v2665_v37 = vadd.f32 %v2664_v18, %v2663_v22  ;;  %v9290_v18 = vmax.f32 %v6541_v15, 0.0  ;;  %v6592_v15 = vadd.f32 %v6568_v57, %v2171_v20 }
 0x350   : > { %9291 = vst [vmem:[#allocation73_spill] sm:$0xff] %v6578_v49 }
 0x351   : > { %v2667_v7 = vadd.f32 %v2666_v31, %v2665_v37  ;;  %v2670_v39 = vsel %vm1924_vm7, %v9290_v18, 0.0  ;;  %v9292_v31 = vmax.f32 %v6548_v10, 0.0  ;;  %v9293_v18 = vmax.f32 %v6555_v4, 0.0  ;;  %9294 = vst [vmem:[#allocation74_spill] sm:$0xff] %v6592_v15 }
 0x352   : > { %v9027_v52 = vmax.f32 %v6592_v15, 0.0 }
 0x353   : > { %v2669_v22 = vadd.f32 %v2668_v59, %v2667_v7  ;;  %v2672_v37 = vsel %vm1924_vm7, %v9292_v31, 0.0  ;;  %v2674_v59 = vsel %vm1924_vm7, %v9293_v18, 0.0  ;;  %v2172_v7 = vld [vmem:[#allocation2 + $0x368] sm:$0xff]  ;;  %v9295_v31 = vmax.f32 %v6562_v0, 0.0 }
 0x354   : > { %v6599_v10 = vadd.f32 %v6568_v57, %v2172_v7  ;;  %v9297_v18 = vmax.f32 %v6571_v50, 0.0  ;;  %v9299_v50 = vmax.f32 %v6585_v25, 0.0 }
 0x355   : > { %v2671_v36 = vadd.f32 %v2670_v39, %v2669_v22  ;;  %v2676_v39 = vsel %vm1924_vm7, %v9295_v31, 0.0  ;;  %v2173_v22 = vld [vmem:[#allocation2 + $0x370] sm:$0xff]  ;;  %v9298_v31 = vmax.f32 %v6578_v49, 0.0  ;;  %v2684_v49 = vsel %vm1924_vm7, %v9027_v52, 0.0 }
 0x356   : > { %9296 = vst [vmem:[#allocation75_spill] sm:$0xff] %v6599_v10  ;;  %v6606_v4 = vadd.f32 %v6568_v57, %v2173_v22  ;;  %v9029_v54 = vmax.f32 %v6599_v10, 0.0 }
 0x357   : > { %v2673_v60 = vadd.f32 %v2672_v37, %v2671_v36  ;;  %v2678_v37 = vsel %vm1924_vm7, %v9297_v18, 0.0  ;;  %v2174_v36 = vld [vmem:[#allocation2 + $0x378] sm:$0xff]  ;;  %v2682_v18 = vsel %vm1924_vm7, %v9299_v50, 0.0 }
 0x358   : > { %v6613_v7 = vadd.f32 %v6568_v57, %v2174_v36  ;;  %v9030_v22 = vmax.f32 %v6606_v4, 0.0 }
 0x359   : > { %v2675_v21 = vadd.f32 %v2674_v59, %v2673_v60  ;;  %v2680_v59 = vsel %vm1924_vm7, %v9298_v31, 0.0  ;;  %v2176_v31 = vld [vmem:[#allocation2 + $0x388] sm:$0xff] }
 0x35a   : > { %v9032_v36 = vmax.f32 %v6613_v7, 0.0  ;;  %v6634_v15 = vadd.f32 %v6568_v57, %v2176_v31 }
 0x35b   : > { %v2677_v20 = vadd.f32 %v2676_v39, %v2675_v21  ;;  %v2175_v39 = vld [vmem:[#allocation2 + $0x380] sm:$0xff] }
 0x35c   : > { %9301 = vst [vmem:[#allocation77_spill] sm:$0xff] %v6634_v15 }
 0x35d   : > { %v2679_v60 = vadd.f32 %v2678_v37, %v2677_v20  ;;  %v6624_v37 = vadd.f32 %v6568_v57, %v2175_v39  ;;  %v2686_v20 = vsel %vm1924_vm7, %v9029_v54, 0.0  ;;  %v2690_v39 = vsel %vm1924_vm7, %v9032_v36, 0.0 }
 0x35f   : > { %v2681_v21 = vadd.f32 %v2680_v59, %v2679_v60  ;;  %9300 = vst [vmem:[#allocation76_spill] sm:$0xff] %v6624_v37  ;;  %v2688_v59 = vsel %vm1924_vm7, %v9030_v22, 0.0 }
 0x361   : > { %v2683_v0 = vadd.f32 %v2682_v18, %v2681_v21  ;;  %v9031_v18 = vmax.f32 %v6624_v37, 0.0  ;;  %v2177_v21 = vld [vmem:[#allocation2 + $0x390] sm:$0xff] }
 0x362   : > { %v6641_v54 = vadd.f32 %v6568_v57, %v2177_v21 }
 0x363   : > { %v2685_v50 = vadd.f32 %v2684_v49, %v2683_v0  ;;  %v9033_v49 = vmax.f32 %v6634_v15, 0.0  ;;  %v2692_v0 = vsel %vm1924_vm7, %v9031_v18, 0.0 }
 0x364   : > { %9302 = vst [vmem:[#allocation78_spill] sm:$0xff] %v6641_v54  ;;  %v9035_v22 = vmax.f32 %v6641_v54, 0.0 }
 0x365   : > { %v2687_v60 = vadd.f32 %v2686_v20, %v2685_v50  ;;  %v2178_v20 = vld [vmem:[#allocation2 + $0x398] sm:$0xff] }
 0x366   : > { %v6648_v50 = vadd.f32 %v6568_v57, %v2178_v20 }
 0x367   : > { %v2689_v52 = vadd.f32 %v2688_v59, %v2687_v60  ;;  %v2179_v59 = vld [vmem:[#allocation2 + $0x3a0] sm:$0xff] }
 0x368   : > { %9303 = vst [vmem:[#allocation79_spill] sm:$0xff] %v6648_v50  ;;  %v9037_v21 = vmax.f32 %v6648_v50, 0.0 }
 0x369   : > { %v2691_v10 = vadd.f32 %v2690_v39, %v2689_v52  ;;  %v2694_v52 = vsel %vm1924_vm7, %v9033_v49, 0.0  ;;  %v6655_v39 = vadd.f32 %v6568_v57, %v2179_v59 }
 0x36b   : > { %v2693_v31 = vadd.f32 %v2692_v0, %v2691_v10  ;;  %9304 = vst [vmem:[#allocation80_spill] sm:$0xff] %v6655_v39  ;;  %v2696_v10 = vsel %vm1924_vm7, %v9035_v22, 0.0  ;;  %v2180_v0 = vld [vmem:[#allocation2 + $0x3a8] sm:$0xff]  ;;  %v9039_v36 = vmax.f32 %v6655_v39, 0.0 }
 0x36c   : > { %v6662_v18 = vadd.f32 %v6568_v57, %v2180_v0 }
 0x36d   : > { %v2695_v60 = vadd.f32 %v2694_v52, %v2693_v31  ;;  %v2698_v31 = vsel %vm1924_vm7, %v9037_v21, 0.0  ;;  %v2181_v52 = vld [vmem:[#allocation2 + $0x3b0] sm:$0xff] }
 0x36e   : > { %9305 = vst [vmem:[#allocation81_spill] sm:$0xff] %v6662_v18  ;;  %v6669_v49 = vadd.f32 %v6568_v57, %v2181_v52  ;;  %v9041_v54 = vmax.f32 %v6662_v18, 0.0 }
 0x36f   : > { %v2697_v20 = vadd.f32 %v2696_v10, %v2695_v60  ;;  %v2700_v60 = vsel %vm1924_vm7, %v9039_v36, 0.0  ;;  %v2182_v10 = vld [vmem:[#allocation2 + $0x3b8] sm:$0xff] }
 0x370   : > { %9306 = vst [vmem:[#allocation82_spill] sm:$0xff] %v6669_v49  ;;  %v6676_v22 = vadd.f32 %v6568_v57, %v2182_v10  ;;  %v9043_v50 = vmax.f32 %v6669_v49, 0.0 }
 0x371   : > { %v2699_v59 = vadd.f32 %v2698_v31, %v2697_v20  ;;  %v2702_v20 = vsel %vm1924_vm7, %v9041_v54, 0.0  ;;  %v2183_v31 = vld [vmem:[#allocation2 + $0x3c0] sm:$0xff] }
 0x372   : > { %9307 = vst [vmem:[#allocation83_spill] sm:$0xff] %v6676_v22  ;;  %v6683_v21 = vadd.f32 %v6568_v57, %v2183_v31  ;;  %v9045_v39 = vmax.f32 %v6676_v22, 0.0 }
 0x373   : > { %v2701_v0 = vadd.f32 %v2700_v60, %v2699_v59  ;;  %v2704_v59 = vsel %vm1924_vm7, %v9043_v50, 0.0  ;;  %v2184_v60 = vld [vmem:[#allocation2 + $0x3c8] sm:$0xff] }
 0x374   : > { %9308 = vst [vmem:[#allocation84_spill] sm:$0xff] %v6683_v21  ;;  %v6690_v36 = vadd.f32 %v6568_v57, %v2184_v60  ;;  %v9047_v18 = vmax.f32 %v6683_v21, 0.0 }
 0x375   : > { %v2703_v52 = vadd.f32 %v2702_v20, %v2701_v0  ;;  %v2706_v0 = vsel %vm1924_vm7, %v9045_v39, 0.0  ;;  %v2185_v20 = vld [vmem:[#allocation2 + $0x3d0] sm:$0xff] }
 0x376   : > { %9309 = vst [vmem:[#allocation85_spill] sm:$0xff] %v6690_v36  ;;  %v6697_v54 = vadd.f32 %v6568_v57, %v2185_v20  ;;  %v9049_v49 = vmax.f32 %v6690_v36, 0.0 }
 0x377   : > { %v2705_v10 = vadd.f32 %v2704_v59, %v2703_v52  ;;  %v2708_v52 = vsel %vm1924_vm7, %v9047_v18, 0.0  ;;  %v2186_v59 = vld [vmem:[#allocation2 + $0x3d8] sm:$0xff] }
 0x378   : > { %9310 = vst [vmem:[#allocation86_spill] sm:$0xff] %v6697_v54  ;;  %v6704_v50 = vadd.f32 %v6568_v57, %v2186_v59  ;;  %v9051_v22 = vmax.f32 %v6697_v54, 0.0 }
 0x379   : > { %v2707_v31 = vadd.f32 %v2706_v0, %v2705_v10  ;;  %v2710_v10 = vsel %vm1924_vm7, %v9049_v49, 0.0  ;;  %v2187_v0 = vld [vmem:[#allocation2 + $0x3e0] sm:$0xff] }
 0x37a   : > { %9311 = vst [vmem:[#allocation87_spill] sm:$0xff] %v6704_v50  ;;  %v6711_v39 = vadd.f32 %v6568_v57, %v2187_v0  ;;  %v9053_v21 = vmax.f32 %v6704_v50, 0.0 }
 0x37b   : > { %v2709_v60 = vadd.f32 %v2708_v52, %v2707_v31  ;;  %v2712_v31 = vsel %vm1924_vm7, %v9051_v22, 0.0  ;;  %v2188_v52 = vld [vmem:[#allocation2 + $0x3e8] sm:$0xff] }
 0x37c   : > { %9312 = vst [vmem:[#allocation88_spill] sm:$0xff] %v6711_v39  ;;  %v6718_v18 = vadd.f32 %v6568_v57, %v2188_v52  ;;  %v9055_v36 = vmax.f32 %v6711_v39, 0.0 }
 0x37d   : > { %v2711_v20 = vadd.f32 %v2710_v10, %v2709_v60  ;;  %v2714_v60 = vsel %vm1924_vm7, %v9053_v21, 0.0  ;;  %v2189_v10 = vld [vmem:[#allocation2 + $0x3f0] sm:$0xff] }
 0x37e   : > { %9313 = vst [vmem:[#allocation89_spill] sm:$0xff] %v6718_v18  ;;  %v6725_v49 = vadd.f32 %v6568_v57, %v2189_v10  ;;  %v9057_v54 = vmax.f32 %v6718_v18, 0.0 }
 0x37f   : > { %v2713_v59 = vadd.f32 %v2712_v31, %v2711_v20  ;;  %v2716_v20 = vsel %vm1924_vm7, %v9055_v36, 0.0  ;;  %v2190_v31 = vld [vmem:[#allocation2 + $0x3f8] sm:$0xff] }
 0x380   : > { %9314 = vst [vmem:[#allocation90_spill] sm:$0xff] %v6725_v49  ;;  %v6732_v22 = vadd.f32 %v6568_v57, %v2190_v31  ;;  %v9059_v50 = vmax.f32 %v6725_v49, 0.0 }
 0x381   : > { %v2715_v0 = vadd.f32 %v2714_v60, %v2713_v59  ;;  %v2718_v59 = vsel %vm1924_vm7, %v9057_v54, 0.0  ;;  %v2191_v60 = vld [vmem:[#allocation2 + $0x400] sm:$0xff] }
 0x382   : > { %9315 = vst [vmem:[#allocation91_spill] sm:$0xff] %v6732_v22  ;;  %v6739_v21 = vadd.f32 %v6568_v57, %v2191_v60  ;;  %v9061_v39 = vmax.f32 %v6732_v22, 0.0 }
 0x383   : > { %v2717_v52 = vadd.f32 %v2716_v20, %v2715_v0  ;;  %v2720_v0 = vsel %vm1924_vm7, %v9059_v50, 0.0  ;;  %v2192_v20 = vld [vmem:[#allocation2 + $0x408] sm:$0xff] }
 0x384   : > { %9316 = vst [vmem:[#allocation92_spill] sm:$0xff] %v6739_v21  ;;  %v6746_v36 = vadd.f32 %v6568_v57, %v2192_v20  ;;  %v9063_v18 = vmax.f32 %v6739_v21, 0.0 }
 0x385   : > { %v2719_v10 = vadd.f32 %v2718_v59, %v2717_v52  ;;  %v2722_v52 = vsel %vm1924_vm7, %v9061_v39, 0.0  ;;  %v2193_v59 = vld [vmem:[#allocation2 + $0x410] sm:$0xff] }
 0x386   : > { %9317 = vst [vmem:[#allocation93_spill] sm:$0xff] %v6746_v36  ;;  %v6753_v54 = vadd.f32 %v6568_v57, %v2193_v59  ;;  %v9065_v49 = vmax.f32 %v6746_v36, 0.0 }
 0x387   : > { %v2721_v31 = vadd.f32 %v2720_v0, %v2719_v10  ;;  %v2724_v10 = vsel %vm1924_vm7, %v9063_v18, 0.0  ;;  %v2194_v0 = vld [vmem:[#allocation2 + $0x418] sm:$0xff] }
 0x388   : > { %9318 = vst [vmem:[#allocation94_spill] sm:$0xff] %v6753_v54  ;;  %v6760_v50 = vadd.f32 %v6568_v57, %v2194_v0  ;;  %v9069_v22 = vmax.f32 %v6753_v54, 0.0 }
 0x389   : > { %v2723_v60 = vadd.f32 %v2722_v52, %v2721_v31  ;;  %v2726_v31 = vsel %vm1924_vm7, %v9065_v49, 0.0  ;;  %v2195_v52 = vld [vmem:[#allocation2 + $0x420] sm:$0x3] }
 0x38a   : > { %v6767_v39 = vadd.f32 %v6568_v57, %v2195_v52  ;;  %v9071_v21 = vmax.f32 %v6760_v50, 0.0 }
 0x38b   : > { %v2725_v20 = vadd.f32 %v2724_v10, %v2723_v60  ;;  %v2728_v60 = vsel %vm1924_vm7, %v9069_v22, 0.0 }
 0x38c   : > { %v9070_v0 = vmax.f32 %v6767_v39, 0.0  ;;  %v2730_v18 = vsel %vm1924_vm7, %v9071_v21, 0.0  ;;  %v9327_v21 = vmax.f32 %v5890_v3, 0.0  ;;  %v9329_v3 = vmax.f32 %v5904_v14, 0.0 }
 0x38d   : > { %v2727_v59 = vadd.f32 %v2726_v31, %v2725_v20  ;;  %v9331_v14 = vmax.f32 %v5918_v24, 0.0  ;;  %v9333_v24 = vmax.f32 %v5932_v34, 0.0  ;;  %v9335_v34 = vmax.f32 %v5946_v55, 0.0 }
 0x38e   : > { %v2732_v20 = vsel %vm2057_vm8, %v9070_v0, 0.0  ;;  %v9337_v55 = vmax.f32 %v5960_v6, 0.0  ;;  %v9339_v6 = vmax.f32 %v5974_v23, 0.0  ;;  %v9341_v23 = vmax.f32 %v5988_v44, 0.0 }
 0x38f   : > { %v2729_v10 = vadd.f32 %v2728_v60, %v2727_v59  ;;  %v9319_v59 = vmax.f32 %v5848_v42, 0.0  ;;  %v9323_v42 = vmax.f32 %v5860_v48, 0.0  ;;  %v9325_v48 = vmax.f32 %v5870_v56, 0.0 }
 0x390   : > { %v9343_v44 = vmax.f32 %v6002_v12, 0.0  ;;  %v9345_v12 = vmax.f32 %v6016_v38, 0.0  ;;  %v9347_v38 = vmax.f32 %v6030_v2, 0.0  ;;  %v9349_v2 = vmax.f32 %v6044_v28, 0.0 }
 0x391   : > { %v2731_v36 = vadd.f32 %v2730_v18, %v2729_v10  ;;  %v9320_v18 = vmax.f32 %v5851_v43, 0.0  ;;  %v9351_v28 = vmax.f32 %v6058_v11, 0.0  ;;  %v9353_v11 = vmax.f32 %v6072_v33, 0.0 }
 0x392   : > { %v9355_v33 = vmax.f32 %v6086_v17, 0.0  ;;  %v9357_v17 = vmax.f32 %v6100_v1, 0.0  ;;  %v9360_v1 = vmax.f32 %v6114_v41, 0.0  ;;  %v9364_v41 = vmax.f32 %v6128_v30, 0.0  ;;  %v9369_v30 = vld [vmem:[#allocation11_spill] sm:$0xff] }
 0x393   : > { %v2733_v57 = vadd.f32 %v2732_v20, %v2731_v36  ;;  %v9321_v36 = vmax.f32 %v5854_v45, 0.0 }
 0x395   : > { %v2734_v31 = vrot.slane %v2733_v57, 4 }
 0x397   : > { %v2735_v52 = vadd.f32 %v2734_v31, %v2733_v57  ;;  %v9324_v57 = vmax.f32 %v5866_v53, 0.0 }
 0x399   : > { %v2736_v49 = vrot.slane %v2735_v52, 2 }
 0x39b   : > { %v2737_v15 = vadd.f32 %v2736_v49, %v2735_v52 }
 0x39d   : > { %v2738_v54 = vrot.slane %v2737_v15, 1 }
 0x39f   : > { %v2739_v37 = vadd.f32 %v2738_v54, %v2737_v15  ;;  %v9322_v15 = vmax.f32 %v5857_v46, 0.0 }
 0x3a1   : > { %v6780_v22 = vmul.f32 0.0009451796, %v2739_v37 }
 0x3a3   : > { %v6785_v60 = vsub.f32 %v9319_v59, %v6780_v22  ;;  %v6790_v10 = vsub.f32 %v9320_v18, %v6780_v22  ;;  %v6795_v20 = vsub.f32 %v9321_v36, %v6780_v22  ;;  %v6800_v54 = vsub.f32 %v9322_v15, %v6780_v22 }
 0x3a4   : > { %v6805_v37 = vsub.f32 %v9323_v42, %v6780_v22  ;;  %v6816_v46 = vsub.f32 %v9324_v57, %v6780_v22  ;;  %v6823_v52 = vsub.f32 %v9325_v48, %v6780_v22  ;;  %v9326_v42 = vmax.f32 %v5883_v63, 0.0 }
 0x3a5   : > { %v2874_v43 = vmul.f32 %v6785_v60, %v6785_v60  ;;  %v2875_v49 = vmul.f32 %v6790_v10, %v6790_v10  ;;  %v2876_v45 = vmul.f32 %v6795_v20, %v6795_v20  ;;  %v2877_v31 = vmul.f32 %v6800_v54, %v6800_v54 }
 0x3a6   : > { %v2878_v59 = vmul.f32 %v6805_v37, %v6805_v37  ;;  %v6833_v57 = vsub.f32 %v9326_v42, %v6780_v22  ;;  %v2879_v56 = vmul.f32 %v6816_v46, %v6816_v46  ;;  %v9328_v63 = vmax.f32 %v5897_v9, 0.0 }
 0x3a7   : > { %v3007_v18 = vsel %vm1924_vm7, %v2874_v43, 0.0  ;;  %v3008_v36 = vsel %vm1924_vm7, %v2875_v49, 0.0  ;;  %v3010_v53 = vsel %vm1924_vm7, %v2876_v45, 0.0  ;;  %v3012_v48 = vsel %vm1924_vm7, %v2877_v31, 0.0 }
 0x3a8   : > { %v3009_v15 = vadd.f32 %v3008_v36, %v3007_v18  ;;  %v6841_v43 = vsub.f32 %v9327_v21, %v6780_v22  ;;  %v2880_v49 = vmul.f32 %v6823_v52, %v6823_v52  ;;  %v3014_v45 = vsel %vm1924_vm7, %v2878_v59, 0.0 }
 0x3a9   : > { %v6849_v36 = vsub.f32 %v9328_v63, %v6780_v22  ;;  %v2881_v31 = vmul.f32 %v6833_v57, %v6833_v57  ;;  %v6857_v21 = vsub.f32 %v9329_v3, %v6780_v22  ;;  %v9330_v9 = vmax.f32 %v5911_v19, 0.0 }
 0x3aa   : > { %v3011_v0 = vadd.f32 %v3010_v53, %v3009_v15  ;;  %v3016_v15 = vsel %vm1924_vm7, %v2879_v56, 0.0  ;;  %v2882_v59 = vmul.f32 %v6841_v43, %v6841_v43  ;;  %v6873_v63 = vsub.f32 %v9331_v14, %v6780_v22 }
 0x3ab   : > { %v2883_v56 = vmul.f32 %v6849_v36, %v6849_v36  ;;  %v9332_v19 = vmax.f32 %v5925_v29, 0.0  ;;  %v9334_v29 = vmax.f32 %v5939_v40, 0.0  ;;  %v9336_v40 = vmax.f32 %v5953_v62, 0.0 }
 0x3ac   : > { %v3013_v18 = vadd.f32 %v3012_v48, %v3011_v0  ;;  %v3018_v0 = vsel %vm1924_vm7, %v2880_v49, 0.0  ;;  %v6865_v48 = vsub.f32 %v9330_v9, %v6780_v22  ;;  %v2884_v49 = vmul.f32 %v6857_v21, %v6857_v21 }
 0x3ad   : > { %v6881_v3 = vsub.f32 %v9332_v19, %v6780_v22  ;;  %v6889_v9 = vsub.f32 %v9333_v24, %v6780_v22  ;;  %v6897_v14 = vsub.f32 %v9334_v29, %v6780_v22  ;;  %v6905_v19 = vsub.f32 %v9335_v34, %v6780_v22 }
 0x3ae   : > { %v3015_v53 = vadd.f32 %v3014_v45, %v3013_v18  ;;  %v3020_v45 = vsel %vm1924_vm7, %v2881_v31, 0.0  ;;  %v2885_v31 = vmul.f32 %v6865_v48, %v6865_v48  ;;  %v6913_v24 = vsub.f32 %v9336_v40, %v6780_v22 }
 0x3af   : > { %v6921_v29 = vsub.f32 %v9337_v55, %v6780_v22  ;;  %v9338_v62 = vmax.f32 %v5967_v16, 0.0  ;;  %v6937_v40 = vsub.f32 %v9339_v6, %v6780_v22  ;;  %v9340_v16 = vmax.f32 %v5981_v32, 0.0 }
 0x3b0   : > { %v3017_v42 = vadd.f32 %v3016_v15, %v3015_v53  ;;  %v3022_v15 = vsel %vm1924_vm7, %v2882_v59, 0.0  ;;  %v2886_v59 = vmul.f32 %v6873_v63, %v6873_v63  ;;  %v9342_v32 = vmax.f32 %v5995_v61, 0.0 }
 0x3b1   : > { %v6929_v34 = vsub.f32 %v9338_v62, %v6780_v22  ;;  %v6945_v55 = vsub.f32 %v9340_v16, %v6780_v22  ;;  %v6953_v62 = vsub.f32 %v9341_v23, %v6780_v22  ;;  %v6969_v16 = vsub.f32 %v9343_v44, %v6780_v22 }
 0x3b2   : > { %v3019_v18 = vadd.f32 %v3018_v0, %v3017_v42  ;;  %v3024_v0 = vsel %vm1924_vm7, %v2883_v56, 0.0  ;;  %v2887_v56 = vmul.f32 %v6881_v3, %v6881_v3  ;;  %v6961_v6 = vsub.f32 %v9342_v32, %v6780_v22 }
 0x3b3   : > { %v9344_v61 = vmax.f32 %v6009_v27, 0.0  ;;  %v6985_v32 = vsub.f32 %v9345_v12, %v6780_v22  ;;  %v9346_v27 = vmax.f32 %v6023_v5, 0.0  ;;  %v9348_v5 = vmax.f32 %v6037_v13, 0.0 }
 0x3b4   : > { %v3021_v53 = vadd.f32 %v3020_v45, %v3019_v18  ;;  %v3026_v45 = vsel %vm1924_vm7, %v2884_v49, 0.0  ;;  %v2888_v49 = vmul.f32 %v6889_v9, %v6889_v9  ;;  %v9350_v13 = vmax.f32 %v6051_v51, 0.0 }
 0x3b5   : > { %v6977_v23 = vsub.f32 %v9344_v61, %v6780_v22  ;;  %v6993_v44 = vsub.f32 %v9346_v27, %v6780_v22  ;;  %v7001_v61 = vsub.f32 %v9347_v38, %v6780_v22  ;;  %v7009_v12 = vsub.f32 %v9348_v5, %v6780_v22 }
 0x3b6   : > { %v3023_v42 = vadd.f32 %v3022_v15, %v3021_v53  ;;  %v3028_v15 = vsel %vm1924_vm7, %v2885_v31, 0.0  ;;  %v2889_v31 = vmul.f32 %v6897_v14, %v6897_v14  ;;  %v7017_v27 = vsub.f32 %v9349_v2, %v6780_v22 }
 0x3b7   : > { %v7025_v38 = vsub.f32 %v9350_v13, %v6780_v22  ;;  %v7033_v5 = vsub.f32 %v9351_v28, %v6780_v22  ;;  %v9352_v51 = vmax.f32 %v6065_v47, 0.0  ;;  %v7049_v13 = vsub.f32 %v9353_v11, %v6780_v22 }
 0x3b8   : > { %v3025_v18 = vadd.f32 %v3024_v0, %v3023_v42  ;;  %v3030_v0 = vsel %vm1924_vm7, %v2886_v59, 0.0  ;;  %v2890_v59 = vmul.f32 %v6905_v19, %v6905_v19  ;;  %v9354_v47 = vmax.f32 %v6079_v26, 0.0 }
 0x3b9   : > { %v7041_v2 = vsub.f32 %v9352_v51, %v6780_v22  ;;  %v7065_v51 = vsub.f32 %v9355_v33, %v6780_v22  ;;  %v9356_v26 = vmax.f32 %v6093_v8, 0.0  ;;  %v9358_v8 = vmax.f32 %v6107_v58, 0.0 }
 0x3ba   : > { %v3027_v53 = vadd.f32 %v3026_v45, %v3025_v18  ;;  %v3032_v45 = vsel %vm1924_vm7, %v2887_v56, 0.0  ;;  %v2891_v56 = vmul.f32 %v6913_v24, %v6913_v24  ;;  %v7057_v28 = vsub.f32 %v9354_v47, %v6780_v22 }
 0x3bb   : > { %v7073_v11 = vsub.f32 %v9356_v26, %v6780_v22  ;;  %v7081_v47 = vsub.f32 %v9357_v17, %v6780_v22  ;;  %v7089_v33 = vsub.f32 %v9358_v8, %v6780_v22  ;;  %v7097_v26 = vsub.f32 %v9360_v1, %v6780_v22 }
 0x3bc   : > { %v3029_v42 = vadd.f32 %v3028_v15, %v3027_v53  ;;  %v3034_v15 = vsel %vm1924_vm7, %v2888_v49, 0.0  ;;  %v2892_v49 = vmul.f32 %v6921_v29, %v6921_v29  ;;  %v9362_v58 = vmax.f32 %v6121_v35, 0.0  ;;  %v9366_v35 = vld [vmem:[#allocation10_spill] sm:$0xff] }
 0x3bd   : > { %9359 = vst [vmem:[#allocation95_spill] sm:$0xff] %v7089_v33  ;;  %9361 = vst [vmem:[#allocation96_spill] sm:$0xff] %v7097_v26  ;;  %v7113_v8 = vsub.f32 %v9364_v41, %v6780_v22  ;;  %v9367_v1 = vmax.f32 %v9366_v35, 0.0  ;;  %v9370_v41 = vmax.f32 %v9369_v30, 0.0  ;;  %v9372_v35 = vld [vmem:[#allocation12_spill] sm:$0xff]  ;;  %v9375_v30 = vld [vmem:[#allocation13_spill] sm:$0xff] }
 0x3be   : > { %v3031_v18 = vadd.f32 %v3030_v0, %v3029_v42  ;;  %v3036_v0 = vsel %vm1924_vm7, %v2889_v31, 0.0  ;;  %v2893_v31 = vmul.f32 %v6929_v34, %v6929_v34  ;;  %v7105_v17 = vsub.f32 %v9362_v58, %v6780_v22 }
 0x3bf   : > { %9365 = vst [vmem:[#allocation98_spill] sm:$0xff] %v7113_v8  ;;  %v7121_v58 = vsub.f32 %v9367_v1, %v6780_v22  ;;  %v9373_v1 = vmax.f32 %v9372_v35, 0.0  ;;  %v9378_v35 = vld [vmem:[#allocation14_spill] sm:$0xff] }
 0x3c0   : > { %v3033_v53 = vadd.f32 %v3032_v45, %v3031_v18  ;;  %v3038_v45 = vsel %vm1924_vm7, %v2890_v59, 0.0  ;;  %v2894_v59 = vmul.f32 %v6937_v40, %v6937_v40  ;;  %9363 = vst [vmem:[#allocation97_spill] sm:$0xff] %v7105_v17 }
 0x3c1   : > { %9368 = vst [vmem:[#allocation10_spill] sm:$0xff] %v7121_v58 }
 0x3c2   : > { %v3035_v42 = vadd.f32 %v3034_v15, %v3033_v53  ;;  %v3040_v15 = vsel %vm1924_vm7, %v2891_v56, 0.0  ;;  %v2895_v56 = vmul.f32 %v6945_v55, %v6945_v55 }
 0x3c4   : > { %v3037_v18 = vadd.f32 %v3036_v0, %v3035_v42  ;;  %v3042_v0 = vsel %vm1924_vm7, %v2892_v49, 0.0  ;;  %v2896_v49 = vmul.f32 %v6953_v62, %v6953_v62 }
 0x3c6   : > { %v3039_v53 = vadd.f32 %v3038_v45, %v3037_v18  ;;  %v3044_v45 = vsel %vm1924_vm7, %v2893_v31, 0.0  ;;  %v2897_v31 = vmul.f32 %v6961_v6, %v6961_v6 }
 0x3c8   : > { %v3041_v42 = vadd.f32 %v3040_v15, %v3039_v53  ;;  %v3046_v15 = vsel %vm1924_vm7, %v2894_v59, 0.0  ;;  %v2898_v59 = vmul.f32 %v6969_v16, %v6969_v16 }
 0x3ca   : > { %v3043_v18 = vadd.f32 %v3042_v0, %v3041_v42  ;;  %v3048_v0 = vsel %vm1924_vm7, %v2895_v56, 0.0  ;;  %v2899_v56 = vmul.f32 %v6977_v23, %v6977_v23 }
 0x3cc   : > { %v3045_v53 = vadd.f32 %v3044_v45, %v3043_v18  ;;  %v3050_v45 = vsel %vm1924_vm7, %v2896_v49, 0.0  ;;  %v2900_v49 = vmul.f32 %v6985_v32, %v6985_v32 }
 0x3ce   : > { %v3047_v42 = vadd.f32 %v3046_v15, %v3045_v53  ;;  %v3052_v15 = vsel %vm1924_vm7, %v2897_v31, 0.0  ;;  %v2901_v31 = vmul.f32 %v6993_v44, %v6993_v44 }
 0x3d0   : > { %v3049_v18 = vadd.f32 %v3048_v0, %v3047_v42  ;;  %v3054_v0 = vsel %vm1924_vm7, %v2898_v59, 0.0  ;;  %v2902_v59 = vmul.f32 %v7001_v61, %v7001_v61 }
 0x3d2   : > { %v3051_v53 = vadd.f32 %v3050_v45, %v3049_v18  ;;  %v3056_v45 = vsel %vm1924_vm7, %v2899_v56, 0.0  ;;  %v2903_v56 = vmul.f32 %v7009_v12, %v7009_v12 }
 0x3d4   : > { %v3053_v42 = vadd.f32 %v3052_v15, %v3051_v53  ;;  %v3058_v15 = vsel %vm1924_vm7, %v2900_v49, 0.0  ;;  %v2904_v49 = vmul.f32 %v7017_v27, %v7017_v27 }
 0x3d6   : > { %v3055_v18 = vadd.f32 %v3054_v0, %v3053_v42  ;;  %v3060_v0 = vsel %vm1924_vm7, %v2901_v31, 0.0  ;;  %v2905_v31 = vmul.f32 %v7025_v38, %v7025_v38 }
 0x3d8   : > { %v3057_v53 = vadd.f32 %v3056_v45, %v3055_v18  ;;  %v3062_v45 = vsel %vm1924_vm7, %v2902_v59, 0.0  ;;  %v2906_v59 = vmul.f32 %v7033_v5, %v7033_v5 }
 0x3da   : > { %v3059_v42 = vadd.f32 %v3058_v15, %v3057_v53  ;;  %v3064_v15 = vsel %vm1924_vm7, %v2903_v56, 0.0  ;;  %v2907_v56 = vmul.f32 %v7041_v2, %v7041_v2 }
 0x3dc   : > { %v3061_v18 = vadd.f32 %v3060_v0, %v3059_v42  ;;  %v3066_v0 = vsel %vm1924_vm7, %v2904_v49, 0.0  ;;  %v2908_v49 = vmul.f32 %v7049_v13, %v7049_v13 }
 0x3de   : > { %v3063_v53 = vadd.f32 %v3062_v45, %v3061_v18  ;;  %v3068_v45 = vsel %vm1924_vm7, %v2905_v31, 0.0  ;;  %v2909_v31 = vmul.f32 %v7057_v28, %v7057_v28 }
 0x3e0   : > { %v3065_v42 = vadd.f32 %v3064_v15, %v3063_v53  ;;  %v3070_v15 = vsel %vm1924_vm7, %v2906_v59, 0.0  ;;  %v2910_v59 = vmul.f32 %v7065_v51, %v7065_v51 }
 0x3e2   : > { %v3067_v18 = vadd.f32 %v3066_v0, %v3065_v42  ;;  %v3072_v0 = vsel %vm1924_vm7, %v2907_v56, 0.0  ;;  %v2911_v56 = vmul.f32 %v7073_v11, %v7073_v11 }
 0x3e4   : > { %v3069_v53 = vadd.f32 %v3068_v45, %v3067_v18  ;;  %v3074_v45 = vsel %vm1924_vm7, %v2908_v49, 0.0  ;;  %v2912_v49 = vmul.f32 %v7081_v47, %v7081_v47 }
 0x3e6   : > { %v3071_v42 = vadd.f32 %v3070_v15, %v3069_v53  ;;  %v3076_v15 = vsel %vm1924_vm7, %v2909_v31, 0.0  ;;  %v2913_v31 = vmul.f32 %v7089_v33, %v7089_v33  ;;  %v7129_v33 = vsub.f32 %v9370_v41, %v6780_v22 }
 0x3e7   : > { %v9376_v41 = vmax.f32 %v9375_v30, 0.0  ;;  %v9381_v30 = vld [vmem:[#allocation15_spill] sm:$0xff] }
 0x3e8   : > { %v3073_v18 = vadd.f32 %v3072_v0, %v3071_v42  ;;  %v3078_v0 = vsel %vm1924_vm7, %v2910_v59, 0.0  ;;  %v2914_v59 = vmul.f32 %v7097_v26, %v7097_v26  ;;  %9371 = vst [vmem:[#allocation11_spill] sm:$0xff] %v7129_v33  ;;  %v7137_v26 = vsub.f32 %v9373_v1, %v6780_v22 }
 0x3e9   : > { %v9379_v1 = vmax.f32 %v9378_v35, 0.0  ;;  %v9384_v35 = vld [vmem:[#allocation16_spill] sm:$0xff] }
 0x3ea   : > { %v3075_v53 = vadd.f32 %v3074_v45, %v3073_v18  ;;  %v3080_v45 = vsel %vm1924_vm7, %v2911_v56, 0.0  ;;  %v2915_v56 = vmul.f32 %v7105_v17, %v7105_v17  ;;  %9374 = vst [vmem:[#allocation12_spill] sm:$0xff] %v7137_v26  ;;  %v7145_v17 = vsub.f32 %v9376_v41, %v6780_v22 }
 0x3eb   : > { %v9382_v41 = vmax.f32 %v9381_v30, 0.0  ;;  %v9387_v30 = vld [vmem:[#allocation17_spill] sm:$0xff] }
 0x3ec   : > { %v3077_v42 = vadd.f32 %v3076_v15, %v3075_v53  ;;  %v3082_v15 = vsel %vm1924_vm7, %v2912_v49, 0.0  ;;  %v2916_v49 = vmul.f32 %v7113_v8, %v7113_v8  ;;  %9377 = vst [vmem:[#allocation13_spill] sm:$0xff] %v7145_v17  ;;  %v7153_v8 = vsub.f32 %v9379_v1, %v6780_v22 }
 0x3ed   : > { %v9385_v1 = vmax.f32 %v9384_v35, 0.0  ;;  %v9390_v35 = vld [vmem:[#allocation18_spill] sm:$0xff] }
 0x3ee   : > { %v3079_v18 = vadd.f32 %v3078_v0, %v3077_v42  ;;  %v3084_v0 = vsel %vm1924_vm7, %v2913_v31, 0.0  ;;  %v2917_v31 = vmul.f32 %v7121_v58, %v7121_v58  ;;  %9380 = vst [vmem:[#allocation14_spill] sm:$0xff] %v7153_v8  ;;  %v7161_v58 = vsub.f32 %v9382_v41, %v6780_v22 }
 0x3ef   : > { %v9388_v41 = vmax.f32 %v9387_v30, 0.0  ;;  %v9393_v30 = vld [vmem:[#allocation19_spill] sm:$0xff] }
 0x3f0   : > { %v3081_v53 = vadd.f32 %v3080_v45, %v3079_v18  ;;  %v3086_v45 = vsel %vm1924_vm7, %v2914_v59, 0.0  ;;  %v2918_v59 = vmul.f32 %v7129_v33, %v7129_v33  ;;  %9383 = vst [vmem:[#allocation15_spill] sm:$0xff] %v7161_v58  ;;  %v7169_v33 = vsub.f32 %v9385_v1, %v6780_v22 }
 0x3f1   : > { %v9391_v1 = vmax.f32 %v9390_v35, 0.0  ;;  %v9396_v35 = vld [vmem:[#allocation20_spill] sm:$0xff] }
 0x3f2   : > { %v3083_v42 = vadd.f32 %v3082_v15, %v3081_v53  ;;  %v3088_v15 = vsel %vm1924_vm7, %v2915_v56, 0.0  ;;  %v2919_v56 = vmul.f32 %v7137_v26, %v7137_v26  ;;  %9386 = vst [vmem:[#allocation16_spill] sm:$0xff] %v7169_v33  ;;  %v7177_v26 = vsub.f32 %v9388_v41, %v6780_v22 }
 0x3f3   : > { %v9394_v41 = vmax.f32 %v9393_v30, 0.0  ;;  %v9399_v30 = vld [vmem:[#allocation21_spill] sm:$0xff] }
 0x3f4   : > { %v3085_v18 = vadd.f32 %v3084_v0, %v3083_v42  ;;  %v3090_v0 = vsel %vm1924_vm7, %v2916_v49, 0.0  ;;  %v2920_v49 = vmul.f32 %v7145_v17, %v7145_v17  ;;  %9389 = vst [vmem:[#allocation17_spill] sm:$0xff] %v7177_v26  ;;  %v7185_v17 = vsub.f32 %v9391_v1, %v6780_v22 }
 0x3f5   : > { %v9397_v1 = vmax.f32 %v9396_v35, 0.0  ;;  %v9402_v35 = vld [vmem:[#allocation22_spill] sm:$0xff] }
 0x3f6   : > { %v3087_v53 = vadd.f32 %v3086_v45, %v3085_v18  ;;  %v3092_v45 = vsel %vm1924_vm7, %v2917_v31, 0.0  ;;  %v2921_v31 = vmul.f32 %v7153_v8, %v7153_v8  ;;  %9392 = vst [vmem:[#allocation18_spill] sm:$0xff] %v7185_v17  ;;  %v7193_v8 = vsub.f32 %v9394_v41, %v6780_v22 }
 0x3f7   : > { %v9400_v41 = vmax.f32 %v9399_v30, 0.0  ;;  %v9405_v30 = vld [vmem:[#allocation23_spill] sm:$0xff] }
 0x3f8   : > { %v3089_v42 = vadd.f32 %v3088_v15, %v3087_v53  ;;  %v3094_v15 = vsel %vm1924_vm7, %v2918_v59, 0.0  ;;  %v2922_v59 = vmul.f32 %v7161_v58, %v7161_v58  ;;  %9395 = vst [vmem:[#allocation19_spill] sm:$0xff] %v7193_v8  ;;  %v7201_v58 = vsub.f32 %v9397_v1, %v6780_v22 }
 0x3f9   : > { %v9403_v1 = vmax.f32 %v9402_v35, 0.0  ;;  %v9408_v35 = vld [vmem:[#allocation24_spill] sm:$0xff] }
 0x3fa   : > { %v3091_v18 = vadd.f32 %v3090_v0, %v3089_v42  ;;  %v3096_v0 = vsel %vm1924_vm7, %v2919_v56, 0.0  ;;  %v2923_v56 = vmul.f32 %v7169_v33, %v7169_v33  ;;  %9398 = vst [vmem:[#allocation20_spill] sm:$0xff] %v7201_v58  ;;  %v7209_v33 = vsub.f32 %v9400_v41, %v6780_v22 }
 0x3fb   : > { %v9406_v41 = vmax.f32 %v9405_v30, 0.0  ;;  %v9411_v30 = vld [vmem:[#allocation25_spill] sm:$0xff] }
 0x3fc   : > { %v3093_v53 = vadd.f32 %v3092_v45, %v3091_v18  ;;  %v3098_v45 = vsel %vm1924_vm7, %v2920_v49, 0.0  ;;  %v2924_v49 = vmul.f32 %v7177_v26, %v7177_v26  ;;  %9401 = vst [vmem:[#allocation21_spill] sm:$0xff] %v7209_v33  ;;  %v7217_v26 = vsub.f32 %v9403_v1, %v6780_v22 }
 0x3fd   : > { %v9409_v1 = vmax.f32 %v9408_v35, 0.0  ;;  %v9414_v35 = vld [vmem:[#allocation26_spill] sm:$0xff] }
 0x3fe   : > { %v3095_v42 = vadd.f32 %v3094_v15, %v3093_v53  ;;  %v3100_v15 = vsel %vm1924_vm7, %v2921_v31, 0.0  ;;  %v2925_v31 = vmul.f32 %v7185_v17, %v7185_v17  ;;  %9404 = vst [vmem:[#allocation22_spill] sm:$0xff] %v7217_v26  ;;  %v7225_v17 = vsub.f32 %v9406_v41, %v6780_v22 }
 0x3ff   : > { %v9412_v41 = vmax.f32 %v9411_v30, 0.0  ;;  %v9417_v30 = vld [vmem:[#allocation27_spill] sm:$0xff] }
 0x400   : > { %v3097_v18 = vadd.f32 %v3096_v0, %v3095_v42  ;;  %v3102_v0 = vsel %vm1924_vm7, %v2922_v59, 0.0  ;;  %v2926_v59 = vmul.f32 %v7193_v8, %v7193_v8  ;;  %9407 = vst [vmem:[#allocation23_spill] sm:$0xff] %v7225_v17  ;;  %v7233_v8 = vsub.f32 %v9409_v1, %v6780_v22 }
 0x401   : > { %v9415_v1 = vmax.f32 %v9414_v35, 0.0  ;;  %v9420_v35 = vld [vmem:[#allocation28_spill] sm:$0xff] }
 0x402   : > { %v3099_v53 = vadd.f32 %v3098_v45, %v3097_v18  ;;  %v3104_v45 = vsel %vm1924_vm7, %v2923_v56, 0.0  ;;  %v2927_v56 = vmul.f32 %v7201_v58, %v7201_v58  ;;  %9410 = vst [vmem:[#allocation24_spill] sm:$0xff] %v7233_v8  ;;  %v7241_v58 = vsub.f32 %v9412_v41, %v6780_v22 }
 0x403   : > { %v9418_v41 = vmax.f32 %v9417_v30, 0.0  ;;  %v9423_v30 = vld [vmem:[#allocation29_spill] sm:$0xff] }
 0x404   : > { %v3101_v42 = vadd.f32 %v3100_v15, %v3099_v53  ;;  %v3106_v15 = vsel %vm1924_vm7, %v2924_v49, 0.0  ;;  %v2928_v49 = vmul.f32 %v7209_v33, %v7209_v33  ;;  %9413 = vst [vmem:[#allocation25_spill] sm:$0xff] %v7241_v58  ;;  %v7249_v33 = vsub.f32 %v9415_v1, %v6780_v22 }
 0x405   : > { %v9421_v1 = vmax.f32 %v9420_v35, 0.0  ;;  %v9426_v35 = vld [vmem:[#allocation30_spill] sm:$0xff] }
 0x406   : > { %v3103_v18 = vadd.f32 %v3102_v0, %v3101_v42  ;;  %v3108_v0 = vsel %vm1924_vm7, %v2925_v31, 0.0  ;;  %v2929_v31 = vmul.f32 %v7217_v26, %v7217_v26  ;;  %9416 = vst [vmem:[#allocation26_spill] sm:$0xff] %v7249_v33  ;;  %v7257_v26 = vsub.f32 %v9418_v41, %v6780_v22 }
 0x407   : > { %v9424_v41 = vmax.f32 %v9423_v30, 0.0  ;;  %v9429_v30 = vld [vmem:[#allocation31_spill] sm:$0xff] }
 0x408   : > { %v3105_v53 = vadd.f32 %v3104_v45, %v3103_v18  ;;  %v3110_v45 = vsel %vm1924_vm7, %v2926_v59, 0.0  ;;  %v2930_v59 = vmul.f32 %v7225_v17, %v7225_v17  ;;  %9419 = vst [vmem:[#allocation27_spill] sm:$0xff] %v7257_v26  ;;  %v7265_v17 = vsub.f32 %v9421_v1, %v6780_v22 }
 0x409   : > { %v9427_v1 = vmax.f32 %v9426_v35, 0.0  ;;  %v9432_v35 = vld [vmem:[#allocation32_spill] sm:$0xff] }
 0x40a   : > { %v3107_v42 = vadd.f32 %v3106_v15, %v3105_v53  ;;  %v3112_v15 = vsel %vm1924_vm7, %v2927_v56, 0.0  ;;  %v2931_v56 = vmul.f32 %v7233_v8, %v7233_v8  ;;  %9422 = vst [vmem:[#allocation28_spill] sm:$0xff] %v7265_v17  ;;  %v7273_v8 = vsub.f32 %v9424_v41, %v6780_v22 }
 0x40b   : > { %v9430_v41 = vmax.f32 %v9429_v30, 0.0  ;;  %v9435_v30 = vld [vmem:[#allocation33_spill] sm:$0xff] }
 0x40c   : > { %v3109_v18 = vadd.f32 %v3108_v0, %v3107_v42  ;;  %v3114_v0 = vsel %vm1924_vm7, %v2928_v49, 0.0  ;;  %v2932_v49 = vmul.f32 %v7241_v58, %v7241_v58  ;;  %9425 = vst [vmem:[#allocation29_spill] sm:$0xff] %v7273_v8  ;;  %v7281_v58 = vsub.f32 %v9427_v1, %v6780_v22 }
 0x40d   : > { %v9433_v1 = vmax.f32 %v9432_v35, 0.0  ;;  %v9438_v35 = vld [vmem:[#allocation34_spill] sm:$0xff] }
 0x40e   : > { %v3111_v53 = vadd.f32 %v3110_v45, %v3109_v18  ;;  %v3116_v45 = vsel %vm1924_vm7, %v2929_v31, 0.0  ;;  %v2933_v31 = vmul.f32 %v7249_v33, %v7249_v33  ;;  %9428 = vst [vmem:[#allocation30_spill] sm:$0xff] %v7281_v58  ;;  %v7289_v33 = vsub.f32 %v9430_v41, %v6780_v22 }
 0x40f   : > { %v9436_v41 = vmax.f32 %v9435_v30, 0.0  ;;  %v9441_v30 = vld [vmem:[#allocation35_spill] sm:$0xff] }
 0x410   : > { %v3113_v42 = vadd.f32 %v3112_v15, %v3111_v53  ;;  %v3118_v15 = vsel %vm1924_vm7, %v2930_v59, 0.0  ;;  %v2934_v59 = vmul.f32 %v7257_v26, %v7257_v26  ;;  %9431 = vst [vmem:[#allocation31_spill] sm:$0xff] %v7289_v33  ;;  %v7297_v26 = vsub.f32 %v9433_v1, %v6780_v22 }
 0x411   : > { %v9439_v1 = vmax.f32 %v9438_v35, 0.0  ;;  %v9444_v35 = vld [vmem:[#allocation36_spill] sm:$0xff] }
 0x412   : > { %v3115_v18 = vadd.f32 %v3114_v0, %v3113_v42  ;;  %v3120_v0 = vsel %vm1924_vm7, %v2931_v56, 0.0  ;;  %v2935_v56 = vmul.f32 %v7265_v17, %v7265_v17  ;;  %9434 = vst [vmem:[#allocation32_spill] sm:$0xff] %v7297_v26  ;;  %v7305_v17 = vsub.f32 %v9436_v41, %v6780_v22 }
 0x413   : > { %v9442_v41 = vmax.f32 %v9441_v30, 0.0  ;;  %v9447_v30 = vld [vmem:[#allocation37_spill] sm:$0xff] }
 0x414   : > { %v3117_v53 = vadd.f32 %v3116_v45, %v3115_v18  ;;  %v3122_v45 = vsel %vm1924_vm7, %v2932_v49, 0.0  ;;  %v2936_v49 = vmul.f32 %v7273_v8, %v7273_v8  ;;  %9437 = vst [vmem:[#allocation33_spill] sm:$0xff] %v7305_v17  ;;  %v7313_v8 = vsub.f32 %v9439_v1, %v6780_v22 }
 0x415   : > { %v9445_v1 = vmax.f32 %v9444_v35, 0.0  ;;  %v9450_v35 = vld [vmem:[#allocation38_spill] sm:$0xff] }
 0x416   : > { %v3119_v42 = vadd.f32 %v3118_v15, %v3117_v53  ;;  %v3124_v15 = vsel %vm1924_vm7, %v2933_v31, 0.0  ;;  %v2937_v31 = vmul.f32 %v7281_v58, %v7281_v58  ;;  %9440 = vst [vmem:[#allocation34_spill] sm:$0xff] %v7313_v8  ;;  %v7321_v58 = vsub.f32 %v9442_v41, %v6780_v22 }
 0x417   : > { %v9448_v41 = vmax.f32 %v9447_v30, 0.0  ;;  %v9453_v30 = vld [vmem:[#allocation39_spill] sm:$0xff] }
 0x418   : > { %v3121_v18 = vadd.f32 %v3120_v0, %v3119_v42  ;;  %v3126_v0 = vsel %vm1924_vm7, %v2934_v59, 0.0  ;;  %v2938_v59 = vmul.f32 %v7289_v33, %v7289_v33  ;;  %9443 = vst [vmem:[#allocation35_spill] sm:$0xff] %v7321_v58  ;;  %v7329_v33 = vsub.f32 %v9445_v1, %v6780_v22 }
 0x419   : > { %v9451_v1 = vmax.f32 %v9450_v35, 0.0  ;;  %v9456_v35 = vld [vmem:[#allocation40_spill] sm:$0xff] }
 0x41a   : > { %v3123_v53 = vadd.f32 %v3122_v45, %v3121_v18  ;;  %v3128_v45 = vsel %vm1924_vm7, %v2935_v56, 0.0  ;;  %v2939_v56 = vmul.f32 %v7297_v26, %v7297_v26  ;;  %9446 = vst [vmem:[#allocation36_spill] sm:$0xff] %v7329_v33  ;;  %v7337_v26 = vsub.f32 %v9448_v41, %v6780_v22 }
 0x41b   : > { %v9454_v41 = vmax.f32 %v9453_v30, 0.0  ;;  %v9459_v30 = vld [vmem:[#allocation41_spill] sm:$0xff] }
 0x41c   : > { %v3125_v42 = vadd.f32 %v3124_v15, %v3123_v53  ;;  %v3130_v15 = vsel %vm1924_vm7, %v2936_v49, 0.0  ;;  %v2940_v49 = vmul.f32 %v7305_v17, %v7305_v17  ;;  %9449 = vst [vmem:[#allocation37_spill] sm:$0xff] %v7337_v26  ;;  %v7345_v17 = vsub.f32 %v9451_v1, %v6780_v22 }
 0x41d   : > { %v9457_v1 = vmax.f32 %v9456_v35, 0.0  ;;  %v9462_v35 = vld [vmem:[#allocation42_spill] sm:$0xff] }
 0x41e   : > { %v3127_v18 = vadd.f32 %v3126_v0, %v3125_v42  ;;  %v3132_v0 = vsel %vm1924_vm7, %v2937_v31, 0.0  ;;  %v2941_v31 = vmul.f32 %v7313_v8, %v7313_v8  ;;  %9452 = vst [vmem:[#allocation38_spill] sm:$0xff] %v7345_v17  ;;  %v7353_v8 = vsub.f32 %v9454_v41, %v6780_v22 }
 0x41f   : > { %v9460_v41 = vmax.f32 %v9459_v30, 0.0  ;;  %v9465_v30 = vld [vmem:[#allocation43_spill] sm:$0xff] }
 0x420   : > { %v3129_v53 = vadd.f32 %v3128_v45, %v3127_v18  ;;  %v3134_v45 = vsel %vm1924_vm7, %v2938_v59, 0.0  ;;  %v2942_v59 = vmul.f32 %v7321_v58, %v7321_v58  ;;  %9455 = vst [vmem:[#allocation39_spill] sm:$0xff] %v7353_v8  ;;  %v7361_v58 = vsub.f32 %v9457_v1, %v6780_v22 }
 0x421   : > { %v9463_v1 = vmax.f32 %v9462_v35, 0.0  ;;  %v9468_v35 = vld [vmem:[#allocation44_spill] sm:$0xff] }
 0x422   : > { %v3131_v42 = vadd.f32 %v3130_v15, %v3129_v53  ;;  %v3136_v15 = vsel %vm1924_vm7, %v2939_v56, 0.0  ;;  %v2943_v56 = vmul.f32 %v7329_v33, %v7329_v33  ;;  %9458 = vst [vmem:[#allocation40_spill] sm:$0xff] %v7361_v58  ;;  %v7369_v33 = vsub.f32 %v9460_v41, %v6780_v22 }
 0x423   : > { %v9466_v41 = vmax.f32 %v9465_v30, 0.0  ;;  %v9471_v30 = vld [vmem:[#allocation45_spill] sm:$0xff] }
 0x424   : > { %v3133_v18 = vadd.f32 %v3132_v0, %v3131_v42  ;;  %v3138_v0 = vsel %vm1924_vm7, %v2940_v49, 0.0  ;;  %v2944_v49 = vmul.f32 %v7337_v26, %v7337_v26  ;;  %9461 = vst [vmem:[#allocation41_spill] sm:$0xff] %v7369_v33  ;;  %v7377_v26 = vsub.f32 %v9463_v1, %v6780_v22 }
 0x425   : > { %v9469_v1 = vmax.f32 %v9468_v35, 0.0  ;;  %v9474_v35 = vld [vmem:[#allocation46_spill] sm:$0xff] }
 0x426   : > { %v3135_v53 = vadd.f32 %v3134_v45, %v3133_v18  ;;  %v3140_v45 = vsel %vm1924_vm7, %v2941_v31, 0.0  ;;  %v2945_v31 = vmul.f32 %v7345_v17, %v7345_v17  ;;  %9464 = vst [vmem:[#allocation42_spill] sm:$0xff] %v7377_v26  ;;  %v7385_v17 = vsub.f32 %v9466_v41, %v6780_v22 }
 0x427   : > { %v9472_v41 = vmax.f32 %v9471_v30, 0.0  ;;  %v9477_v30 = vld [vmem:[#allocation47_spill] sm:$0xff] }
 0x428   : > { %v3137_v42 = vadd.f32 %v3136_v15, %v3135_v53  ;;  %v3142_v15 = vsel %vm1924_vm7, %v2942_v59, 0.0  ;;  %v2946_v59 = vmul.f32 %v7353_v8, %v7353_v8  ;;  %9467 = vst [vmem:[#allocation43_spill] sm:$0xff] %v7385_v17  ;;  %v7393_v8 = vsub.f32 %v9469_v1, %v6780_v22 }
 0x429   : > { %v9475_v1 = vmax.f32 %v9474_v35, 0.0  ;;  %v9480_v35 = vld [vmem:[#allocation48_spill] sm:$0xff] }
 0x42a   : > { %v3139_v18 = vadd.f32 %v3138_v0, %v3137_v42  ;;  %v3144_v0 = vsel %vm1924_vm7, %v2943_v56, 0.0  ;;  %v2947_v56 = vmul.f32 %v7361_v58, %v7361_v58  ;;  %9470 = vst [vmem:[#allocation44_spill] sm:$0xff] %v7393_v8  ;;  %v7401_v58 = vsub.f32 %v9472_v41, %v6780_v22 }
 0x42b   : > { %v9478_v41 = vmax.f32 %v9477_v30, 0.0  ;;  %v9483_v30 = vld [vmem:[#allocation49_spill] sm:$0xff] }
 0x42c   : > { %v3141_v53 = vadd.f32 %v3140_v45, %v3139_v18  ;;  %v3146_v45 = vsel %vm1924_vm7, %v2944_v49, 0.0  ;;  %v2948_v49 = vmul.f32 %v7369_v33, %v7369_v33  ;;  %9473 = vst [vmem:[#allocation45_spill] sm:$0xff] %v7401_v58  ;;  %v7409_v33 = vsub.f32 %v9475_v1, %v6780_v22 }
 0x42d   : > { %v9481_v1 = vmax.f32 %v9480_v35, 0.0  ;;  %v9486_v35 = vld [vmem:[#allocation50_spill] sm:$0xff] }
 0x42e   : > { %v3143_v42 = vadd.f32 %v3142_v15, %v3141_v53  ;;  %v3148_v15 = vsel %vm1924_vm7, %v2945_v31, 0.0  ;;  %v2949_v31 = vmul.f32 %v7377_v26, %v7377_v26  ;;  %9476 = vst [vmem:[#allocation46_spill] sm:$0xff] %v7409_v33  ;;  %v7417_v26 = vsub.f32 %v9478_v41, %v6780_v22 }
 0x42f   : > { %v9484_v41 = vmax.f32 %v9483_v30, 0.0  ;;  %v9489_v30 = vld [vmem:[#allocation51_spill] sm:$0xff] }
 0x430   : > { %v3145_v18 = vadd.f32 %v3144_v0, %v3143_v42  ;;  %v3150_v0 = vsel %vm1924_vm7, %v2946_v59, 0.0  ;;  %v2950_v59 = vmul.f32 %v7385_v17, %v7385_v17  ;;  %9479 = vst [vmem:[#allocation47_spill] sm:$0xff] %v7417_v26  ;;  %v7425_v17 = vsub.f32 %v9481_v1, %v6780_v22 }
 0x431   : > { %v9487_v1 = vmax.f32 %v9486_v35, 0.0  ;;  %v9492_v35 = vld [vmem:[#allocation52_spill] sm:$0xff] }
 0x432   : > { %v3147_v53 = vadd.f32 %v3146_v45, %v3145_v18  ;;  %v3152_v45 = vsel %vm1924_vm7, %v2947_v56, 0.0  ;;  %v2951_v56 = vmul.f32 %v7393_v8, %v7393_v8  ;;  %9482 = vst [vmem:[#allocation48_spill] sm:$0xff] %v7425_v17  ;;  %v7433_v8 = vsub.f32 %v9484_v41, %v6780_v22 }
 0x433   : > { %v9490_v41 = vmax.f32 %v9489_v30, 0.0  ;;  %v9495_v30 = vld [vmem:[#allocation53_spill] sm:$0xff] }
 0x434   : > { %v3149_v42 = vadd.f32 %v3148_v15, %v3147_v53  ;;  %v3154_v15 = vsel %vm1924_vm7, %v2948_v49, 0.0  ;;  %v2952_v49 = vmul.f32 %v7401_v58, %v7401_v58  ;;  %9485 = vst [vmem:[#allocation49_spill] sm:$0xff] %v7433_v8  ;;  %v7441_v58 = vsub.f32 %v9487_v1, %v6780_v22 }
 0x435   : > { %v9493_v1 = vmax.f32 %v9492_v35, 0.0  ;;  %v9498_v35 = vld [vmem:[#allocation54_spill] sm:$0xff] }
 0x436   : > { %v3151_v18 = vadd.f32 %v3150_v0, %v3149_v42  ;;  %v3156_v0 = vsel %vm1924_vm7, %v2949_v31, 0.0  ;;  %v2953_v31 = vmul.f32 %v7409_v33, %v7409_v33  ;;  %9488 = vst [vmem:[#allocation50_spill] sm:$0xff] %v7441_v58  ;;  %v7449_v33 = vsub.f32 %v9490_v41, %v6780_v22 }
 0x437   : > { %v9496_v41 = vmax.f32 %v9495_v30, 0.0  ;;  %v9501_v30 = vld [vmem:[#allocation55_spill] sm:$0xff] }
 0x438   : > { %v3153_v53 = vadd.f32 %v3152_v45, %v3151_v18  ;;  %v3158_v45 = vsel %vm1924_vm7, %v2950_v59, 0.0  ;;  %v2954_v59 = vmul.f32 %v7417_v26, %v7417_v26  ;;  %9491 = vst [vmem:[#allocation51_spill] sm:$0xff] %v7449_v33  ;;  %v7457_v26 = vsub.f32 %v9493_v1, %v6780_v22 }
 0x439   : > { %v9499_v1 = vmax.f32 %v9498_v35, 0.0  ;;  %v9504_v35 = vld [vmem:[#allocation56_spill] sm:$0xff] }
 0x43a   : > { %v3155_v42 = vadd.f32 %v3154_v15, %v3153_v53  ;;  %v3160_v15 = vsel %vm1924_vm7, %v2951_v56, 0.0  ;;  %v2955_v56 = vmul.f32 %v7425_v17, %v7425_v17  ;;  %9494 = vst [vmem:[#allocation52_spill] sm:$0xff] %v7457_v26  ;;  %v7465_v17 = vsub.f32 %v9496_v41, %v6780_v22 }
 0x43b   : > { %v9502_v41 = vmax.f32 %v9501_v30, 0.0  ;;  %v9507_v30 = vld [vmem:[#allocation57_spill] sm:$0xff] }
 0x43c   : > { %v3157_v18 = vadd.f32 %v3156_v0, %v3155_v42  ;;  %v3162_v0 = vsel %vm1924_vm7, %v2952_v49, 0.0  ;;  %v2956_v49 = vmul.f32 %v7433_v8, %v7433_v8  ;;  %9497 = vst [vmem:[#allocation53_spill] sm:$0xff] %v7465_v17  ;;  %v7473_v8 = vsub.f32 %v9499_v1, %v6780_v22 }
 0x43d   : > { %v9505_v1 = vmax.f32 %v9504_v35, 0.0  ;;  %v9510_v35 = vld [vmem:[#allocation58_spill] sm:$0xff] }
 0x43e   : > { %v3159_v53 = vadd.f32 %v3158_v45, %v3157_v18  ;;  %v3164_v45 = vsel %vm1924_vm7, %v2953_v31, 0.0  ;;  %v2957_v31 = vmul.f32 %v7441_v58, %v7441_v58  ;;  %9500 = vst [vmem:[#allocation54_spill] sm:$0xff] %v7473_v8  ;;  %v7481_v58 = vsub.f32 %v9502_v41, %v6780_v22 }
 0x43f   : > { %v9508_v41 = vmax.f32 %v9507_v30, 0.0  ;;  %v9513_v30 = vld [vmem:[#allocation59_spill] sm:$0xff] }
 0x440   : > { %v3161_v42 = vadd.f32 %v3160_v15, %v3159_v53  ;;  %v3166_v15 = vsel %vm1924_vm7, %v2954_v59, 0.0  ;;  %v2958_v59 = vmul.f32 %v7449_v33, %v7449_v33  ;;  %9503 = vst [vmem:[#allocation55_spill] sm:$0xff] %v7481_v58  ;;  %v7489_v33 = vsub.f32 %v9505_v1, %v6780_v22 }
 0x441   : > { %v9511_v1 = vmax.f32 %v9510_v35, 0.0  ;;  %v9516_v35 = vld [vmem:[#allocation60_spill] sm:$0xff] }
 0x442   : > { %v3163_v18 = vadd.f32 %v3162_v0, %v3161_v42  ;;  %v3168_v0 = vsel %vm1924_vm7, %v2955_v56, 0.0  ;;  %v2959_v56 = vmul.f32 %v7457_v26, %v7457_v26  ;;  %9506 = vst [vmem:[#allocation56_spill] sm:$0xff] %v7489_v33  ;;  %v7497_v26 = vsub.f32 %v9508_v41, %v6780_v22 }
 0x443   : > { %v9514_v41 = vmax.f32 %v9513_v30, 0.0  ;;  %v9519_v30 = vld [vmem:[#allocation61_spill] sm:$0xff] }
 0x444   : > { %v3165_v53 = vadd.f32 %v3164_v45, %v3163_v18  ;;  %v3170_v45 = vsel %vm1924_vm7, %v2956_v49, 0.0  ;;  %v2960_v49 = vmul.f32 %v7465_v17, %v7465_v17  ;;  %9509 = vst [vmem:[#allocation57_spill] sm:$0xff] %v7497_v26  ;;  %v7505_v17 = vsub.f32 %v9511_v1, %v6780_v22 }
 0x445   : > { %v9517_v1 = vmax.f32 %v9516_v35, 0.0  ;;  %v9522_v35 = vld [vmem:[#allocation62_spill] sm:$0xff] }
 0x446   : > { %v3167_v42 = vadd.f32 %v3166_v15, %v3165_v53  ;;  %v3172_v15 = vsel %vm1924_vm7, %v2957_v31, 0.0  ;;  %v2961_v31 = vmul.f32 %v7473_v8, %v7473_v8  ;;  %9512 = vst [vmem:[#allocation58_spill] sm:$0xff] %v7505_v17  ;;  %v7513_v8 = vsub.f32 %v9514_v41, %v6780_v22 }
 0x447   : > { %v9520_v41 = vmax.f32 %v9519_v30, 0.0  ;;  %v9525_v30 = vld [vmem:[#allocation63_spill] sm:$0xff] }
 0x448   : > { %v3169_v18 = vadd.f32 %v3168_v0, %v3167_v42  ;;  %v3174_v0 = vsel %vm1924_vm7, %v2958_v59, 0.0  ;;  %v2962_v59 = vmul.f32 %v7481_v58, %v7481_v58  ;;  %9515 = vst [vmem:[#allocation59_spill] sm:$0xff] %v7513_v8  ;;  %v7521_v58 = vsub.f32 %v9517_v1, %v6780_v22 }
 0x449   : > { %v9523_v1 = vmax.f32 %v9522_v35, 0.0  ;;  %v9528_v35 = vld [vmem:[#allocation64_spill] sm:$0xff] }
 0x44a   : > { %v3171_v53 = vadd.f32 %v3170_v45, %v3169_v18  ;;  %v3176_v45 = vsel %vm1924_vm7, %v2959_v56, 0.0  ;;  %v2963_v56 = vmul.f32 %v7489_v33, %v7489_v33  ;;  %9518 = vst [vmem:[#allocation60_spill] sm:$0xff] %v7521_v58  ;;  %v7529_v33 = vsub.f32 %v9520_v41, %v6780_v22 }
 0x44b   : > { %v9526_v41 = vmax.f32 %v9525_v30, 0.0  ;;  %v9531_v30 = vld [vmem:[#allocation65_spill] sm:$0xff] }
 0x44c   : > { %v3173_v42 = vadd.f32 %v3172_v15, %v3171_v53  ;;  %v3178_v15 = vsel %vm1924_vm7, %v2960_v49, 0.0  ;;  %v2964_v49 = vmul.f32 %v7497_v26, %v7497_v26  ;;  %9521 = vst [vmem:[#allocation61_spill] sm:$0xff] %v7529_v33  ;;  %v7537_v26 = vsub.f32 %v9523_v1, %v6780_v22 }
 0x44d   : > { %v9529_v1 = vmax.f32 %v9528_v35, 0.0  ;;  %v9534_v35 = vld [vmem:[#allocation66_spill] sm:$0xff] }
 0x44e   : > { %v3175_v18 = vadd.f32 %v3174_v0, %v3173_v42  ;;  %v3180_v0 = vsel %vm1924_vm7, %v2961_v31, 0.0  ;;  %v2965_v31 = vmul.f32 %v7505_v17, %v7505_v17  ;;  %9524 = vst [vmem:[#allocation62_spill] sm:$0xff] %v7537_v26  ;;  %v7545_v17 = vsub.f32 %v9526_v41, %v6780_v22 }
 0x44f   : > { %v9532_v41 = vmax.f32 %v9531_v30, 0.0  ;;  %v9537_v30 = vld [vmem:[#allocation67_spill] sm:$0xff] }
 0x450   : > { %v3177_v53 = vadd.f32 %v3176_v45, %v3175_v18  ;;  %v3182_v45 = vsel %vm1924_vm7, %v2962_v59, 0.0  ;;  %v2966_v59 = vmul.f32 %v7513_v8, %v7513_v8  ;;  %9527 = vst [vmem:[#allocation63_spill] sm:$0xff] %v7545_v17  ;;  %v7553_v8 = vsub.f32 %v9529_v1, %v6780_v22 }
 0x451   : > { %v9535_v1 = vmax.f32 %v9534_v35, 0.0  ;;  %v9540_v35 = vld [vmem:[#allocation68_spill] sm:$0xff] }
 0x452   : > { %v3179_v42 = vadd.f32 %v3178_v15, %v3177_v53  ;;  %v3184_v15 = vsel %vm1924_vm7, %v2963_v56, 0.0  ;;  %v2967_v56 = vmul.f32 %v7521_v58, %v7521_v58  ;;  %9530 = vst [vmem:[#allocation64_spill] sm:$0xff] %v7553_v8  ;;  %v7561_v58 = vsub.f32 %v9532_v41, %v6780_v22 }
 0x453   : > { %v9538_v41 = vmax.f32 %v9537_v30, 0.0  ;;  %v9543_v30 = vld [vmem:[#allocation69_spill] sm:$0xff] }
 0x454   : > { %v3181_v18 = vadd.f32 %v3180_v0, %v3179_v42  ;;  %v3186_v0 = vsel %vm1924_vm7, %v2964_v49, 0.0  ;;  %v2968_v49 = vmul.f32 %v7529_v33, %v7529_v33  ;;  %9533 = vst [vmem:[#allocation65_spill] sm:$0xff] %v7561_v58  ;;  %v7569_v33 = vsub.f32 %v9535_v1, %v6780_v22 }
 0x455   : > { %v9541_v1 = vmax.f32 %v9540_v35, 0.0  ;;  %v9545_v35 = vld [vmem:[#allocation70_spill] sm:$0xff] }
 0x456   : > { %v3183_v53 = vadd.f32 %v3182_v45, %v3181_v18  ;;  %v3188_v45 = vsel %vm1924_vm7, %v2965_v31, 0.0  ;;  %v2969_v31 = vmul.f32 %v7537_v26, %v7537_v26  ;;  %9536 = vst [vmem:[#allocation66_spill] sm:$0xff] %v7569_v33  ;;  %v7577_v26 = vsub.f32 %v9538_v41, %v6780_v22 }
 0x457   : > { %v9544_v41 = vmax.f32 %v9543_v30, 0.0  ;;  %v9548_v30 = vld [vmem:[#allocation71_spill] sm:$0xff] }
 0x458   : > { %v3185_v42 = vadd.f32 %v3184_v15, %v3183_v53  ;;  %v3190_v15 = vsel %vm1924_vm7, %v2966_v59, 0.0  ;;  %v2970_v59 = vmul.f32 %v7545_v17, %v7545_v17  ;;  %9539 = vst [vmem:[#allocation67_spill] sm:$0xff] %v7577_v26  ;;  %v7585_v17 = vsub.f32 %v9541_v1, %v6780_v22 }
 0x459   : > { %v9546_v1 = vmax.f32 %v9545_v35, 0.0  ;;  %v9551_v35 = vld [vmem:[#allocation72_spill] sm:$0xff] }
 0x45a   : > { %v3187_v18 = vadd.f32 %v3186_v0, %v3185_v42  ;;  %v3192_v0 = vsel %vm1924_vm7, %v2967_v56, 0.0  ;;  %v2971_v56 = vmul.f32 %v7553_v8, %v7553_v8  ;;  %9542 = vst [vmem:[#allocation68_spill] sm:$0xff] %v7585_v17  ;;  %v7593_v8 = vsub.f32 %v9544_v41, %v6780_v22 }
 0x45b   : > { %v9549_v41 = vmax.f32 %v9548_v30, 0.0  ;;  %v9553_v30 = vld [vmem:[#allocation73_spill] sm:$0xff] }
 0x45c   : > { %v3189_v53 = vadd.f32 %v3188_v45, %v3187_v18  ;;  %v3194_v45 = vsel %vm1924_vm7, %v2968_v49, 0.0  ;;  %v2972_v49 = vmul.f32 %v7561_v58, %v7561_v58  ;;  %v7601_v58 = vsub.f32 %v9546_v1, %v6780_v22 }
 0x45d   : > { %v9552_v1 = vmax.f32 %v9551_v35, 0.0  ;;  %v9555_v35 = vmax.f32 %v6585_v25, 0.0  ;;  %v9560_v25 = vld [vmem:[#allocation75_spill] sm:$0xff] }
 0x45e   : > { %v3191_v42 = vadd.f32 %v3190_v15, %v3189_v53  ;;  %v3196_v15 = vsel %vm1924_vm7, %v2969_v31, 0.0  ;;  %v2973_v31 = vmul.f32 %v7569_v33, %v7569_v33  ;;  %9547 = vst [vmem:[#allocation69_spill] sm:$0xff] %v7601_v58  ;;  %v7609_v33 = vsub.f32 %v9549_v41, %v6780_v22 }
 0x45f   : > { %v9554_v41 = vmax.f32 %v9553_v30, 0.0  ;;  %v9557_v30 = vld [vmem:[#allocation74_spill] sm:$0xff] }
 0x460   : > { %v3193_v18 = vadd.f32 %v3192_v0, %v3191_v42  ;;  %v3198_v0 = vsel %vm1924_vm7, %v2970_v59, 0.0  ;;  %v2974_v59 = vmul.f32 %v7577_v26, %v7577_v26  ;;  %9550 = vst [vmem:[#allocation70_spill] sm:$0xff] %v7609_v33  ;;  %v7617_v26 = vsub.f32 %v9552_v1, %v6780_v22 }
 0x461   : > { %v7633_v1 = vsub.f32 %v9555_v35, %v6780_v22  ;;  %v9561_v35 = vmax.f32 %v9560_v25, 0.0  ;;  %v9565_v25 = vmax.f32 %v6613_v7, 0.0  ;;  %v9570_v7 = vld [vmem:[#allocation77_spill] sm:$0xff] }
 0x462   : > { %v3195_v53 = vadd.f32 %v3194_v45, %v3193_v18  ;;  %v3200_v45 = vsel %vm1924_vm7, %v2971_v56, 0.0  ;;  %v2975_v56 = vmul.f32 %v7585_v17, %v7585_v17  ;;  %v7625_v17 = vsub.f32 %v9554_v41, %v6780_v22 }
 0x463   : > { %9556 = vst [vmem:[#allocation71_spill] sm:$0xff] %v7633_v1  ;;  %v9558_v41 = vmax.f32 %v9557_v30, 0.0  ;;  %v9563_v30 = vmax.f32 %v6606_v4, 0.0  ;;  %v9567_v4 = vld [vmem:[#allocation76_spill] sm:$0xff] }
 0x464   : > { %v3197_v42 = vadd.f32 %v3196_v15, %v3195_v53  ;;  %v3202_v15 = vsel %vm1924_vm7, %v2972_v49, 0.0  ;;  %v2976_v49 = vmul.f32 %v7593_v8, %v7593_v8 }
 0x466   : > { %v3199_v18 = vadd.f32 %v3198_v0, %v3197_v42  ;;  %v3204_v0 = vsel %vm1924_vm7, %v2973_v31, 0.0  ;;  %v2977_v31 = vmul.f32 %v7601_v58, %v7601_v58  ;;  %v7641_v58 = vsub.f32 %v9558_v41, %v6780_v22 }
 0x467   : > { %v7657_v41 = vsub.f32 %v9563_v30, %v6780_v22  ;;  %v9568_v30 = vmax.f32 %v9567_v4, 0.0  ;;  %v9573_v4 = vld [vmem:[#allocation78_spill] sm:$0xff] }
 0x468   : > { %v3201_v53 = vadd.f32 %v3200_v45, %v3199_v18  ;;  %v3206_v45 = vsel %vm1924_vm7, %v2974_v59, 0.0  ;;  %v2978_v59 = vmul.f32 %v7609_v33, %v7609_v33  ;;  %9559 = vst [vmem:[#allocation72_spill] sm:$0xff] %v7641_v58  ;;  %v7649_v33 = vsub.f32 %v9561_v35, %v6780_v22 }
 0x469   : > { %9564 = vst [vmem:[#allocation74_spill] sm:$0xff] %v7657_v41  ;;  %v7665_v35 = vsub.f32 %v9565_v25, %v6780_v22  ;;  %v9571_v25 = vmax.f32 %v9570_v7, 0.0  ;;  %v9576_v7 = vld [vmem:[#allocation79_spill] sm:$0xff] }
 0x46a   : > { %v3203_v42 = vadd.f32 %v3202_v15, %v3201_v53  ;;  %v3208_v15 = vsel %vm1924_vm7, %v2975_v56, 0.0  ;;  %v2979_v56 = vmul.f32 %v7617_v26, %v7617_v26  ;;  %9562 = vst [vmem:[#allocation73_spill] sm:$0xff] %v7649_v33 }
 0x46b   : > { %9566 = vst [vmem:[#allocation75_spill] sm:$0xff] %v7665_v35 }
 0x46c   : > { %v3205_v18 = vadd.f32 %v3204_v0, %v3203_v42  ;;  %v3210_v0 = vsel %vm1924_vm7, %v2976_v49, 0.0  ;;  %v2980_v49 = vmul.f32 %v7625_v17, %v7625_v17 }
 0x46e   : > { %v3207_v53 = vadd.f32 %v3206_v45, %v3205_v18  ;;  %v3212_v45 = vsel %vm1924_vm7, %v2977_v31, 0.0  ;;  %v2981_v31 = vmul.f32 %v7633_v1, %v7633_v1  ;;  %v7673_v1 = vsub.f32 %v9568_v30, %v6780_v22 }
 0x46f   : > { %v9574_v30 = vmax.f32 %v9573_v4, 0.0  ;;  %v9579_v4 = vld [vmem:[#allocation80_spill] sm:$0xff] }
 0x470   : > { %v3209_v42 = vadd.f32 %v3208_v15, %v3207_v53  ;;  %v3214_v15 = vsel %vm1924_vm7, %v2978_v59, 0.0  ;;  %v2982_v59 = vmul.f32 %v7641_v58, %v7641_v58  ;;  %9569 = vst [vmem:[#allocation76_spill] sm:$0xff] %v7673_v1  ;;  %v7681_v58 = vsub.f32 %v9571_v25, %v6780_v22 }
 0x471   : > { %v9577_v25 = vmax.f32 %v9576_v7, 0.0  ;;  %v9582_v7 = vld [vmem:[#allocation81_spill] sm:$0xff] }
 0x472   : > { %v3211_v18 = vadd.f32 %v3210_v0, %v3209_v42  ;;  %v3216_v0 = vsel %vm1924_vm7, %v2979_v56, 0.0  ;;  %v2983_v56 = vmul.f32 %v7649_v33, %v7649_v33  ;;  %9572 = vst [vmem:[#allocation77_spill] sm:$0xff] %v7681_v58  ;;  %v7689_v33 = vsub.f32 %v9574_v30, %v6780_v22 }
 0x473   : > { %v9580_v30 = vmax.f32 %v9579_v4, 0.0  ;;  %v9585_v4 = vld [vmem:[#allocation82_spill] sm:$0xff] }
 0x474   : > { %v3213_v53 = vadd.f32 %v3212_v45, %v3211_v18  ;;  %v3218_v45 = vsel %vm1924_vm7, %v2980_v49, 0.0  ;;  %v2984_v49 = vmul.f32 %v7657_v41, %v7657_v41  ;;  %9575 = vst [vmem:[#allocation78_spill] sm:$0xff] %v7689_v33  ;;  %v7697_v41 = vsub.f32 %v9577_v25, %v6780_v22 }
 0x475   : > { %v9583_v25 = vmax.f32 %v9582_v7, 0.0  ;;  %v9588_v7 = vld [vmem:[#allocation83_spill] sm:$0xff] }
 0x476   : > { %v3215_v42 = vadd.f32 %v3214_v15, %v3213_v53  ;;  %v3220_v15 = vsel %vm1924_vm7, %v2981_v31, 0.0  ;;  %v2985_v31 = vmul.f32 %v7665_v35, %v7665_v35  ;;  %9578 = vst [vmem:[#allocation79_spill] sm:$0xff] %v7697_v41  ;;  %v7705_v35 = vsub.f32 %v9580_v30, %v6780_v22 }
 0x477   : > { %v9586_v30 = vmax.f32 %v9585_v4, 0.0  ;;  %v9591_v4 = vld [vmem:[#allocation84_spill] sm:$0xff] }
 0x478   : > { %v3217_v18 = vadd.f32 %v3216_v0, %v3215_v42  ;;  %v3222_v0 = vsel %vm1924_vm7, %v2982_v59, 0.0  ;;  %v2986_v59 = vmul.f32 %v7673_v1, %v7673_v1  ;;  %9581 = vst [vmem:[#allocation80_spill] sm:$0xff] %v7705_v35  ;;  %v7713_v1 = vsub.f32 %v9583_v25, %v6780_v22 }
 0x479   : > { %v9589_v25 = vmax.f32 %v9588_v7, 0.0  ;;  %v9594_v7 = vld [vmem:[#allocation85_spill] sm:$0xff] }
 0x47a   : > { %v3219_v53 = vadd.f32 %v3218_v45, %v3217_v18  ;;  %v3224_v45 = vsel %vm1924_vm7, %v2983_v56, 0.0  ;;  %v2987_v56 = vmul.f32 %v7681_v58, %v7681_v58  ;;  %9584 = vst [vmem:[#allocation81_spill] sm:$0xff] %v7713_v1  ;;  %v7721_v58 = vsub.f32 %v9586_v30, %v6780_v22 }
 0x47b   : > { %v9592_v30 = vmax.f32 %v9591_v4, 0.0  ;;  %v9597_v4 = vld [vmem:[#allocation86_spill] sm:$0xff] }
 0x47c   : > { %v3221_v42 = vadd.f32 %v3220_v15, %v3219_v53  ;;  %v3226_v15 = vsel %vm1924_vm7, %v2984_v49, 0.0  ;;  %v2988_v49 = vmul.f32 %v7689_v33, %v7689_v33  ;;  %9587 = vst [vmem:[#allocation82_spill] sm:$0xff] %v7721_v58  ;;  %v7729_v33 = vsub.f32 %v9589_v25, %v6780_v22 }
 0x47d   : > { %v9595_v25 = vmax.f32 %v9594_v7, 0.0  ;;  %v9600_v7 = vld [vmem:[#allocation87_spill] sm:$0xff] }
 0x47e   : > { %v3223_v18 = vadd.f32 %v3222_v0, %v3221_v42  ;;  %v3228_v0 = vsel %vm1924_vm7, %v2985_v31, 0.0  ;;  %v2989_v31 = vmul.f32 %v7697_v41, %v7697_v41  ;;  %9590 = vst [vmem:[#allocation83_spill] sm:$0xff] %v7729_v33  ;;  %v7737_v41 = vsub.f32 %v9592_v30, %v6780_v22 }
 0x47f   : > { %v9598_v30 = vmax.f32 %v9597_v4, 0.0  ;;  %v9603_v4 = vld [vmem:[#allocation88_spill] sm:$0xff] }
 0x480   : > { %v3225_v53 = vadd.f32 %v3224_v45, %v3223_v18  ;;  %v3230_v45 = vsel %vm1924_vm7, %v2986_v59, 0.0  ;;  %v2990_v59 = vmul.f32 %v7705_v35, %v7705_v35  ;;  %9593 = vst [vmem:[#allocation84_spill] sm:$0xff] %v7737_v41  ;;  %v7745_v35 = vsub.f32 %v9595_v25, %v6780_v22 }
 0x481   : > { %v9601_v25 = vmax.f32 %v9600_v7, 0.0  ;;  %v9606_v7 = vld [vmem:[#allocation89_spill] sm:$0xff] }
 0x482   : > { %v3227_v42 = vadd.f32 %v3226_v15, %v3225_v53  ;;  %v3232_v15 = vsel %vm1924_vm7, %v2987_v56, 0.0  ;;  %v2991_v56 = vmul.f32 %v7713_v1, %v7713_v1  ;;  %9596 = vst [vmem:[#allocation85_spill] sm:$0xff] %v7745_v35  ;;  %v7753_v1 = vsub.f32 %v9598_v30, %v6780_v22 }
 0x483   : > { %v9604_v30 = vmax.f32 %v9603_v4, 0.0  ;;  %v9609_v4 = vld [vmem:[#allocation90_spill] sm:$0xff] }
 0x484   : > { %v3229_v18 = vadd.f32 %v3228_v0, %v3227_v42  ;;  %v3234_v0 = vsel %vm1924_vm7, %v2988_v49, 0.0  ;;  %v2992_v49 = vmul.f32 %v7721_v58, %v7721_v58  ;;  %9599 = vst [vmem:[#allocation86_spill] sm:$0xff] %v7753_v1  ;;  %v7761_v58 = vsub.f32 %v9601_v25, %v6780_v22 }
 0x485   : > { %v9607_v25 = vmax.f32 %v9606_v7, 0.0  ;;  %v9611_v7 = vld [vmem:[#allocation91_spill] sm:$0xff] }
 0x486   : > { %v3231_v53 = vadd.f32 %v3230_v45, %v3229_v18  ;;  %v3236_v45 = vsel %vm1924_vm7, %v2989_v31, 0.0  ;;  %v2993_v31 = vmul.f32 %v7729_v33, %v7729_v33  ;;  %9602 = vst [vmem:[#allocation87_spill] sm:$0xff] %v7761_v58  ;;  %v7769_v33 = vsub.f32 %v9604_v30, %v6780_v22 }
 0x487   : > { %v9610_v30 = vmax.f32 %v9609_v4, 0.0  ;;  %v9614_v4 = vld [vmem:[#allocation92_spill] sm:$0xff] }
 0x488   : > { %v3233_v42 = vadd.f32 %v3232_v15, %v3231_v53  ;;  %v3238_v15 = vsel %vm1924_vm7, %v2990_v59, 0.0  ;;  %v2994_v59 = vmul.f32 %v7737_v41, %v7737_v41  ;;  %9605 = vst [vmem:[#allocation88_spill] sm:$0xff] %v7769_v33  ;;  %v7777_v41 = vsub.f32 %v9607_v25, %v6780_v22 }
 0x489   : > { %v9612_v25 = vmax.f32 %v9611_v7, 0.0  ;;  %v9617_v7 = vld [vmem:[#allocation93_spill] sm:$0xff] }
 0x48a   : > { %v3235_v18 = vadd.f32 %v3234_v0, %v3233_v42  ;;  %v3240_v0 = vsel %vm1924_vm7, %v2991_v56, 0.0  ;;  %v2995_v56 = vmul.f32 %v7745_v35, %v7745_v35  ;;  %9608 = vst [vmem:[#allocation89_spill] sm:$0xff] %v7777_v41  ;;  %v7785_v35 = vsub.f32 %v9610_v30, %v6780_v22 }
 0x48b   : > { %v9615_v30 = vmax.f32 %v9614_v4, 0.0  ;;  %v9620_v4 = vld [vmem:[#allocation94_spill] sm:$0xff] }
 0x48c   : > { %v3237_v53 = vadd.f32 %v3236_v45, %v3235_v18  ;;  %v3242_v45 = vsel %vm1924_vm7, %v2992_v49, 0.0  ;;  %v2996_v49 = vmul.f32 %v7753_v1, %v7753_v1  ;;  %v7793_v1 = vsub.f32 %v9612_v25, %v6780_v22 }
 0x48d   : > { %v9618_v25 = vmax.f32 %v9617_v7, 0.0  ;;  %v9623_v7 = vmax.f32 %v6760_v50, 0.0 }
 0x48e   : > { %v3239_v42 = vadd.f32 %v3238_v15, %v3237_v53  ;;  %v3244_v15 = vsel %vm1924_vm7, %v2993_v31, 0.0  ;;  %v2997_v31 = vmul.f32 %v7761_v58, %v7761_v58  ;;  %9613 = vst [vmem:[#allocation90_spill] sm:$0xff] %v7793_v1  ;;  %v7801_v58 = vsub.f32 %v9615_v30, %v6780_v22 }
 0x48f   : > { %v9621_v30 = vmax.f32 %v9620_v4, 0.0  ;;  %v9625_v4 = vmax.f32 %v6767_v39, 0.0 }
 0x490   : > { %v3241_v18 = vadd.f32 %v3240_v0, %v3239_v42  ;;  %v3246_v0 = vsel %vm1924_vm7, %v2994_v59, 0.0  ;;  %v2998_v59 = vmul.f32 %v7769_v33, %v7769_v33  ;;  %9616 = vst [vmem:[#allocation91_spill] sm:$0xff] %v7801_v58  ;;  %v7809_v33 = vsub.f32 %v9618_v25, %v6780_v22 }
 0x491   : > { %v7825_v25 = vsub.f32 %v9623_v7, %v6780_v22 }
 0x492   : > { %v3243_v53 = vadd.f32 %v3242_v45, %v3241_v18  ;;  %v3248_v45 = vsel %vm1924_vm7, %v2995_v56, 0.0  ;;  %v2999_v56 = vmul.f32 %v7777_v41, %v7777_v41  ;;  %9619 = vst [vmem:[#allocation92_spill] sm:$0xff] %v7809_v33  ;;  %v7817_v41 = vsub.f32 %v9621_v30, %v6780_v22 }
 0x493   : > { %9624 = vst [vmem:[#allocation94_spill] sm:$0xff] %v7825_v25  ;;  %v7833_v30 = vsub.f32 %v9625_v4, %v6780_v22  ;;  %v3005_v50 = vmul.f32 %v7825_v25, %v7825_v25 }
 0x494   : > { %v3245_v42 = vadd.f32 %v3244_v15, %v3243_v53  ;;  %v3250_v15 = vsel %vm1924_vm7, %v2996_v49, 0.0  ;;  %v3000_v49 = vmul.f32 %v7785_v35, %v7785_v35  ;;  %9622 = vst [vmem:[#allocation93_spill] sm:$0xff] %v7817_v41 }
 0x495   : > { %9626 = vst [vmem:[#allocation99_spill] sm:$0xff] %v7833_v30  ;;  %v3268_v22 = vsel %vm1924_vm7, %v3005_v50, 0.0 }
 0x496   : > { %v3247_v18 = vadd.f32 %v3246_v0, %v3245_v42  ;;  %v3252_v0 = vsel %vm1924_vm7, %v2997_v31, 0.0  ;;  %v3001_v31 = vmul.f32 %v7793_v1, %v7793_v1 }
 0x498   : > { %v3249_v53 = vadd.f32 %v3248_v45, %v3247_v18  ;;  %v3254_v45 = vsel %vm1924_vm7, %v2998_v59, 0.0  ;;  %v3002_v59 = vmul.f32 %v7801_v58, %v7801_v58 }
 0x49a   : > { %v3251_v42 = vadd.f32 %v3250_v15, %v3249_v53  ;;  %v3256_v15 = vsel %vm1924_vm7, %v2999_v56, 0.0  ;;  %v3003_v56 = vmul.f32 %v7809_v33, %v7809_v33 }
 0x49c   : > { %v3253_v18 = vadd.f32 %v3252_v0, %v3251_v42  ;;  %v3258_v0 = vsel %vm1924_vm7, %v3000_v49, 0.0  ;;  %v3004_v49 = vmul.f32 %v7817_v41, %v7817_v41  ;;  %v3264_v7 = vsel %vm1924_vm7, %v3003_v56, 0.0 }
 0x49e   : > { %v3255_v53 = vadd.f32 %v3254_v45, %v3253_v18  ;;  %v3260_v45 = vsel %vm1924_vm7, %v3001_v31, 0.0  ;;  %v3006_v31 = vmul.f32 %v7833_v30, %v7833_v30 }
 0x4a0   : > { %v3257_v42 = vadd.f32 %v3256_v15, %v3255_v53  ;;  %v3262_v15 = vsel %vm1924_vm7, %v3002_v59, 0.0  ;;  %v3270_v4 = vsel %vm2057_vm8, %v3006_v31, 0.0 }
 0x4a2   : > { %v3259_v18 = vadd.f32 %v3258_v0, %v3257_v42  ;;  %v3266_v0 = vsel %vm1924_vm7, %v3004_v49, 0.0  ;;  %v7848_v49 = vld [vmem:[#allocation5] ss:$0 sm:$0xff] }
 0x4a4   : > { %v3261_v53 = vadd.f32 %v3260_v45, %v3259_v18 }
 0x4a6   : > { %v3263_v33 = vadd.f32 %v3262_v15, %v3261_v53 }
 0x4a8   : > { %v3265_v39 = vadd.f32 %v3264_v7, %v3263_v33 }
 0x4aa   : > { %v3267_v42 = vadd.f32 %v3266_v0, %v3265_v39 }
 0x4ac   : > { %v3269_v41 = vadd.f32 %v3268_v22, %v3267_v42 }
 0x4ae   : > { %v3271_v59 = vadd.f32 %v3270_v4, %v3269_v41 }
 0x4b0   : > { %v3272_v45 = vrot.slane %v3271_v59, 4 }
 0x4b2   : > { %v3273_v18 = vadd.f32 %v3272_v45, %v3271_v59 }
 0x4b4   : > { %v3274_v58 = vrot.slane %v3273_v18, 2 }
 0x4b6   : > { %v3275_v25 = vadd.f32 %v3274_v58, %v3273_v18 }
 0x4b8   : > { %v3276_v1 = vrot.slane %v3275_v25, 1 }
 0x4ba   : > { %v3277_v56 = vadd.f32 %v3276_v1, %v3275_v25  ;;  %v7858_v1 = vld [vmem:[#allocation7] ss:$0 sm:$0xff] }
 0x4bc   : > { %v3278_v15 = vmul.f32 0.0009451796, %v3277_v56 }
 0x4be   : > { %v3279_v53 = vadd.f32 1e-05, %v3278_v15 }
 0x4c0   : > { %4638 = vrsqrt.f32 %v3279_v53 }
 0x4ca   : > { %v7846_v30 = vpop.eup %4638 }
 0x4cb   : > { %v3281_v33 = vmul.f32 %v7846_v30, %v6785_v60  ;;  %v3282_v50 = vmul.f32 %v7846_v30, %v6790_v10  ;;  %v3283_v41 = vmul.f32 %v7846_v30, %v6795_v20  ;;  %v3284_v58 = vmul.f32 %v7846_v30, %v6800_v54 }
 0x4cc   : > { %v3285_v25 = vmul.f32 %v7846_v30, %v6805_v37  ;;  %v3286_v7 = vmul.f32 %v7846_v30, %v6816_v46  ;;  %v3287_v60 = vmul.f32 %v7846_v30, %v6823_v52  ;;  %v3288_v10 = vmul.f32 %v7846_v30, %v6833_v57 }
 0x4cd   : > { %v3421_v31 = vmul.f32 %v7848_v49, %v3281_v33  ;;  %v3422_v20 = vmul.f32 %v7848_v49, %v3282_v50  ;;  %v3423_v54 = vmul.f32 %v7848_v49, %v3283_v41  ;;  %v3424_v0 = vmul.f32 %v7848_v49, %v3284_v58 }
 0x4ce   : > { %v3425_v39 = vmul.f32 %v7848_v49, %v3285_v25  ;;  %v3426_v37 = vmul.f32 %v7848_v49, %v3286_v7  ;;  %v3427_v46 = vmul.f32 %v7848_v49, %v3287_v60  ;;  %v3428_v22 = vmul.f32 %v7848_v49, %v3288_v10 }
 0x4cf   : > { %v3561_v52 = vadd.f32 %v7858_v1, %v3421_v31  ;;  %v3562_v57 = vadd.f32 %v7858_v1, %v3422_v20  ;;  %v3563_v42 = vadd.f32 %v7858_v1, %v3423_v54  ;;  %v3564_v4 = vadd.f32 %v7858_v1, %v3424_v0 }
 0x4d0   : > { %v3565_v59 = vadd.f32 %v7858_v1, %v3425_v39  ;;  %v3566_v45 = vadd.f32 %v7858_v1, %v3426_v37  ;;  %v3567_v18 = vadd.f32 %v7858_v1, %v3427_v46  ;;  %v3568_v56 = vadd.f32 %v7858_v1, %v3428_v22 }
 0x4d1   : > { %3694 = vst.msk [vmem:[%s8914_s5] sm:$0xff] %vm1924_vm7, %v3561_v52  ;;  %3695 = vst.msk [vmem:[%s8914_s5 + $0x8] sm:$0xff] %vm1924_vm7, %v3562_v57  ;;  %v3289_v15 = vmul.f32 %v7846_v30, %v6841_v43  ;;  %v3290_v53 = vmul.f32 %v7846_v30, %v6849_v36  ;;  %v3291_v33 = vmul.f32 %v7846_v30, %v6857_v21 }
 0x4d2   : > { %3696 = vst.msk [vmem:[%s8914_s5 + $0x10] sm:$0xff] %vm1924_vm7, %v3563_v42  ;;  %3697 = vst.msk [vmem:[%s8914_s5 + $0x18] sm:$0xff] %vm1924_vm7, %v3564_v4  ;;  %v3292_v50 = vmul.f32 %v7846_v30, %v6865_v48  ;;  %v3293_v43 = vmul.f32 %v7846_v30, %v6873_v63  ;;  %v3294_v36 = vmul.f32 %v7846_v30, %v6881_v3 }
 0x4d3   : > { %3698 = vst.msk [vmem:[%s8914_s5 + $0x20] sm:$0xff] %vm1924_vm7, %v3565_v59  ;;  %3699 = vst.msk [vmem:[%s8914_s5 + $0x28] sm:$0xff] %vm1924_vm7, %v3566_v45  ;;  %v3295_v21 = vmul.f32 %v7846_v30, %v6889_v9  ;;  %v3296_v48 = vmul.f32 %v7846_v30, %v6897_v14  ;;  %v3429_v41 = vmul.f32 %v7848_v49, %v3289_v15 }
 0x4d4   : > { %3700 = vst.msk [vmem:[%s8914_s5 + $0x30] sm:$0xff] %vm1924_vm7, %v3567_v18  ;;  %3701 = vst.msk [vmem:[%s8914_s5 + $0x38] sm:$0xff] %vm1924_vm7, %v3568_v56  ;;  %v3430_v58 = vmul.f32 %v7848_v49, %v3290_v53  ;;  %v3431_v25 = vmul.f32 %v7848_v49, %v3291_v33  ;;  %v3432_v7 = vmul.f32 %v7848_v49, %v3292_v50 }
 0x4d5   : > { %v3433_v60 = vmul.f32 %v7848_v49, %v3293_v43  ;;  %v3434_v63 = vmul.f32 %v7848_v49, %v3294_v36  ;;  %v3435_v3 = vmul.f32 %v7848_v49, %v3295_v21  ;;  %v3436_v10 = vmul.f32 %v7848_v49, %v3296_v48 }
 0x4d6   : > { %v3569_v9 = vadd.f32 %v7858_v1, %v3429_v41  ;;  %v3570_v14 = vadd.f32 %v7858_v1, %v3430_v58  ;;  %v3571_v31 = vadd.f32 %v7858_v1, %v3431_v25  ;;  %v3572_v20 = vadd.f32 %v7858_v1, %v3432_v7 }
 0x4d7   : > { %v3573_v54 = vadd.f32 %v7858_v1, %v3433_v60  ;;  %v3574_v0 = vadd.f32 %v7858_v1, %v3434_v63  ;;  %v3575_v39 = vadd.f32 %v7858_v1, %v3435_v3  ;;  %v3576_v37 = vadd.f32 %v7858_v1, %v3436_v10 }
 0x4d8   : > { %3702 = vst.msk [vmem:[%s8914_s5 + $0x40] sm:$0xff] %vm1924_vm7, %v3569_v9  ;;  %3703 = vst.msk [vmem:[%s8914_s5 + $0x48] sm:$0xff] %vm1924_vm7, %v3570_v14  ;;  %v3297_v46 = vmul.f32 %v7846_v30, %v6905_v19  ;;  %v3298_v22 = vmul.f32 %v7846_v30, %v6913_v24  ;;  %v3299_v52 = vmul.f32 %v7846_v30, %v6921_v29 }
 0x4d9   : > { %3704 = vst.msk [vmem:[%s8914_s5 + $0x50] sm:$0xff] %vm1924_vm7, %v3571_v31  ;;  %3705 = vst.msk [vmem:[%s8914_s5 + $0x58] sm:$0xff] %vm1924_vm7, %v3572_v20  ;;  %v3300_v57 = vmul.f32 %v7846_v30, %v6929_v34  ;;  %v3301_v19 = vmul.f32 %v7846_v30, %v6937_v40  ;;  %v3302_v24 = vmul.f32 %v7846_v30, %v6945_v55 }
 0x4da   : > { %3706 = vst.msk [vmem:[%s8914_s5 + $0x60] sm:$0xff] %vm1924_vm7, %v3573_v54  ;;  %3707 = vst.msk [vmem:[%s8914_s5 + $0x68] sm:$0xff] %vm1924_vm7, %v3574_v0  ;;  %v3303_v29 = vmul.f32 %v7846_v30, %v6953_v62  ;;  %v3304_v34 = vmul.f32 %v7846_v30, %v6961_v6  ;;  %v3437_v42 = vmul.f32 %v7848_v49, %v3297_v46 }
 0x4db   : > { %3708 = vst.msk [vmem:[%s8914_s5 + $0x70] sm:$0xff] %vm1924_vm7, %v3575_v39  ;;  %3709 = vst.msk [vmem:[%s8914_s5 + $0x78] sm:$0xff] %vm1924_vm7, %v3576_v37  ;;  %v3438_v4 = vmul.f32 %v7848_v49, %v3298_v22  ;;  %v3439_v59 = vmul.f32 %v7848_v49, %v3299_v52  ;;  %v3440_v45 = vmul.f32 %v7848_v49, %v3300_v57 }
 0x4dc   : > { %v3441_v18 = vmul.f32 %v7848_v49, %v3301_v19  ;;  %v3442_v40 = vmul.f32 %v7848_v49, %v3302_v24  ;;  %v3443_v55 = vmul.f32 %v7848_v49, %v3303_v29  ;;  %v3444_v56 = vmul.f32 %v7848_v49, %v3304_v34 }
 0x4dd   : > { %v3577_v62 = vadd.f32 %v7858_v1, %v3437_v42  ;;  %v3578_v6 = vadd.f32 %v7858_v1, %v3438_v4  ;;  %v3579_v15 = vadd.f32 %v7858_v1, %v3439_v59  ;;  %v3580_v53 = vadd.f32 %v7858_v1, %v3440_v45 }
 0x4de   : > { %v3581_v33 = vadd.f32 %v7858_v1, %v3441_v18  ;;  %v3582_v50 = vadd.f32 %v7858_v1, %v3442_v40  ;;  %v3583_v43 = vadd.f32 %v7858_v1, %v3443_v55  ;;  %v3584_v36 = vadd.f32 %v7858_v1, %v3444_v56 }
 0x4df   : > { %3710 = vst.msk [vmem:[%s8914_s5 + $0x80] sm:$0xff] %vm1924_vm7, %v3577_v62  ;;  %3711 = vst.msk [vmem:[%s8914_s5 + $0x88] sm:$0xff] %vm1924_vm7, %v3578_v6  ;;  %v3305_v21 = vmul.f32 %v7846_v30, %v6969_v16  ;;  %v3306_v48 = vmul.f32 %v7846_v30, %v6977_v23  ;;  %v3307_v41 = vmul.f32 %v7846_v30, %v6985_v32  ;;  %v9628_v62 = vld [vmem:[#allocation96_spill] sm:$0xff] }
 0x4e0   : > { %3712 = vst.msk [vmem:[%s8914_s5 + $0x90] sm:$0xff] %vm1924_vm7, %v3579_v15  ;;  %3713 = vst.msk [vmem:[%s8914_s5 + $0x98] sm:$0xff] %vm1924_vm7, %v3580_v53  ;;  %v3308_v58 = vmul.f32 %v7846_v30, %v6993_v44  ;;  %v3309_v16 = vmul.f32 %v7846_v30, %v7001_v61  ;;  %v3310_v23 = vmul.f32 %v7846_v30, %v7009_v12  ;;  %v9629_v15 = vld [vmem:[#allocation97_spill] sm:$0xff] }
 0x4e1   : > { %3714 = vst.msk [vmem:[%s8914_s5 + $0xa0] sm:$0xff] %vm1924_vm7, %v3581_v33  ;;  %3715 = vst.msk [vmem:[%s8914_s5 + $0xa8] sm:$0xff] %vm1924_vm7, %v3582_v50  ;;  %v3311_v32 = vmul.f32 %v7846_v30, %v7017_v27  ;;  %v3312_v44 = vmul.f32 %v7846_v30, %v7025_v38  ;;  %v3445_v25 = vmul.f32 %v7848_v49, %v3305_v21  ;;  %v9630_v33 = vld [vmem:[#allocation98_spill] sm:$0xff]  ;;  %v9632_v21 = vld [vmem:[#allocation11_spill] sm:$0xff] }
 0x4e2   : > { %3716 = vst.msk [vmem:[%s8914_s5 + $0xb0] sm:$0xff] %vm1924_vm7, %v3583_v43  ;;  %3717 = vst.msk [vmem:[%s8914_s5 + $0xb8] sm:$0xff] %vm1924_vm7, %v3584_v36  ;;  %v3446_v7 = vmul.f32 %v7848_v49, %v3306_v48  ;;  %v3447_v60 = vmul.f32 %v7848_v49, %v3307_v41  ;;  %v3448_v63 = vmul.f32 %v7848_v49, %v3308_v58  ;;  %v9631_v43 = vld [vmem:[#allocation10_spill] sm:$0xff]  ;;  %v9633_v41 = vld [vmem:[#allocation12_spill] sm:$0xff] }
 0x4e3   : > { %v3449_v3 = vmul.f32 %v7848_v49, %v3309_v16  ;;  %v3450_v61 = vmul.f32 %v7848_v49, %v3310_v23  ;;  %v3451_v12 = vmul.f32 %v7848_v49, %v3311_v32  ;;  %v3452_v10 = vmul.f32 %v7848_v49, %v3312_v44  ;;  %v9634_v16 = vld [vmem:[#allocation13_spill] sm:$0xff]  ;;  %v9635_v32 = vld [vmem:[#allocation14_spill] sm:$0xff] }
 0x4e4   : > { %v3585_v27 = vadd.f32 %v7858_v1, %v3445_v25  ;;  %v3586_v38 = vadd.f32 %v7858_v1, %v3446_v7  ;;  %v3587_v9 = vadd.f32 %v7858_v1, %v3447_v60  ;;  %v3588_v14 = vadd.f32 %v7858_v1, %v3448_v63 }
 0x4e5   : > { %v3589_v31 = vadd.f32 %v7858_v1, %v3449_v3  ;;  %v3590_v20 = vadd.f32 %v7858_v1, %v3450_v61  ;;  %v3591_v54 = vadd.f32 %v7858_v1, %v3451_v12  ;;  %v3592_v0 = vadd.f32 %v7858_v1, %v3452_v10 }
 0x4e6   : > { %3718 = vst.msk [vmem:[%s8914_s5 + $0xc0] sm:$0xff] %vm1924_vm7, %v3585_v27  ;;  %3719 = vst.msk [vmem:[%s8914_s5 + $0xc8] sm:$0xff] %vm1924_vm7, %v3586_v38  ;;  %v3313_v39 = vmul.f32 %v7846_v30, %v7033_v5  ;;  %v3314_v37 = vmul.f32 %v7846_v30, %v7041_v2  ;;  %v3315_v46 = vmul.f32 %v7846_v30, %v7049_v13 }
 0x4e7   : > { %3720 = vst.msk [vmem:[%s8914_s5 + $0xd0] sm:$0xff] %vm1924_vm7, %v3587_v9  ;;  %3721 = vst.msk [vmem:[%s8914_s5 + $0xd8] sm:$0xff] %vm1924_vm7, %v3588_v14  ;;  %v3316_v22 = vmul.f32 %v7846_v30, %v7057_v28  ;;  %v3317_v5 = vmul.f32 %v7846_v30, %v7065_v51  ;;  %v3318_v2 = vmul.f32 %v7846_v30, %v7073_v11  ;;  %v9627_v28 = vld [vmem:[#allocation95_spill] sm:$0xff] }
 0x4e8   : > { %3722 = vst.msk [vmem:[%s8914_s5 + $0xe0] sm:$0xff] %vm1924_vm7, %v3589_v31  ;;  %3723 = vst.msk [vmem:[%s8914_s5 + $0xe8] sm:$0xff] %vm1924_vm7, %v3590_v20  ;;  %v3319_v13 = vmul.f32 %v7846_v30, %v7081_v47  ;;  %v3320_v52 = vmul.f32 %v7846_v30, %v9627_v28  ;;  %v3453_v57 = vmul.f32 %v7848_v49, %v3313_v39  ;;  %v9636_v39 = vld [vmem:[#allocation15_spill] sm:$0xff] }
 0x4e9   : > { %3724 = vst.msk [vmem:[%s8914_s5 + $0xf0] sm:$0xff] %vm1924_vm7, %v3591_v54  ;;  %3725 = vst.msk [vmem:[%s8914_s5 + $0xf8] sm:$0xff] %vm1924_vm7, %v3592_v0  ;;  %v3454_v19 = vmul.f32 %v7848_v49, %v3314_v37  ;;  %v3455_v24 = vmul.f32 %v7848_v49, %v3315_v46  ;;  %v3456_v29 = vmul.f32 %v7848_v49, %v3316_v22  ;;  %v9637_v46 = vld [vmem:[#allocation16_spill] sm:$0xff] }
 0x4ea   : > { %v3457_v34 = vmul.f32 %v7848_v49, %v3317_v5  ;;  %v3458_v51 = vmul.f32 %v7848_v49, %v3318_v2  ;;  %v3459_v11 = vmul.f32 %v7848_v49, %v3319_v13  ;;  %v3460_v42 = vmul.f32 %v7848_v49, %v3320_v52  ;;  %v9638_v5 = vld [vmem:[#allocation17_spill] sm:$0xff]  ;;  %v9639_v13 = vld [vmem:[#allocation18_spill] sm:$0xff]  ;;  %v9640_v52 = vld [vmem:[#allocation19_spill] sm:$0xff] }
 0x4eb   : > { %v3593_v47 = vadd.f32 %v7858_v1, %v3453_v57  ;;  %v3594_v4 = vadd.f32 %v7858_v1, %v3454_v19  ;;  %v3595_v59 = vadd.f32 %v7858_v1, %v3455_v24  ;;  %v3596_v45 = vadd.f32 %v7858_v1, %v3456_v29  ;;  %v9641_v19 = vld [vmem:[#allocation20_spill] sm:$0xff]  ;;  %v9642_v29 = vld [vmem:[#allocation21_spill] sm:$0xff] }
 0x4ec   : > { %v3597_v18 = vadd.f32 %v7858_v1, %v3457_v34  ;;  %v3598_v40 = vadd.f32 %v7858_v1, %v3458_v51  ;;  %v3599_v55 = vadd.f32 %v7858_v1, %v3459_v11  ;;  %v3600_v56 = vadd.f32 %v7858_v1, %v3460_v42  ;;  %v9643_v51 = vld [vmem:[#allocation22_spill] sm:$0xff] }
 0x4ed   : > { %3726 = vst.msk [vmem:[%s8914_s5 + $0x100] sm:$0xff] %vm1924_vm7, %v3593_v47  ;;  %3727 = vst.msk [vmem:[%s8914_s5 + $0x108] sm:$0xff] %vm1924_vm7, %v3594_v4  ;;  %v3321_v6 = vmul.f32 %v7846_v30, %v9628_v62  ;;  %v3322_v53 = vmul.f32 %v7846_v30, %v9629_v15  ;;  %v3323_v50 = vmul.f32 %v7846_v30, %v9630_v33 }
 0x4ee   : > { %3728 = vst.msk [vmem:[%s8914_s5 + $0x110] sm:$0xff] %vm1924_vm7, %v3595_v59  ;;  %3729 = vst.msk [vmem:[%s8914_s5 + $0x118] sm:$0xff] %vm1924_vm7, %v3596_v45  ;;  %v3324_v36 = vmul.f32 %v7846_v30, %v9631_v43  ;;  %v3325_v48 = vmul.f32 %v7846_v30, %v9632_v21  ;;  %v3326_v58 = vmul.f32 %v7846_v30, %v9633_v41 }
 0x4ef   : > { %3730 = vst.msk [vmem:[%s8914_s5 + $0x120] sm:$0xff] %vm1924_vm7, %v3597_v18  ;;  %3731 = vst.msk [vmem:[%s8914_s5 + $0x128] sm:$0xff] %vm1924_vm7, %v3598_v40  ;;  %v3327_v23 = vmul.f32 %v7846_v30, %v9634_v16  ;;  %v3328_v44 = vmul.f32 %v7846_v30, %v9635_v32  ;;  %v3461_v25 = vmul.f32 %v7848_v49, %v3321_v6 }
 0x4f0   : > { %3732 = vst.msk [vmem:[%s8914_s5 + $0x130] sm:$0xff] %vm1924_vm7, %v3599_v55  ;;  %3733 = vst.msk [vmem:[%s8914_s5 + $0x138] sm:$0xff] %vm1924_vm7, %v3600_v56  ;;  %v3462_v7 = vmul.f32 %v7848_v49, %v3322_v53  ;;  %v3463_v60 = vmul.f32 %v7848_v49, %v3323_v50  ;;  %v3464_v63 = vmul.f32 %v7848_v49, %v3324_v36  ;;  %v9644_v36 = vld [vmem:[#allocation23_spill] sm:$0xff] }
 0x4f1   : > { %v3465_v3 = vmul.f32 %v7848_v49, %v3325_v48  ;;  %v3466_v61 = vmul.f32 %v7848_v49, %v3326_v58  ;;  %v3467_v12 = vmul.f32 %v7848_v49, %v3327_v23  ;;  %v3468_v10 = vmul.f32 %v7848_v49, %v3328_v44  ;;  %v9645_v48 = vld [vmem:[#allocation24_spill] sm:$0xff]  ;;  %v9646_v58 = vld [vmem:[#allocation25_spill] sm:$0xff]  ;;  %v9647_v23 = vld [vmem:[#allocation26_spill] sm:$0xff] }
 0x4f2   : > { %v3601_v27 = vadd.f32 %v7858_v1, %v3461_v25  ;;  %v3602_v38 = vadd.f32 %v7858_v1, %v3462_v7  ;;  %v3603_v9 = vadd.f32 %v7858_v1, %v3463_v60  ;;  %v3604_v14 = vadd.f32 %v7858_v1, %v3464_v63  ;;  %v9648_v44 = vld [vmem:[#allocation27_spill] sm:$0xff]  ;;  %v9649_v7 = vld [vmem:[#allocation28_spill] sm:$0xff]  ;;  %v9650_v63 = vld [vmem:[#allocation29_spill] sm:$0xff] }
 0x4f3   : > { %v3605_v31 = vadd.f32 %v7858_v1, %v3465_v3  ;;  %v3606_v20 = vadd.f32 %v7858_v1, %v3466_v61  ;;  %v3607_v54 = vadd.f32 %v7858_v1, %v3467_v12  ;;  %v3608_v0 = vadd.f32 %v7858_v1, %v3468_v10  ;;  %v9651_v61 = vld [vmem:[#allocation30_spill] sm:$0xff] }
 0x4f4   : > { %3734 = vst.msk [vmem:[%s8914_s5 + $0x140] sm:$0xff] %vm1924_vm7, %v3601_v27  ;;  %3735 = vst.msk [vmem:[%s8914_s5 + $0x148] sm:$0xff] %vm1924_vm7, %v3602_v38  ;;  %v3329_v37 = vmul.f32 %v7846_v30, %v9636_v39  ;;  %v3330_v22 = vmul.f32 %v7846_v30, %v9637_v46  ;;  %v3331_v2 = vmul.f32 %v7846_v30, %v9638_v5 }
 0x4f5   : > { %3736 = vst.msk [vmem:[%s8914_s5 + $0x150] sm:$0xff] %vm1924_vm7, %v3603_v9  ;;  %3737 = vst.msk [vmem:[%s8914_s5 + $0x158] sm:$0xff] %vm1924_vm7, %v3604_v14  ;;  %v3332_v28 = vmul.f32 %v7846_v30, %v9639_v13  ;;  %v3333_v57 = vmul.f32 %v7846_v30, %v9640_v52  ;;  %v3334_v24 = vmul.f32 %v7846_v30, %v9641_v19 }
 0x4f6   : > { %3738 = vst.msk [vmem:[%s8914_s5 + $0x160] sm:$0xff] %vm1924_vm7, %v3605_v31  ;;  %3739 = vst.msk [vmem:[%s8914_s5 + $0x168] sm:$0xff] %vm1924_vm7, %v3606_v20  ;;  %v3335_v34 = vmul.f32 %v7846_v30, %v9642_v29  ;;  %v3336_v11 = vmul.f32 %v7846_v30, %v9643_v51  ;;  %v3469_v42 = vmul.f32 %v7848_v49, %v3329_v37 }
 0x4f7   : > { %3740 = vst.msk [vmem:[%s8914_s5 + $0x170] sm:$0xff] %vm1924_vm7, %v3607_v54  ;;  %3741 = vst.msk [vmem:[%s8914_s5 + $0x178] sm:$0xff] %vm1924_vm7, %v3608_v0  ;;  %v3470_v47 = vmul.f32 %v7848_v49, %v3330_v22  ;;  %v3471_v4 = vmul.f32 %v7848_v49, %v3331_v2  ;;  %v3472_v59 = vmul.f32 %v7848_v49, %v3332_v28  ;;  %v9652_v28 = vld [vmem:[#allocation31_spill] sm:$0xff] }
 0x4f8   : > { %v3473_v45 = vmul.f32 %v7848_v49, %v3333_v57  ;;  %v3474_v18 = vmul.f32 %v7848_v49, %v3334_v24  ;;  %v3475_v40 = vmul.f32 %v7848_v49, %v3335_v34  ;;  %v3476_v55 = vmul.f32 %v7848_v49, %v3336_v11  ;;  %v9653_v57 = vld [vmem:[#allocation32_spill] sm:$0xff]  ;;  %v9654_v24 = vld [vmem:[#allocation33_spill] sm:$0xff]  ;;  %v9655_v34 = vld [vmem:[#allocation34_spill] sm:$0xff] }
 0x4f9   : > { %v3609_v56 = vadd.f32 %v7858_v1, %v3469_v42  ;;  %v3610_v62 = vadd.f32 %v7858_v1, %v3470_v47  ;;  %v3611_v6 = vadd.f32 %v7858_v1, %v3471_v4  ;;  %v3612_v15 = vadd.f32 %v7858_v1, %v3472_v59  ;;  %v9656_v11 = vld [vmem:[#allocation35_spill] sm:$0xff]  ;;  %v9657_v47 = vld [vmem:[#allocation36_spill] sm:$0xff]  ;;  %v9658_v59 = vld [vmem:[#allocation37_spill] sm:$0xff] }
 0x4fa   : > { %v3613_v53 = vadd.f32 %v7858_v1, %v3473_v45  ;;  %v3614_v33 = vadd.f32 %v7858_v1, %v3474_v18  ;;  %v3615_v50 = vadd.f32 %v7858_v1, %v3475_v40  ;;  %v3616_v43 = vadd.f32 %v7858_v1, %v3476_v55  ;;  %v9659_v18 = vld [vmem:[#allocation38_spill] sm:$0xff] }
 0x4fb   : > { %3742 = vst.msk [vmem:[%s8914_s5 + $0x180] sm:$0xff] %vm1924_vm7, %v3609_v56  ;;  %3743 = vst.msk [vmem:[%s8914_s5 + $0x188] sm:$0xff] %vm1924_vm7, %v3610_v62  ;;  %v3337_v21 = vmul.f32 %v7846_v30, %v9644_v36  ;;  %v3338_v41 = vmul.f32 %v7846_v30, %v9645_v48  ;;  %v3339_v16 = vmul.f32 %v7846_v30, %v9646_v58 }
 0x4fc   : > { %3744 = vst.msk [vmem:[%s8914_s5 + $0x190] sm:$0xff] %vm1924_vm7, %v3611_v6  ;;  %3745 = vst.msk [vmem:[%s8914_s5 + $0x198] sm:$0xff] %vm1924_vm7, %v3612_v15  ;;  %v3340_v32 = vmul.f32 %v7846_v30, %v9647_v23  ;;  %v3341_v25 = vmul.f32 %v7846_v30, %v9648_v44  ;;  %v3342_v60 = vmul.f32 %v7846_v30, %v9649_v7 }
 0x4fd   : > { %3746 = vst.msk [vmem:[%s8914_s5 + $0x1a0] sm:$0xff] %vm1924_vm7, %v3613_v53  ;;  %3747 = vst.msk [vmem:[%s8914_s5 + $0x1a8] sm:$0xff] %vm1924_vm7, %v3614_v33  ;;  %v3343_v3 = vmul.f32 %v7846_v30, %v9650_v63  ;;  %v3344_v12 = vmul.f32 %v7846_v30, %v9651_v61  ;;  %v3477_v10 = vmul.f32 %v7848_v49, %v3337_v21 }
 0x4fe   : > { %3748 = vst.msk [vmem:[%s8914_s5 + $0x1b0] sm:$0xff] %vm1924_vm7, %v3615_v50  ;;  %3749 = vst.msk [vmem:[%s8914_s5 + $0x1b8] sm:$0xff] %vm1924_vm7, %v3616_v43  ;;  %v3478_v27 = vmul.f32 %v7848_v49, %v3338_v41  ;;  %v3479_v38 = vmul.f32 %v7848_v49, %v3339_v16  ;;  %v3480_v9 = vmul.f32 %v7848_v49, %v3340_v32  ;;  %v9660_v32 = vld [vmem:[#allocation39_spill] sm:$0xff] }
 0x4ff   : > { %v3481_v14 = vmul.f32 %v7848_v49, %v3341_v25  ;;  %v3482_v31 = vmul.f32 %v7848_v49, %v3342_v60  ;;  %v3483_v20 = vmul.f32 %v7848_v49, %v3343_v3  ;;  %v3484_v54 = vmul.f32 %v7848_v49, %v3344_v12  ;;  %v9661_v25 = vld [vmem:[#allocation40_spill] sm:$0xff]  ;;  %v9662_v60 = vld [vmem:[#allocation41_spill] sm:$0xff]  ;;  %v9663_v3 = vld [vmem:[#allocation42_spill] sm:$0xff] }
 0x500   : > { %v3617_v0 = vadd.f32 %v7858_v1, %v3477_v10  ;;  %v3618_v39 = vadd.f32 %v7858_v1, %v3478_v27  ;;  %v3619_v37 = vadd.f32 %v7858_v1, %v3479_v38  ;;  %v3620_v46 = vadd.f32 %v7858_v1, %v3480_v9  ;;  %v9664_v12 = vld [vmem:[#allocation43_spill] sm:$0xff]  ;;  %v9665_v27 = vld [vmem:[#allocation44_spill] sm:$0xff]  ;;  %v9666_v9 = vld [vmem:[#allocation45_spill] sm:$0xff] }
 0x501   : > { %v3621_v22 = vadd.f32 %v7858_v1, %v3481_v14  ;;  %v3622_v5 = vadd.f32 %v7858_v1, %v3482_v31  ;;  %v3623_v2 = vadd.f32 %v7858_v1, %v3483_v20  ;;  %v3624_v13 = vadd.f32 %v7858_v1, %v3484_v54  ;;  %v9667_v31 = vld [vmem:[#allocation46_spill] sm:$0xff] }
 0x502   : > { %3750 = vst.msk [vmem:[%s8914_s5 + $0x1c0] sm:$0xff] %vm1924_vm7, %v3617_v0  ;;  %3751 = vst.msk [vmem:[%s8914_s5 + $0x1c8] sm:$0xff] %vm1924_vm7, %v3618_v39  ;;  %v3345_v52 = vmul.f32 %v7846_v30, %v9652_v28  ;;  %v3346_v19 = vmul.f32 %v7846_v30, %v9653_v57  ;;  %v3347_v29 = vmul.f32 %v7846_v30, %v9654_v24 }
 0x503   : > { %3752 = vst.msk [vmem:[%s8914_s5 + $0x1d0] sm:$0xff] %vm1924_vm7, %v3619_v37  ;;  %3753 = vst.msk [vmem:[%s8914_s5 + $0x1d8] sm:$0xff] %vm1924_vm7, %v3620_v46  ;;  %v3348_v51 = vmul.f32 %v7846_v30, %v9655_v34  ;;  %v3349_v42 = vmul.f32 %v7846_v30, %v9656_v11  ;;  %v3350_v4 = vmul.f32 %v7846_v30, %v9657_v47 }
 0x504   : > { %3754 = vst.msk [vmem:[%s8914_s5 + $0x1e0] sm:$0xff] %vm1924_vm7, %v3621_v22  ;;  %3755 = vst.msk [vmem:[%s8914_s5 + $0x1e8] sm:$0xff] %vm1924_vm7, %v3622_v5  ;;  %v3351_v45 = vmul.f32 %v7846_v30, %v9658_v59  ;;  %v3352_v40 = vmul.f32 %v7846_v30, %v9659_v18  ;;  %v3485_v55 = vmul.f32 %v7848_v49, %v3345_v52 }
 0x505   : > { %3756 = vst.msk [vmem:[%s8914_s5 + $0x1f0] sm:$0xff] %vm1924_vm7, %v3623_v2  ;;  %3757 = vst.msk [vmem:[%s8914_s5 + $0x1f8] sm:$0xff] %vm1924_vm7, %v3624_v13  ;;  %v3486_v56 = vmul.f32 %v7848_v49, %v3346_v19  ;;  %v3487_v62 = vmul.f32 %v7848_v49, %v3347_v29  ;;  %v3488_v6 = vmul.f32 %v7848_v49, %v3348_v51  ;;  %v9668_v51 = vld [vmem:[#allocation47_spill] sm:$0xff] }
 0x506   : > { %v3489_v15 = vmul.f32 %v7848_v49, %v3349_v42  ;;  %v3490_v53 = vmul.f32 %v7848_v49, %v3350_v4  ;;  %v3491_v33 = vmul.f32 %v7848_v49, %v3351_v45  ;;  %v3492_v50 = vmul.f32 %v7848_v49, %v3352_v40  ;;  %v9669_v42 = vld [vmem:[#allocation48_spill] sm:$0xff]  ;;  %v9670_v4 = vld [vmem:[#allocation49_spill] sm:$0xff]  ;;  %v9671_v45 = vld [vmem:[#allocation50_spill] sm:$0xff] }
 0x507   : > { %v3625_v43 = vadd.f32 %v7858_v1, %v3485_v55  ;;  %v3626_v36 = vadd.f32 %v7858_v1, %v3486_v56  ;;  %v3627_v21 = vadd.f32 %v7858_v1, %v3487_v62  ;;  %v3628_v48 = vadd.f32 %v7858_v1, %v3488_v6  ;;  %v9672_v40 = vld [vmem:[#allocation51_spill] sm:$0xff]  ;;  %v9673_v56 = vld [vmem:[#allocation52_spill] sm:$0xff]  ;;  %v9674_v6 = vld [vmem:[#allocation53_spill] sm:$0xff] }
 0x508   : > { %v3629_v41 = vadd.f32 %v7858_v1, %v3489_v15  ;;  %v3630_v58 = vadd.f32 %v7858_v1, %v3490_v53  ;;  %v3631_v16 = vadd.f32 %v7858_v1, %v3491_v33  ;;  %v3632_v23 = vadd.f32 %v7858_v1, %v3492_v50  ;;  %v9675_v53 = vld [vmem:[#allocation54_spill] sm:$0xff] }
 0x509   : > { %3758 = vst.msk [vmem:[%s8914_s5 + $0x200] sm:$0xff] %vm1924_vm7, %v3625_v43  ;;  %3759 = vst.msk [vmem:[%s8914_s5 + $0x208] sm:$0xff] %vm1924_vm7, %v3626_v36  ;;  %v3353_v44 = vmul.f32 %v7846_v30, %v9660_v32  ;;  %v3354_v7 = vmul.f32 %v7846_v30, %v9661_v25  ;;  %v3355_v63 = vmul.f32 %v7846_v30, %v9662_v60 }
 0x50a   : > { %3760 = vst.msk [vmem:[%s8914_s5 + $0x210] sm:$0xff] %vm1924_vm7, %v3627_v21  ;;  %3761 = vst.msk [vmem:[%s8914_s5 + $0x218] sm:$0xff] %vm1924_vm7, %v3628_v48  ;;  %v3356_v61 = vmul.f32 %v7846_v30, %v9663_v3  ;;  %v3357_v10 = vmul.f32 %v7846_v30, %v9664_v12  ;;  %v3358_v38 = vmul.f32 %v7846_v30, %v9665_v27 }
 0x50b   : > { %3762 = vst.msk [vmem:[%s8914_s5 + $0x220] sm:$0xff] %vm1924_vm7, %v3629_v41  ;;  %3763 = vst.msk [vmem:[%s8914_s5 + $0x228] sm:$0xff] %vm1924_vm7, %v3630_v58  ;;  %v3359_v14 = vmul.f32 %v7846_v30, %v9666_v9  ;;  %v3360_v20 = vmul.f32 %v7846_v30, %v9667_v31  ;;  %v3493_v54 = vmul.f32 %v7848_v49, %v3353_v44 }
 0x50c   : > { %3764 = vst.msk [vmem:[%s8914_s5 + $0x230] sm:$0xff] %vm1924_vm7, %v3631_v16  ;;  %3765 = vst.msk [vmem:[%s8914_s5 + $0x238] sm:$0xff] %vm1924_vm7, %v3632_v23  ;;  %v3494_v0 = vmul.f32 %v7848_v49, %v3354_v7  ;;  %v3495_v39 = vmul.f32 %v7848_v49, %v3355_v63  ;;  %v3496_v37 = vmul.f32 %v7848_v49, %v3356_v61  ;;  %v9676_v61 = vld [vmem:[#allocation55_spill] sm:$0xff] }
 0x50d   : > { %v3497_v46 = vmul.f32 %v7848_v49, %v3357_v10  ;;  %v3498_v22 = vmul.f32 %v7848_v49, %v3358_v38  ;;  %v3499_v5 = vmul.f32 %v7848_v49, %v3359_v14  ;;  %v3500_v2 = vmul.f32 %v7848_v49, %v3360_v20  ;;  %v9677_v10 = vld [vmem:[#allocation56_spill] sm:$0xff]  ;;  %v9678_v38 = vld [vmem:[#allocation57_spill] sm:$0xff]  ;;  %v9679_v14 = vld [vmem:[#allocation58_spill] sm:$0xff] }
 0x50e   : > { %v3633_v13 = vadd.f32 %v7858_v1, %v3493_v54  ;;  %v3634_v28 = vadd.f32 %v7858_v1, %v3494_v0  ;;  %v3635_v52 = vadd.f32 %v7858_v1, %v3495_v39  ;;  %v3636_v57 = vadd.f32 %v7858_v1, %v3496_v37  ;;  %v9680_v20 = vld [vmem:[#allocation59_spill] sm:$0xff]  ;;  %v9681_v0 = vld [vmem:[#allocation60_spill] sm:$0xff]  ;;  %v9682_v37 = vld [vmem:[#allocation61_spill] sm:$0xff] }
 0x50f   : > { %v3637_v19 = vadd.f32 %v7858_v1, %v3497_v46  ;;  %v3638_v24 = vadd.f32 %v7858_v1, %v3498_v22  ;;  %v3639_v29 = vadd.f32 %v7858_v1, %v3499_v5  ;;  %v3640_v34 = vadd.f32 %v7858_v1, %v3500_v2  ;;  %v9683_v22 = vld [vmem:[#allocation62_spill] sm:$0xff] }
 0x510   : > { %3766 = vst.msk [vmem:[%s8914_s5 + $0x240] sm:$0xff] %vm1924_vm7, %v3633_v13  ;;  %3767 = vst.msk [vmem:[%s8914_s5 + $0x248] sm:$0xff] %vm1924_vm7, %v3634_v28  ;;  %v3361_v11 = vmul.f32 %v7846_v30, %v9668_v51  ;;  %v3362_v47 = vmul.f32 %v7846_v30, %v9669_v42  ;;  %v3363_v59 = vmul.f32 %v7846_v30, %v9670_v4 }
 0x511   : > { %3768 = vst.msk [vmem:[%s8914_s5 + $0x250] sm:$0xff] %vm1924_vm7, %v3635_v52  ;;  %3769 = vst.msk [vmem:[%s8914_s5 + $0x258] sm:$0xff] %vm1924_vm7, %v3636_v57  ;;  %v3364_v18 = vmul.f32 %v7846_v30, %v9671_v45  ;;  %v3365_v55 = vmul.f32 %v7846_v30, %v9672_v40  ;;  %v3366_v62 = vmul.f32 %v7846_v30, %v9673_v56 }
 0x512   : > { %3770 = vst.msk [vmem:[%s8914_s5 + $0x260] sm:$0xff] %vm1924_vm7, %v3637_v19  ;;  %3771 = vst.msk [vmem:[%s8914_s5 + $0x268] sm:$0xff] %vm1924_vm7, %v3638_v24  ;;  %v3367_v15 = vmul.f32 %v7846_v30, %v9674_v6  ;;  %v3368_v33 = vmul.f32 %v7846_v30, %v9675_v53  ;;  %v3501_v50 = vmul.f32 %v7848_v49, %v3361_v11 }
 0x513   : > { %3772 = vst.msk [vmem:[%s8914_s5 + $0x270] sm:$0xff] %vm1924_vm7, %v3639_v29  ;;  %3773 = vst.msk [vmem:[%s8914_s5 + $0x278] sm:$0xff] %vm1924_vm7, %v3640_v34  ;;  %v3502_v43 = vmul.f32 %v7848_v49, %v3362_v47  ;;  %v3503_v36 = vmul.f32 %v7848_v49, %v3363_v59  ;;  %v3504_v21 = vmul.f32 %v7848_v49, %v3364_v18  ;;  %v9684_v18 = vld [vmem:[#allocation63_spill] sm:$0xff] }
 0x514   : > { %v3505_v48 = vmul.f32 %v7848_v49, %v3365_v55  ;;  %v3506_v41 = vmul.f32 %v7848_v49, %v3366_v62  ;;  %v3507_v58 = vmul.f32 %v7848_v49, %v3367_v15  ;;  %v3508_v16 = vmul.f32 %v7848_v49, %v3368_v33  ;;  %v9685_v55 = vld [vmem:[#allocation64_spill] sm:$0xff]  ;;  %v9686_v62 = vld [vmem:[#allocation65_spill] sm:$0xff]  ;;  %v9687_v15 = vld [vmem:[#allocation66_spill] sm:$0xff] }
 0x515   : > { %v3641_v23 = vadd.f32 %v7858_v1, %v3501_v50  ;;  %v3642_v32 = vadd.f32 %v7858_v1, %v3502_v43  ;;  %v3643_v44 = vadd.f32 %v7858_v1, %v3503_v36  ;;  %v3644_v25 = vadd.f32 %v7858_v1, %v3504_v21  ;;  %v9688_v33 = vld [vmem:[#allocation67_spill] sm:$0xff]  ;;  %v9689_v43 = vld [vmem:[#allocation68_spill] sm:$0xff] }
 0x516   : > { %v3645_v7 = vadd.f32 %v7858_v1, %v3505_v48  ;;  %v3646_v60 = vadd.f32 %v7858_v1, %v3506_v41  ;;  %v3647_v63 = vadd.f32 %v7858_v1, %v3507_v58  ;;  %v3648_v3 = vadd.f32 %v7858_v1, %v3508_v16  ;;  %v9690_v48 = vld [vmem:[#allocation69_spill] sm:$0xff] }
 0x517   : > { %3774 = vst.msk [vmem:[%s8914_s5 + $0x280] sm:$0xff] %vm1924_vm7, %v3641_v23  ;;  %3775 = vst.msk [vmem:[%s8914_s5 + $0x288] sm:$0xff] %vm1924_vm7, %v3642_v32  ;;  %v3369_v12 = vmul.f32 %v7846_v30, %v9676_v61  ;;  %v3370_v27 = vmul.f32 %v7846_v30, %v9677_v10  ;;  %v3371_v9 = vmul.f32 %v7846_v30, %v9678_v38 }
 0x518   : > { %3776 = vst.msk [vmem:[%s8914_s5 + $0x290] sm:$0xff] %vm1924_vm7, %v3643_v44  ;;  %3777 = vst.msk [vmem:[%s8914_s5 + $0x298] sm:$0xff] %vm1924_vm7, %v3644_v25  ;;  %v3372_v31 = vmul.f32 %v7846_v30, %v9679_v14  ;;  %v3373_v54 = vmul.f32 %v7846_v30, %v9680_v20  ;;  %v3374_v39 = vmul.f32 %v7846_v30, %v9681_v0 }
 0x519   : > { %3778 = vst.msk [vmem:[%s8914_s5 + $0x2a0] sm:$0xff] %vm1924_vm7, %v3645_v7  ;;  %3779 = vst.msk [vmem:[%s8914_s5 + $0x2a8] sm:$0xff] %vm1924_vm7, %v3646_v60  ;;  %v3375_v46 = vmul.f32 %v7846_v30, %v9682_v37  ;;  %v3376_v5 = vmul.f32 %v7846_v30, %v9683_v22  ;;  %v3509_v2 = vmul.f32 %v7848_v49, %v3369_v12 }
 0x51a   : > { %3780 = vst.msk [vmem:[%s8914_s5 + $0x2b0] sm:$0xff] %vm1924_vm7, %v3647_v63  ;;  %3781 = vst.msk [vmem:[%s8914_s5 + $0x2b8] sm:$0xff] %vm1924_vm7, %v3648_v3  ;;  %v3510_v13 = vmul.f32 %v7848_v49, %v3370_v27  ;;  %v3511_v28 = vmul.f32 %v7848_v49, %v3371_v9  ;;  %v3512_v52 = vmul.f32 %v7848_v49, %v3372_v31  ;;  %v9691_v9 = vld [vmem:[#allocation70_spill] sm:$0xff] }
 0x51b   : > { %v3513_v57 = vmul.f32 %v7848_v49, %v3373_v54  ;;  %v3514_v19 = vmul.f32 %v7848_v49, %v3374_v39  ;;  %v3515_v24 = vmul.f32 %v7848_v49, %v3375_v46  ;;  %v3516_v29 = vmul.f32 %v7848_v49, %v3376_v5  ;;  %v9692_v54 = vld [vmem:[#allocation71_spill] sm:$0xff]  ;;  %v9694_v39 = vld [vmem:[#allocation73_spill] sm:$0xff]  ;;  %v9695_v46 = vld [vmem:[#allocation74_spill] sm:$0xff] }
 0x51c   : > { %v3649_v34 = vadd.f32 %v7858_v1, %v3509_v2  ;;  %v3650_v51 = vadd.f32 %v7858_v1, %v3510_v13  ;;  %v3651_v11 = vadd.f32 %v7858_v1, %v3511_v28  ;;  %v3652_v42 = vadd.f32 %v7858_v1, %v3512_v52  ;;  %v9696_v5 = vld [vmem:[#allocation75_spill] sm:$0xff] }
 0x51d   : > { %v3653_v47 = vadd.f32 %v7858_v1, %v3513_v57  ;;  %v3654_v4 = vadd.f32 %v7858_v1, %v3514_v19  ;;  %v3655_v59 = vadd.f32 %v7858_v1, %v3515_v24  ;;  %v3656_v45 = vadd.f32 %v7858_v1, %v3516_v29 }
 0x51e   : > { %3782 = vst.msk [vmem:[%s8914_s5 + $0x2c0] sm:$0xff] %vm1924_vm7, %v3649_v34  ;;  %3783 = vst.msk [vmem:[%s8914_s5 + $0x2c8] sm:$0xff] %vm1924_vm7, %v3650_v51  ;;  %v3377_v40 = vmul.f32 %v7846_v30, %v9684_v18  ;;  %v3378_v56 = vmul.f32 %v7846_v30, %v9685_v55  ;;  %v3379_v6 = vmul.f32 %v7846_v30, %v9686_v62 }
 0x51f   : > { %3784 = vst.msk [vmem:[%s8914_s5 + $0x2d0] sm:$0xff] %vm1924_vm7, %v3651_v11  ;;  %3785 = vst.msk [vmem:[%s8914_s5 + $0x2d8] sm:$0xff] %vm1924_vm7, %v3652_v42  ;;  %v3380_v53 = vmul.f32 %v7846_v30, %v9687_v15  ;;  %v3381_v50 = vmul.f32 %v7846_v30, %v9688_v33  ;;  %v3382_v36 = vmul.f32 %v7846_v30, %v9689_v43 }
 0x520   : > { %3786 = vst.msk [vmem:[%s8914_s5 + $0x2e0] sm:$0xff] %vm1924_vm7, %v3653_v47  ;;  %3787 = vst.msk [vmem:[%s8914_s5 + $0x2e8] sm:$0xff] %vm1924_vm7, %v3654_v4  ;;  %v3383_v21 = vmul.f32 %v7846_v30, %v7593_v8  ;;  %v3384_v41 = vmul.f32 %v7846_v30, %v9690_v48  ;;  %v3517_v58 = vmul.f32 %v7848_v49, %v3377_v40  ;;  %v9697_v40 = vld [vmem:[#allocation76_spill] sm:$0xff]  ;;  %v9703_v48 = vld [vmem:[#allocation82_spill] sm:$0xff] }
 0x521   : > { %3788 = vst.msk [vmem:[%s8914_s5 + $0x2f0] sm:$0xff] %vm1924_vm7, %v3655_v59  ;;  %3789 = vst.msk [vmem:[%s8914_s5 + $0x2f8] sm:$0xff] %vm1924_vm7, %v3656_v45  ;;  %v3518_v16 = vmul.f32 %v7848_v49, %v3378_v56  ;;  %v3519_v23 = vmul.f32 %v7848_v49, %v3379_v6  ;;  %v3520_v32 = vmul.f32 %v7848_v49, %v3380_v53  ;;  %v9698_v56 = vld [vmem:[#allocation77_spill] sm:$0xff]  ;;  %v9699_v6 = vld [vmem:[#allocation78_spill] sm:$0xff] }
 0x522   : > { %v3521_v44 = vmul.f32 %v7848_v49, %v3381_v50  ;;  %v3522_v25 = vmul.f32 %v7848_v49, %v3382_v36  ;;  %v3523_v7 = vmul.f32 %v7848_v49, %v3383_v21  ;;  %v3524_v60 = vmul.f32 %v7848_v49, %v3384_v41  ;;  %v9700_v53 = vld [vmem:[#allocation79_spill] sm:$0xff]  ;;  %v9701_v50 = vld [vmem:[#allocation80_spill] sm:$0xff]  ;;  %v9702_v36 = vld [vmem:[#allocation81_spill] sm:$0xff] }
 0x523   : > { %v3657_v8 = vadd.f32 %v7858_v1, %v3517_v58  ;;  %v3658_v63 = vadd.f32 %v7858_v1, %v3518_v16  ;;  %v3659_v3 = vadd.f32 %v7858_v1, %v3519_v23  ;;  %v3660_v61 = vadd.f32 %v7858_v1, %v3520_v32  ;;  %v9704_v58 = vld [vmem:[#allocation83_spill] sm:$0xff] }
 0x524   : > { %v3661_v12 = vadd.f32 %v7858_v1, %v3521_v44  ;;  %v3662_v10 = vadd.f32 %v7858_v1, %v3522_v25  ;;  %v3663_v27 = vadd.f32 %v7858_v1, %v3523_v7  ;;  %v3664_v38 = vadd.f32 %v7858_v1, %v3524_v60 }
 0x525   : > { %3790 = vst.msk [vmem:[%s8914_s5 + $0x300] sm:$0xff] %vm1924_vm7, %v3657_v8  ;;  %3791 = vst.msk [vmem:[%s8914_s5 + $0x308] sm:$0xff] %vm1924_vm7, %v3658_v63  ;;  %v3385_v14 = vmul.f32 %v7846_v30, %v9691_v9  ;;  %v3386_v31 = vmul.f32 %v7846_v30, %v7617_v26  ;;  %v3387_v20 = vmul.f32 %v7846_v30, %v7625_v17  ;;  %v9693_v26 = vld [vmem:[#allocation72_spill] sm:$0xff] }
 0x526   : > { %3792 = vst.msk [vmem:[%s8914_s5 + $0x310] sm:$0xff] %vm1924_vm7, %v3659_v3  ;;  %3793 = vst.msk [vmem:[%s8914_s5 + $0x318] sm:$0xff] %vm1924_vm7, %v3660_v61  ;;  %v3388_v0 = vmul.f32 %v7846_v30, %v9692_v54  ;;  %v3389_v17 = vmul.f32 %v7846_v30, %v9693_v26  ;;  %v3390_v37 = vmul.f32 %v7846_v30, %v9694_v39  ;;  %v9706_v54 = vld [vmem:[#allocation85_spill] sm:$0xff]  ;;  %v9707_v26 = vld [vmem:[#allocation86_spill] sm:$0xff] }
 0x527   : > { %3794 = vst.msk [vmem:[%s8914_s5 + $0x320] sm:$0xff] %vm1924_vm7, %v3661_v12  ;;  %3795 = vst.msk [vmem:[%s8914_s5 + $0x328] sm:$0xff] %vm1924_vm7, %v3662_v10  ;;  %v3391_v22 = vmul.f32 %v7846_v30, %v9695_v46  ;;  %v3392_v2 = vmul.f32 %v7846_v30, %v9696_v5  ;;  %v3525_v13 = vmul.f32 %v7848_v49, %v3385_v14  ;;  %v9708_v39 = vld [vmem:[#allocation87_spill] sm:$0xff]  ;;  %v9709_v46 = vld [vmem:[#allocation88_spill] sm:$0xff] }
 0x528   : > { %3796 = vst.msk [vmem:[%s8914_s5 + $0x330] sm:$0xff] %vm1924_vm7, %v3663_v27  ;;  %3797 = vst.msk [vmem:[%s8914_s5 + $0x338] sm:$0xff] %vm1924_vm7, %v3664_v38  ;;  %v3526_v28 = vmul.f32 %v7848_v49, %v3386_v31  ;;  %v3527_v52 = vmul.f32 %v7848_v49, %v3387_v20  ;;  %v3528_v57 = vmul.f32 %v7848_v49, %v3388_v0  ;;  %v9705_v31 = vld [vmem:[#allocation84_spill] sm:$0xff]  ;;  %v9710_v5 = vld [vmem:[#allocation89_spill] sm:$0xff] }
 0x529   : > { %v3529_v19 = vmul.f32 %v7848_v49, %v3389_v17  ;;  %v3530_v24 = vmul.f32 %v7848_v49, %v3390_v37  ;;  %v3531_v29 = vmul.f32 %v7848_v49, %v3391_v22  ;;  %v3532_v34 = vmul.f32 %v7848_v49, %v3392_v2 }
 0x52a   : > { %v3665_v51 = vadd.f32 %v7858_v1, %v3525_v13  ;;  %v3666_v11 = vadd.f32 %v7858_v1, %v3526_v28  ;;  %v3667_v42 = vadd.f32 %v7858_v1, %v3527_v52  ;;  %v3668_v47 = vadd.f32 %v7858_v1, %v3528_v57  ;;  %v9711_v28 = vld [vmem:[#allocation90_spill] sm:$0xff] }
 0x52b   : > { %v3669_v4 = vadd.f32 %v7858_v1, %v3529_v19  ;;  %v3670_v59 = vadd.f32 %v7858_v1, %v3530_v24  ;;  %v3671_v45 = vadd.f32 %v7858_v1, %v3531_v29  ;;  %v3672_v18 = vadd.f32 %v7858_v1, %v3532_v34 }
 0x52c   : > { %3798 = vst.msk [vmem:[%s8914_s5 + $0x340] sm:$0xff] %vm1924_vm7, %v3665_v51  ;;  %3799 = vst.msk [vmem:[%s8914_s5 + $0x348] sm:$0xff] %vm1924_vm7, %v3666_v11  ;;  %v3393_v55 = vmul.f32 %v7846_v30, %v9697_v40  ;;  %v3394_v62 = vmul.f32 %v7846_v30, %v9698_v56  ;;  %v3395_v15 = vmul.f32 %v7846_v30, %v9699_v6  ;;  %v9713_v56 = vld [vmem:[#allocation92_spill] sm:$0xff]  ;;  %v9714_v6 = vld [vmem:[#allocation93_spill] sm:$0xff] }
 0x52d   : > { %3800 = vst.msk [vmem:[%s8914_s5 + $0x350] sm:$0xff] %vm1924_vm7, %v3667_v42  ;;  %3801 = vst.msk [vmem:[%s8914_s5 + $0x358] sm:$0xff] %vm1924_vm7, %v3668_v47  ;;  %v3396_v33 = vmul.f32 %v7846_v30, %v9700_v53  ;;  %v3397_v43 = vmul.f32 %v7846_v30, %v9701_v50  ;;  %v3398_v21 = vmul.f32 %v7846_v30, %v9702_v36  ;;  %v9715_v53 = vld [vmem:[#allocation94_spill] sm:$0xff]  ;;  %v9716_v50 = vld [vmem:[#allocation99_spill] sm:$0xff] }
 0x52e   : > { %3802 = vst.msk [vmem:[%s8914_s5 + $0x360] sm:$0xff] %vm1924_vm7, %v3669_v4  ;;  %3803 = vst.msk [vmem:[%s8914_s5 + $0x368] sm:$0xff] %vm1924_vm7, %v3670_v59  ;;  %v3399_v41 = vmul.f32 %v7846_v30, %v9703_v48  ;;  %v3400_v16 = vmul.f32 %v7846_v30, %v9704_v58  ;;  %v3533_v23 = vmul.f32 %v7848_v49, %v3393_v55  ;;  %v4641_v36 = vld [vmem:[#allocation5] ss:$0 sm:$0xff] }
 0x52f   : > { %3804 = vst.msk [vmem:[%s8914_s5 + $0x370] sm:$0xff] %vm1924_vm7, %v3671_v45  ;;  %3805 = vst.msk [vmem:[%s8914_s5 + $0x378] sm:$0xff] %vm1924_vm7, %v3672_v18  ;;  %v3534_v32 = vmul.f32 %v7848_v49, %v3394_v62  ;;  %v3535_v44 = vmul.f32 %v7848_v49, %v3395_v15  ;;  %v3536_v25 = vmul.f32 %v7848_v49, %v3396_v33 }
 0x530   : > { %v3537_v7 = vmul.f32 %v7848_v49, %v3397_v43  ;;  %v3538_v60 = vmul.f32 %v7848_v49, %v3398_v21  ;;  %v3539_v8 = vmul.f32 %v7848_v49, %v3399_v41  ;;  %v3540_v63 = vmul.f32 %v7848_v49, %v3400_v16 }
 0x531   : > { %v3673_v3 = vadd.f32 %v7858_v1, %v3533_v23  ;;  %v3674_v61 = vadd.f32 %v7858_v1, %v3534_v32  ;;  %v3675_v12 = vadd.f32 %v7858_v1, %v3535_v44  ;;  %v3676_v10 = vadd.f32 %v7858_v1, %v3536_v25  ;;  %v4642_v23 = vld [vmem:[#allocation7] ss:$0 sm:$0xff] }
 0x532   : > { %v3677_v27 = vadd.f32 %v7858_v1, %v3537_v7  ;;  %v3678_v38 = vadd.f32 %v7858_v1, %v3538_v60  ;;  %v3679_v9 = vadd.f32 %v7858_v1, %v3539_v8  ;;  %v3680_v14 = vadd.f32 %v7858_v1, %v3540_v63 }
 0x533   : > { %3806 = vst.msk [vmem:[%s8914_s5 + $0x380] sm:$0xff] %vm1924_vm7, %v3673_v3  ;;  %3807 = vst.msk [vmem:[%s8914_s5 + $0x388] sm:$0xff] %vm1924_vm7, %v3674_v61  ;;  %v3401_v20 = vmul.f32 %v7846_v30, %v9705_v31  ;;  %v3402_v0 = vmul.f32 %v7846_v30, %v9706_v54  ;;  %v3403_v17 = vmul.f32 %v7846_v30, %v9707_v26 }
 0x534   : > { %3808 = vst.msk [vmem:[%s8914_s5 + $0x390] sm:$0xff] %vm1924_vm7, %v3675_v12  ;;  %3809 = vst.msk [vmem:[%s8914_s5 + $0x398] sm:$0xff] %vm1924_vm7, %v3676_v10  ;;  %v3404_v37 = vmul.f32 %v7846_v30, %v9708_v39  ;;  %v3405_v22 = vmul.f32 %v7846_v30, %v9709_v46  ;;  %v3406_v2 = vmul.f32 %v7846_v30, %v9710_v5 }
 0x535   : > { %3810 = vst.msk [vmem:[%s8914_s5 + $0x3a0] sm:$0xff] %vm1924_vm7, %v3677_v27  ;;  %3811 = vst.msk [vmem:[%s8914_s5 + $0x3a8] sm:$0xff] %vm1924_vm7, %v3678_v38  ;;  %v3407_v13 = vmul.f32 %v7846_v30, %v7785_v35  ;;  %v3408_v52 = vmul.f32 %v7846_v30, %v9711_v28  ;;  %v3541_v57 = vmul.f32 %v7848_v49, %v3401_v20 }
 0x536   : > { %3812 = vst.msk [vmem:[%s8914_s5 + $0x3b0] sm:$0xff] %vm1924_vm7, %v3679_v9  ;;  %3813 = vst.msk [vmem:[%s8914_s5 + $0x3b8] sm:$0xff] %vm1924_vm7, %v3680_v14  ;;  %v3542_v19 = vmul.f32 %v7848_v49, %v3402_v0  ;;  %v3543_v24 = vmul.f32 %v7848_v49, %v3403_v17  ;;  %v3544_v29 = vmul.f32 %v7848_v49, %v3404_v37 }
 0x537   : > { %v3545_v34 = vmul.f32 %v7848_v49, %v3405_v22  ;;  %v3546_v51 = vmul.f32 %v7848_v49, %v3406_v2  ;;  %v3547_v11 = vmul.f32 %v7848_v49, %v3407_v13  ;;  %v3548_v42 = vmul.f32 %v7848_v49, %v3408_v52  ;;  %v9712_v49 = vld [vmem:[#allocation91_spill] sm:$0xff] }
 0x538   : > { %v3681_v35 = vadd.f32 %v7858_v1, %v3541_v57  ;;  %v3682_v47 = vadd.f32 %v7858_v1, %v3542_v19  ;;  %v3683_v4 = vadd.f32 %v7858_v1, %v3543_v24  ;;  %v3684_v59 = vadd.f32 %v7858_v1, %v3544_v29 }
 0x539   : > { %v3685_v45 = vadd.f32 %v7858_v1, %v3545_v34  ;;  %v3686_v18 = vadd.f32 %v7858_v1, %v3546_v51  ;;  %v3687_v40 = vadd.f32 %v7858_v1, %v3547_v11  ;;  %v3688_v55 = vadd.f32 %v7858_v1, %v3548_v42 }
 0x53a   : > { %3814 = vst.msk [vmem:[%s8914_s5 + $0x3c0] sm:$0xff] %vm1924_vm7, %v3681_v35  ;;  %3815 = vst.msk [vmem:[%s8914_s5 + $0x3c8] sm:$0xff] %vm1924_vm7, %v3682_v47  ;;  %v3409_v1 = vmul.f32 %v7846_v30, %v9712_v49  ;;  %v3410_v62 = vmul.f32 %v7846_v30, %v9713_v56  ;;  %v3411_v15 = vmul.f32 %v7846_v30, %v9714_v6 }
 0x53b   : > { %3816 = vst.msk [vmem:[%s8914_s5 + $0x3d0] sm:$0xff] %vm1924_vm7, %v3683_v4  ;;  %3817 = vst.msk [vmem:[%s8914_s5 + $0x3d8] sm:$0xff] %vm1924_vm7, %v3684_v59  ;;  %v3412_v33 = vmul.f32 %v7846_v30, %v9715_v53  ;;  %v3413_v43 = vmul.f32 %v7846_v30, %v9716_v50 }
 0x53c   : > { %3818 = vst.msk [vmem:[%s8914_s5 + $0x3e0] sm:$0xff] %vm1924_vm7, %v3685_v45  ;;  %3819 = vst.msk [vmem:[%s8914_s5 + $0x3e8] sm:$0xff] %vm1924_vm7, %v3686_v18  ;;  %v3549_v21 = vmul.f32 %v4641_v36, %v3409_v1  ;;  %v3550_v48 = vmul.f32 %v4641_v36, %v3410_v62  ;;  %v3551_v41 = vmul.f32 %v4641_v36, %v3411_v15 }
 0x53d   : > { %3820 = vst.msk [vmem:[%s8914_s5 + $0x3f0] sm:$0xff] %vm1924_vm7, %v3687_v40  ;;  %3821 = vst.msk [vmem:[%s8914_s5 + $0x3f8] sm:$0xff] %vm1924_vm7, %v3688_v55  ;;  %v3552_v58 = vmul.f32 %v4641_v36, %v3412_v33  ;;  %v3553_v16 = vmul.f32 %v4641_v36, %v3413_v43 }
 0x53e   : > { %v3689_v32 = vadd.f32 %v4642_v23, %v3549_v21  ;;  %v3690_v44 = vadd.f32 %v4642_v23, %v3550_v48  ;;  %v3691_v25 = vadd.f32 %v4642_v23, %v3551_v41 }
 0x53f   : > { %v3692_v7 = vadd.f32 %v4642_v23, %v3552_v58  ;;  %v3693_v60 = vadd.f32 %v4642_v23, %v3553_v16 }
 0x540   : > { %3822 = vst.msk [vmem:[%s8914_s5 + $0x400] sm:$0xff] %vm1924_vm7, %v3689_v32  ;;  %3823 = vst.msk [vmem:[%s8914_s5 + $0x408] sm:$0xff] %vm1924_vm7, %v3690_v44 }
 0x541   : > { %3824 = vst.msk [vmem:[%s8914_s5 + $0x410] sm:$0xff] %vm1924_vm7, %v3691_v25  ;;  %3825 = vst.msk [vmem:[%s8914_s5 + $0x418] sm:$0xff] %vm1924_vm7, %v3692_v7 }
 0x542   : > { %3826 = vst.msk [vmem:[%s8914_s5 + $0x420] sm:$0x3] %vm2057_vm8, %v3693_v60 }
 0x543 PF: > { %s17_s18 = sadd.s32 1, %s4741_s18  }
 0x544   : > { %p14_p11 = scmp.ge.s32.totalorder %s17_s18, 6  }
 0x546   :  { %16 = sbr.rel (!%p14_p11) target bundleno = 2 (0x2), region = 87 }
 0x54d   :  { %3838 = vsyncpa [#allocation4], 1 }
 0x54e   :  { %3840 = vsyncpa [#allocation4 + $0x1], 1 }
 0x54f   :  { %3841 = vsyncpa [#allocation6], 1 }

// kernel: net_forward.5
= control target key start
LH: loop header
LB: loop body
LE: loop exit
PB: predicated region body
PF: predicated region fallthrough
CT: control target
= control target key end

     0   :  { %s2074_s18 = smov 0   ;;  %s3200_s0 = inlined_call_operand.vmem [shape: f32[4,162,800], index: 0, kind: input, shape index: {}]   ;;  %s3201_s1 = inlined_call_operand.vmem [shape: f32[800,64], index: 1, kind: input, shape index: {}]   ;;  %s3202_s2 = inlined_call_operand.vmem [shape: f32[1,64], index: 2, kind: input, shape index: {}]   ;;  %s3203_s3 = inlined_call_operand.vmem [shape: f32[1,64], index: 3, kind: input, shape index: {}]   ;;  %s3204_s4 = inlined_call_operand.vmem [shape: f32[1,64], index: 4, kind: input, shape index: {}]   ;;  %s3205_s5 = inlined_call_operand.vmem [shape: f32[162,64], index: 5, kind: output, shape index: {}]  }
   0x1 LB: > { %s2080_s19 = sadd.s32 4294967295, %s2038_s18   ;;  %p1636_p0 = scmp.ge.s32.totalorder %s2038_s18, 1  ;;  %s2038_s18 = sphi %s2074_s18, %s15_s18  }
   0x2   : > { %p182_p1 = scmp.lt.s32.totalorder %s2038_s18, 5 }
   0x4   : > { %p183_p2 = pnand %p1636_p0, %p182_p1 }
   0x5   : > { %p205_p3 = scmp.lt.s32.totalorder (!%p183_p2), %s2080_s19, 3  ;;  %p1638_p4 = scmp.ne.s32.totalorder (!%p183_p2), %s2080_s19, 0 }
   0x6   : > { %186 = sbr.rel (%p183_p2) target bundleno = 604 (0x25c), region = 40 }
   0xd   : > { %s206_s20 = scalar_select %p205_p3, %s2080_s19, 3 }
   0xe   : > { %213 = sbr.rel (%p1638_p4) target bundleno = 26 (0x1a), region = 44  ;;  %vm214_vm0 = vcmask (!%p1638_p4), 523264   ;;  %vm235_vm1 = vcmask (!%p1638_p4), 517120   ;;  %v2040_v0 = vmov (!%p1638_p4), -inf  }
   0xf   : > { %s2017_s21 = smul.u32 1176, %s206_s20  ;;  %215 = vst.msk [vmem:[#allocation2] sm:$0xff] (!%p1638_p4), %vm214_vm0, %v2040_v0  ;;  %216 = vst.msk [vmem:[#allocation2 + $0x8] sm:$0xff] (!%p1638_p4), %vm214_vm0, %v2040_v0 }
  0x10   : > { %217 = vst.msk [vmem:[#allocation2 + $0x10] sm:$0xff] (!%p1638_p4), %vm214_vm0, %v2040_v0  ;;  %218 = vst.msk [vmem:[#allocation2 + $0x18] sm:$0xff] (!%p1638_p4), %vm214_vm0, %v2040_v0 }
  0x11   : > { %s2089_s24 = scalar_lea.vmem %s3200_s0, %s2017_s21  ;;  %219 = vst.msk [vmem:[#allocation2 + $0x20] sm:$0xff] (!%p1638_p4), %vm214_vm0, %v2040_v0  ;;  %220 = vst.msk [vmem:[#allocation2 + $0x28] sm:$0xff] (!%p1638_p4), %vm214_vm0, %v2040_v0 }
  0x12   : > { %221 = vst.msk [vmem:[#allocation2 + $0x30] sm:$0xff] (!%p1638_p4), %vm214_vm0, %v2040_v0  ;;  %222 = vst.msk [vmem:[#allocation2 + $0x38] sm:$0xff] (!%p1638_p4), %vm214_vm0, %v2040_v0 }
  0x13   : > { %223 = vst.msk [vmem:[#allocation2 + $0x40] sm:$0xff] (!%p1638_p4), %vm214_vm0, %v2040_v0  ;;  %224 = vst.msk [vmem:[#allocation2 + $0x48] sm:$0xff] (!%p1638_p4), %vm214_vm0, %v2040_v0 }
  0x14   : > { %225 = vst.msk [vmem:[#allocation2 + $0x50] sm:$0xff] (!%p1638_p4), %vm214_vm0, %v2040_v0  ;;  %226 = vst.msk [vmem:[#allocation2 + $0x58] sm:$0xff] (!%p1638_p4), %vm214_vm0, %v2040_v0 }
  0x15   : > { %227 = vst.msk [vmem:[#allocation2 + $0x60] sm:$0xff] %vm214_vm0, %v2040_v0  ;;  %228 = vst.msk [vmem:[#allocation2 + $0x68] sm:$0xff] %vm214_vm0, %v2040_v0 }
  0x16   : > { %229 = vst.msk [vmem:[#allocation2 + $0x70] sm:$0xff] %vm214_vm0, %v2040_v0  ;;  %230 = vst.msk [vmem:[#allocation2 + $0x78] sm:$0xff] %vm214_vm0, %v2040_v0 }
  0x17   : > { %231 = vst.msk [vmem:[#allocation2 + $0x80] sm:$0xff] %vm214_vm0, %v2040_v0  ;;  %232 = vst.msk [vmem:[#allocation2 + $0x88] sm:$0xff] %vm214_vm0, %v2040_v0 }
  0x18   : > { %233 = vst.msk [vmem:[#allocation2 + $0x90] sm:$0xff] %vm214_vm0, %v2040_v0  ;;  %234 = vst.msk [vmem:[#allocation2 + $0x98] sm:$0xff] %vm214_vm0, %v2040_v0 }
  0x19   : > { %236 = vst.msk [vmem:[#allocation2 + $0xa0] sm:$0x3] %vm235_vm1, %v2040_v0 }
  0x1a PF: > { %v384_v1 = vld [vmem:[%s3201_s1] sm:$0xff]  ;;  %v385_v2 = vld [vmem:[%s3201_s1 + $0x8] sm:$0xff]  ;;  %v2041_v4 = vmov 0.0|0.0   ;;  %v386_v7 = vld [vmem:[%s3201_s1 + $0x10] sm:$0xff]  ;;  %vm2042_vm2 = vmmov 0   ;;  %vm484_vm3 = vcmask 261120  }
  0x1b   : > { %v448_v3 = vld [vmem:[%s3201_s1 + $0x200] sm:$0xff]  ;;  %1762 = vmatprep.subr.bf16.mxu1 %v2041_v4  ;;  %1858 = vmatprep.subr.bf16.mxu0 %v2041_v4  ;;  %v1763_v5 = vpack.c.bf16 %v385_v2, %v384_v1  ;;  %v449_v6 = vld [vmem:[%s3201_s1 + $0x208] sm:$0xff]  ;;  %v387_v8 = vld [vmem:[%s3201_s1 + $0x18] sm:$0xff]  ;;  %vm1270_vm4 = vcmask 523264   ;;  %vm1291_vm5 = vcmask 517120   ;;  %p1660_p5 = scmp.ne.s32.totalorder %s2080_s19, 3 }
  0x1c   : > { %v1859_v9 = vpack.c.bf16 %v449_v6, %v448_v3  ;;  %v450_v10 = vld [vmem:[%s3201_s1 + $0x210] sm:$0xff]  ;;  %v451_v11 = vld [vmem:[%s3201_s1 + $0x218] sm:$0xff]  ;;  %v1766_v12 = vpack.c.bf16 %v387_v8, %v386_v7  ;;  %v388_v14 = vld [vmem:[%s3201_s1 + $0x20] sm:$0xff] }
  0x1d   : > { %1764 = vmatpush1.bf16.msra.mxu1 %v1763_v5  ;;  %v1862_v13 = vpack.c.bf16 %v451_v11, %v450_v10  ;;  %v389_v15 = vld [vmem:[%s3201_s1 + $0x28] sm:$0xff]  ;;  %v452_v16 = vld [vmem:[%s3201_s1 + $0x220] sm:$0xff]  ;;  %v390_v20 = vld [vmem:[%s3201_s1 + $0x30] sm:$0xff] }
  0x1e   : > { %1860 = vmatpush1.bf16.msra.mxu0 %v1859_v9  ;;  %1765 = vmatprep.subr.bf16.mxu1 %v2041_v4  ;;  %v453_v17 = vld [vmem:[%s3201_s1 + $0x228] sm:$0xff]  ;;  %v1769_v18 = vpack.c.bf16 %v389_v15, %v388_v14  ;;  %v391_v21 = vld [vmem:[%s3201_s1 + $0x38] sm:$0xff]  ;;  %v454_v22 = vld [vmem:[%s3201_s1 + $0x230] sm:$0xff] }
  0x1f   : > { %1861 = vmatprep.subr.bf16.mxu0 %v2041_v4  ;;  %v1865_v19 = vpack.c.bf16 %v453_v17, %v452_v16  ;;  %v455_v23 = vld [vmem:[%s3201_s1 + $0x238] sm:$0xff]  ;;  %v1772_v24 = vpack.c.bf16 %v391_v21, %v390_v20  ;;  %v392_v26 = vld [vmem:[%s3201_s1 + $0x40] sm:$0xff]  ;;  %v393_v27 = vld [vmem:[%s3201_s1 + $0x48] sm:$0xff] }
  0x20   : > { %v1868_v25 = vpack.c.bf16 %v455_v23, %v454_v22  ;;  %v456_v28 = vld [vmem:[%s3201_s1 + $0x240] sm:$0xff]  ;;  %v457_v29 = vld [vmem:[%s3201_s1 + $0x248] sm:$0xff]  ;;  %v1775_v30 = vpack.c.bf16 %v393_v27, %v392_v26  ;;  %v394_v32 = vld [vmem:[%s3201_s1 + $0x50] sm:$0xff] }
  0x21   : > { %1767 = vmatpush1.bf16.msra.mxu1 %v1766_v12  ;;  %v1871_v31 = vpack.c.bf16 %v457_v29, %v456_v28  ;;  %v395_v33 = vld [vmem:[%s3201_s1 + $0x58] sm:$0xff]  ;;  %v458_v34 = vld [vmem:[%s3201_s1 + $0x250] sm:$0xff]  ;;  %v396_v38 = vld [vmem:[%s3201_s1 + $0x60] sm:$0xff] }
  0x22   : > { %1863 = vmatpush1.bf16.msra.mxu0 %v1862_v13  ;;  %1768 = vmatprep.subr.bf16.mxu1 %v2041_v4  ;;  %v459_v35 = vld [vmem:[%s3201_s1 + $0x258] sm:$0xff]  ;;  %v1778_v36 = vpack.c.bf16 %v395_v33, %v394_v32  ;;  %v397_v39 = vld [vmem:[%s3201_s1 + $0x68] sm:$0xff]  ;;  %v460_v40 = vld [vmem:[%s3201_s1 + $0x260] sm:$0xff] }
  0x23   : > { %1864 = vmatprep.subr.bf16.mxu0 %v2041_v4  ;;  %v1874_v37 = vpack.c.bf16 %v459_v35, %v458_v34  ;;  %v461_v41 = vld [vmem:[%s3201_s1 + $0x268] sm:$0xff]  ;;  %v1781_v44 = vpack.c.bf16 %v397_v39, %v396_v38  ;;  %v398_v46 = vld [vmem:[%s3201_s1 + $0x70] sm:$0xff]  ;;  %v399_v47 = vld [vmem:[%s3201_s1 + $0x78] sm:$0xff] }
  0x24   : > { %v238_v42 = vld [vmem:[%s2089_s24 + $0x8] sm:$0xff]  ;;  %v1877_v45 = vpack.c.bf16 %v461_v41, %v460_v40  ;;  %v462_v48 = vld [vmem:[%s3201_s1 + $0x270] sm:$0xff]  ;;  %v463_v49 = vld [vmem:[%s3201_s1 + $0x278] sm:$0xff]  ;;  %v1784_v50 = vpack.c.bf16 %v399_v47, %v398_v46 }
  0x25   : > { %1770 = vmatpush1.bf16.msra.mxu1 %v1769_v18  ;;  %v242_v43 = vld [vmem:[%s2089_s24 + $0x28] sm:$0xff]  ;;  %612 = vmatprep.mubr.f32.mxu1 %v238_v42  ;;  %v1880_v51 = vpack.c.bf16 %v463_v49, %v462_v48  ;;  %v400_v52 = vld [vmem:[%s3201_s1 + $0x80] sm:$0xff]  ;;  %v402_v58 = vld [vmem:[%s3201_s1 + $0x90] sm:$0xff] }
  0x26   : > { %1866 = vmatpush1.bf16.msra.mxu0 %v1865_v19  ;;  %1771 = vmatprep.subr.bf16.mxu1 %v2041_v4  ;;  %v401_v53 = vld [vmem:[%s3201_s1 + $0x88] sm:$0xff]  ;;  %v464_v54 = vld [vmem:[%s3201_s1 + $0x280] sm:$0xff]  ;;  %v403_v59 = vld [vmem:[%s3201_s1 + $0x98] sm:$0xff] }
  0x27   : > { %1867 = vmatprep.subr.bf16.mxu0 %v2041_v4  ;;  %952 = vmatprep.mubr.f32.mxu0 %v242_v43  ;;  %v465_v55 = vld [vmem:[%s3201_s1 + $0x288] sm:$0xff]  ;;  %v1787_v56 = vpack.c.bf16 %v401_v53, %v400_v52  ;;  %v466_v60 = vld [vmem:[%s3201_s1 + $0x290] sm:$0xff]  ;;  %v467_v61 = vld [vmem:[%s3201_s1 + $0x298] sm:$0xff]  ;;  %v1790_v62 = vpack.c.bf16 %v403_v59, %v402_v58 }
  0x28   : > { %v1883_v57 = vpack.c.bf16 %v465_v55, %v464_v54  ;;  %v1886_v63 = vpack.c.bf16 %v467_v61, %v466_v60  ;;  %v404_v0 = vld [vmem:[%s3201_s1 + $0xa0] sm:$0xff]  ;;  %v405_v1 = vld [vmem:[%s3201_s1 + $0xa8] sm:$0xff]  ;;  %v406_v7 = vld [vmem:[%s3201_s1 + $0xb0] sm:$0xff] }
  0x29   : > { %1773 = vmatpush1.bf16.msra.mxu1 %v1772_v24  ;;  %v468_v2 = vld [vmem:[%s3201_s1 + $0x2a0] sm:$0xff]  ;;  %v469_v3 = vld [vmem:[%s3201_s1 + $0x2a8] sm:$0xff]  ;;  %v1793_v5 = vpack.c.bf16 %v405_v1, %v404_v0  ;;  %v407_v8 = vld [vmem:[%s3201_s1 + $0xb8] sm:$0xff] }
  0x2a   : > { %1869 = vmatpush1.bf16.msra.mxu0 %v1868_v25  ;;  %1774 = vmatprep.subr.bf16.mxu1 %v2041_v4  ;;  %v1889_v6 = vpack.c.bf16 %v469_v3, %v468_v2  ;;  %v470_v9 = vld [vmem:[%s3201_s1 + $0x2b0] sm:$0xff]  ;;  %v471_v10 = vld [vmem:[%s3201_s1 + $0x2b8] sm:$0xff]  ;;  %v1796_v11 = vpack.c.bf16 %v407_v8, %v406_v7  ;;  %v408_v13 = vld [vmem:[%s3201_s1 + $0xc0] sm:$0xff] }
  0x2b   : > { %1870 = vmatprep.subr.bf16.mxu0 %v2041_v4  ;;  %v1892_v12 = vpack.c.bf16 %v471_v10, %v470_v9  ;;  %v409_v14 = vld [vmem:[%s3201_s1 + $0xc8] sm:$0xff]  ;;  %v472_v15 = vld [vmem:[%s3201_s1 + $0x2c0] sm:$0xff]  ;;  %v410_v19 = vld [vmem:[%s3201_s1 + $0xd0] sm:$0xff] }
  0x2c   : > { %v473_v16 = vld [vmem:[%s3201_s1 + $0x2c8] sm:$0xff]  ;;  %v1799_v17 = vpack.c.bf16 %v409_v14, %v408_v13  ;;  %v411_v20 = vld [vmem:[%s3201_s1 + $0xd8] sm:$0xff]  ;;  %v474_v21 = vld [vmem:[%s3201_s1 + $0x2d0] sm:$0xff] }
  0x2d   : > { %1776 = vmatpush1.bf16.msra.mxu1 %v1775_v30  ;;  %v1895_v18 = vpack.c.bf16 %v473_v16, %v472_v15  ;;  %v475_v22 = vld [vmem:[%s3201_s1 + $0x2d8] sm:$0xff]  ;;  %v1802_v23 = vpack.c.bf16 %v411_v20, %v410_v19  ;;  %v412_v25 = vld [vmem:[%s3201_s1 + $0xe0] sm:$0xff]  ;;  %v413_v26 = vld [vmem:[%s3201_s1 + $0xe8] sm:$0xff] }
  0x2e   : > { %1872 = vmatpush1.bf16.msra.mxu0 %v1871_v31  ;;  %1777 = vmatprep.subr.bf16.mxu1 %v2041_v4  ;;  %v1898_v24 = vpack.c.bf16 %v475_v22, %v474_v21  ;;  %v476_v27 = vld [vmem:[%s3201_s1 + $0x2e0] sm:$0xff]  ;;  %v477_v28 = vld [vmem:[%s3201_s1 + $0x2e8] sm:$0xff]  ;;  %v1805_v29 = vpack.c.bf16 %v413_v26, %v412_v25  ;;  %v414_v31 = vld [vmem:[%s3201_s1 + $0xf0] sm:$0xff] }
  0x2f   : > { %1873 = vmatprep.subr.bf16.mxu0 %v2041_v4  ;;  %v1901_v30 = vpack.c.bf16 %v477_v28, %v476_v27  ;;  %v415_v32 = vld [vmem:[%s3201_s1 + $0xf8] sm:$0xff]  ;;  %v478_v33 = vld [vmem:[%s3201_s1 + $0x2f0] sm:$0xff]  ;;  %v417_v38 = vld [vmem:[%s3201_s1 + $0x108] sm:$0xff] }
  0x30   : > { %v479_v34 = vld [vmem:[%s3201_s1 + $0x2f8] sm:$0xff]  ;;  %v1808_v35 = vpack.c.bf16 %v415_v32, %v414_v31  ;;  %v480_v39 = vld [vmem:[%s3201_s1 + $0x300] sm:$0xff]  ;;  %v481_v40 = vld [vmem:[%s3201_s1 + $0x308] sm:$0xff] }
  0x31   : > { %1779 = vmatpush1.bf16.msra.mxu1 %v1778_v36  ;;  %v1904_v36 = vpack.c.bf16 %v479_v34, %v478_v33  ;;  %v237_v41 = vld [vmem:[%s2089_s24] sm:$0xff]  ;;  %v418_v46 = vld [vmem:[%s3201_s1 + $0x110] sm:$0xff]  ;;  %v419_v47 = vld [vmem:[%s3201_s1 + $0x118] sm:$0xff] }
  0x32   : > { %1875 = vmatpush1.bf16.msra.mxu0 %v1874_v37  ;;  %1780 = vmatprep.subr.bf16.mxu1 %v2041_v4  ;;  %v416_v37 = vld [vmem:[%s3201_s1 + $0x100] sm:$0xff]  ;;  %v482_v49 = vld [vmem:[%s3201_s1 + $0x310] sm:$0xff]  ;;  %v248_v52 = vld [vmem:[%s2089_s24 + $0x58] sm:$0xff]  ;;  %v1814_v54 = vpack.c.bf16 %v419_v47, %v418_v46 }
  0x33   : > { %1876 = vmatprep.subr.bf16.mxu0 %v2041_v4  ;;  %v1811_v42 = vpack.c.bf16 %v417_v38, %v416_v37  ;;  %v241_v43 = vld [vmem:[%s2089_s24 + $0x20] sm:$0xff]  ;;  %v252_v53 = vld [vmem:[%s2089_s24 + $0x78] sm:$0xff]  ;;  %v251_v59 = vld [vmem:[%s2089_s24 + $0x70] sm:$0xff] }
  0x34   : > { %v249_v48 = vld [vmem:[%s2089_s24 + $0x60] sm:$0xff]  ;;  %v256_v55 = vld [vmem:[%s2089_s24 + $0x98] sm:$0xff]  ;;  %v255_v60 = vld [vmem:[%s2089_s24 + $0x90] sm:$0xff] }
  0x35   : > { %1782 = vmatpush1.bf16.msra.mxu1 %v1781_v44  ;;  %v1907_v44 = vpack.c.bf16 %v481_v40, %v480_v39  ;;  %v259_v61 = vld [vmem:[%s2089_s24 + $0xb0] sm:$0xff]  ;;  %v423_v1 = vld [vmem:[%s3201_s1 + $0x138] sm:$0xff]  ;;  %v258_v2 = vld [vmem:[%s2089_s24 + $0xa8] sm:$0xff] }
  0x36   : > { %1878 = vmatpush1.bf16.msra.mxu0 %v1877_v45  ;;  %1783 = vmatprep.subr.bf16.mxu1 %v2041_v4  ;;  %v245_v45 = vld [vmem:[%s2089_s24 + $0x40] sm:$0xff]  ;;  %v422_v0 = vld [vmem:[%s3201_s1 + $0x130] sm:$0xff]  ;;  %v262_v3 = vld [vmem:[%s2089_s24 + $0xc8] sm:$0xff] }
  0x37   : > { %1879 = vmatprep.subr.bf16.mxu0 %v2041_v4  ;;  %v270_v7 = vld [vmem:[%s2089_s24 + $0x108] sm:$0xff]  ;;  %v424_v8 = vld [vmem:[%s3201_s1 + $0x140] sm:$0xff]  ;;  %v426_v15 = vld [vmem:[%s3201_s1 + $0x150] sm:$0xff] }
  0x38   : > { %v425_v9 = vld [vmem:[%s3201_s1 + $0x148] sm:$0xff]  ;;  %v265_v10 = vld [vmem:[%s2089_s24 + $0xe0] sm:$0xff]  ;;  %v427_v16 = vld [vmem:[%s3201_s1 + $0x158] sm:$0xff] }
  0x39   : > { %1785 = vmatpush1.bf16.msra.mxu1 %v1784_v50  ;;  %v483_v50 = vld [vmem:[%s3201_s1 + $0x318] sm:$0xff]  ;;  %v1823_v13 = vpack.c.bf16 %v425_v9, %v424_v8  ;;  %v277_v14 = vld [vmem:[%s2089_s24 + $0x140] sm:$0xff]  ;;  %v1826_v20 = vpack.c.bf16 %v427_v16, %v426_v15  ;;  %v283_v25 = vld [vmem:[%s2089_s24 + $0x170] sm:$0xff] }
  0x3a   : > { %1881 = vmatpush1.bf16.msra.mxu0 %v1880_v51  ;;  %1786 = vmatprep.subr.bf16.mxu1 %v2041_v4  ;;  %v244_v51 = vld [vmem:[%s2089_s24 + $0x38] sm:$0xff]  ;;  %v1910_v58 = vpack.c.bf16 %v483_v50, %v482_v49  ;;  %v428_v22 = vld [vmem:[%s3201_s1 + $0x160] sm:$0xff]  ;;  %v287_v26 = vld [vmem:[%s2089_s24 + $0x190] sm:$0xff] }
  0x3b   : > { %1882 = vmatprep.subr.bf16.mxu0 %v2041_v4  ;;  %v280_v19 = vld [vmem:[%s2089_s24 + $0x158] sm:$0xff]  ;;  %v291_v28 = vld [vmem:[%s2089_s24 + $0x1b0] sm:$0xff]  ;;  %v286_v31 = vld [vmem:[%s2089_s24 + $0x188] sm:$0xff] }
  0x3c   : > { %v284_v21 = vld [vmem:[%s2089_s24 + $0x178] sm:$0xff]  ;;  %v290_v32 = vld [vmem:[%s2089_s24 + $0x1a8] sm:$0xff]  ;;  %v293_v38 = vld [vmem:[%s2089_s24 + $0x1c0] sm:$0xff] }
  0x3d   : > { %1788 = vmatpush1.bf16.msra.mxu1 %v1787_v56  ;;  %v420_v56 = vld [vmem:[%s3201_s1 + $0x120] sm:$0xff]  ;;  %v294_v33 = vld [vmem:[%s2089_s24 + $0x1c8] sm:$0xff]  ;;  %v304_v46 = vld [vmem:[%s2089_s24 + $0x218] sm:$0xff] }
  0x3e   : > { %1884 = vmatpush1.bf16.msra.mxu0 %v1883_v57  ;;  %1789 = vmatprep.subr.bf16.mxu1 %v2041_v4  ;;  %v421_v57 = vld [vmem:[%s3201_s1 + $0x128] sm:$0xff]  ;;  %v297_v39 = vld [vmem:[%s2089_s24 + $0x1e0] sm:$0xff]  ;;  %v308_v47 = vld [vmem:[%s2089_s24 + $0x238] sm:$0xff] }
  0x3f   : > { %1885 = vmatprep.subr.bf16.mxu0 %v2041_v4  ;;  %v433_v37 = vld [vmem:[%s3201_s1 + $0x188] sm:$0xff]  ;;  %v301_v40 = vld [vmem:[%s2089_s24 + $0x200] sm:$0xff]  ;;  %v312_v49 = vld [vmem:[%s2089_s24 + $0x258] sm:$0xff] }
  0x40   : > { %v436_v50 = vld [vmem:[%s3201_s1 + $0x1a0] sm:$0xff]  ;;  %v442_v8 = vld [vmem:[%s3201_s1 + $0x1d0] sm:$0xff]  ;;  %v443_v9 = vld [vmem:[%s3201_s1 + $0x1d8] sm:$0xff] }
  0x41   : > { %1791 = vmatpush1.bf16.msra.mxu1 %v1790_v62  ;;  %v1817_v62 = vpack.c.bf16 %v421_v57, %v420_v56  ;;  %v319_v56 = vld [vmem:[%s2089_s24 + $0x290] sm:$0xff]  ;;  %v444_v15 = vld [vmem:[%s3201_s1 + $0x1e0] sm:$0xff]  ;;  %v445_v16 = vld [vmem:[%s3201_s1 + $0x1e8] sm:$0xff] }
  0x42   : > { %1887 = vmatpush1.bf16.msra.mxu0 %v1886_v63  ;;  %1792 = vmatprep.subr.bf16.mxu1 %v2041_v4  ;;  %v263_v63 = vld [vmem:[%s2089_s24 + $0xd0] sm:$0xff] }
  0x43   : > { %1888 = vmatprep.subr.bf16.mxu0 %v2041_v4  ;;  %v438_v57 = vld [vmem:[%s3201_s1 + $0x1b0] sm:$0xff] }
  0x45   : > { %1794 = vmatpush1.bf16.msra.mxu1 %v1793_v5  ;;  %v266_v5 = vld [vmem:[%s2089_s24 + $0xe8] sm:$0xff] }
  0x46   : > { %1890 = vmatpush1.bf16.msra.mxu0 %v1889_v6  ;;  %1795 = vmatprep.subr.bf16.mxu1 %v2041_v4  ;;  %v1820_v6 = vpack.c.bf16 %v423_v1, %v422_v0  ;;  %v440_v0 = vld [vmem:[%s3201_s1 + $0x1c0] sm:$0xff]  ;;  %v441_v1 = vld [vmem:[%s3201_s1 + $0x1c8] sm:$0xff] }
  0x47   : > { %1891 = vmatprep.subr.bf16.mxu0 %v2041_v4 }
  0x49   : > { %1797 = vmatpush1.bf16.msra.mxu1 %v1796_v11  ;;  %v269_v11 = vld [vmem:[%s2089_s24 + $0x100] sm:$0xff] }
  0x4a   : > { %1893 = vmatpush1.bf16.msra.mxu0 %v1892_v12  ;;  %1798 = vmatprep.subr.bf16.mxu1 %v2041_v4  ;;  %v273_v12 = vld [vmem:[%s2089_s24 + $0x120] sm:$0xff] }
  0x4b   : > { %1894 = vmatprep.subr.bf16.mxu0 %v2041_v4 }
  0x4d   : > { %1800 = vmatpush1.bf16.msra.mxu1 %v1799_v17  ;;  %v272_v17 = vld [vmem:[%s2089_s24 + $0x118] sm:$0xff] }
  0x4e   : > { %1896 = vmatpush1.bf16.msra.mxu0 %v1895_v18  ;;  %1801 = vmatprep.subr.bf16.mxu1 %v2041_v4  ;;  %v276_v18 = vld [vmem:[%s2089_s24 + $0x138] sm:$0xff] }
  0x4f   : > { %1897 = vmatprep.subr.bf16.mxu0 %v2041_v4 }
  0x51   : > { %1803 = vmatpush1.bf16.msra.mxu1 %v1802_v23  ;;  %v429_v23 = vld [vmem:[%s3201_s1 + $0x168] sm:$0xff] }
  0x52   : > { %1899 = vmatpush1.bf16.msra.mxu0 %v1898_v24  ;;  %1804 = vmatprep.subr.bf16.mxu1 %v2041_v4  ;;  %v279_v24 = vld [vmem:[%s2089_s24 + $0x150] sm:$0xff]  ;;  %v1829_v27 = vpack.c.bf16 %v429_v23, %v428_v22  ;;  %v447_v23 = vld [vmem:[%s3201_s1 + $0x1f8] sm:$0xff] }
  0x53   : > { %1900 = vmatprep.subr.bf16.mxu0 %v2041_v4  ;;  %v446_v22 = vld [vmem:[%s3201_s1 + $0x1f0] sm:$0xff] }
  0x55   : > { %1806 = vmatpush1.bf16.msra.mxu1 %v1805_v29  ;;  %v430_v29 = vld [vmem:[%s3201_s1 + $0x170] sm:$0xff] }
  0x56   : > { %1902 = vmatpush1.bf16.msra.mxu0 %v1901_v30  ;;  %1807 = vmatprep.subr.bf16.mxu1 %v2041_v4  ;;  %v431_v30 = vld [vmem:[%s3201_s1 + $0x178] sm:$0xff] }
  0x57   : > { %1903 = vmatprep.subr.bf16.mxu0 %v2041_v4  ;;  %v1832_v34 = vpack.c.bf16 %v431_v30, %v430_v29  ;;  %v349_v29 = vld [vmem:[%s2089_s24 + $0x380] sm:$0xff] }
  0x58   : > { %v353_v30 = vld [vmem:[%s2089_s24 + $0x3a0] sm:$0xff] }
  0x59   : > { %1809 = vmatpush1.bf16.msra.mxu1 %v1808_v35  ;;  %v298_v35 = vld [vmem:[%s2089_s24 + $0x1e8] sm:$0xff] }
  0x5a   : > { %1905 = vmatpush1.bf16.msra.mxu0 %v1904_v36  ;;  %1810 = vmatprep.subr.bf16.mxu1 %v2041_v4  ;;  %v432_v36 = vld [vmem:[%s3201_s1 + $0x180] sm:$0xff] }
  0x5b   : > { %1906 = vmatprep.subr.bf16.mxu0 %v2041_v4 }
  0x5c   : > { %613 = vmatmul.mubr.f32.vlgmr.msra.gmra.mrb[0].mxu1 %v237_v41  ;;  %v1835_v41 = vpack.c.bf16 %v433_v37, %v432_v36  ;;  %v363_v36 = vld [vmem:[%s2089_s24 + $0x3f0] sm:$0xff] }
  0x5d   : > { %953 = vmatmul.mubr.f32.vlgmr.msra.gmra.mrb[0].mxu0 %v241_v43  ;;  %1812 = vmatpush1.bf16.msra.mxu1 %v1811_v42  ;;  %v305_v42 = vld [vmem:[%s2089_s24 + $0x220] sm:$0xff]  ;;  %v434_v43 = vld [vmem:[%s3201_s1 + $0x190] sm:$0xff] }
  0x5e   : > { %1908 = vmatpush3.bf16.msra.mxu0 %v1907_v44  ;;  %617 = vmatprep.mubr.f32.mxu1 %v245_v45  ;;  %v435_v44 = vld [vmem:[%s3201_s1 + $0x198] sm:$0xff]  ;;  %v367_v37 = vld [vmem:[%s2089_s24 + $0x410] sm:$0xff] }
  0x5f   : > { %957 = vmatprep.mubr.f32.mxu0 %v249_v48  ;;  %1813 = vmatprep.subr.bf16.mxu1 %v2041_v4  ;;  %v300_v45 = vld [vmem:[%s2089_s24 + $0x1f8] sm:$0xff]  ;;  %v1838_v48 = vpack.c.bf16 %v435_v44, %v434_v43  ;;  %v382_v43 = vld [vmem:[%s2089_s24 + $0x488] sm:$0x3]  ;;  %v377_v44 = vld [vmem:[%s2089_s24 + $0x460] sm:$0x3] }
  0x60   : > { %618 = vmatmul.mubr.f32.gmra.mrb[2].mxu1 %v244_v51  ;;  %1909 = vmatprep.subr.bf16.mxu0 %v2041_v4  ;;  %v437_v51 = vld [vmem:[%s3201_s1 + $0x1a8] sm:$0xff] }
  0x61   : > { %958 = vmatmul.mubr.f32.gmra.mrb[2].mxu0 %v248_v52  ;;  %622 = vmatprep.mubr.f32.mxu1 %v252_v53  ;;  %v307_v52 = vld [vmem:[%s2089_s24 + $0x230] sm:$0xff] }
  0x62   : > { %1815 = vmatpush1.bf16.msra.mxu1 %v1814_v54  ;;  %962 = vmatprep.mubr.f32.mxu0 %v256_v55  ;;  %v311_v53 = vld [vmem:[%s2089_s24 + $0x250] sm:$0xff]  ;;  %v1841_v55 = vpack.c.bf16 %v437_v51, %v436_v50  ;;  %v246_v51 = vld [vmem:[%s2089_s24 + $0x48] sm:$0xff] }
  0x63   : > { %1816 = vmatprep.subr.bf16.mxu1 %v2041_v4  ;;  %1911 = vmatpush3.bf16.msra.mxu0 %v1910_v58  ;;  %v315_v54 = vld [vmem:[%s2089_s24 + $0x270] sm:$0xff]  ;;  %v439_v58 = vld [vmem:[%s3201_s1 + $0x1b8] sm:$0xff] }
  0x64   : > { %623 = vmatmul.mubr.f32.gmra.mrb[4].mxu1 %v251_v59  ;;  %v314_v59 = vld [vmem:[%s2089_s24 + $0x268] sm:$0xff]  ;;  %v247_v50 = vld [vmem:[%s2089_s24 + $0x50] sm:$0xff] }
  0x65   : > { %963 = vmatmul.mubr.f32.gmra.mrb[4].mxu0 %v255_v60  ;;  %627 = vmatprep.mubr.f32.mxu1 %v259_v61  ;;  %v318_v60 = vld [vmem:[%s2089_s24 + $0x288] sm:$0xff] }
  0x66   : > { %967 = vmatprep.mubr.f32.mxu0 %v263_v63  ;;  %1818 = vmatpush1.bf16.msra.mxu1 %v1817_v62  ;;  %v322_v61 = vld [vmem:[%s2089_s24 + $0x2a8] sm:$0xff]  ;;  %v1844_v62 = vpack.c.bf16 %v439_v58, %v438_v57  ;;  %v260_v57 = vld [vmem:[%s2089_s24 + $0xb8] sm:$0xff] }
  0x67   : > { %1819 = vmatprep.subr.bf16.mxu1 %v2041_v4  ;;  %v326_v63 = vld [vmem:[%s2089_s24 + $0x2c8] sm:$0xff]  ;;  %v264_v58 = vld [vmem:[%s2089_s24 + $0xd8] sm:$0xff] }
  0x68   : > { %628 = vmatmul.mubr.f32.gmra.mrb[6].mxu1 %v258_v2  ;;  %v321_v2 = vld [vmem:[%s2089_s24 + $0x2a0] sm:$0xff] }
  0x69   : > { %968 = vmatmul.mubr.f32.gmra.mrb[6].mxu0 %v262_v3  ;;  %632 = vmatprep.mubr.f32.mxu1 %v266_v5  ;;  %v325_v3 = vld [vmem:[%s2089_s24 + $0x2c0] sm:$0xff] }
  0x6a   : > { %972 = vmatprep.mubr.f32.mxu0 %v270_v7  ;;  %1821 = vmatpush1.bf16.msra.mxu1 %v1820_v6  ;;  %v329_v5 = vld [vmem:[%s2089_s24 + $0x2e0] sm:$0xff]  ;;  %v1847_v6 = vpack.c.bf16 %v441_v1, %v440_v0  ;;  %v278_v0 = vld [vmem:[%s2089_s24 + $0x148] sm:$0xff] }
  0x6b   : > { %1822 = vmatprep.subr.bf16.mxu1 %v2041_v4  ;;  %v333_v7 = vld [vmem:[%s2089_s24 + $0x300] sm:$0xff]  ;;  %v282_v1 = vld [vmem:[%s2089_s24 + $0x168] sm:$0xff] }
  0x6c   : > { %633 = vmatmul.mubr.f32.gmra.mrb[8].mxu1 %v265_v10  ;;  %v328_v10 = vld [vmem:[%s2089_s24 + $0x2d8] sm:$0xff] }
  0x6d   : > { %973 = vmatmul.mubr.f32.gmra.mrb[8].mxu0 %v269_v11  ;;  %637 = vmatprep.mubr.f32.mxu1 %v273_v12  ;;  %v332_v11 = vld [vmem:[%s2089_s24 + $0x2f8] sm:$0xff] }
  0x6e   : > { %977 = vmatprep.mubr.f32.mxu0 %v277_v14  ;;  %1824 = vmatpush1.bf16.msra.mxu1 %v1823_v13  ;;  %v336_v12 = vld [vmem:[%s2089_s24 + $0x318] sm:$0xff]  ;;  %v1850_v13 = vpack.c.bf16 %v443_v9, %v442_v8  ;;  %v295_v9 = vld [vmem:[%s2089_s24 + $0x1d0] sm:$0xff] }
  0x6f   : > { %1825 = vmatprep.subr.bf16.mxu1 %v2041_v4  ;;  %v340_v14 = vld [vmem:[%s2089_s24 + $0x338] sm:$0xff] }
  0x70   : > { %638 = vmatmul.mubr.f32.gmra.mrb[10].mxu1 %v272_v17  ;;  %v335_v17 = vld [vmem:[%s2089_s24 + $0x310] sm:$0xff]  ;;  %v296_v8 = vld [vmem:[%s2089_s24 + $0x1d8] sm:$0xff] }
  0x71   : > { %978 = vmatmul.mubr.f32.gmra.mrb[10].mxu0 %v276_v18  ;;  %642 = vmatprep.mubr.f32.mxu1 %v280_v19  ;;  %v339_v18 = vld [vmem:[%s2089_s24 + $0x330] sm:$0xff] }
  0x72   : > { %982 = vmatprep.mubr.f32.mxu0 %v284_v21  ;;  %1827 = vmatpush1.bf16.msra.mxu1 %v1826_v20  ;;  %v343_v19 = vld [vmem:[%s2089_s24 + $0x350] sm:$0xff]  ;;  %v1853_v20 = vpack.c.bf16 %v445_v16, %v444_v15  ;;  %v309_v15 = vld [vmem:[%s2089_s24 + $0x240] sm:$0xff] }
  0x73   : > { %1828 = vmatprep.subr.bf16.mxu1 %v2041_v4  ;;  %v347_v21 = vld [vmem:[%s2089_s24 + $0x370] sm:$0xff]  ;;  %v313_v16 = vld [vmem:[%s2089_s24 + $0x260] sm:$0xff] }
  0x74   : > { %643 = vmatmul.mubr.f32.gmra.mrb[12].mxu1 %v279_v24  ;;  %v342_v24 = vld [vmem:[%s2089_s24 + $0x348] sm:$0xff] }
  0x75   : > { %983 = vmatmul.mubr.f32.gmra.mrb[12].mxu0 %v283_v25  ;;  %647 = vmatprep.mubr.f32.mxu1 %v287_v26  ;;  %v346_v25 = vld [vmem:[%s2089_s24 + $0x368] sm:$0xff] }
  0x76   : > { %987 = vmatprep.mubr.f32.mxu0 %v291_v28  ;;  %1830 = vmatpush1.bf16.msra.mxu1 %v1829_v27  ;;  %v350_v26 = vld [vmem:[%s2089_s24 + $0x388] sm:$0xff]  ;;  %v1856_v27 = vpack.c.bf16 %v447_v23, %v446_v22  ;;  %v327_v22 = vld [vmem:[%s2089_s24 + $0x2d0] sm:$0xff] }
  0x77   : > { %1831 = vmatprep.subr.bf16.mxu1 %v2041_v4  ;;  %v354_v28 = vld [vmem:[%s2089_s24 + $0x3a8] sm:$0xff]  ;;  %v331_v23 = vld [vmem:[%s2089_s24 + $0x2f0] sm:$0xff] }
  0x78   : > { %648 = vmatmul.mubr.f32.gmra.mrb[14].mxu1 %v286_v31  ;;  %v357_v31 = vld [vmem:[%s2089_s24 + $0x3c0] sm:$0xff] }
  0x79   : > { %988 = vmatmul.mubr.f32.gmra.mrb[14].mxu0 %v290_v32  ;;  %652 = vmatprep.mubr.f32.mxu1 %v294_v33  ;;  %v361_v32 = vld [vmem:[%s2089_s24 + $0x3e0] sm:$0xff]  ;;  %v356_v33 = vld [vmem:[%s2089_s24 + $0x3b8] sm:$0xff] }
  0x7a   : > { %992 = vmatprep.mubr.f32.mxu0 %v298_v35  ;;  %1833 = vmatpush1.bf16.msra.mxu1 %v1832_v34  ;;  %v364_v34 = vld [vmem:[%s2089_s24 + $0x3f8] sm:$0xff] }
  0x7b   : > { %1834 = vmatprep.subr.bf16.mxu1 %v2041_v4  ;;  %v368_v35 = vld [vmem:[%s2089_s24 + $0x418] sm:$0xff] }
  0x7c   : > { %653 = vmatmul.mubr.f32.gmra.mrb[16].mxu1 %v293_v38  ;;  %v371_v38 = vld [vmem:[%s2089_s24 + $0x430] sm:$0xff] }
  0x7d   : > { %993 = vmatmul.mubr.f32.gmra.mrb[16].mxu0 %v297_v39  ;;  %657 = vmatprep.mubr.f32.mxu1 %v301_v40  ;;  %v375_v39 = vld [vmem:[%s2089_s24 + $0x450] sm:$0xff]  ;;  %v370_v40 = vld [vmem:[%s2089_s24 + $0x428] sm:$0xff] }
  0x7e   : > { %997 = vmatprep.mubr.f32.mxu0 %v305_v42  ;;  %1836 = vmatpush1.bf16.msra.mxu1 %v1835_v41  ;;  %v374_v41 = vld [vmem:[%s2089_s24 + $0x448] sm:$0xff] }
  0x7f   : > { %1837 = vmatprep.subr.bf16.mxu1 %v2041_v4  ;;  %v378_v42 = vld [vmem:[%s2089_s24 + $0x468] sm:$0x3] }
  0x80   : > { %658 = vmatmul.mubr.f32.gmra.mrb[18].mxu1 %v300_v45  ;;  %v381_v45 = vld [vmem:[%s2089_s24 + $0x480] sm:$0x3] }
  0x81   : > { %998 = vmatmul.mubr.f32.gmra.mrb[18].mxu0 %v304_v46  ;;  %662 = vmatprep.mubr.f32.mxu1 %v308_v47  ;;  %v240_v46 = vld [vmem:[%s2089_s24 + $0x18] sm:$0xff]  ;;  %v239_v47 = vld [vmem:[%s2089_s24 + $0x10] sm:$0xff] }
  0x82   : > { %1002 = vmatprep.mubr.f32.mxu0 %v312_v49  ;;  %1839 = vmatpush1.bf16.msra.mxu1 %v1838_v48  ;;  %v2043_v48 = vmov 0.0   ;;  %v243_v49 = vld [vmem:[%s2089_s24 + $0x30] sm:$0xff] }
  0x83   : > { %1840 = vmatprep.subr.bf16.mxu1 %v2041_v4 }
  0x84   : > { %663 = vmatmul.mubr.f32.gmra.mrb[20].mxu1 %v307_v52  ;;  %v250_v52 = vld [vmem:[%s2089_s24 + $0x68] sm:$0xff] }
  0x85   : > { %1003 = vmatmul.mubr.f32.gmra.mrb[20].mxu0 %v311_v53  ;;  %667 = vmatprep.mubr.f32.mxu1 %v315_v54  ;;  %v254_v53 = vld [vmem:[%s2089_s24 + $0x88] sm:$0xff]  ;;  %v253_v54 = vld [vmem:[%s2089_s24 + $0x80] sm:$0xff] }
  0x86   : > { %1007 = vmatprep.mubr.f32.mxu0 %v319_v56  ;;  %1842 = vmatpush1.bf16.msra.mxu1 %v1841_v55  ;;  %v257_v55 = vld [vmem:[%s2089_s24 + $0xa0] sm:$0xff] }
  0x87   : > { %1843 = vmatprep.subr.bf16.mxu1 %v2041_v4  ;;  %v261_v56 = vld [vmem:[%s2089_s24 + $0xc0] sm:$0xff] }
  0x88   : > { %668 = vmatmul.mubr.f32.gmra.mrb[22].mxu1 %v314_v59  ;;  %v268_v59 = vld [vmem:[%s2089_s24 + $0xf8] sm:$0xff] }
  0x89   : > { %1008 = vmatmul.mubr.f32.gmra.mrb[22].mxu0 %v318_v60  ;;  %672 = vmatprep.mubr.f32.mxu1 %v322_v61  ;;  %v267_v60 = vld [vmem:[%s2089_s24 + $0xf0] sm:$0xff] }
  0x8a   : > { %1012 = vmatprep.mubr.f32.mxu0 %v326_v63  ;;  %1845 = vmatpush1.bf16.msra.mxu1 %v1844_v62  ;;  %v271_v61 = vld [vmem:[%s2089_s24 + $0x110] sm:$0xff]  ;;  %v274_v63 = vld [vmem:[%s2089_s24 + $0x128] sm:$0xff] }
  0x8b   : > { %1846 = vmatprep.subr.bf16.mxu1 %v2041_v4  ;;  %v275_v62 = vld [vmem:[%s2089_s24 + $0x130] sm:$0xff] }
  0x8c   : > { %673 = vmatmul.mubr.f32.gmra.mrb[24].mxu1 %v321_v2  ;;  %v281_v2 = vld [vmem:[%s2089_s24 + $0x160] sm:$0xff] }
  0x8d   : > { %1013 = vmatmul.mubr.f32.gmra.mrb[24].mxu0 %v325_v3  ;;  %677 = vmatprep.mubr.f32.mxu1 %v329_v5  ;;  %v285_v3 = vld [vmem:[%s2089_s24 + $0x180] sm:$0xff] }
  0x8e   : > { %1017 = vmatprep.mubr.f32.mxu0 %v333_v7  ;;  %1848 = vmatpush1.bf16.msra.mxu1 %v1847_v6  ;;  %v289_v5 = vld [vmem:[%s2089_s24 + $0x1a0] sm:$0xff]  ;;  %v288_v6 = vld [vmem:[%s2089_s24 + $0x198] sm:$0xff] }
  0x8f   : > { %1849 = vmatprep.subr.bf16.mxu1 %v2041_v4  ;;  %v292_v7 = vld [vmem:[%s2089_s24 + $0x1b8] sm:$0xff] }
  0x90   : > { %678 = vmatmul.mubr.f32.gmra.mrb[26].mxu1 %v328_v10  ;;  %v299_v10 = vld [vmem:[%s2089_s24 + $0x1f0] sm:$0xff] }
  0x91   : > { %1018 = vmatmul.mubr.f32.gmra.mrb[26].mxu0 %v332_v11  ;;  %682 = vmatprep.mubr.f32.mxu1 %v336_v12  ;;  %v303_v11 = vld [vmem:[%s2089_s24 + $0x210] sm:$0xff]  ;;  %v302_v12 = vld [vmem:[%s2089_s24 + $0x208] sm:$0xff] }
  0x92   : > { %1022 = vmatprep.mubr.f32.mxu0 %v340_v14  ;;  %1851 = vmatpush1.bf16.msra.mxu1 %v1850_v13  ;;  %v306_v13 = vld [vmem:[%s2089_s24 + $0x228] sm:$0xff] }
  0x93   : > { %1852 = vmatprep.subr.bf16.mxu1 %v2041_v4  ;;  %v310_v14 = vld [vmem:[%s2089_s24 + $0x248] sm:$0xff] }
  0x94   : > { %683 = vmatmul.mubr.f32.gmra.mrb[28].mxu1 %v335_v17  ;;  %v317_v17 = vld [vmem:[%s2089_s24 + $0x280] sm:$0xff] }
  0x95   : > { %1023 = vmatmul.mubr.f32.gmra.mrb[28].mxu0 %v339_v18  ;;  %687 = vmatprep.mubr.f32.mxu1 %v343_v19  ;;  %v316_v18 = vld [vmem:[%s2089_s24 + $0x278] sm:$0xff] }
  0x96   : > { %1027 = vmatprep.mubr.f32.mxu0 %v347_v21  ;;  %1854 = vmatpush1.bf16.msra.mxu1 %v1853_v20  ;;  %v320_v19 = vld [vmem:[%s2089_s24 + $0x298] sm:$0xff]  ;;  %v323_v21 = vld [vmem:[%s2089_s24 + $0x2b0] sm:$0xff] }
  0x97   : > { %1855 = vmatprep.subr.bf16.mxu1 %v2041_v4  ;;  %v360_v4 = vld [vmem:[%s2089_s24 + $0x3d8] sm:$0xff] }
  0x98   : > { %688 = vmatmul.mubr.f32.gmra.mrb[30].mxu1 %v342_v24  ;;  %v324_v20 = vld [vmem:[%s2089_s24 + $0x2b8] sm:$0xff]  ;;  %v330_v24 = vld [vmem:[%s2089_s24 + $0x2e8] sm:$0xff] }
  0x99   : > { %1028 = vmatmul.mubr.f32.gmra.mrb[30].mxu0 %v346_v25  ;;  %692 = vmatprep.mubr.f32.mxu1 %v350_v26  ;;  %v334_v25 = vld [vmem:[%s2089_s24 + $0x308] sm:$0xff] }
  0x9a   : > { %1032 = vmatprep.mubr.f32.mxu0 %v354_v28  ;;  %1857 = vmatpush1.bf16.msra.mxu1 %v1856_v27  ;;  %v338_v26 = vld [vmem:[%s2089_s24 + $0x328] sm:$0xff]  ;;  %v337_v27 = vld [vmem:[%s2089_s24 + $0x320] sm:$0xff] }
  0x9b   : > { %v341_v28 = vld [vmem:[%s2089_s24 + $0x340] sm:$0xff] }
  0x9c   : > { %693 = vmatmul.mubr.f32.gmra.mrb[32].mxu1 %v349_v29  ;;  %v345_v29 = vld [vmem:[%s2089_s24 + $0x360] sm:$0xff] }
  0x9d   : > { %1033 = vmatmul.mubr.f32.gmra.mrb[32].mxu0 %v353_v30  ;;  %697 = vmatprep.mubr.f32.mxu1 %v357_v31  ;;  %v344_v30 = vld [vmem:[%s2089_s24 + $0x358] sm:$0xff] }
  0x9e   : > { %1037 = vmatprep.mubr.f32.mxu0 %v361_v32  ;;  %v348_v31 = vld [vmem:[%s2089_s24 + $0x378] sm:$0xff] }
  0x9f   : > { %v352_v32 = vld [vmem:[%s2089_s24 + $0x398] sm:$0xff] }
  0xa0   : > { %698 = vmatmul.mubr.f32.gmra.mrb[34].mxu1 %v356_v33  ;;  %v351_v33 = vld [vmem:[%s2089_s24 + $0x390] sm:$0xff] }
  0xa1   : > { %1038 = vmatmul.mubr.f32.gmra.mrb[34].mxu0 %v360_v4  ;;  %702 = vmatprep.mubr.f32.mxu1 %v364_v34  ;;  %v355_v4 = vld [vmem:[%s2089_s24 + $0x3b0] sm:$0xff] }
  0xa2   : > { %1042 = vmatprep.mubr.f32.mxu0 %v368_v35  ;;  %v359_v34 = vld [vmem:[%s2089_s24 + $0x3d0] sm:$0xff]  ;;  %v358_v35 = vld [vmem:[%s2089_s24 + $0x3c8] sm:$0xff] }
  0xa4   : > { %703 = vmatmul.mubr.f32.gmra.mrb[36].mxu1 %v363_v36  ;;  %v362_v36 = vld [vmem:[%s2089_s24 + $0x3e8] sm:$0xff] }
  0xa5   : > { %1043 = vmatmul.mubr.f32.gmra.mrb[36].mxu0 %v367_v37  ;;  %707 = vmatprep.mubr.f32.mxu1 %v371_v38  ;;  %v366_v37 = vld [vmem:[%s2089_s24 + $0x408] sm:$0xff]  ;;  %v365_v38 = vld [vmem:[%s2089_s24 + $0x400] sm:$0xff] }
  0xa6   : > { %1047 = vmatprep.mubr.f32.mxu0 %v375_v39  ;;  %v369_v39 = vld [vmem:[%s2089_s24 + $0x420] sm:$0xff] }
  0xa8   : > { %708 = vmatmul.mubr.f32.gmra.mrb[38].mxu1 %v370_v40  ;;  %v373_v40 = vld [vmem:[%s2089_s24 + $0x440] sm:$0xff] }
  0xa9   : > { %1048 = vmatmul.mubr.f32.gmra.mrb[38].mxu0 %v374_v41  ;;  %712 = vmatprep.mubr.f32.mxu1 %v378_v42  ;;  %v372_v41 = vld [vmem:[%s2089_s24 + $0x438] sm:$0xff] }
  0xaa   : > { %1052 = vmatprep.mubr.f32.mxu0 %v382_v43  ;;  %v376_v42 = vld [vmem:[%s2089_s24 + $0x458] sm:$0xff] }
  0xab   : > { %v380_v43 = vld [vmem:[%s2089_s24 + $0x478] sm:$0x3] }
  0xac   : > { %713 = vmatmul.mubr.f32.gmra.mrb[40].mxu1 %v377_v44  ;;  %v379_v44 = vld [vmem:[%s2089_s24 + $0x470] sm:$0x3] }
  0xad   : > { %1053 = vmatmul.mubr.f32.gmra.mrb[40].mxu0 %v381_v45  ;;  %782 = vmatprep.mubr.f32.mxu1 %v240_v46  ;;  %v383_v45 = vld [vmem:[%s2089_s24 + $0x490] sm:$0x3] }
  0xae   : > { %1699 = vmatprep.mubr.msk.f32.mxu0 %vm2042_vm2, %v2043_v48 }
  0xb0   : > { %783 = vmatmul.mubr.f32.vlgmr.msra.gmra.mrb[0].mxu1 %v239_v47 }
  0xb1   : > { %1700 = vmatmul.mubr.msk.f32.vlgmr.msra.gmra.mrb[0].mxu0 %vm484_vm3, %v243_v49  ;;  %787 = vmatprep.mubr.f32.mxu1 %v247_v50  ;;  %v1228_v49 = vld [vmem:[#allocation2] sm:$0xff] }
  0xb2   : > { %1702 = vmatprep.mubr.msk.f32.mxu0 %vm2042_vm2, %v2043_v48 }
  0xb4   : > { %788 = vmatmul.mubr.f32.gmra.mrb[2].mxu1 %v246_v51 }
  0xb5   : > { %1703 = vmatmul.mubr.msk.f32.gmra.mrb[2].mxu0 %vm484_vm3, %v250_v52  ;;  %792 = vmatprep.mubr.f32.mxu1 %v254_v53 }
  0xb6   : > { %1705 = vmatprep.mubr.msk.f32.mxu0 %vm2042_vm2, %v2043_v48 }
  0xb8   : > { %793 = vmatmul.mubr.f32.gmra.mrb[4].mxu1 %v253_v54 }
  0xb9   : > { %1706 = vmatmul.mubr.msk.f32.gmra.mrb[4].mxu0 %vm484_vm3, %v257_v55  ;;  %797 = vmatprep.mubr.f32.mxu1 %v261_v56  ;;  %v1229_v56 = vld [vmem:[#allocation2 + $0x8] sm:$0xff] }
  0xba   : > { %1708 = vmatprep.mubr.msk.f32.mxu0 %vm2042_vm2, %v2043_v48 }
  0xbc   : > { %798 = vmatmul.mubr.f32.gmra.mrb[6].mxu1 %v260_v57 }
  0xbd   : > { %1709 = vmatmul.mubr.msk.f32.gmra.mrb[6].mxu0 %vm484_vm3, %v264_v58  ;;  %802 = vmatprep.mubr.f32.mxu1 %v268_v59 }
  0xbe   : > { %1711 = vmatprep.mubr.msk.f32.mxu0 %vm2042_vm2, %v2043_v48 }
  0xc0   : > { %803 = vmatmul.mubr.f32.gmra.mrb[8].mxu1 %v267_v60 }
  0xc1   : > { %1712 = vmatmul.mubr.msk.f32.gmra.mrb[8].mxu0 %vm484_vm3, %v271_v61  ;;  %807 = vmatprep.mubr.f32.mxu1 %v275_v62  ;;  %v1230_v62 = vld [vmem:[#allocation2 + $0x10] sm:$0xff] }
  0xc2   : > { %1714 = vmatprep.mubr.msk.f32.mxu0 %vm2042_vm2, %v2043_v48 }
  0xc4   : > { %808 = vmatmul.mubr.f32.gmra.mrb[10].mxu1 %v274_v63 }
  0xc5   : > { %1715 = vmatmul.mubr.msk.f32.gmra.mrb[10].mxu0 %vm484_vm3, %v278_v0  ;;  %812 = vmatprep.mubr.f32.mxu1 %v282_v1 }
  0xc6   : > { %1717 = vmatprep.mubr.msk.f32.mxu0 %vm2042_vm2, %v2043_v48 }
  0xc8   : > { %813 = vmatmul.mubr.f32.gmra.mrb[12].mxu1 %v281_v2 }
  0xc9   : > { %1718 = vmatmul.mubr.msk.f32.gmra.mrb[12].mxu0 %vm484_vm3, %v285_v3  ;;  %817 = vmatprep.mubr.f32.mxu1 %v289_v5 }
  0xca   : > { %1720 = vmatprep.mubr.msk.f32.mxu0 %vm2042_vm2, %v2043_v48 }
  0xcc   : > { %818 = vmatmul.mubr.f32.gmra.mrb[14].mxu1 %v288_v6  ;;  %v1231_v6 = vld [vmem:[#allocation2 + $0x18] sm:$0xff] }
  0xcd   : > { %1721 = vmatmul.mubr.msk.f32.gmra.mrb[14].mxu0 %vm484_vm3, %v292_v7  ;;  %822 = vmatprep.mubr.f32.mxu1 %v296_v8 }
  0xce   : > { %1723 = vmatprep.mubr.msk.f32.mxu0 %vm2042_vm2, %v2043_v48 }
  0xd0   : > { %823 = vmatmul.mubr.f32.gmra.mrb[16].mxu1 %v295_v9 }
  0xd1   : > { %1724 = vmatmul.mubr.msk.f32.gmra.mrb[16].mxu0 %vm484_vm3, %v299_v10  ;;  %827 = vmatprep.mubr.f32.mxu1 %v303_v11 }
  0xd2   : > { %1726 = vmatprep.mubr.msk.f32.mxu0 %vm2042_vm2, %v2043_v48 }
  0xd4   : > { %828 = vmatmul.mubr.f32.gmra.mrb[18].mxu1 %v302_v12 }
  0xd5   : > { %1727 = vmatmul.mubr.msk.f32.gmra.mrb[18].mxu0 %vm484_vm3, %v306_v13  ;;  %832 = vmatprep.mubr.f32.mxu1 %v310_v14  ;;  %v1232_v13 = vld [vmem:[#allocation2 + $0x20] sm:$0xff] }
  0xd6   : > { %1729 = vmatprep.mubr.msk.f32.mxu0 %vm2042_vm2, %v2043_v48 }
  0xd8   : > { %833 = vmatmul.mubr.f32.gmra.mrb[20].mxu1 %v309_v15 }
  0xd9   : > { %1730 = vmatmul.mubr.msk.f32.gmra.mrb[20].mxu0 %vm484_vm3, %v313_v16  ;;  %837 = vmatprep.mubr.f32.mxu1 %v317_v17 }
  0xda   : > { %1732 = vmatprep.mubr.msk.f32.mxu0 %vm2042_vm2, %v2043_v48 }
  0xdc   : > { %838 = vmatmul.mubr.f32.gmra.mrb[22].mxu1 %v316_v18 }
  0xdd   : > { %1733 = vmatmul.mubr.msk.f32.gmra.mrb[22].mxu0 %vm484_vm3, %v320_v19  ;;  %842 = vmatprep.mubr.f32.mxu1 %v324_v20  ;;  %v1233_v20 = vld [vmem:[#allocation2 + $0x28] sm:$0xff] }
  0xde   : > { %1735 = vmatprep.mubr.msk.f32.mxu0 %vm2042_vm2, %v2043_v48 }
  0xe0   : > { %843 = vmatmul.mubr.f32.gmra.mrb[24].mxu1 %v323_v21 }
  0xe1   : > { %1736 = vmatmul.mubr.msk.f32.gmra.mrb[24].mxu0 %vm484_vm3, %v327_v22  ;;  %847 = vmatprep.mubr.f32.mxu1 %v331_v23 }
  0xe2   : > { %1738 = vmatprep.mubr.msk.f32.mxu0 %vm2042_vm2, %v2043_v48 }
  0xe4   : > { %848 = vmatmul.mubr.f32.gmra.mrb[26].mxu1 %v330_v24 }
  0xe5   : > { %1739 = vmatmul.mubr.msk.f32.gmra.mrb[26].mxu0 %vm484_vm3, %v334_v25  ;;  %852 = vmatprep.mubr.f32.mxu1 %v338_v26 }
  0xe6   : > { %1741 = vmatprep.mubr.msk.f32.mxu0 %vm2042_vm2, %v2043_v48 }
  0xe8   : > { %853 = vmatmul.mubr.f32.gmra.mrb[28].mxu1 %v337_v27  ;;  %v1234_v27 = vld [vmem:[#allocation2 + $0x30] sm:$0xff] }
  0xe9   : > { %1742 = vmatmul.mubr.msk.f32.gmra.mrb[28].mxu0 %vm484_vm3, %v341_v28  ;;  %857 = vmatprep.mubr.f32.mxu1 %v345_v29 }
  0xea   : > { %1744 = vmatprep.mubr.msk.f32.mxu0 %vm2042_vm2, %v2043_v48 }
  0xec   : > { %858 = vmatmul.mubr.f32.gmra.mrb[30].mxu1 %v344_v30 }
  0xed   : > { %1745 = vmatmul.mubr.msk.f32.gmra.mrb[30].mxu0 %vm484_vm3, %v348_v31  ;;  %862 = vmatprep.mubr.f32.mxu1 %v352_v32 }
  0xee   : > { %1747 = vmatprep.mubr.msk.f32.mxu0 %vm2042_vm2, %v2043_v48 }
  0xf0   : > { %863 = vmatmul.mubr.f32.gmra.mrb[32].mxu1 %v351_v33 }
  0xf1   : > { %1748 = vmatmul.mubr.msk.f32.gmra.mrb[32].mxu0 %vm484_vm3, %v355_v4  ;;  %867 = vmatprep.mubr.f32.mxu1 %v359_v34  ;;  %v1235_v4 = vld [vmem:[#allocation2 + $0x38] sm:$0xff] }
  0xf2   : > { %1750 = vmatprep.mubr.msk.f32.mxu0 %vm2042_vm2, %v2043_v48 }
  0xf4   : > { %868 = vmatmul.mubr.f32.gmra.mrb[34].mxu1 %v358_v35 }
  0xf5   : > { %1751 = vmatmul.mubr.msk.f32.gmra.mrb[34].mxu0 %vm484_vm3, %v362_v36  ;;  %872 = vmatprep.mubr.f32.mxu1 %v366_v37 }
  0xf6   : > { %1753 = vmatprep.mubr.msk.f32.mxu0 %vm2042_vm2, %v2043_v48 }
  0xf8   : > { %873 = vmatmul.mubr.f32.gmra.mrb[36].mxu1 %v365_v38 }
  0xf9   : > { %1754 = vmatmul.mubr.msk.f32.gmra.mrb[36].mxu0 %vm484_vm3, %v369_v39  ;;  %877 = vmatprep.mubr.f32.mxu1 %v373_v40  ;;  %v1236_v40 = vld [vmem:[#allocation2 + $0x40] sm:$0xff] }
  0xfa   : > { %1756 = vmatprep.mubr.msk.f32.mxu0 %vm2042_vm2, %v2043_v48 }
  0xfc   : > { %878 = vmatmul.mubr.f32.gmra.mrb[38].mxu1 %v372_v41 }
  0xfd   : > { %1757 = vmatmul.mubr.msk.f32.gmra.mrb[38].mxu0 %vm484_vm3, %v376_v42  ;;  %882 = vmatprep.mubr.f32.mxu1 %v380_v43 }
  0xfe   : > { %1759 = vmatprep.mubr.msk.f32.mxu0 %vm2042_vm2, %v2043_v48 }
 0x100   : > { %883 = vmatmul.mubr.f32.gmra.mrb[40].mxu1 %v379_v44 }
 0x101   : > { %1760 = vmatmul.mubr.msk.f32.gmra.mrb[40].mxu0 %vm484_vm3, %v383_v45 }
 0x183   : > { %v784_v46 = vpop.f32.mrb[0].mxu1 }
 0x184   : > { %v1124_v47 = vpop.f32.mrb[0].mxu0  ;;  %v786_v50 = vpop.f32.mrb[1].mxu1 }
 0x185   : > { %v1912_v51 = vadd.f32 %v1124_v47, %v784_v46  ;;  %v1701_v52 = vpop.f32.mrb[1].mxu0  ;;  %v1237_v47 = vld [vmem:[#allocation2 + $0x48] sm:$0xff] }
 0x187   : > { %v1249_v53 = vmax.f32 %v1228_v49, %v1912_v51  ;;  %v789_v54 = vpop.f32.mrb[2].mxu1 }
 0x188   : > { %v1129_v55 = vpop.f32.mrb[2].mxu0  ;;  %v791_v57 = vpop.f32.mrb[3].mxu1 }
 0x189   : > { %1271 = vst.msk [vmem:[#allocation2] sm:$0xff] %vm1270_vm4, %v1249_v53  ;;  %v1913_v58 = vadd.f32 %v1129_v55, %v789_v54  ;;  %v1704_v48 = vpop.f32.mrb[3].mxu0  ;;  %v1238_v55 = vld [vmem:[#allocation2 + $0x50] sm:$0xff] }
 0x18b   : > { %v1250_v59 = vmax.f32 %v1229_v56, %v1913_v58  ;;  %v794_v60 = vpop.f32.mrb[4].mxu1 }
 0x18c   : > { %v1134_v61 = vpop.f32.mrb[4].mxu0  ;;  %v796_v63 = vpop.f32.mrb[5].mxu1 }
 0x18d   : > { %1272 = vst.msk [vmem:[#allocation2 + $0x8] sm:$0xff] %vm1270_vm4, %v1250_v59  ;;  %v1914_v0 = vadd.f32 %v1134_v61, %v794_v60  ;;  %v1707_v1 = vpop.f32.mrb[5].mxu0  ;;  %v1239_v61 = vld [vmem:[#allocation2 + $0x58] sm:$0xff] }
 0x18f   : > { %v1251_v2 = vmax.f32 %v1230_v62, %v1914_v0  ;;  %v799_v3 = vpop.f32.mrb[6].mxu1 }
 0x190   : > { %v1139_v5 = vpop.f32.mrb[6].mxu0  ;;  %v801_v7 = vpop.f32.mrb[7].mxu1 }
 0x191   : > { %1273 = vst.msk [vmem:[#allocation2 + $0x10] sm:$0xff] %vm1270_vm4, %v1251_v2  ;;  %v1915_v8 = vadd.f32 %v1139_v5, %v799_v3  ;;  %v1710_v9 = vpop.f32.mrb[7].mxu0  ;;  %v1240_v5 = vld [vmem:[#allocation2 + $0x60] sm:$0xff] }
 0x193   : > { %v1252_v10 = vmax.f32 %v1231_v6, %v1915_v8  ;;  %v804_v11 = vpop.f32.mrb[8].mxu1 }
 0x194   : > { %v1144_v12 = vpop.f32.mrb[8].mxu0  ;;  %v806_v14 = vpop.f32.mrb[9].mxu1 }
 0x195   : > { %1274 = vst.msk [vmem:[#allocation2 + $0x18] sm:$0xff] %vm1270_vm4, %v1252_v10  ;;  %v1916_v15 = vadd.f32 %v1144_v12, %v804_v11  ;;  %v1713_v16 = vpop.f32.mrb[9].mxu0  ;;  %v1241_v12 = vld [vmem:[#allocation2 + $0x68] sm:$0xff] }
 0x197   : > { %v1253_v17 = vmax.f32 %v1232_v13, %v1916_v15  ;;  %v809_v18 = vpop.f32.mrb[10].mxu1 }
 0x198   : > { %v1149_v19 = vpop.f32.mrb[10].mxu0  ;;  %v811_v21 = vpop.f32.mrb[11].mxu1 }
 0x199   : > { %1275 = vst.msk [vmem:[#allocation2 + $0x20] sm:$0xff] %vm1270_vm4, %v1253_v17  ;;  %v1917_v22 = vadd.f32 %v1149_v19, %v809_v18  ;;  %v1716_v23 = vpop.f32.mrb[11].mxu0  ;;  %v1242_v19 = vld [vmem:[#allocation2 + $0x70] sm:$0xff] }
 0x19b   : > { %v1254_v24 = vmax.f32 %v1233_v20, %v1917_v22  ;;  %v814_v25 = vpop.f32.mrb[12].mxu1 }
 0x19c   : > { %v1154_v26 = vpop.f32.mrb[12].mxu0  ;;  %v816_v28 = vpop.f32.mrb[13].mxu1 }
 0x19d   : > { %1276 = vst.msk [vmem:[#allocation2 + $0x28] sm:$0xff] %vm1270_vm4, %v1254_v24  ;;  %v1918_v29 = vadd.f32 %v1154_v26, %v814_v25  ;;  %v1719_v30 = vpop.f32.mrb[13].mxu0  ;;  %v1243_v26 = vld [vmem:[#allocation2 + $0x78] sm:$0xff] }
 0x19f   : > { %v1255_v31 = vmax.f32 %v1234_v27, %v1918_v29  ;;  %v819_v32 = vpop.f32.mrb[14].mxu1 }
 0x1a0   : > { %v1159_v33 = vpop.f32.mrb[14].mxu0  ;;  %v821_v34 = vpop.f32.mrb[15].mxu1 }
 0x1a1   : > { %1277 = vst.msk [vmem:[#allocation2 + $0x30] sm:$0xff] %vm1270_vm4, %v1255_v31  ;;  %v1919_v35 = vadd.f32 %v1159_v33, %v819_v32  ;;  %v1722_v36 = vpop.f32.mrb[15].mxu0  ;;  %v1244_v33 = vld [vmem:[#allocation2 + $0x80] sm:$0xff] }
 0x1a3   : > { %v1256_v37 = vmax.f32 %v1235_v4, %v1919_v35  ;;  %v824_v38 = vpop.f32.mrb[16].mxu1 }
 0x1a4   : > { %v1164_v39 = vpop.f32.mrb[16].mxu0  ;;  %v826_v41 = vpop.f32.mrb[17].mxu1 }
 0x1a5   : > { %1278 = vst.msk [vmem:[#allocation2 + $0x38] sm:$0xff] %vm1270_vm4, %v1256_v37  ;;  %v1920_v42 = vadd.f32 %v1164_v39, %v824_v38  ;;  %v1725_v43 = vpop.f32.mrb[17].mxu0  ;;  %v1245_v39 = vld [vmem:[#allocation2 + $0x88] sm:$0xff] }
 0x1a7   : > { %v1257_v44 = vmax.f32 %v1236_v40, %v1920_v42  ;;  %v829_v45 = vpop.f32.mrb[18].mxu1 }
 0x1a8   : > { %v1169_v46 = vpop.f32.mrb[18].mxu0  ;;  %v831_v49 = vpop.f32.mrb[19].mxu1 }
 0x1a9   : > { %1279 = vst.msk [vmem:[#allocation2 + $0x40] sm:$0xff] %vm1270_vm4, %v1257_v44  ;;  %v1921_v50 = vadd.f32 %v1169_v46, %v829_v45  ;;  %v1728_v51 = vpop.f32.mrb[19].mxu0  ;;  %v1246_v46 = vld [vmem:[#allocation2 + $0x90] sm:$0xff] }
 0x1ab   : > { %v1258_v52 = vmax.f32 %v1237_v47, %v1921_v50  ;;  %v834_v53 = vpop.f32.mrb[20].mxu1 }
 0x1ac   : > { %v1174_v54 = vpop.f32.mrb[20].mxu0  ;;  %v836_v56 = vpop.f32.mrb[21].mxu1 }
 0x1ad   : > { %1280 = vst.msk [vmem:[#allocation2 + $0x48] sm:$0xff] %vm1270_vm4, %v1258_v52  ;;  %v1922_v57 = vadd.f32 %v1174_v54, %v834_v53  ;;  %v1731_v58 = vpop.f32.mrb[21].mxu0  ;;  %v1247_v54 = vld [vmem:[#allocation2 + $0x98] sm:$0xff] }
 0x1af   : > { %v1259_v48 = vmax.f32 %v1238_v55, %v1922_v57  ;;  %v839_v59 = vpop.f32.mrb[22].mxu1 }
 0x1b0   : > { %v1179_v60 = vpop.f32.mrb[22].mxu0  ;;  %v841_v62 = vpop.f32.mrb[23].mxu1 }
 0x1b1   : > { %1281 = vst.msk [vmem:[#allocation2 + $0x50] sm:$0xff] %vm1270_vm4, %v1259_v48  ;;  %v1923_v63 = vadd.f32 %v1179_v60, %v839_v59  ;;  %v1734_v0 = vpop.f32.mrb[23].mxu0  ;;  %v1248_v60 = vld [vmem:[#allocation2 + $0xa0] sm:$0x3] }
 0x1b3   : > { %v1260_v1 = vmax.f32 %v1239_v61, %v1923_v63  ;;  %v844_v2 = vpop.f32.mrb[24].mxu1 }
 0x1b4   : > { %v1184_v3 = vpop.f32.mrb[24].mxu0  ;;  %v846_v6 = vpop.f32.mrb[25].mxu1 }
 0x1b5   : > { %1282 = vst.msk [vmem:[#allocation2 + $0x58] sm:$0xff] %vm1270_vm4, %v1260_v1  ;;  %v1924_v7 = vadd.f32 %v1184_v3, %v844_v2  ;;  %v1737_v8 = vpop.f32.mrb[25].mxu0  ;;  %v1297_v1 = vld [vmem:[#allocation2] sm:$0xff] (!%p1660_p5)  ;;  %v1298_v2 = vld [vmem:[#allocation2 + $0x8] sm:$0xff] (!%p1660_p5)  ;;  %v1300_v6 = vld [vmem:[#allocation2 + $0x18] sm:$0xff] (!%p1660_p5) }
 0x1b6   : > { %v2698_v3 = vld [vmem:[%s3202_s2] ss:$0 sm:$0xff] (!%p1660_p5) }
 0x1b7   : > { %v1261_v9 = vmax.f32 %v1240_v5, %v1924_v7  ;;  %v849_v10 = vpop.f32.mrb[26].mxu1  ;;  %v1299_v5 = vld [vmem:[#allocation2 + $0x10] sm:$0xff] (!%p1660_p5)  ;;  %v2701_v7 = vadd.f32 (!%p1660_p5), %v2698_v3, %v1297_v1  ;;  %v2704_v8 = vadd.f32 (!%p1660_p5), %v2698_v3, %v1298_v2 }
 0x1b8   : > { %v1189_v11 = vpop.f32.mrb[26].mxu0  ;;  %v851_v13 = vpop.f32.mrb[27].mxu1 }
 0x1b9   : > { %1283 = vst.msk [vmem:[#allocation2 + $0x60] sm:$0xff] %vm1270_vm4, %v1261_v9  ;;  %v1925_v14 = vadd.f32 %v1189_v11, %v849_v10  ;;  %v1740_v15 = vpop.f32.mrb[27].mxu0  ;;  %v1301_v9 = vld [vmem:[#allocation2 + $0x20] sm:$0xff] (!%p1660_p5)  ;;  %v2707_v10 = vadd.f32 (!%p1660_p5), %v2698_v3, %v1299_v5  ;;  %v2710_v11 = vadd.f32 (!%p1660_p5), %v2698_v3, %v1300_v6 }
 0x1ba   : > { %v2713_v13 = vadd.f32 (!%p1660_p5), %v2698_v3, %v1301_v9  ;;  %v1347_v15 = vmax.f32 (!%p1660_p5), %v2704_v8, 0.0 }
 0x1bb   : > { %v1262_v16 = vmax.f32 %v1241_v12, %v1925_v14  ;;  %v854_v17 = vpop.f32.mrb[28].mxu1  ;;  %v1302_v12 = vld [vmem:[#allocation2 + $0x28] sm:$0xff] (!%p1660_p5)  ;;  %v1346_v14 = vmax.f32 (!%p1660_p5), %v2701_v7, 0.0 }
 0x1bc   : > { %v1194_v18 = vpop.f32.mrb[28].mxu0  ;;  %v856_v20 = vpop.f32.mrb[29].mxu1 }
 0x1bd   : > { %1284 = vst.msk [vmem:[#allocation2 + $0x68] sm:$0xff] %vm1270_vm4, %v1262_v16  ;;  %v1926_v21 = vadd.f32 %v1194_v18, %v854_v17  ;;  %v1743_v22 = vpop.f32.mrb[29].mxu0  ;;  %v1303_v16 = vld [vmem:[#allocation2 + $0x30] sm:$0xff] (!%p1660_p5)  ;;  %v1348_v17 = vmax.f32 (!%p1660_p5), %v2707_v10, 0.0  ;;  %v2719_v18 = vadd.f32 (!%p1660_p5), %v2698_v3, %v1302_v12  ;;  %v1304_v20 = vld [vmem:[#allocation2 + $0x38] sm:$0xff] (!%p1660_p5) }
 0x1be   : > { %v1350_v22 = vmax.f32 (!%p1660_p5), %v2713_v13, 0.0 }
 0x1bf   : > { %v1263_v23 = vmax.f32 %v1242_v19, %v1926_v21  ;;  %v859_v24 = vpop.f32.mrb[30].mxu1  ;;  %v1349_v19 = vmax.f32 (!%p1660_p5), %v2710_v11, 0.0  ;;  %v2723_v21 = vadd.f32 (!%p1660_p5), %v2698_v3, %v1303_v16 }
 0x1c0   : > { %v1199_v25 = vpop.f32.mrb[30].mxu0  ;;  %v861_v27 = vpop.f32.mrb[31].mxu1 }
 0x1c1   : > { %1285 = vst.msk [vmem:[#allocation2 + $0x70] sm:$0xff] %vm1270_vm4, %v1263_v23  ;;  %v1927_v28 = vadd.f32 %v1199_v25, %v859_v24  ;;  %v1746_v29 = vpop.f32.mrb[31].mxu0  ;;  %v1367_v23 = vsel (!%p1660_p5), %vm1270_vm4, %v1346_v14, 0.0  ;;  %v1368_v24 = vsel (!%p1660_p5), %vm1270_vm4, %v1347_v15, 0.0  ;;  %v1305_v25 = vld [vmem:[#allocation2 + $0x40] sm:$0xff] (!%p1660_p5)  ;;  %v1370_v27 = vsel (!%p1660_p5), %vm1270_vm4, %v1348_v17, 0.0 }
 0x1c2   : > { %v1351_v29 = vmax.f32 (!%p1660_p5), %v2719_v18, 0.0 }
 0x1c3   : > { %v1264_v30 = vmax.f32 %v1243_v26, %v1927_v28  ;;  %v864_v31 = vpop.f32.mrb[32].mxu1  ;;  %v1369_v26 = vadd.f32 (!%p1660_p5), %v1368_v24, %v1367_v23  ;;  %v2736_v28 = vadd.f32 (!%p1660_p5), %v2698_v3, %v1304_v20 }
 0x1c4   : > { %v1204_v32 = vpop.f32.mrb[32].mxu0  ;;  %v866_v4 = vpop.f32.mrb[33].mxu1 }
 0x1c5   : > { %1286 = vst.msk [vmem:[#allocation2 + $0x78] sm:$0xff] %vm1270_vm4, %v1264_v30  ;;  %v1928_v34 = vadd.f32 %v1204_v32, %v864_v31  ;;  %v1749_v35 = vpop.f32.mrb[33].mxu0  ;;  %v1372_v30 = vsel (!%p1660_p5), %vm1270_vm4, %v1349_v19, 0.0  ;;  %v1306_v31 = vld [vmem:[#allocation2 + $0x48] sm:$0xff] (!%p1660_p5)  ;;  %v1371_v32 = vadd.f32 (!%p1660_p5), %v1370_v27, %v1369_v26  ;;  %v1352_v4 = vmax.f32 (!%p1660_p5), %v2723_v21, 0.0 }
 0x1c6   : > { %v1307_v35 = vld [vmem:[#allocation2 + $0x50] sm:$0xff] (!%p1660_p5) }
 0x1c7   : > { %v1265_v36 = vmax.f32 %v1244_v33, %v1928_v34  ;;  %v869_v37 = vpop.f32.mrb[34].mxu1  ;;  %v2743_v33 = vadd.f32 (!%p1660_p5), %v2698_v3, %v1305_v25  ;;  %v1374_v34 = vsel (!%p1660_p5), %vm1270_vm4, %v1350_v22, 0.0 }
 0x1c8   : > { %v1209_v38 = vpop.f32.mrb[34].mxu0  ;;  %v871_v40 = vpop.f32.mrb[35].mxu1 }
 0x1c9   : > { %1287 = vst.msk [vmem:[#allocation2 + $0x80] sm:$0xff] %vm1270_vm4, %v1265_v36  ;;  %v1929_v41 = vadd.f32 %v1209_v38, %v869_v37  ;;  %v1752_v42 = vpop.f32.mrb[35].mxu0  ;;  %v1373_v36 = vadd.f32 (!%p1660_p5), %v1372_v30, %v1371_v32  ;;  %v2750_v37 = vadd.f32 (!%p1660_p5), %v2698_v3, %v1306_v31  ;;  %v1353_v38 = vmax.f32 (!%p1660_p5), %v2736_v28, 0.0  ;;  %v1308_v40 = vld [vmem:[#allocation2 + $0x58] sm:$0xff] (!%p1660_p5) }
 0x1ca   : > { %v2757_v42 = vadd.f32 (!%p1660_p5), %v2698_v3, %v1307_v35 }
 0x1cb   : > { %v1266_v43 = vmax.f32 %v1245_v39, %v1929_v41  ;;  %v874_v44 = vpop.f32.mrb[36].mxu1  ;;  %v1376_v39 = vsel (!%p1660_p5), %vm1270_vm4, %v1351_v29, 0.0  ;;  %v1375_v41 = vadd.f32 (!%p1660_p5), %v1374_v34, %v1373_v36 }
 0x1cc   : > { %v1214_v45 = vpop.f32.mrb[36].mxu0  ;;  %v876_v47 = vpop.f32.mrb[37].mxu1 }
 0x1cd   : > { %1288 = vst.msk [vmem:[#allocation2 + $0x88] sm:$0xff] %vm1270_vm4, %v1266_v43  ;;  %v1930_v49 = vadd.f32 %v1214_v45, %v874_v44  ;;  %v1755_v50 = vpop.f32.mrb[37].mxu0  ;;  %v1354_v43 = vmax.f32 (!%p1660_p5), %v2743_v33, 0.0  ;;  %v1378_v44 = vsel (!%p1660_p5), %vm1270_vm4, %v1352_v4, 0.0  ;;  %v1309_v45 = vld [vmem:[#allocation2 + $0x60] sm:$0xff] (!%p1660_p5)  ;;  %v2764_v47 = vadd.f32 (!%p1660_p5), %v2698_v3, %v1308_v40 }
 0x1ce   : > { %v1380_v50 = vsel (!%p1660_p5), %vm1270_vm4, %v1353_v38, 0.0 }
 0x1cf   : > { %v1267_v51 = vmax.f32 %v1246_v46, %v1930_v49  ;;  %v879_v52 = vpop.f32.mrb[38].mxu1  ;;  %v1377_v46 = vadd.f32 (!%p1660_p5), %v1376_v39, %v1375_v41  ;;  %v1355_v49 = vmax.f32 (!%p1660_p5), %v2750_v37, 0.0 }
 0x1d0   : > { %v1219_v53 = vpop.f32.mrb[38].mxu0  ;;  %v881_v55 = vpop.f32.mrb[39].mxu1  ;;  %v1313_v1 = vld [vmem:[#allocation2 + $0x80] sm:$0xff] (!%p1660_p5) }
 0x1d1   : > { %1289 = vst.msk [vmem:[#allocation2 + $0x90] sm:$0xff] %vm1270_vm4, %v1267_v51  ;;  %v1931_v56 = vadd.f32 %v1219_v53, %v879_v52  ;;  %v1758_v57 = vpop.f32.mrb[39].mxu0  ;;  %v1310_v51 = vld [vmem:[#allocation2 + $0x68] sm:$0xff] (!%p1660_p5)  ;;  %v1379_v52 = vadd.f32 (!%p1660_p5), %v1378_v44, %v1377_v46  ;;  %v2771_v53 = vadd.f32 (!%p1660_p5), %v2698_v3, %v1309_v45  ;;  %v1382_v55 = vsel (!%p1660_p5), %vm1270_vm4, %v1354_v43, 0.0 }
 0x1d2   : > { %v2799_v20 = vadd.f32 (!%p1660_p5), %v2698_v3, %v1313_v1 }
 0x1d3   : > { %v1268_v58 = vmax.f32 %v1247_v54, %v1931_v56  ;;  %v884_v48 = vpop.f32.mrb[40].mxu1  ;;  %1296 = sbr.rel (%p1660_p5) target bundleno = 604 (0x25c), region = 48  ;;  %v1356_v54 = vmax.f32 (!%p1660_p5), %v2757_v42, 0.0  ;;  %v1311_v56 = vld [vmem:[#allocation2 + $0x70] sm:$0xff] (!%p1660_p5)  ;;  %v1381_v57 = vadd.f32 (!%p1660_p5), %v1380_v50, %v1379_v52 }
 0x1d4   : > { %v1224_v59 = vpop.f32.mrb[40].mxu0  ;;  %v886_v61 = vpop.f32.mrb[41].mxu1  ;;  %v1314_v12 = vld [vmem:[#allocation2 + $0x88] sm:$0xff] (!%p1660_p5)  ;;  %v1362_v36 = vmax.f32 (!%p1660_p5), %v2799_v20, 0.0 }
 0x1d5   : > { %1290 = vst.msk [vmem:[#allocation2 + $0x98] sm:$0xff] %vm1270_vm4, %v1268_v58  ;;  %v1932_v62 = vadd.f32 %v1224_v59, %v884_v48  ;;  %v1761_v63 = vpop.f32.mrb[41].mxu0  ;;  %v2778_v58 = vadd.f32 (!%p1660_p5), %v2698_v3, %v1310_v51  ;;  %v1357_v48 = vmax.f32 (!%p1660_p5), %v2764_v47, 0.0  ;;  %v1384_v59 = vsel (!%p1660_p5), %vm1270_vm4, %v1355_v49, 0.0 }
 0x1d6   : > { %v1383_v61 = vadd.f32 (!%p1660_p5), %v1382_v55, %v1381_v57  ;;  %v1358_v63 = vmax.f32 (!%p1660_p5), %v2771_v53, 0.0  ;;  %v2806_v27 = vadd.f32 (!%p1660_p5), %v2698_v3, %v1314_v12  ;;  %v1398_v55 = vsel (!%p1660_p5), %vm1270_vm4, %v1362_v36, 0.0 }
 0x1d7   : > { %v1269_v0 = vmax.f32 %v1248_v60, %v1932_v62  ;;  %v1312_v60 = vld [vmem:[#allocation2 + $0x78] sm:$0xff] (!%p1660_p5)  ;;  %v2785_v62 = vadd.f32 (!%p1660_p5), %v2698_v3, %v1311_v56  ;;  %v1359_v6 = vmax.f32 (!%p1660_p5), %v2778_v58, 0.0  ;;  %v1388_v9 = vsel (!%p1660_p5), %vm1270_vm4, %v1357_v48, 0.0 }
 0x1d8   : > { %v1385_v2 = vadd.f32 (!%p1660_p5), %v1384_v59, %v1383_v61  ;;  %v2792_v5 = vadd.f32 (!%p1660_p5), %v2698_v3, %v1312_v60  ;;  %v1390_v24 = vsel (!%p1660_p5), %vm1270_vm4, %v1358_v63, 0.0  ;;  %v1315_v25 = vld [vmem:[#allocation2 + $0x90] sm:$0xff] (!%p1660_p5)  ;;  %v1363_v45 = vmax.f32 (!%p1660_p5), %v2806_v27, 0.0 }
 0x1d9   : > { %1292 = vst.msk [vmem:[#allocation2 + $0xa0] sm:$0x3] %vm1291_vm5, %v1269_v0  ;;  %v1386_v0 = vsel (!%p1660_p5), %vm1270_vm4, %v1356_v54, 0.0  ;;  %v1360_v23 = vmax.f32 (!%p1660_p5), %v2785_v62, 0.0  ;;  %v1392_v31 = vsel (!%p1660_p5), %vm1270_vm4, %v1359_v6, 0.0  ;;  %v2813_v35 = vadd.f32 (!%p1660_p5), %v2698_v3, %v1315_v25 }
 0x1da   : > { %v1387_v16 = vadd.f32 %v1386_v0, %v1385_v2  ;;  %v1361_v30 = vmax.f32 %v2792_v5, 0.0  ;;  %v1400_v59 = vsel %vm1270_vm4, %v1363_v45, 0.0 }
 0x1db   : > { %v1394_v39 = vsel %vm1270_vm4, %v1360_v23, 0.0  ;;  %v1364_v52 = vmax.f32 %v2813_v35, 0.0 }
 0x1dc   : > { %v1389_v26 = vadd.f32 %v1388_v9, %v1387_v16  ;;  %v1316_v32 = vld [vmem:[#allocation2 + $0x98] sm:$0xff]  ;;  %v1396_v46 = vsel %vm1270_vm4, %v1361_v30, 0.0 }
 0x1dd   : > { %v2820_v44 = vadd.f32 %v2698_v3, %v1316_v32 }
 0x1de   : > { %v1391_v34 = vadd.f32 %v1390_v24, %v1389_v26 }
 0x1df   : > { %v1365_v57 = vmax.f32 %v2820_v44, 0.0 }
 0x1e0   : > { %v1317_v40 = vld [vmem:[#allocation2 + $0xa0] sm:$0x3]  ;;  %v1393_v41 = vadd.f32 %v1392_v31, %v1391_v34 }
 0x1e1   : > { %v2827_v51 = vadd.f32 %v2698_v3, %v1317_v40  ;;  %v1402_v3 = vsel %vm1270_vm4, %v1364_v52, 0.0  ;;  %v1404_v1 = vsel %vm1270_vm4, %v1365_v57, 0.0 }
 0x1e2   : > { %v1395_v50 = vadd.f32 %v1394_v39, %v1393_v41 }
 0x1e3   : > { %v1366_v61 = vmax.f32 %v2827_v51, 0.0 }
 0x1e4   : > { %v1397_v56 = vadd.f32 %v1396_v46, %v1395_v50 }
 0x1e5   : > { %v1406_v9 = vsel %vm1291_vm5, %v1366_v61, 0.0 }
 0x1e6   : > { %v1399_v60 = vadd.f32 %v1398_v55, %v1397_v56 }
 0x1e8   : > { %v1401_v0 = vadd.f32 %v1400_v59, %v1399_v60 }
 0x1ea   : > { %v1403_v2 = vadd.f32 %v1402_v3, %v1401_v0 }
 0x1ec   : > { %v1405_v12 = vadd.f32 %v1404_v1, %v1403_v2 }
 0x1ee   : > { %v1407_v16 = vadd.f32 %v1406_v9, %v1405_v12 }
 0x1f0   : > { %v1408_v24 = vrot.slane %v1407_v16, 4 }
 0x1f2   : > { %v1409_v25 = vadd.f32 %v1408_v24, %v1407_v16 }
 0x1f4   : > { %v1410_v26 = vrot.slane %v1409_v25, 2 }
 0x1f6   : > { %v1411_v31 = vadd.f32 %v1410_v26, %v1409_v25 }
 0x1f8   : > { %v1412_v32 = vrot.slane %v1411_v31, 1 }
 0x1fa   : > { %v1413_v34 = vadd.f32 %v1412_v32, %v1411_v31 }
 0x1fc   : > { %v2847_v39 = vmul.f32 0.0061728396, %v1413_v34 }
 0x1fe   : > { %v2852_v40 = vsub.f32 %v1346_v14, %v2847_v39  ;;  %v2857_v41 = vsub.f32 %v1347_v15, %v2847_v39  ;;  %v2862_v46 = vsub.f32 %v1348_v17, %v2847_v39  ;;  %v2867_v50 = vsub.f32 %v1349_v19, %v2847_v39 }
 0x1ff   : > { %v2872_v7 = vsub.f32 %v1350_v22, %v2847_v39  ;;  %v2883_v11 = vsub.f32 %v1351_v29, %v2847_v39  ;;  %v2890_v13 = vsub.f32 %v1352_v4, %v2847_v39  ;;  %v2900_v29 = vsub.f32 %v1353_v38, %v2847_v39 }
 0x200   : > { %v1436_v8 = vmul.f32 %v2852_v40, %v2852_v40  ;;  %v1437_v14 = vmul.f32 %v2857_v41, %v2857_v41  ;;  %v1438_v10 = vmul.f32 %v2862_v46, %v2862_v46  ;;  %v1439_v15 = vmul.f32 %v2867_v50, %v2867_v50 }
 0x201   : > { %v1440_v17 = vmul.f32 %v2872_v7, %v2872_v7  ;;  %v1441_v21 = vmul.f32 %v2883_v11, %v2883_v11  ;;  %v2908_v59 = vsub.f32 %v1354_v43, %v2847_v39  ;;  %v1442_v60 = vmul.f32 %v2890_v13, %v2890_v13 }
 0x202   : > { %v1457_v19 = vsel %vm1270_vm4, %v1436_v8, 0.0  ;;  %v1458_v22 = vsel %vm1270_vm4, %v1437_v14, 0.0  ;;  %v1460_v18 = vsel %vm1270_vm4, %v1438_v10, 0.0  ;;  %v1462_v4 = vsel %vm1270_vm4, %v1439_v15, 0.0 }
 0x203   : > { %v1459_v55 = vadd.f32 %v1458_v22, %v1457_v19  ;;  %v1464_v3 = vsel %vm1270_vm4, %v1440_v17, 0.0  ;;  %v2916_v28 = vsub.f32 %v1355_v49, %v2847_v39  ;;  %v1443_v38 = vmul.f32 %v2900_v29, %v2900_v29 }
 0x204   : > { %v1466_v1 = vsel %vm1270_vm4, %v1441_v21, 0.0  ;;  %v2924_v33 = vsub.f32 %v1356_v54, %v2847_v39  ;;  %v1444_v43 = vmul.f32 %v2908_v59, %v2908_v59  ;;  %v1468_v9 = vsel %vm1270_vm4, %v1442_v60, 0.0 }
 0x205   : > { %v1461_v56 = vadd.f32 %v1460_v18, %v1459_v55  ;;  %v2932_v37 = vsub.f32 %v1357_v48, %v2847_v39  ;;  %v1445_v49 = vmul.f32 %v2916_v28, %v2916_v28  ;;  %v1470_v16 = vsel %vm1270_vm4, %v1443_v38, 0.0 }
 0x206   : > { %v2940_v42 = vsub.f32 %v1358_v63, %v2847_v39  ;;  %v1446_v54 = vmul.f32 %v2924_v33, %v2924_v33  ;;  %v1472_v25 = vsel %vm1270_vm4, %v1444_v43, 0.0  ;;  %v2948_v47 = vsub.f32 %v1359_v6, %v2847_v39 }
 0x207   : > { %v1463_v0 = vadd.f32 %v1462_v4, %v1461_v56  ;;  %v1447_v48 = vmul.f32 %v2932_v37, %v2932_v37  ;;  %v1474_v31 = vsel %vm1270_vm4, %v1445_v49, 0.0  ;;  %v2956_v53 = vsub.f32 %v1360_v23, %v2847_v39 }
 0x208   : > { %v1448_v63 = vmul.f32 %v2940_v42, %v2940_v42  ;;  %v1476_v34 = vsel %vm1270_vm4, %v1446_v54, 0.0  ;;  %v2964_v58 = vsub.f32 %v1361_v30, %v2847_v39  ;;  %v1449_v6 = vmul.f32 %v2948_v47, %v2948_v47 }
 0x209   : > { %v1465_v2 = vadd.f32 %v1464_v3, %v1463_v0  ;;  %v1478_v14 = vsel %vm1270_vm4, %v1447_v48, 0.0  ;;  %v2972_v62 = vsub.f32 %v1362_v36, %v2847_v39  ;;  %v1450_v23 = vmul.f32 %v2956_v53, %v2956_v53 }
 0x20a   : > { %v1480_v15 = vsel %vm1270_vm4, %v1448_v63, 0.0  ;;  %v2980_v5 = vsub.f32 %v1363_v45, %v2847_v39  ;;  %v1451_v30 = vmul.f32 %v2964_v58, %v2964_v58  ;;  %v1482_v19 = vsel %vm1270_vm4, %v1449_v6, 0.0  ;;  %v3035_v6 = vld [vmem:[%s3204_s4] ss:$0 sm:$0xff] }
 0x20b   : > { %v1467_v12 = vadd.f32 %v1466_v1, %v1465_v2  ;;  %v2988_v20 = vsub.f32 %v1364_v52, %v2847_v39  ;;  %v1452_v36 = vmul.f32 %v2972_v62, %v2972_v62  ;;  %v1484_v55 = vsel %vm1270_vm4, %v1450_v23, 0.0 }
 0x20c   : > { %v2996_v27 = vsub.f32 %v1365_v57, %v2847_v39  ;;  %v1453_v45 = vmul.f32 %v2980_v5, %v2980_v5  ;;  %v1486_v21 = vsel %vm1270_vm4, %v1451_v30, 0.0  ;;  %v3004_v35 = vsub.f32 %v1366_v61, %v2847_v39 }
 0x20d   : > { %v1469_v24 = vadd.f32 %v1468_v9, %v1467_v12  ;;  %v1454_v52 = vmul.f32 %v2988_v20, %v2988_v20  ;;  %v1488_v56 = vsel %vm1270_vm4, %v1452_v36, 0.0 }
 0x20e   : > { %v1455_v44 = vmul.f32 %v2996_v27, %v2996_v27  ;;  %v1490_v57 = vsel %vm1270_vm4, %v1453_v45, 0.0  ;;  %v1456_v0 = vmul.f32 %v3004_v35, %v3004_v35 }
 0x20f   : > { %v1471_v26 = vadd.f32 %v1470_v16, %v1469_v24  ;;  %v1492_v38 = vsel %vm1270_vm4, %v1454_v52, 0.0 }
 0x210   : > { %v1494_v61 = vsel %vm1270_vm4, %v1455_v44, 0.0  ;;  %v1496_v1 = vsel %vm1291_vm5, %v1456_v0, 0.0 }
 0x211   : > { %v1473_v32 = vadd.f32 %v1472_v25, %v1471_v26 }
 0x213   : > { %v1475_v8 = vadd.f32 %v1474_v31, %v1473_v32  ;;  %v3022_v31 = vld [vmem:[%s3203_s3] ss:$0 sm:$0xff] }
 0x215   : > { %v1477_v10 = vadd.f32 %v1476_v34, %v1475_v8 }
 0x217   : > { %v1479_v17 = vadd.f32 %v1478_v14, %v1477_v10 }
 0x219   : > { %v1481_v22 = vadd.f32 %v1480_v15, %v1479_v17 }
 0x21b   : > { %v1483_v18 = vadd.f32 %v1482_v19, %v1481_v22 }
 0x21d   : > { %v1485_v4 = vadd.f32 %v1484_v55, %v1483_v18 }
 0x21f   : > { %v1487_v60 = vadd.f32 %v1486_v21, %v1485_v4 }
 0x221   : > { %v1489_v3 = vadd.f32 %v1488_v56, %v1487_v60 }
 0x223   : > { %v1491_v51 = vadd.f32 %v1490_v57, %v1489_v3 }
 0x225   : > { %v1493_v39 = vadd.f32 %v1492_v38, %v1491_v51 }
 0x227   : > { %v1495_v2 = vadd.f32 %v1494_v61, %v1493_v39 }
 0x229   : > { %v1497_v43 = vadd.f32 %v1496_v1, %v1495_v2 }
 0x22b   : > { %v1498_v9 = vrot.slane %v1497_v43, 4 }
 0x22d   : > { %v1499_v12 = vadd.f32 %v1498_v9, %v1497_v43 }
 0x22f   : > { %v1500_v49 = vrot.slane %v1499_v12, 2 }
 0x231   : > { %v1501_v16 = vadd.f32 %v1500_v49, %v1499_v12 }
 0x233   : > { %v1502_v24 = vrot.slane %v1501_v16, 1 }
 0x235   : > { %v1503_v54 = vadd.f32 %v1502_v24, %v1501_v16 }
 0x237   : > { %v1504_v25 = vmul.f32 0.0061728396, %v1503_v54 }
 0x239   : > { %v1505_v26 = vadd.f32 1e-05, %v1504_v25 }
 0x23b   : > { %2030 = vrsqrt.f32 %v1505_v26 }
 0x245   : > { %v3017_v48 = vpop.eup %2030 }
 0x246   : > { %v1507_v32 = vmul.f32 %v3017_v48, %v2852_v40  ;;  %v1508_v63 = vmul.f32 %v3017_v48, %v2857_v41  ;;  %v1509_v34 = vmul.f32 %v3017_v48, %v2862_v46  ;;  %v1510_v8 = vmul.f32 %v3017_v48, %v2867_v50 }
 0x247   : > { %v1511_v14 = vmul.f32 %v3017_v48, %v2872_v7  ;;  %v1512_v40 = vmul.f32 %v3017_v48, %v2883_v11  ;;  %v1513_v41 = vmul.f32 %v3017_v48, %v2890_v13  ;;  %v1514_v46 = vmul.f32 %v3017_v48, %v2900_v29 }
 0x248   : > { %v1535_v10 = vmul.f32 %v3022_v31, %v1507_v32  ;;  %v1536_v50 = vmul.f32 %v3022_v31, %v1508_v63  ;;  %v1537_v23 = vmul.f32 %v3022_v31, %v1509_v34  ;;  %v1538_v15 = vmul.f32 %v3022_v31, %v1510_v8 }
 0x249   : > { %v1539_v17 = vmul.f32 %v3022_v31, %v1511_v14  ;;  %v1540_v7 = vmul.f32 %v3022_v31, %v1512_v40  ;;  %v1541_v11 = vmul.f32 %v3022_v31, %v1513_v41  ;;  %v1542_v30 = vmul.f32 %v3022_v31, %v1514_v46 }
 0x24a   : > { %v1563_v13 = vadd.f32 %v3035_v6, %v1535_v10  ;;  %v1564_v29 = vadd.f32 %v3035_v6, %v1536_v50  ;;  %v1565_v19 = vadd.f32 %v3035_v6, %v1537_v23  ;;  %v1566_v22 = vadd.f32 %v3035_v6, %v1538_v15 }
 0x24b   : > { %v1567_v36 = vadd.f32 %v3035_v6, %v1539_v17  ;;  %v1568_v55 = vadd.f32 %v3035_v6, %v1540_v7  ;;  %v1569_v18 = vadd.f32 %v3035_v6, %v1541_v11  ;;  %v1570_v45 = vadd.f32 %v3035_v6, %v1542_v30 }
 0x24c   : > { %1584 = vst.msk [vmem:[%s3205_s5] sm:$0xff] %vm1270_vm4, %v1563_v13  ;;  %1585 = vst.msk [vmem:[%s3205_s5 + $0x8] sm:$0xff] %vm1270_vm4, %v1564_v29  ;;  %v1515_v21 = vmul.f32 %v3017_v48, %v2908_v59  ;;  %v1516_v4 = vmul.f32 %v3017_v48, %v2916_v28  ;;  %v1517_v52 = vmul.f32 %v3017_v48, %v2924_v33 }
 0x24d   : > { %1586 = vst.msk [vmem:[%s3205_s5 + $0x10] sm:$0xff] %vm1270_vm4, %v1565_v19  ;;  %1587 = vst.msk [vmem:[%s3205_s5 + $0x18] sm:$0xff] %vm1270_vm4, %v1566_v22  ;;  %v1518_v56 = vmul.f32 %v3017_v48, %v2932_v37  ;;  %v1519_v59 = vmul.f32 %v3017_v48, %v2940_v42  ;;  %v1520_v28 = vmul.f32 %v3017_v48, %v2948_v47 }
 0x24e   : > { %1588 = vst.msk [vmem:[%s3205_s5 + $0x20] sm:$0xff] %vm1270_vm4, %v1567_v36  ;;  %1589 = vst.msk [vmem:[%s3205_s5 + $0x28] sm:$0xff] %vm1270_vm4, %v1568_v55  ;;  %v1521_v33 = vmul.f32 %v3017_v48, %v2956_v53  ;;  %v1522_v37 = vmul.f32 %v3017_v48, %v2964_v58  ;;  %v1543_v60 = vmul.f32 %v3022_v31, %v1515_v21 }
 0x24f   : > { %1590 = vst.msk [vmem:[%s3205_s5 + $0x30] sm:$0xff] %vm1270_vm4, %v1569_v18  ;;  %1591 = vst.msk [vmem:[%s3205_s5 + $0x38] sm:$0xff] %vm1270_vm4, %v1570_v45  ;;  %v1544_v44 = vmul.f32 %v3022_v31, %v1516_v4  ;;  %v1545_v57 = vmul.f32 %v3022_v31, %v1517_v52  ;;  %v1546_v3 = vmul.f32 %v3022_v31, %v1518_v56 }
 0x250   : > { %v1547_v0 = vmul.f32 %v3022_v31, %v1519_v59  ;;  %v1548_v42 = vmul.f32 %v3022_v31, %v1520_v28  ;;  %v1549_v47 = vmul.f32 %v3022_v31, %v1521_v33  ;;  %v1550_v38 = vmul.f32 %v3022_v31, %v1522_v37 }
 0x251   : > { %v1571_v53 = vadd.f32 %v3035_v6, %v1543_v60  ;;  %v1572_v58 = vadd.f32 %v3035_v6, %v1544_v44  ;;  %v1573_v51 = vadd.f32 %v3035_v6, %v1545_v57  ;;  %v1574_v61 = vadd.f32 %v3035_v6, %v1546_v3 }
 0x252   : > { %v1575_v39 = vadd.f32 %v3035_v6, %v1547_v0  ;;  %v1576_v1 = vadd.f32 %v3035_v6, %v1548_v42  ;;  %v1577_v2 = vadd.f32 %v3035_v6, %v1549_v47  ;;  %v1578_v43 = vadd.f32 %v3035_v6, %v1550_v38 }
 0x253   : > { %1592 = vst.msk [vmem:[%s3205_s5 + $0x40] sm:$0xff] %vm1270_vm4, %v1571_v53  ;;  %1593 = vst.msk [vmem:[%s3205_s5 + $0x48] sm:$0xff] %vm1270_vm4, %v1572_v58  ;;  %v1523_v9 = vmul.f32 %v3017_v48, %v2972_v62  ;;  %v1524_v12 = vmul.f32 %v3017_v48, %v2980_v5  ;;  %v1525_v49 = vmul.f32 %v3017_v48, %v2988_v20 }
 0x254   : > { %1594 = vst.msk [vmem:[%s3205_s5 + $0x50] sm:$0xff] %vm1270_vm4, %v1573_v51  ;;  %1595 = vst.msk [vmem:[%s3205_s5 + $0x58] sm:$0xff] %vm1270_vm4, %v1574_v61  ;;  %v1526_v16 = vmul.f32 %v3017_v48, %v2996_v27  ;;  %v1527_v62 = vmul.f32 %v3017_v48, %v3004_v35 }
 0x255   : > { %1596 = vst.msk [vmem:[%s3205_s5 + $0x60] sm:$0xff] %vm1270_vm4, %v1575_v39  ;;  %1597 = vst.msk [vmem:[%s3205_s5 + $0x68] sm:$0xff] %vm1270_vm4, %v1576_v1  ;;  %v1551_v5 = vmul.f32 %v3022_v31, %v1523_v9  ;;  %v1552_v20 = vmul.f32 %v3022_v31, %v1524_v12  ;;  %v1553_v27 = vmul.f32 %v3022_v31, %v1525_v49 }
 0x256   : > { %1598 = vst.msk [vmem:[%s3205_s5 + $0x70] sm:$0xff] %vm1270_vm4, %v1577_v2  ;;  %1599 = vst.msk [vmem:[%s3205_s5 + $0x78] sm:$0xff] %vm1270_vm4, %v1578_v43  ;;  %v1554_v24 = vmul.f32 %v3022_v31, %v1526_v16  ;;  %v1555_v54 = vmul.f32 %v3022_v31, %v1527_v62 }
 0x257   : > { %v1579_v25 = vadd.f32 %v3035_v6, %v1551_v5  ;;  %v1580_v26 = vadd.f32 %v3035_v6, %v1552_v20  ;;  %v1581_v32 = vadd.f32 %v3035_v6, %v1553_v27 }
 0x258   : > { %v1582_v63 = vadd.f32 %v3035_v6, %v1554_v24  ;;  %v1583_v35 = vadd.f32 %v3035_v6, %v1555_v54 }
 0x259   : > { %1600 = vst.msk [vmem:[%s3205_s5 + $0x80] sm:$0xff] %vm1270_vm4, %v1579_v25  ;;  %1601 = vst.msk [vmem:[%s3205_s5 + $0x88] sm:$0xff] %vm1270_vm4, %v1580_v26 }
 0x25a   : > { %1602 = vst.msk [vmem:[%s3205_s5 + $0x90] sm:$0xff] %vm1270_vm4, %v1581_v32  ;;  %1603 = vst.msk [vmem:[%s3205_s5 + $0x98] sm:$0xff] %vm1270_vm4, %v1582_v63 }
 0x25b   : > { %1604 = vst.msk [vmem:[%s3205_s5 + $0xa0] sm:$0x3] %vm1291_vm5, %v1583_v35 }
 0x25c PF: > { %s15_s18 = sadd.s32 1, %s2038_s18  }
 0x25d   : > { %p12_p6 = scmp.ge.s32.totalorder %s15_s18, 6  }
 0x25f   :  { %14 = sbr.rel (!%p12_p6) target bundleno = 1 (0x1), region = 74 }

// kernel: net_forward.6
= control target key start
LH: loop header
LB: loop body
LE: loop exit
PB: predicated region body
PF: predicated region fallthrough
CT: control target
= control target key end

     0   :  { %s1515_s18 = smov 0   ;;  %s2162_s0 = inlined_call_operand.vmem [shape: f32[4,8,1600], index: 0, kind: input, shape index: {}]   ;;  %s2163_s1 = inlined_call_operand.vmem [shape: f32[1600,128], index: 1, kind: input, shape index: {}]   ;;  %s2164_s2 = inlined_call_operand.vmem [shape: f32[1,128], index: 2, kind: input, shape index: {}]   ;;  %s2165_s3 = inlined_call_operand.vmem [shape: f32[1,128], index: 3, kind: input, shape index: {}]   ;;  %s2166_s4 = inlined_call_operand.vmem [shape: f32[1,128], index: 4, kind: input, shape index: {}]   ;;  %s2167_s5 = inlined_call_operand.vmem [shape: f32[8,128], index: 5, kind: output, shape index: {}]  }
   0x1 LB: > { %s1521_s19 = sadd.s32 4294967295, %s1479_s18   ;;  %p1006_p0 = scmp.ge.s32.totalorder %s1479_s18, 1  ;;  %s1479_s18 = sphi %s1515_s18, %s15_s18  }
   0x2   : > { %p182_p1 = scmp.lt.s32.totalorder %s1479_s18, 5 }
   0x4   : > { %p183_p2 = pnand %p1006_p0, %p182_p1 }
   0x5   : > { %p205_p3 = scmp.lt.s32.totalorder (!%p183_p2), %s1521_s19, 3  ;;  %p1008_p4 = scmp.ne.s32.totalorder (!%p183_p2), %s1521_s19, 0 }
   0x6   : > { %186 = sbr.rel (%p183_p2) target bundleno = 417 (0x1a1), region = 40 }
   0xd   : > { %s206_s20 = scalar_select %p205_p3, %s1521_s19, 3 }
   0xe   : > { %213 = sbr.rel (%p1008_p4) target bundleno = 21 (0x15), region = 44  ;;  %v1481_v0 = vmov (!%p1008_p4), -inf  }
   0xf   : > { %s1458_s21 = smul.u32 104, %s206_s20  ;;  %214 = vst [vmem:[#allocation2] sm:$0xff] (!%p1008_p4), %v1481_v0 }
  0x11   : > { %s1530_s24 = scalar_lea.vmem %s2162_s0, %s1458_s21 }
  0x15 PF: > { %v244_v1 = vld [vmem:[%s2163_s1 + $0x80] sm:$0xff]  ;;  %v245_v2 = vld [vmem:[%s2163_s1 + $0x88] sm:$0xff]  ;;  %v246_v12 = vld [vmem:[%s2163_s1 + $0x90] sm:$0xff]  ;;  %vm1483_vm0 = vmmov 0   ;;  %vm428_vm1 = vcmask 523264   ;;  %p1010_p5 = scmp.ne.s32.totalorder %s1521_s19, 3 }
  0x16   : > { %v276_v3 = vld [vmem:[%s2163_s1 + $0x180] sm:$0xff]  ;;  %v1254_v4 = vpack.c.bf16 %v245_v2, %v244_v1  ;;  %v277_v5 = vld [vmem:[%s2163_s1 + $0x188] sm:$0xff]  ;;  %v247_v14 = vld [vmem:[%s2163_s1 + $0x98] sm:$0xff] }
  0x17   : > { %v228_v6 = vld [vmem:[%s2163_s1] sm:$0xff]  ;;  %v229_v7 = vld [vmem:[%s2163_s1 + $0x8] sm:$0xff]  ;;  %v1286_v8 = vpack.c.bf16 %v277_v5, %v276_v3  ;;  %v278_v15 = vld [vmem:[%s2163_s1 + $0x190] sm:$0xff]  ;;  %v1258_v17 = vpack.c.bf16 %v247_v14, %v246_v12 }
  0x18   : > { %v1256_v9 = vpack.c.bf16 %v229_v7, %v228_v6  ;;  %v260_v10 = vld [vmem:[%s2163_s1 + $0x100] sm:$0xff]  ;;  %v261_v11 = vld [vmem:[%s2163_s1 + $0x108] sm:$0xff]  ;;  %1255 = vmatprep.subr.bf16.mxu0 %v1254_v4  ;;  %v279_v16 = vld [vmem:[%s2163_s1 + $0x198] sm:$0xff] }
  0x19   : > { %v1288_v13 = vpack.c.bf16 %v261_v11, %v260_v10  ;;  %1287 = vmatprep.subr.bf16.mxu1 %v1286_v8  ;;  %v1290_v18 = vpack.c.bf16 %v279_v16, %v278_v15  ;;  %v230_v19 = vld [vmem:[%s2163_s1 + $0x10] sm:$0xff]  ;;  %v231_v20 = vld [vmem:[%s2163_s1 + $0x18] sm:$0xff]  ;;  %v248_v24 = vld [vmem:[%s2163_s1 + $0xa0] sm:$0xff] }
  0x1a   : > { %1257 = vmatpush3.bf16.msra.mxu0 %v1256_v9  ;;  %v262_v21 = vld [vmem:[%s2163_s1 + $0x110] sm:$0xff]  ;;  %v1260_v22 = vpack.c.bf16 %v231_v20, %v230_v19  ;;  %v263_v23 = vld [vmem:[%s2163_s1 + $0x118] sm:$0xff]  ;;  %v249_v25 = vld [vmem:[%s2163_s1 + $0xa8] sm:$0xff] }
  0x1b   : > { %1289 = vmatpush3.bf16.msra.mxu1 %v1288_v13  ;;  %1259 = vmatprep.subr.bf16.mxu0 %v1258_v17  ;;  %v1292_v26 = vpack.c.bf16 %v263_v23, %v262_v21  ;;  %v1262_v27 = vpack.c.bf16 %v249_v25, %v248_v24  ;;  %v280_v28 = vld [vmem:[%s2163_s1 + $0x1a0] sm:$0xff]  ;;  %v281_v29 = vld [vmem:[%s2163_s1 + $0x1a8] sm:$0xff]  ;;  %v250_v36 = vld [vmem:[%s2163_s1 + $0xb0] sm:$0xff] }
  0x1c   : > { %1291 = vmatprep.subr.bf16.mxu1 %v1290_v18  ;;  %v232_v30 = vld [vmem:[%s2163_s1 + $0x20] sm:$0xff]  ;;  %v1294_v31 = vpack.c.bf16 %v281_v29, %v280_v28  ;;  %v233_v32 = vld [vmem:[%s2163_s1 + $0x28] sm:$0xff]  ;;  %v251_v37 = vld [vmem:[%s2163_s1 + $0xb8] sm:$0xff] }
  0x1d   : > { %v264_v33 = vld [vmem:[%s2163_s1 + $0x120] sm:$0xff]  ;;  %v265_v34 = vld [vmem:[%s2163_s1 + $0x128] sm:$0xff]  ;;  %v1264_v35 = vpack.c.bf16 %v233_v32, %v232_v30  ;;  %v282_v38 = vld [vmem:[%s2163_s1 + $0x1b0] sm:$0xff]  ;;  %v1266_v40 = vpack.c.bf16 %v251_v37, %v250_v36 }
  0x1e   : > { %1261 = vmatpush3.bf16.msra.mxu0 %v1260_v22  ;;  %v1296_v39 = vpack.c.bf16 %v265_v34, %v264_v33  ;;  %v283_v41 = vld [vmem:[%s2163_s1 + $0x1b8] sm:$0xff]  ;;  %v234_v42 = vld [vmem:[%s2163_s1 + $0x30] sm:$0xff]  ;;  %v252_v47 = vld [vmem:[%s2163_s1 + $0xc0] sm:$0xff] }
  0x1f   : > { %1293 = vmatpush3.bf16.msra.mxu1 %v1292_v26  ;;  %1263 = vmatprep.subr.bf16.mxu0 %v1262_v27  ;;  %v235_v43 = vld [vmem:[%s2163_s1 + $0x38] sm:$0xff]  ;;  %v1298_v44 = vpack.c.bf16 %v283_v41, %v282_v38  ;;  %v266_v45 = vld [vmem:[%s2163_s1 + $0x130] sm:$0xff]  ;;  %v253_v48 = vld [vmem:[%s2163_s1 + $0xc8] sm:$0xff] }
  0x20   : > { %1295 = vmatprep.subr.bf16.mxu1 %v1294_v31  ;;  %v267_v46 = vld [vmem:[%s2163_s1 + $0x138] sm:$0xff]  ;;  %v284_v49 = vld [vmem:[%s2163_s1 + $0x1c0] sm:$0xff]  ;;  %v285_v50 = vld [vmem:[%s2163_s1 + $0x1c8] sm:$0xff]  ;;  %v1268_v51 = vpack.c.bf16 %v235_v43, %v234_v42  ;;  %v1270_v53 = vpack.c.bf16 %v253_v48, %v252_v47 }
  0x21   : > { %v1300_v52 = vpack.c.bf16 %v267_v46, %v266_v45  ;;  %v236_v54 = vld [vmem:[%s2163_s1 + $0x40] sm:$0xff]  ;;  %v237_v55 = vld [vmem:[%s2163_s1 + $0x48] sm:$0xff]  ;;  %v1302_v57 = vpack.c.bf16 %v285_v50, %v284_v49  ;;  %v254_v59 = vld [vmem:[%s2163_s1 + $0xd0] sm:$0xff] }
  0x22   : > { %1265 = vmatpush3.bf16.msra.mxu0 %v1264_v35  ;;  %v268_v56 = vld [vmem:[%s2163_s1 + $0x140] sm:$0xff]  ;;  %v269_v58 = vld [vmem:[%s2163_s1 + $0x148] sm:$0xff]  ;;  %v255_v60 = vld [vmem:[%s2163_s1 + $0xd8] sm:$0xff]  ;;  %v1272_v63 = vpack.c.bf16 %v237_v55, %v236_v54 }
  0x23   : > { %1297 = vmatpush3.bf16.msra.mxu1 %v1296_v39  ;;  %1267 = vmatprep.subr.bf16.mxu0 %v1266_v40  ;;  %v286_v61 = vld [vmem:[%s2163_s1 + $0x1d0] sm:$0xff]  ;;  %v287_v62 = vld [vmem:[%s2163_s1 + $0x1d8] sm:$0xff]  ;;  %v1304_v0 = vpack.c.bf16 %v269_v58, %v268_v56  ;;  %v1274_v1 = vpack.c.bf16 %v255_v60, %v254_v59  ;;  %v256_v7 = vld [vmem:[%s2163_s1 + $0xe0] sm:$0xff] }
  0x24   : > { %1299 = vmatprep.subr.bf16.mxu1 %v1298_v44  ;;  %v238_v2 = vld [vmem:[%s2163_s1 + $0x50] sm:$0xff]  ;;  %v239_v3 = vld [vmem:[%s2163_s1 + $0x58] sm:$0xff]  ;;  %v1306_v5 = vpack.c.bf16 %v287_v62, %v286_v61  ;;  %v257_v8 = vld [vmem:[%s2163_s1 + $0xe8] sm:$0xff] }
  0x25   : > { %v270_v4 = vld [vmem:[%s2163_s1 + $0x150] sm:$0xff]  ;;  %v271_v6 = vld [vmem:[%s2163_s1 + $0x158] sm:$0xff]  ;;  %v288_v9 = vld [vmem:[%s2163_s1 + $0x1e0] sm:$0xff]  ;;  %v1276_v11 = vpack.c.bf16 %v239_v3, %v238_v2  ;;  %v1278_v15 = vpack.c.bf16 %v257_v8, %v256_v7 }
  0x26   : > { %1269 = vmatpush3.bf16.msra.mxu0 %v1268_v51  ;;  %v289_v10 = vld [vmem:[%s2163_s1 + $0x1e8] sm:$0xff]  ;;  %v240_v12 = vld [vmem:[%s2163_s1 + $0x60] sm:$0xff]  ;;  %v1308_v14 = vpack.c.bf16 %v271_v6, %v270_v4  ;;  %v218_v18 = vld [vmem:[%s1530_s24 + $0x18] sm:$0xff] }
  0x27   : > { %1301 = vmatpush3.bf16.msra.mxu1 %v1300_v52  ;;  %1271 = vmatprep.subr.bf16.mxu0 %v1270_v53  ;;  %v241_v13 = vld [vmem:[%s2163_s1 + $0x68] sm:$0xff]  ;;  %v272_v16 = vld [vmem:[%s2163_s1 + $0x160] sm:$0xff]  ;;  %v1310_v19 = vpack.c.bf16 %v289_v10, %v288_v9  ;;  %v258_v21 = vld [vmem:[%s2163_s1 + $0xf0] sm:$0xff] }
  0x28   : > { %1303 = vmatprep.subr.bf16.mxu1 %v1302_v57  ;;  %v216_v17 = vld [vmem:[%s1530_s24 + $0x8] sm:$0xff]  ;;  %v259_v22 = vld [vmem:[%s2163_s1 + $0xf8] sm:$0xff]  ;;  %v290_v23 = vld [vmem:[%s2163_s1 + $0x1f0] sm:$0xff]  ;;  %566 = vmatprep.mubr.f32.mxu1 %v218_v18  ;;  %v1280_v25 = vpack.c.bf16 %v241_v13, %v240_v12 }
  0x29   : > { %v273_v20 = vld [vmem:[%s2163_s1 + $0x168] sm:$0xff]  ;;  %496 = vmatprep.mubr.f32.mxu0 %v216_v17  ;;  %v291_v24 = vld [vmem:[%s2163_s1 + $0x1f8] sm:$0xff]  ;;  %v1282_v27 = vpack.c.bf16 %v259_v22, %v258_v21  ;;  %v242_v28 = vld [vmem:[%s2163_s1 + $0x70] sm:$0xff] }
  0x2a   : > { %1273 = vmatpush3.bf16.msra.mxu0 %v1272_v63  ;;  %v1312_v26 = vpack.c.bf16 %v273_v20, %v272_v16  ;;  %v243_v29 = vld [vmem:[%s2163_s1 + $0x78] sm:$0xff]  ;;  %v274_v30 = vld [vmem:[%s2163_s1 + $0x170] sm:$0xff]  ;;  %v1314_v31 = vpack.c.bf16 %v291_v24, %v290_v23  ;;  %v308_v33 = vld [vmem:[%s2163_s1 + $0x280] sm:$0xff] }
  0x2b   : > { %1305 = vmatpush3.bf16.msra.mxu1 %v1304_v0  ;;  %1275 = vmatprep.subr.bf16.mxu0 %v1274_v1  ;;  %v275_v32 = vld [vmem:[%s2163_s1 + $0x178] sm:$0xff]  ;;  %v309_v34 = vld [vmem:[%s2163_s1 + $0x288] sm:$0xff]  ;;  %v340_v35 = vld [vmem:[%s2163_s1 + $0x380] sm:$0xff]  ;;  %v1284_v37 = vpack.c.bf16 %v243_v29, %v242_v28 }
  0x2c   : > { %1307 = vmatprep.subr.bf16.mxu1 %v1306_v5  ;;  %v341_v36 = vld [vmem:[%s2163_s1 + $0x388] sm:$0xff]  ;;  %v1316_v38 = vpack.c.bf16 %v275_v32, %v274_v30  ;;  %v1318_v39 = vpack.c.bf16 %v309_v34, %v308_v33  ;;  %v292_v40 = vld [vmem:[%s2163_s1 + $0x200] sm:$0xff]  ;;  %v310_v45 = vld [vmem:[%s2163_s1 + $0x290] sm:$0xff] }
  0x2d   : > { %v293_v41 = vld [vmem:[%s2163_s1 + $0x208] sm:$0xff]  ;;  %v324_v42 = vld [vmem:[%s2163_s1 + $0x300] sm:$0xff]  ;;  %v1350_v43 = vpack.c.bf16 %v341_v36, %v340_v35  ;;  %v311_v46 = vld [vmem:[%s2163_s1 + $0x298] sm:$0xff] }
  0x2e   : > { %1277 = vmatpush3.bf16.msra.mxu0 %v1276_v11  ;;  %v325_v44 = vld [vmem:[%s2163_s1 + $0x308] sm:$0xff]  ;;  %v342_v47 = vld [vmem:[%s2163_s1 + $0x390] sm:$0xff]  ;;  %v343_v48 = vld [vmem:[%s2163_s1 + $0x398] sm:$0xff]  ;;  %v1320_v51 = vpack.c.bf16 %v293_v41, %v292_v40  ;;  %v1322_v53 = vpack.c.bf16 %v311_v46, %v310_v45 }
  0x2f   : > { %1309 = vmatpush3.bf16.msra.mxu1 %v1308_v14  ;;  %1279 = vmatprep.subr.bf16.mxu0 %v1278_v15  ;;  %v215_v49 = vld [vmem:[%s1530_s24] sm:$0xff]  ;;  %v217_v50 = vld [vmem:[%s1530_s24 + $0x10] sm:$0xff]  ;;  %v1352_v52 = vpack.c.bf16 %v325_v44, %v324_v42  ;;  %v295_v55 = vld [vmem:[%s2163_s1 + $0x218] sm:$0xff]  ;;  %v1354_v57 = vpack.c.bf16 %v343_v48, %v342_v47 }
  0x30   : > { %1311 = vmatprep.subr.bf16.mxu1 %v1310_v19  ;;  %v294_v54 = vld [vmem:[%s2163_s1 + $0x210] sm:$0xff]  ;;  %v327_v58 = vld [vmem:[%s2163_s1 + $0x318] sm:$0xff]  ;;  %v312_v59 = vld [vmem:[%s2163_s1 + $0x2a0] sm:$0xff] }
  0x31   : > { %v326_v56 = vld [vmem:[%s2163_s1 + $0x310] sm:$0xff]  ;;  %v313_v60 = vld [vmem:[%s2163_s1 + $0x2a8] sm:$0xff]  ;;  %v344_v61 = vld [vmem:[%s2163_s1 + $0x3a0] sm:$0xff]  ;;  %v1324_v63 = vpack.c.bf16 %v295_v55, %v294_v54 }
  0x32   : > { %1281 = vmatpush3.bf16.msra.mxu0 %v1280_v25  ;;  %v345_v62 = vld [vmem:[%s2163_s1 + $0x3a8] sm:$0xff]  ;;  %v1356_v0 = vpack.c.bf16 %v327_v58, %v326_v56  ;;  %v1326_v1 = vpack.c.bf16 %v313_v60, %v312_v59  ;;  %v296_v2 = vld [vmem:[%s2163_s1 + $0x220] sm:$0xff]  ;;  %v314_v7 = vld [vmem:[%s2163_s1 + $0x2b0] sm:$0xff] }
  0x33   : > { %1313 = vmatpush3.bf16.msra.mxu1 %v1312_v26  ;;  %1283 = vmatprep.subr.bf16.mxu0 %v1282_v27  ;;  %v297_v3 = vld [vmem:[%s2163_s1 + $0x228] sm:$0xff]  ;;  %v328_v4 = vld [vmem:[%s2163_s1 + $0x320] sm:$0xff]  ;;  %v1358_v5 = vpack.c.bf16 %v345_v62, %v344_v61  ;;  %v315_v8 = vld [vmem:[%s2163_s1 + $0x2b8] sm:$0xff] }
  0x34   : > { %1315 = vmatprep.subr.bf16.mxu1 %v1314_v31  ;;  %v329_v6 = vld [vmem:[%s2163_s1 + $0x328] sm:$0xff]  ;;  %v346_v9 = vld [vmem:[%s2163_s1 + $0x3b0] sm:$0xff]  ;;  %v347_v10 = vld [vmem:[%s2163_s1 + $0x3b8] sm:$0xff]  ;;  %v1328_v11 = vpack.c.bf16 %v297_v3, %v296_v2  ;;  %v1330_v13 = vpack.c.bf16 %v315_v8, %v314_v7 }
  0x35   : > { %v1360_v12 = vpack.c.bf16 %v329_v6, %v328_v4  ;;  %v298_v14 = vld [vmem:[%s2163_s1 + $0x230] sm:$0xff]  ;;  %v299_v15 = vld [vmem:[%s2163_s1 + $0x238] sm:$0xff]  ;;  %v1362_v17 = vpack.c.bf16 %v347_v10, %v346_v9  ;;  %v316_v19 = vld [vmem:[%s2163_s1 + $0x2c0] sm:$0xff] }
  0x36   : > { %1285 = vmatpush3.bf16.msra.mxu0 %v1284_v37  ;;  %v330_v16 = vld [vmem:[%s2163_s1 + $0x330] sm:$0xff]  ;;  %v331_v18 = vld [vmem:[%s2163_s1 + $0x338] sm:$0xff]  ;;  %v317_v20 = vld [vmem:[%s2163_s1 + $0x2c8] sm:$0xff]  ;;  %v1332_v24 = vpack.c.bf16 %v299_v15, %v298_v14 }
  0x37   : > { %1317 = vmatpush3.bf16.msra.mxu1 %v1316_v38  ;;  %1319 = vmatprep.subr.bf16.mxu0 %v1318_v39  ;;  %v348_v21 = vld [vmem:[%s2163_s1 + $0x3c0] sm:$0xff]  ;;  %v349_v22 = vld [vmem:[%s2163_s1 + $0x3c8] sm:$0xff]  ;;  %v1364_v26 = vpack.c.bf16 %v331_v18, %v330_v16  ;;  %v1334_v27 = vpack.c.bf16 %v317_v20, %v316_v19  ;;  %v222_v30 = vld [vmem:[%s1530_s24 + $0x38] sm:$0xff] }
  0x38   : > { %1351 = vmatprep.subr.bf16.mxu1 %v1350_v43  ;;  %v220_v23 = vld [vmem:[%s1530_s24 + $0x28] sm:$0xff]  ;;  %v300_v25 = vld [vmem:[%s2163_s1 + $0x240] sm:$0xff]  ;;  %v1366_v31 = vpack.c.bf16 %v349_v22, %v348_v21  ;;  %v318_v33 = vld [vmem:[%s2163_s1 + $0x2d0] sm:$0xff] }
  0x39   : > { %497 = vmatmul.mubr.f32.vlgmr.msra.gmra.mrb[0].mxu0 %v215_v49  ;;  %v301_v28 = vld [vmem:[%s2163_s1 + $0x248] sm:$0xff]  ;;  %v332_v29 = vld [vmem:[%s2163_s1 + $0x340] sm:$0xff]  ;;  %v319_v34 = vld [vmem:[%s2163_s1 + $0x2d8] sm:$0xff] }
  0x3a   : > { %567 = vmatmul.mubr.f32.vlgmr.msra.gmra.mrb[0].mxu1 %v217_v50  ;;  %1321 = vmatpush3.bf16.msra.mxu0 %v1320_v51  ;;  %v333_v32 = vld [vmem:[%s2163_s1 + $0x348] sm:$0xff]  ;;  %v350_v35 = vld [vmem:[%s2163_s1 + $0x3d0] sm:$0xff]  ;;  %v351_v36 = vld [vmem:[%s2163_s1 + $0x3d8] sm:$0xff]  ;;  %v1336_v37 = vpack.c.bf16 %v301_v28, %v300_v25  ;;  %v1338_v39 = vpack.c.bf16 %v319_v34, %v318_v33 }
  0x3b   : > { %1353 = vmatpush3.bf16.msra.mxu1 %v1352_v52  ;;  %1323 = vmatprep.subr.bf16.mxu0 %v1322_v53  ;;  %v1368_v38 = vpack.c.bf16 %v333_v32, %v332_v29  ;;  %v302_v40 = vld [vmem:[%s2163_s1 + $0x250] sm:$0xff]  ;;  %v303_v41 = vld [vmem:[%s2163_s1 + $0x258] sm:$0xff]  ;;  %v1370_v43 = vpack.c.bf16 %v351_v36, %v350_v35  ;;  %v320_v45 = vld [vmem:[%s2163_s1 + $0x2e0] sm:$0xff] }
  0x3c   : > { %1355 = vmatprep.subr.bf16.mxu1 %v1354_v57  ;;  %636 = vmatprep.mubr.f32.mxu0 %v220_v23  ;;  %v334_v42 = vld [vmem:[%s2163_s1 + $0x350] sm:$0xff]  ;;  %v335_v44 = vld [vmem:[%s2163_s1 + $0x358] sm:$0xff]  ;;  %v321_v46 = vld [vmem:[%s2163_s1 + $0x2e8] sm:$0xff]  ;;  %v1340_v49 = vpack.c.bf16 %v303_v41, %v302_v40 }
  0x3d   : > { %706 = vmatprep.mubr.f32.mxu1 %v222_v30  ;;  %v352_v47 = vld [vmem:[%s2163_s1 + $0x3e0] sm:$0xff]  ;;  %v353_v48 = vld [vmem:[%s2163_s1 + $0x3e8] sm:$0xff]  ;;  %v1372_v50 = vpack.c.bf16 %v335_v44, %v334_v42  ;;  %v1342_v51 = vpack.c.bf16 %v321_v46, %v320_v45  ;;  %v322_v57 = vld [vmem:[%s2163_s1 + $0x2f0] sm:$0xff] }
  0x3e   : > { %1325 = vmatpush3.bf16.msra.mxu0 %v1324_v63  ;;  %v304_v52 = vld [vmem:[%s2163_s1 + $0x260] sm:$0xff]  ;;  %v305_v53 = vld [vmem:[%s2163_s1 + $0x268] sm:$0xff]  ;;  %v1374_v55 = vpack.c.bf16 %v353_v48, %v352_v47  ;;  %v323_v58 = vld [vmem:[%s2163_s1 + $0x2f8] sm:$0xff] }
  0x3f   : > { %1357 = vmatpush3.bf16.msra.mxu1 %v1356_v0  ;;  %1327 = vmatprep.subr.bf16.mxu0 %v1326_v1  ;;  %v336_v54 = vld [vmem:[%s2163_s1 + $0x360] sm:$0xff]  ;;  %v337_v56 = vld [vmem:[%s2163_s1 + $0x368] sm:$0xff]  ;;  %v354_v59 = vld [vmem:[%s2163_s1 + $0x3f0] sm:$0xff]  ;;  %v1344_v61 = vpack.c.bf16 %v305_v53, %v304_v52  ;;  %v1346_v63 = vpack.c.bf16 %v323_v58, %v322_v57 }
  0x40   : > { %1359 = vmatprep.subr.bf16.mxu1 %v1358_v5  ;;  %v355_v60 = vld [vmem:[%s2163_s1 + $0x3f8] sm:$0xff]  ;;  %v1376_v62 = vpack.c.bf16 %v337_v56, %v336_v54  ;;  %v306_v0 = vld [vmem:[%s2163_s1 + $0x270] sm:$0xff]  ;;  %v372_v5 = vld [vmem:[%s2163_s1 + $0x480] sm:$0xff] }
  0x41   : > { %v307_v1 = vld [vmem:[%s2163_s1 + $0x278] sm:$0xff]  ;;  %v338_v2 = vld [vmem:[%s2163_s1 + $0x370] sm:$0xff]  ;;  %v1378_v3 = vpack.c.bf16 %v355_v60, %v354_v59  ;;  %v373_v6 = vld [vmem:[%s2163_s1 + $0x488] sm:$0xff] }
  0x42   : > { %1329 = vmatpush3.bf16.msra.mxu0 %v1328_v11  ;;  %v339_v4 = vld [vmem:[%s2163_s1 + $0x378] sm:$0xff]  ;;  %v404_v7 = vld [vmem:[%s2163_s1 + $0x580] sm:$0xff]  ;;  %v405_v8 = vld [vmem:[%s2163_s1 + $0x588] sm:$0xff]  ;;  %v1348_v9 = vpack.c.bf16 %v307_v1, %v306_v0  ;;  %v1382_v11 = vpack.c.bf16 %v373_v6, %v372_v5 }
  0x43   : > { %1361 = vmatpush3.bf16.msra.mxu1 %v1360_v12  ;;  %1331 = vmatprep.subr.bf16.mxu0 %v1330_v13  ;;  %v1380_v10 = vpack.c.bf16 %v339_v4, %v338_v2  ;;  %v356_v12 = vld [vmem:[%s2163_s1 + $0x400] sm:$0xff]  ;;  %v357_v13 = vld [vmem:[%s2163_s1 + $0x408] sm:$0xff]  ;;  %v1414_v15 = vpack.c.bf16 %v405_v8, %v404_v7  ;;  %v375_v18 = vld [vmem:[%s2163_s1 + $0x498] sm:$0xff] }
  0x44   : > { %1363 = vmatprep.subr.bf16.mxu1 %v1362_v17  ;;  %v388_v14 = vld [vmem:[%s2163_s1 + $0x500] sm:$0xff]  ;;  %v389_v16 = vld [vmem:[%s2163_s1 + $0x508] sm:$0xff]  ;;  %v374_v17 = vld [vmem:[%s2163_s1 + $0x490] sm:$0xff]  ;;  %v1384_v22 = vpack.c.bf16 %v357_v13, %v356_v12 }
  0x45   : > { %v406_v19 = vld [vmem:[%s2163_s1 + $0x590] sm:$0xff]  ;;  %v407_v20 = vld [vmem:[%s2163_s1 + $0x598] sm:$0xff]  ;;  %v219_v21 = vld [vmem:[%s1530_s24 + $0x20] sm:$0xff]  ;;  %v1386_v25 = vpack.c.bf16 %v375_v18, %v374_v17 }
  0x46   : > { %1333 = vmatpush3.bf16.msra.mxu0 %v1332_v24  ;;  %v221_v23 = vld [vmem:[%s1530_s24 + $0x30] sm:$0xff]  ;;  %v1416_v24 = vpack.c.bf16 %v389_v16, %v388_v14  ;;  %v1418_v29 = vpack.c.bf16 %v407_v20, %v406_v19  ;;  %v391_v30 = vld [vmem:[%s2163_s1 + $0x518] sm:$0xff]  ;;  %v377_v32 = vld [vmem:[%s2163_s1 + $0x4a8] sm:$0xff] }
  0x47   : > { %1365 = vmatpush3.bf16.msra.mxu1 %v1364_v26  ;;  %1335 = vmatprep.subr.bf16.mxu0 %v1334_v27  ;;  %v358_v26 = vld [vmem:[%s2163_s1 + $0x410] sm:$0xff]  ;;  %v359_v27 = vld [vmem:[%s2163_s1 + $0x418] sm:$0xff]  ;;  %v408_v33 = vld [vmem:[%s2163_s1 + $0x5a0] sm:$0xff] }
  0x48   : > { %1367 = vmatprep.subr.bf16.mxu1 %v1366_v31  ;;  %v390_v28 = vld [vmem:[%s2163_s1 + $0x510] sm:$0xff]  ;;  %v376_v31 = vld [vmem:[%s2163_s1 + $0x4a0] sm:$0xff]  ;;  %v409_v34 = vld [vmem:[%s2163_s1 + $0x5a8] sm:$0xff]  ;;  %v1388_v36 = vpack.c.bf16 %v359_v27, %v358_v26 }
  0x49   : > { %v224_v35 = vld [vmem:[%s1530_s24 + $0x48] sm:$0xff]  ;;  %v360_v40 = vld [vmem:[%s2163_s1 + $0x420] sm:$0xff]  ;;  %v378_v45 = vld [vmem:[%s2163_s1 + $0x4b0] sm:$0xff] }
  0x4a   : > { %1337 = vmatpush3.bf16.msra.mxu0 %v1336_v37  ;;  %v226_v37 = vld [vmem:[%s1530_s24 + $0x58] sm:$0xff]  ;;  %v361_v41 = vld [vmem:[%s2163_s1 + $0x428] sm:$0xff]  ;;  %v392_v42 = vld [vmem:[%s2163_s1 + $0x520] sm:$0xff] }
  0x4b   : > { %1369 = vmatpush3.bf16.msra.mxu1 %v1368_v38  ;;  %1339 = vmatprep.subr.bf16.mxu0 %v1338_v39  ;;  %v1420_v38 = vpack.c.bf16 %v391_v30, %v390_v28  ;;  %v1390_v39 = vpack.c.bf16 %v377_v32, %v376_v31  ;;  %v393_v44 = vld [vmem:[%s2163_s1 + $0x528] sm:$0xff]  ;;  %v379_v46 = vld [vmem:[%s2163_s1 + $0x4b8] sm:$0xff]  ;;  %v410_v47 = vld [vmem:[%s2163_s1 + $0x5b0] sm:$0xff] }
  0x4c   : > { %1371 = vmatprep.subr.bf16.mxu1 %v1370_v43  ;;  %v1422_v43 = vpack.c.bf16 %v409_v34, %v408_v33  ;;  %v411_v48 = vld [vmem:[%s2163_s1 + $0x5b8] sm:$0xff]  ;;  %v362_v52 = vld [vmem:[%s2163_s1 + $0x430] sm:$0xff]  ;;  %v380_v57 = vld [vmem:[%s2163_s1 + $0x4c0] sm:$0xff] }
  0x4d   : > { %v363_v53 = vld [vmem:[%s2163_s1 + $0x438] sm:$0xff]  ;;  %v394_v54 = vld [vmem:[%s2163_s1 + $0x530] sm:$0xff]  ;;  %v381_v58 = vld [vmem:[%s2163_s1 + $0x4c8] sm:$0xff] }
  0x4e   : > { %1341 = vmatpush3.bf16.msra.mxu0 %v1340_v49  ;;  %v1392_v49 = vpack.c.bf16 %v361_v41, %v360_v40  ;;  %v395_v56 = vld [vmem:[%s2163_s1 + $0x538] sm:$0xff]  ;;  %v412_v59 = vld [vmem:[%s2163_s1 + $0x5c0] sm:$0xff]  ;;  %v413_v60 = vld [vmem:[%s2163_s1 + $0x5c8] sm:$0xff] }
  0x4f   : > { %1373 = vmatpush3.bf16.msra.mxu1 %v1372_v50  ;;  %1343 = vmatprep.subr.bf16.mxu0 %v1342_v51  ;;  %v1424_v50 = vpack.c.bf16 %v393_v44, %v392_v42  ;;  %v1394_v51 = vpack.c.bf16 %v379_v46, %v378_v45  ;;  %v364_v0 = vld [vmem:[%s2163_s1 + $0x440] sm:$0xff]  ;;  %v365_v1 = vld [vmem:[%s2163_s1 + $0x448] sm:$0xff]  ;;  %v382_v5 = vld [vmem:[%s2163_s1 + $0x4d0] sm:$0xff] }
  0x50   : > { %1375 = vmatprep.subr.bf16.mxu1 %v1374_v55  ;;  %v1426_v55 = vpack.c.bf16 %v411_v48, %v410_v47  ;;  %v396_v2 = vld [vmem:[%s2163_s1 + $0x540] sm:$0xff]  ;;  %v397_v4 = vld [vmem:[%s2163_s1 + $0x548] sm:$0xff]  ;;  %v383_v6 = vld [vmem:[%s2163_s1 + $0x4d8] sm:$0xff]  ;;  %v1482_v47 = vmov 0.0|0.0  }
  0x51   : > { %v414_v7 = vld [vmem:[%s2163_s1 + $0x5d0] sm:$0xff]  ;;  %v415_v8 = vld [vmem:[%s2163_s1 + $0x5d8] sm:$0xff]  ;;  %v384_v17 = vld [vmem:[%s2163_s1 + $0x4e0] sm:$0xff] }
  0x52   : > { %1345 = vmatpush3.bf16.msra.mxu0 %v1344_v61  ;;  %v1396_v61 = vpack.c.bf16 %v363_v53, %v362_v52  ;;  %v366_v12 = vld [vmem:[%s2163_s1 + $0x450] sm:$0xff]  ;;  %v367_v13 = vld [vmem:[%s2163_s1 + $0x458] sm:$0xff]  ;;  %v385_v18 = vld [vmem:[%s2163_s1 + $0x4e8] sm:$0xff] }
  0x53   : > { %1377 = vmatpush3.bf16.msra.mxu1 %v1376_v62  ;;  %1347 = vmatprep.subr.bf16.mxu0 %v1346_v63  ;;  %v1428_v62 = vpack.c.bf16 %v395_v56, %v394_v54  ;;  %v1398_v63 = vpack.c.bf16 %v381_v58, %v380_v57  ;;  %v398_v14 = vld [vmem:[%s2163_s1 + $0x550] sm:$0xff]  ;;  %v399_v16 = vld [vmem:[%s2163_s1 + $0x558] sm:$0xff]  ;;  %v416_v19 = vld [vmem:[%s2163_s1 + $0x5e0] sm:$0xff]  ;;  %v1484_v54 = vmov 0.0  }
  0x54   : > { %1379 = vmatprep.subr.bf16.mxu1 %v1378_v3  ;;  %v1430_v3 = vpack.c.bf16 %v413_v60, %v412_v59  ;;  %v417_v20 = vld [vmem:[%s2163_s1 + $0x5e8] sm:$0xff]  ;;  %v400_v26 = vld [vmem:[%s2163_s1 + $0x560] sm:$0xff]  ;;  %v387_v30 = vld [vmem:[%s2163_s1 + $0x4f8] sm:$0xff] }
  0x55   : > { %v1438_v27 = vpack.c.bf16 %v417_v20, %v416_v19  ;;  %v401_v28 = vld [vmem:[%s2163_s1 + $0x568] sm:$0xff]  ;;  %v418_v31 = vld [vmem:[%s2163_s1 + $0x5f0] sm:$0xff]  ;;  %v419_v32 = vld [vmem:[%s2163_s1 + $0x5f8] sm:$0xff] }
  0x56   : > { %1349 = vmatpush3.bf16.msra.mxu0 %v1348_v9  ;;  %v1400_v9 = vpack.c.bf16 %v365_v1, %v364_v0  ;;  %v1440_v34 = vpack.c.bf16 %v401_v28, %v400_v26  ;;  %v403_v40 = vld [vmem:[%s2163_s1 + $0x578] sm:$0xff]  ;;  %v421_v44 = vld [vmem:[%s2163_s1 + $0x608] sm:$0xff]  ;;  %v223_v45 = vld [vmem:[%s1530_s24 + $0x40] sm:$0xff] }
  0x57   : > { %1381 = vmatpush3.bf16.msra.mxu1 %v1380_v10  ;;  %1383 = vmatprep.subr.bf16.mxu0 %v1382_v11  ;;  %v1432_v10 = vpack.c.bf16 %v397_v4, %v396_v2  ;;  %v1402_v11 = vpack.c.bf16 %v383_v6, %v382_v5  ;;  %v225_v48 = vld [vmem:[%s1530_s24 + $0x50] sm:$0xff]  ;;  %v424_v52 = vld [vmem:[%s2163_s1 + $0x620] sm:$0xff]  ;;  %v425_v53 = vld [vmem:[%s2163_s1 + $0x628] sm:$0xff] }
  0x58   : > { %1415 = vmatprep.subr.bf16.mxu1 %v1414_v15  ;;  %v1434_v15 = vpack.c.bf16 %v415_v8, %v414_v7  ;;  %v426_v56 = vld [vmem:[%s2163_s1 + $0x630] sm:$0xff]  ;;  %v427_v57 = vld [vmem:[%s2163_s1 + $0x638] sm:$0xff]  ;;  %v227_v59 = vld [vmem:[%s1530_s24 + $0x60] sm:$0xff] }
  0x59   : > { %637 = vmatmul.mubr.f32.vlgmr.msra.gmra.mrb[2].mxu0 %v219_v21  ;;  %v1404_v21 = vpack.c.bf16 %v367_v13, %v366_v12  ;;  %v1456_v58 = vpack.c.bf16 %v427_v57, %v426_v56  ;;  %v922_v20 = vld [vmem:[#allocation2] sm:$0xff] }
  0x5a   : > { %1385 = vmatpush3.bf16.msra.mxu0 %v1384_v22  ;;  %707 = vmatmul.mubr.f32.vlgmr.msra.gmra.mrb[2].mxu1 %v221_v23  ;;  %v1436_v22 = vpack.c.bf16 %v399_v16, %v398_v14  ;;  %v1406_v23 = vpack.c.bf16 %v385_v18, %v384_v17 }
  0x5b   : > { %1417 = vmatpush3.bf16.msra.mxu1 %v1416_v24  ;;  %1387 = vmatprep.subr.bf16.mxu0 %v1386_v25  ;;  %v368_v24 = vld [vmem:[%s2163_s1 + $0x460] sm:$0xff]  ;;  %v369_v25 = vld [vmem:[%s2163_s1 + $0x468] sm:$0xff] }
  0x5c   : > { %1419 = vmatprep.subr.bf16.mxu1 %v1418_v29  ;;  %776 = vmatprep.mubr.f32.mxu0 %v224_v35  ;;  %v386_v29 = vld [vmem:[%s2163_s1 + $0x4f0] sm:$0xff]  ;;  %v1408_v33 = vpack.c.bf16 %v369_v25, %v368_v24  ;;  %v1011_v25 = vld [vmem:[%s2164_s2] ss:$0 sm:$0xff] (!%p1010_p5) }
  0x5d   : > { %846 = vmatprep.mubr.f32.mxu1 %v226_v37  ;;  %v1410_v35 = vpack.c.bf16 %v387_v30, %v386_v29  ;;  %v371_v37 = vld [vmem:[%s2163_s1 + $0x478] sm:$0xff] }
  0x5e   : > { %1389 = vmatpush3.bf16.msra.mxu0 %v1388_v36  ;;  %v370_v36 = vld [vmem:[%s2163_s1 + $0x470] sm:$0xff] }
  0x5f   : > { %1421 = vmatpush3.bf16.msra.mxu1 %v1420_v38  ;;  %1391 = vmatprep.subr.bf16.mxu0 %v1390_v39  ;;  %v1442_v38 = vpack.c.bf16 %v419_v32, %v418_v31  ;;  %v402_v39 = vld [vmem:[%s2163_s1 + $0x570] sm:$0xff]  ;;  %v1412_v41 = vpack.c.bf16 %v371_v37, %v370_v36 }
  0x60   : > { %1423 = vmatprep.subr.bf16.mxu1 %v1422_v43  ;;  %v1444_v42 = vpack.c.bf16 %v403_v40, %v402_v39  ;;  %v420_v43 = vld [vmem:[%s2163_s1 + $0x600] sm:$0xff] }
  0x61   : > { %v1447_v46 = vpack.c.bf16 %v421_v44, %v420_v43 }
  0x62   : > { %1393 = vmatpush3.bf16.msra.mxu0 %v1392_v49  ;;  %v422_v49 = vld [vmem:[%s2163_s1 + $0x610] sm:$0xff] }
  0x63   : > { %1425 = vmatpush3.bf16.msra.mxu1 %v1424_v50  ;;  %1395 = vmatprep.subr.bf16.mxu0 %v1394_v51  ;;  %v423_v50 = vld [vmem:[%s2163_s1 + $0x618] sm:$0xff] }
  0x64   : > { %1427 = vmatprep.subr.bf16.mxu1 %v1426_v55  ;;  %v1450_v51 = vpack.c.bf16 %v423_v50, %v422_v49  ;;  %v1453_v55 = vpack.c.bf16 %v425_v53, %v424_v52 }
  0x66   : > { %1397 = vmatpush3.bf16.msra.mxu0 %v1396_v61 }
  0x67   : > { %1429 = vmatpush3.bf16.msra.mxu1 %v1428_v62  ;;  %1399 = vmatprep.subr.bf16.mxu0 %v1398_v63 }
  0x68   : > { %1431 = vmatprep.subr.bf16.mxu1 %v1430_v3 }
  0x6a   : > { %1401 = vmatpush3.bf16.msra.mxu0 %v1400_v9 }
  0x6b   : > { %1433 = vmatpush3.bf16.msra.mxu1 %v1432_v10  ;;  %1403 = vmatprep.subr.bf16.mxu0 %v1402_v11 }
  0x6c   : > { %1435 = vmatprep.subr.bf16.mxu1 %v1434_v15 }
  0x6e   : > { %1405 = vmatpush3.bf16.msra.mxu0 %v1404_v21 }
  0x6f   : > { %1437 = vmatpush3.bf16.msra.mxu1 %v1436_v22  ;;  %1407 = vmatprep.subr.bf16.mxu0 %v1406_v23 }
  0x70   : > { %1439 = vmatprep.subr.bf16.mxu1 %v1438_v27 }
  0x72   : > { %1409 = vmatpush3.bf16.msra.mxu0 %v1408_v33 }
  0x73   : > { %1441 = vmatpush3.bf16.msra.mxu1 %v1440_v34  ;;  %1411 = vmatprep.subr.bf16.mxu0 %v1410_v35 }
  0x74   : > { %1443 = vmatprep.subr.bf16.mxu1 %v1442_v38 }
  0x76   : > { %1413 = vmatpush3.bf16.msra.mxu0 %v1412_v41 }
  0x77   : > { %1445 = vmatpush3.bf16.msra.mxu1 %v1444_v42  ;;  %1446 = vmatprep.subr.bf16.mxu0 %v1482_v47 }
  0x79   : > { %777 = vmatmul.mubr.f32.vlgmr.msra.gmra.mrb[4].mxu0 %v223_v45 }
  0x7a   : > { %1448 = vmatpush3.bf16.msra.mxu0 %v1447_v46  ;;  %847 = vmatmul.mubr.f32.vlgmr.msra.gmra.mrb[4].mxu1 %v225_v48  ;;  %v1012_v46 = vld [vmem:[%s2165_s3] ss:$0 sm:$0xff] (!%p1010_p5) }
  0x7b   : > { %1449 = vmatprep.subr.bf16.mxu0 %v1482_v47  ;;  %1251 = vmatprep.mubr.msk.f32.mxu0 %vm1483_vm0, %v1484_v54  ;;  %v1013_v48 = vld [vmem:[%s2166_s4] ss:$0 sm:$0xff] (!%p1010_p5) }
  0x7e   : > { %1451 = vmatpush3.bf16.msra.mxu0 %v1450_v51 }
  0x7f   : > { %1452 = vmatprep.subr.bf16.mxu0 %v1482_v47 }
  0x82   : > { %1454 = vmatpush3.bf16.msra.mxu0 %v1453_v55 }
  0x83   : > { %1455 = vmatprep.subr.bf16.mxu0 %v1482_v47 }
  0x86   : > { %1457 = vmatpush3.bf16.msra.mxu0 %v1456_v58 }
  0x89   : > { %1252 = vmatmul.mubr.msk.f32.vlgmr.msra.gmra.mrb[6].mxu0 %vm428_vm1, %v227_v59 }
 0x10c   : > { %v1048_v60 = vpop.f32.mrb[0].mxu0 }
 0x10d   : > { %v1083_v61 = vpop.f32.mrb[0].mxu1  ;;  %v1049_v62 = vpop.f32.mrb[1].mxu0 }
 0x10e   : > { %v1050_v63 = vadd.f32 %v1049_v62, %v1048_v60  ;;  %v1084_v0 = vpop.f32.mrb[1].mxu1 }
 0x10f   : > { %v1085_v1 = vadd.f32 %v1084_v0, %v1083_v61 }
 0x111   : > { %v569_v2 = vadd.f32 %v1085_v1, %v1050_v63 }
 0x12c   : > { %v1118_v3 = vpop.f32.mrb[2].mxu0 }
 0x12d   : > { %v1119_v4 = vpop.f32.mrb[3].mxu0  ;;  %v1153_v5 = vpop.f32.mrb[2].mxu1 }
 0x12e   : > { %v1120_v6 = vadd.f32 %v1119_v4, %v1118_v3  ;;  %v1154_v7 = vpop.f32.mrb[3].mxu1 }
 0x12f   : > { %v1155_v8 = vadd.f32 %v1154_v7, %v1153_v5 }
 0x130   : > { %v639_v9 = vadd.f32 %v1120_v6, %v569_v2 }
 0x132   : > { %v709_v10 = vadd.f32 %v1155_v8, %v639_v9 }
 0x14c   : > { %v1188_v11 = vpop.f32.mrb[4].mxu0 }
 0x14d   : > { %v1189_v12 = vpop.f32.mrb[5].mxu0  ;;  %v1223_v13 = vpop.f32.mrb[4].mxu1 }
 0x14e   : > { %v1190_v14 = vadd.f32 %v1189_v12, %v1188_v11  ;;  %v1224_v15 = vpop.f32.mrb[5].mxu1 }
 0x14f   : > { %v1225_v16 = vadd.f32 %v1224_v15, %v1223_v13 }
 0x150   : > { %v779_v17 = vadd.f32 %v1190_v14, %v709_v10 }
 0x152   : > { %v849_v18 = vadd.f32 %v1225_v16, %v779_v17 }
 0x15b   : > { %928 = sbr.rel (%p1010_p5) target bundleno = 417 (0x1a1), region = 48 }
 0x15c   : > { %v918_v19 = vpop.f32.mrb[6].mxu0 }
 0x15d   : > { %v919_v21 = vadd.f32 %v918_v19, %v849_v18  ;;  %v1253_v22 = vpop.f32.mrb[7].mxu0 }
 0x15f   : > { %v923_v23 = vmax.f32 %v922_v20, %v919_v21 }
 0x161   : > { %924 = vst [vmem:[#allocation2] sm:$0xff] %v923_v23 }
 0x168   : > { %v929_v24 = vld [vmem:[#allocation2] sm:$0xff] }
 0x169   : > { %v937_v26 = vadd.f32 %v1011_v25, %v929_v24 }
 0x16b   : > { %v938_v27 = vmax.f32 %v937_v26, 0.0 }
 0x16d   : > { %v939_v28 = vrot.slane %v938_v27, 4 }
 0x16f   : > { %v940_v29 = vadd.f32 %v939_v28, %v938_v27 }
 0x171   : > { %v941_v30 = vrot.slane %v940_v29, 2 }
 0x173   : > { %v942_v31 = vadd.f32 %v941_v30, %v940_v29 }
 0x175   : > { %v943_v32 = vrot.slane %v942_v31, 1 }
 0x177   : > { %v944_v33 = vadd.f32 %v943_v32, %v942_v31 }
 0x179   : > { %v945_v34 = vmul.f32 0.125, %v944_v33 }
 0x17b   : > { %v946_v35 = vsub.f32 %v938_v27, %v945_v34 }
 0x17d   : > { %v947_v36 = vmul.f32 %v946_v35, %v946_v35 }
 0x17f   : > { %v948_v37 = vrot.slane %v947_v36, 4 }
 0x181   : > { %v949_v38 = vadd.f32 %v948_v37, %v947_v36 }
 0x183   : > { %v950_v39 = vrot.slane %v949_v38, 2 }
 0x185   : > { %v951_v40 = vadd.f32 %v950_v39, %v949_v38 }
 0x187   : > { %v952_v41 = vrot.slane %v951_v40, 1 }
 0x189   : > { %v953_v42 = vadd.f32 %v952_v41, %v951_v40 }
 0x18b   : > { %v954_v43 = vmul.f32 0.125, %v953_v42 }
 0x18d   : > { %v955_v44 = vadd.f32 1e-05, %v954_v43 }
 0x18f   : > { %1471 = vrsqrt.f32 %v955_v44 }
 0x199   : > { %v1472_v45 = vpop.eup %1471 }
 0x19a   : > { %v957_v47 = vmul.f32 %v1472_v45, %v946_v35 }
 0x19c   : > { %v965_v49 = vmul.f32 %v1012_v46, %v957_v47 }
 0x19e   : > { %v973_v50 = vadd.f32 %v1013_v48, %v965_v49 }
 0x1a0   : > { %974 = vst [vmem:[%s2167_s5] sm:$0xff] %v973_v50 }
 0x1a1 PF: > { %s15_s18 = sadd.s32 1, %s1479_s18  }
 0x1a2   : > { %p12_p6 = scmp.ge.s32.totalorder %s15_s18, 6  }
 0x1a4   :  { %14 = sbr.rel (!%p12_p6) target bundleno = 1 (0x1), region = 74 }

// kernel: net_forward.7
= control target key start
LH: loop header
LB: loop body
LE: loop exit
PB: predicated region body
PF: predicated region fallthrough
CT: control target
= control target key end

     0   :  { %s2257_s1 = inlined_call_operand.vmem [shape: f32[512,512], index: 1, kind: input, shape index: {}]   ;;  %s2258_s0 = inlined_call_operand.vmem [shape: f32[2,512], index: 0, kind: input, shape index: {}]   ;;  %s2259_s3 = inlined_call_operand.vmem [shape: f32[512,128], index: 3, kind: input, shape index: {}]   ;;  %s2260_s2 = inlined_call_operand.vmem [shape: f32[1,512], index: 2, kind: input, shape index: {}]   ;;  %s2261_s4 = inlined_call_operand.vmem [shape: f32[1,128], index: 4, kind: input, shape index: {}]   ;;  %s2262_s5 = inlined_call_operand.vmem [shape: f32[2,128], index: 5, kind: output, shape index: {}]  }
   0x1   :  { %v22_v0 = vld [vmem:[%s2257_s1 + $0x8] sm:$0xff]  ;;  %v24_v2 = vld [vmem:[%s2257_s1 + $0x18] sm:$0xff]  ;;  %v21_v5 = vld [vmem:[%s2257_s1] sm:$0xff] }
   0x2   :  { %v26_v1 = vld [vmem:[%s2257_s1 + $0x28] sm:$0xff]  ;;  %v28_v4 = vld [vmem:[%s2257_s1 + $0x38] sm:$0xff]  ;;  %v25_v6 = vld [vmem:[%s2257_s1 + $0x20] sm:$0xff] }
   0x3   :  { %v896_v3 = vpack.c.bf16 %v26_v1, %v22_v0  ;;  %v1024_v7 = vpack.c.bf16 %v28_v4, %v24_v2  ;;  %v898_v8 = vpack.c.bf16 %v25_v6, %v21_v5  ;;  %v23_v9 = vld [vmem:[%s2257_s1 + $0x10] sm:$0xff]  ;;  %v30_v11 = vld [vmem:[%s2257_s1 + $0x48] sm:$0xff]  ;;  %v32_v14 = vld [vmem:[%s2257_s1 + $0x58] sm:$0xff] }
   0x4   :  { %v27_v10 = vld [vmem:[%s2257_s1 + $0x30] sm:$0xff]  ;;  %v34_v13 = vld [vmem:[%s2257_s1 + $0x68] sm:$0xff]  ;;  %v36_v15 = vld [vmem:[%s2257_s1 + $0x78] sm:$0xff] }
   0x5   :  { %897 = vmatprep.subr.bf16.mxu0 %v896_v3  ;;  %v1026_v12 = vpack.c.bf16 %v27_v10, %v23_v9  ;;  %1025 = vmatprep.subr.bf16.mxu1 %v1024_v7  ;;  %v900_v16 = vpack.c.bf16 %v34_v13, %v30_v11  ;;  %v1028_v17 = vpack.c.bf16 %v36_v15, %v32_v14  ;;  %v29_v18 = vld [vmem:[%s2257_s1 + $0x40] sm:$0xff]  ;;  %v31_v20 = vld [vmem:[%s2257_s1 + $0x50] sm:$0xff]  ;;  %v38_v23 = vld [vmem:[%s2257_s1 + $0x88] sm:$0xff] }
   0x6   :  { %899 = vmatpush1.bf16.msra.mxu0 %v898_v8  ;;  %v33_v19 = vld [vmem:[%s2257_s1 + $0x60] sm:$0xff]  ;;  %v35_v22 = vld [vmem:[%s2257_s1 + $0x70] sm:$0xff]  ;;  %v42_v24 = vld [vmem:[%s2257_s1 + $0xa8] sm:$0xff] }
   0x7   :  { %1027 = vmatpush1.bf16.msra.mxu1 %v1026_v12  ;;  %v902_v21 = vpack.c.bf16 %v33_v19, %v29_v18  ;;  %901 = vmatprep.subr.bf16.mxu0 %v900_v16  ;;  %v1030_v25 = vpack.c.bf16 %v35_v22, %v31_v20  ;;  %v904_v26 = vpack.c.bf16 %v42_v24, %v38_v23  ;;  %v40_v27 = vld [vmem:[%s2257_s1 + $0x98] sm:$0xff]  ;;  %v37_v29 = vld [vmem:[%s2257_s1 + $0x80] sm:$0xff]  ;;  %v39_v32 = vld [vmem:[%s2257_s1 + $0x90] sm:$0xff] }
   0x8   :  { %1029 = vmatprep.subr.bf16.mxu1 %v1028_v17  ;;  %v44_v28 = vld [vmem:[%s2257_s1 + $0xb8] sm:$0xff]  ;;  %v41_v31 = vld [vmem:[%s2257_s1 + $0xa0] sm:$0xff]  ;;  %v43_v33 = vld [vmem:[%s2257_s1 + $0xb0] sm:$0xff] }
   0x9   :  { %v1032_v30 = vpack.c.bf16 %v44_v28, %v40_v27  ;;  %v906_v34 = vpack.c.bf16 %v41_v31, %v37_v29  ;;  %v46_v35 = vld [vmem:[%s2257_s1 + $0xc8] sm:$0xff]  ;;  %v48_v37 = vld [vmem:[%s2257_s1 + $0xd8] sm:$0xff]  ;;  %v1034_v38 = vpack.c.bf16 %v43_v33, %v39_v32  ;;  %v45_v41 = vld [vmem:[%s2257_s1 + $0xc0] sm:$0xff] }
   0xa   :  { %903 = vmatpush1.bf16.msra.mxu0 %v902_v21  ;;  %v50_v36 = vld [vmem:[%s2257_s1 + $0xe8] sm:$0xff]  ;;  %v52_v40 = vld [vmem:[%s2257_s1 + $0xf8] sm:$0xff]  ;;  %v49_v42 = vld [vmem:[%s2257_s1 + $0xe0] sm:$0xff] }
   0xb   :  { %1031 = vmatpush1.bf16.msra.mxu1 %v1030_v25  ;;  %905 = vmatprep.subr.bf16.mxu0 %v904_v26  ;;  %v908_v39 = vpack.c.bf16 %v50_v36, %v46_v35  ;;  %v1036_v43 = vpack.c.bf16 %v52_v40, %v48_v37  ;;  %v47_v44 = vld [vmem:[%s2257_s1 + $0xd0] sm:$0xff]  ;;  %v54_v46 = vld [vmem:[%s2257_s1 + $0x108] sm:$0xff]  ;;  %v56_v48 = vld [vmem:[%s2257_s1 + $0x118] sm:$0xff]  ;;  %v910_v50 = vpack.c.bf16 %v49_v42, %v45_v41 }
   0xc   :  { %1033 = vmatprep.subr.bf16.mxu1 %v1032_v30  ;;  %v51_v45 = vld [vmem:[%s2257_s1 + $0xf0] sm:$0xff]  ;;  %v58_v47 = vld [vmem:[%s2257_s1 + $0x128] sm:$0xff]  ;;  %v60_v49 = vld [vmem:[%s2257_s1 + $0x138] sm:$0xff] }
   0xd   :  { %v1038_v51 = vpack.c.bf16 %v51_v45, %v47_v44  ;;  %v912_v52 = vpack.c.bf16 %v58_v47, %v54_v46  ;;  %v53_v53 = vld [vmem:[%s2257_s1 + $0x100] sm:$0xff]  ;;  %v55_v55 = vld [vmem:[%s2257_s1 + $0x110] sm:$0xff]  ;;  %v1040_v56 = vpack.c.bf16 %v60_v49, %v56_v48  ;;  %v62_v58 = vld [vmem:[%s2257_s1 + $0x148] sm:$0xff]  ;;  %v279_v46 = vlaneseq }
   0xe   :  { %907 = vmatpush1.bf16.msra.mxu0 %v906_v34  ;;  %v57_v54 = vld [vmem:[%s2257_s1 + $0x120] sm:$0xff]  ;;  %v59_v57 = vld [vmem:[%s2257_s1 + $0x130] sm:$0xff]  ;;  %v66_v59 = vld [vmem:[%s2257_s1 + $0x168] sm:$0xff]  ;;  %v1226_v47 = vmov 1983009808  }
   0xf   :  { %1035 = vmatpush1.bf16.msra.mxu1 %v1034_v38  ;;  %909 = vmatprep.subr.bf16.mxu0 %v908_v39  ;;  %v64_v60 = vld [vmem:[%s2257_s1 + $0x158] sm:$0xff]  ;;  %v914_v62 = vpack.c.bf16 %v57_v54, %v53_v53  ;;  %v1042_v63 = vpack.c.bf16 %v59_v57, %v55_v55  ;;  %v916_v0 = vpack.c.bf16 %v66_v59, %v62_v58  ;;  %v61_v1 = vld [vmem:[%s2257_s1 + $0x140] sm:$0xff]  ;;  %v63_v3 = vld [vmem:[%s2257_s1 + $0x150] sm:$0xff]  ;;  %v302_v48 = vunpack.c.l.s4 %v1226_v47 }
  0x10   :  { %1037 = vmatprep.subr.bf16.mxu1 %v1036_v43  ;;  %v68_v61 = vld [vmem:[%s2257_s1 + $0x178] sm:$0xff]  ;;  %v65_v2 = vld [vmem:[%s2257_s1 + $0x160] sm:$0xff]  ;;  %v67_v5 = vld [vmem:[%s2257_s1 + $0x170] sm:$0xff] }
  0x11   :  { %v1044_v4 = vpack.c.bf16 %v68_v61, %v64_v60  ;;  %v70_v6 = vld [vmem:[%s2257_s1 + $0x188] sm:$0xff]  ;;  %v72_v8 = vld [vmem:[%s2257_s1 + $0x198] sm:$0xff]  ;;  %v918_v10 = vpack.c.bf16 %v65_v2, %v61_v1  ;;  %v1046_v11 = vpack.c.bf16 %v67_v5, %v63_v3  ;;  %v69_v13 = vld [vmem:[%s2257_s1 + $0x180] sm:$0xff]  ;;  %v1509_v61 = vshrl.u32 %v279_v46, 7 }
  0x12   :  { %911 = vmatpush1.bf16.msra.mxu0 %v910_v50  ;;  %v74_v7 = vld [vmem:[%s2257_s1 + $0x1a8] sm:$0xff]  ;;  %v76_v9 = vld [vmem:[%s2257_s1 + $0x1b8] sm:$0xff]  ;;  %v73_v14 = vld [vmem:[%s2257_s1 + $0x1a0] sm:$0xff] }
  0x13   :  { %1039 = vmatpush1.bf16.msra.mxu1 %v1038_v51  ;;  %913 = vmatprep.subr.bf16.mxu0 %v912_v52  ;;  %v920_v12 = vpack.c.bf16 %v74_v7, %v70_v6  ;;  %v71_v15 = vld [vmem:[%s2257_s1 + $0x190] sm:$0xff]  ;;  %v1048_v16 = vpack.c.bf16 %v76_v9, %v72_v8  ;;  %v78_v18 = vld [vmem:[%s2257_s1 + $0x1c8] sm:$0xff]  ;;  %v80_v20 = vld [vmem:[%s2257_s1 + $0x1d8] sm:$0xff]  ;;  %v922_v22 = vpack.c.bf16 %v73_v14, %v69_v13 }
  0x14   :  { %1041 = vmatprep.subr.bf16.mxu1 %v1040_v56  ;;  %v75_v17 = vld [vmem:[%s2257_s1 + $0x1b0] sm:$0xff]  ;;  %v82_v19 = vld [vmem:[%s2257_s1 + $0x1e8] sm:$0xff]  ;;  %v84_v21 = vld [vmem:[%s2257_s1 + $0x1f8] sm:$0xff] }
  0x15   :  { %v1050_v23 = vpack.c.bf16 %v75_v17, %v71_v15  ;;  %v924_v24 = vpack.c.bf16 %v82_v19, %v78_v18  ;;  %v77_v25 = vld [vmem:[%s2257_s1 + $0x1c0] sm:$0xff]  ;;  %v79_v27 = vld [vmem:[%s2257_s1 + $0x1d0] sm:$0xff]  ;;  %v1052_v28 = vpack.c.bf16 %v84_v21, %v80_v20  ;;  %v86_v30 = vld [vmem:[%s2257_s1 + $0x208] sm:$0xff] }
  0x16   :  { %915 = vmatpush1.bf16.msra.mxu0 %v914_v62  ;;  %v81_v26 = vld [vmem:[%s2257_s1 + $0x1e0] sm:$0xff]  ;;  %v83_v29 = vld [vmem:[%s2257_s1 + $0x1f0] sm:$0xff]  ;;  %v90_v31 = vld [vmem:[%s2257_s1 + $0x228] sm:$0xff]  ;;  %v303_v62 = vunpack.c.0.s8 %v302_v48 }
  0x17   :  { %1043 = vmatpush1.bf16.msra.mxu1 %v1042_v63  ;;  %917 = vmatprep.subr.bf16.mxu0 %v916_v0  ;;  %v88_v32 = vld [vmem:[%s2257_s1 + $0x218] sm:$0xff]  ;;  %v926_v34 = vpack.c.bf16 %v81_v26, %v77_v25  ;;  %v1054_v35 = vpack.c.bf16 %v83_v29, %v79_v27  ;;  %v928_v36 = vpack.c.bf16 %v90_v31, %v86_v30  ;;  %v85_v37 = vld [vmem:[%s2257_s1 + $0x200] sm:$0xff]  ;;  %v87_v39 = vld [vmem:[%s2257_s1 + $0x210] sm:$0xff] }
  0x18   :  { %1045 = vmatprep.subr.bf16.mxu1 %v1044_v4  ;;  %v92_v33 = vld [vmem:[%s2257_s1 + $0x238] sm:$0xff]  ;;  %v89_v38 = vld [vmem:[%s2257_s1 + $0x220] sm:$0xff]  ;;  %v91_v41 = vld [vmem:[%s2257_s1 + $0x230] sm:$0xff] }
  0x19   :  { %v1056_v40 = vpack.c.bf16 %v92_v33, %v88_v32  ;;  %v94_v42 = vld [vmem:[%s2257_s1 + $0x248] sm:$0xff]  ;;  %v96_v44 = vld [vmem:[%s2257_s1 + $0x258] sm:$0xff]  ;;  %v930_v49 = vpack.c.bf16 %v89_v38, %v85_v37  ;;  %v1058_v50 = vpack.c.bf16 %v91_v41, %v87_v39  ;;  %v93_v52 = vld [vmem:[%s2257_s1 + $0x240] sm:$0xff] }
  0x1a   :  { %919 = vmatpush1.bf16.msra.mxu0 %v918_v10  ;;  %v98_v43 = vld [vmem:[%s2257_s1 + $0x268] sm:$0xff]  ;;  %v100_v45 = vld [vmem:[%s2257_s1 + $0x278] sm:$0xff]  ;;  %v97_v53 = vld [vmem:[%s2257_s1 + $0x260] sm:$0xff] }
  0x1b   :  { %1047 = vmatpush1.bf16.msra.mxu1 %v1046_v11  ;;  %921 = vmatprep.subr.bf16.mxu0 %v920_v12  ;;  %v932_v51 = vpack.c.bf16 %v98_v43, %v94_v42  ;;  %v95_v54 = vld [vmem:[%s2257_s1 + $0x250] sm:$0xff]  ;;  %v1060_v55 = vpack.c.bf16 %v100_v45, %v96_v44  ;;  %v102_v57 = vld [vmem:[%s2257_s1 + $0x288] sm:$0xff]  ;;  %v104_v59 = vld [vmem:[%s2257_s1 + $0x298] sm:$0xff]  ;;  %v934_v63 = vpack.c.bf16 %v97_v53, %v93_v52 }
  0x1c   :  { %1049 = vmatprep.subr.bf16.mxu1 %v1048_v16  ;;  %v99_v56 = vld [vmem:[%s2257_s1 + $0x270] sm:$0xff]  ;;  %v106_v58 = vld [vmem:[%s2257_s1 + $0x2a8] sm:$0xff]  ;;  %v108_v60 = vld [vmem:[%s2257_s1 + $0x2b8] sm:$0xff]  ;;  %v1536_v11 = vsub.s32 %v303_v62, %v1509_v61 }
  0x1d   :  { %v1062_v0 = vpack.c.bf16 %v99_v56, %v95_v54  ;;  %v936_v1 = vpack.c.bf16 %v106_v58, %v102_v57  ;;  %v101_v2 = vld [vmem:[%s2257_s1 + $0x280] sm:$0xff]  ;;  %v103_v4 = vld [vmem:[%s2257_s1 + $0x290] sm:$0xff]  ;;  %v1064_v5 = vpack.c.bf16 %v108_v60, %v104_v59  ;;  %v110_v7 = vld [vmem:[%s2257_s1 + $0x2c8] sm:$0xff] }
  0x1e   :  { %923 = vmatpush1.bf16.msra.mxu0 %v922_v22  ;;  %v105_v3 = vld [vmem:[%s2257_s1 + $0x2a0] sm:$0xff]  ;;  %v107_v6 = vld [vmem:[%s2257_s1 + $0x2b0] sm:$0xff]  ;;  %v114_v8 = vld [vmem:[%s2257_s1 + $0x2e8] sm:$0xff] }
  0x1f   :  { %1051 = vmatpush1.bf16.msra.mxu1 %v1050_v23  ;;  %925 = vmatprep.subr.bf16.mxu0 %v924_v24  ;;  %v112_v9 = vld [vmem:[%s2257_s1 + $0x2d8] sm:$0xff]  ;;  %v938_v12 = vpack.c.bf16 %v105_v3, %v101_v2  ;;  %v109_v13 = vld [vmem:[%s2257_s1 + $0x2c0] sm:$0xff]  ;;  %v1066_v14 = vpack.c.bf16 %v107_v6, %v103_v4  ;;  %v940_v15 = vpack.c.bf16 %v114_v8, %v110_v7  ;;  %v111_v17 = vld [vmem:[%s2257_s1 + $0x2d0] sm:$0xff] }
  0x20   :  { %1053 = vmatprep.subr.bf16.mxu1 %v1052_v28  ;;  %v116_v10 = vld [vmem:[%s2257_s1 + $0x2f8] sm:$0xff]  ;;  %v113_v16 = vld [vmem:[%s2257_s1 + $0x2e0] sm:$0xff]  ;;  %v115_v18 = vld [vmem:[%s2257_s1 + $0x2f0] sm:$0xff] }
  0x21   :  { %v1068_v19 = vpack.c.bf16 %v116_v10, %v112_v9  ;;  %v118_v20 = vld [vmem:[%s2257_s1 + $0x308] sm:$0xff]  ;;  %v1559_v22 = vld [vmem:[%s2258_s0] sm:$0xff]  ;;  %v120_v23 = vld [vmem:[%s2257_s1 + $0x318] sm:$0xff]  ;;  %v942_v26 = vpack.c.bf16 %v113_v16, %v109_v13  ;;  %v1070_v27 = vpack.c.bf16 %v115_v18, %v111_v17 }
  0x22   :  { %927 = vmatpush1.bf16.msra.mxu0 %v926_v34  ;;  %v122_v21 = vld [vmem:[%s2257_s1 + $0x328] sm:$0xff]  ;;  %v124_v24 = vld [vmem:[%s2257_s1 + $0x338] sm:$0xff]  ;;  %v1569_v25 = vrot.slane %v1559_v22, %v1536_v11  ;;  %v117_v29 = vld [vmem:[%s2257_s1 + $0x300] sm:$0xff]  ;;  %v300_v8 = vcombine.high %v1559_v22, %v1559_v22 }
  0x23   :  { %1055 = vmatpush1.bf16.msra.mxu1 %v1054_v35  ;;  %929 = vmatprep.subr.bf16.mxu0 %v928_v36  ;;  %v944_v28 = vpack.c.bf16 %v122_v21, %v118_v20  ;;  %v121_v30 = vld [vmem:[%s2257_s1 + $0x320] sm:$0xff]  ;;  %v119_v31 = vld [vmem:[%s2257_s1 + $0x310] sm:$0xff]  ;;  %v1072_v33 = vpack.c.bf16 %v124_v24, %v120_v23  ;;  %v126_v35 = vld [vmem:[%s2257_s1 + $0x348] sm:$0xff] }
  0x24   :  { %1057 = vmatprep.subr.bf16.mxu1 %v1056_v40  ;;  %v315_v32 = vcombine.high %v1569_v25, %v1569_v25  ;;  %v123_v34 = vld [vmem:[%s2257_s1 + $0x330] sm:$0xff]  ;;  %v130_v36 = vld [vmem:[%s2257_s1 + $0x368] sm:$0xff]  ;;  %v128_v37 = vld [vmem:[%s2257_s1 + $0x358] sm:$0xff]  ;;  %v946_v39 = vpack.c.bf16 %v121_v30, %v117_v29  ;;  %v1690_v24 = vrot.slane %v300_v8, %v1536_v11 }
  0x25   :  { %v132_v38 = vld [vmem:[%s2257_s1 + $0x378] sm:$0xff]  ;;  %v1074_v40 = vpack.c.bf16 %v123_v34, %v119_v31  ;;  %v948_v41 = vpack.c.bf16 %v130_v36, %v126_v35  ;;  %v125_v42 = vld [vmem:[%s2257_s1 + $0x340] sm:$0xff]  ;;  %v127_v44 = vld [vmem:[%s2257_s1 + $0x350] sm:$0xff] }
  0x26   :  { %931 = vmatpush1.bf16.msra.mxu0 %v930_v49  ;;  %385 = vmatprep.mubr.f32.mxu0 %v315_v32  ;;  %v129_v43 = vld [vmem:[%s2257_s1 + $0x360] sm:$0xff]  ;;  %v1076_v45 = vpack.c.bf16 %v132_v38, %v128_v37  ;;  %v131_v46 = vld [vmem:[%s2257_s1 + $0x370] sm:$0xff]  ;;  %v134_v47 = vld [vmem:[%s2257_s1 + $0x388] sm:$0xff]  ;;  %v316_v37 = vcombine.high %v1690_v24, %v1690_v24 }
  0x27   :  { %1059 = vmatpush1.bf16.msra.mxu1 %v1058_v50  ;;  %933 = vmatprep.subr.bf16.mxu0 %v932_v51  ;;  %v138_v48 = vld [vmem:[%s2257_s1 + $0x3a8] sm:$0xff]  ;;  %v136_v49 = vld [vmem:[%s2257_s1 + $0x398] sm:$0xff]  ;;  %v950_v51 = vpack.c.bf16 %v129_v43, %v125_v42  ;;  %v1078_v52 = vpack.c.bf16 %v131_v46, %v127_v44  ;;  %v133_v54 = vld [vmem:[%s2257_s1 + $0x380] sm:$0xff] }
  0x28   :  { %1061 = vmatprep.subr.bf16.mxu1 %v1060_v55  ;;  %527 = vmatprep.mubr.f32.mxu1 %v315_v32  ;;  %v140_v50 = vld [vmem:[%s2257_s1 + $0x3b8] sm:$0xff]  ;;  %v952_v53 = vpack.c.bf16 %v138_v48, %v134_v47  ;;  %v137_v55 = vld [vmem:[%s2257_s1 + $0x3a0] sm:$0xff]  ;;  %v135_v56 = vld [vmem:[%s2257_s1 + $0x390] sm:$0xff] }
  0x29   :  { %v1080_v57 = vpack.c.bf16 %v140_v50, %v136_v49  ;;  %v139_v58 = vld [vmem:[%s2257_s1 + $0x3b0] sm:$0xff]  ;;  %v142_v59 = vld [vmem:[%s2257_s1 + $0x3c8] sm:$0xff]  ;;  %v144_v62 = vld [vmem:[%s2257_s1 + $0x3d8] sm:$0xff] }
  0x2a   :  { %935 = vmatpush1.bf16.msra.mxu0 %v934_v63  ;;  %v146_v60 = vld [vmem:[%s2257_s1 + $0x3e8] sm:$0xff]  ;;  %v148_v63 = vld [vmem:[%s2257_s1 + $0x3f8] sm:$0xff]  ;;  %v141_v3 = vld [vmem:[%s2257_s1 + $0x3c0] sm:$0xff] }
  0x2b   :  { %1063 = vmatpush1.bf16.msra.mxu1 %v1062_v0  ;;  %937 = vmatprep.subr.bf16.mxu0 %v936_v1  ;;  %v954_v0 = vpack.c.bf16 %v137_v55, %v133_v54  ;;  %v1082_v1 = vpack.c.bf16 %v139_v58, %v135_v56  ;;  %v956_v2 = vpack.c.bf16 %v146_v60, %v142_v59  ;;  %v145_v4 = vld [vmem:[%s2257_s1 + $0x3e0] sm:$0xff]  ;;  %v147_v7 = vld [vmem:[%s2257_s1 + $0x3f0] sm:$0xff]  ;;  %v150_v9 = vld [vmem:[%s2257_s1 + $0x408] sm:$0xff] }
  0x2c   :  { %1065 = vmatprep.subr.bf16.mxu1 %v1064_v5  ;;  %v143_v5 = vld [vmem:[%s2257_s1 + $0x3d0] sm:$0xff]  ;;  %v1084_v6 = vpack.c.bf16 %v148_v63, %v144_v62  ;;  %v154_v10 = vld [vmem:[%s2257_s1 + $0x428] sm:$0xff]  ;;  %v156_v13 = vld [vmem:[%s2257_s1 + $0x438] sm:$0xff] }
  0x2d   :  { %v960_v16 = vpack.c.bf16 %v154_v10, %v150_v9  ;;  %v149_v17 = vld [vmem:[%s2257_s1 + $0x400] sm:$0xff]  ;;  %v155_v21 = vld [vmem:[%s2257_s1 + $0x430] sm:$0xff]  ;;  %v158_v22 = vld [vmem:[%s2257_s1 + $0x448] sm:$0xff] }
  0x2e   :  { %939 = vmatpush1.bf16.msra.mxu0 %v938_v12  ;;  %v152_v12 = vld [vmem:[%s2257_s1 + $0x418] sm:$0xff]  ;;  %v153_v18 = vld [vmem:[%s2257_s1 + $0x420] sm:$0xff]  ;;  %v162_v23 = vld [vmem:[%s2257_s1 + $0x468] sm:$0xff] }
  0x2f   :  { %1067 = vmatpush1.bf16.msra.mxu1 %v1066_v14  ;;  %941 = vmatprep.subr.bf16.mxu0 %v940_v15  ;;  %v958_v14 = vpack.c.bf16 %v145_v4, %v141_v3  ;;  %v1086_v15 = vpack.c.bf16 %v147_v7, %v143_v5  ;;  %v1088_v20 = vpack.c.bf16 %v156_v13, %v152_v12  ;;  %v157_v31 = vld [vmem:[%s2257_s1 + $0x440] sm:$0xff]  ;;  %v159_v32 = vld [vmem:[%s2257_s1 + $0x450] sm:$0xff]  ;;  %v166_v35 = vld [vmem:[%s2257_s1 + $0x488] sm:$0xff] }
  0x30   :  { %1069 = vmatprep.subr.bf16.mxu1 %v1068_v19  ;;  %v151_v19 = vld [vmem:[%s2257_s1 + $0x410] sm:$0xff]  ;;  %v964_v30 = vpack.c.bf16 %v162_v23, %v158_v22  ;;  %v161_v11 = vld [vmem:[%s2257_s1 + $0x460] sm:$0xff]  ;;  %v170_v36 = vld [vmem:[%s2257_s1 + $0x4a8] sm:$0xff] }
  0x31   :  { %v1090_v29 = vpack.c.bf16 %v155_v21, %v151_v19  ;;  %v163_v34 = vld [vmem:[%s2257_s1 + $0x470] sm:$0xff]  ;;  %v168_v38 = vld [vmem:[%s2257_s1 + $0x498] sm:$0xff]  ;;  %v968_v42 = vpack.c.bf16 %v170_v36, %v166_v35  ;;  %v165_v43 = vld [vmem:[%s2257_s1 + $0x480] sm:$0xff] }
  0x32   :  { %943 = vmatpush1.bf16.msra.mxu0 %v942_v26  ;;  %v160_v26 = vld [vmem:[%s2257_s1 + $0x458] sm:$0xff]  ;;  %v169_v44 = vld [vmem:[%s2257_s1 + $0x4a0] sm:$0xff]  ;;  %v174_v47 = vld [vmem:[%s2257_s1 + $0x4c8] sm:$0xff] }
  0x33   :  { %1071 = vmatpush1.bf16.msra.mxu1 %v1070_v27  ;;  %945 = vmatprep.subr.bf16.mxu0 %v944_v28  ;;  %v164_v27 = vld [vmem:[%s2257_s1 + $0x478] sm:$0xff]  ;;  %v962_v28 = vpack.c.bf16 %v153_v18, %v149_v17  ;;  %v178_v48 = vld [vmem:[%s2257_s1 + $0x4e8] sm:$0xff]  ;;  %v173_v54 = vld [vmem:[%s2257_s1 + $0x4c0] sm:$0xff] }
  0x34   :  { %1073 = vmatprep.subr.bf16.mxu1 %v1072_v33  ;;  %v1092_v33 = vpack.c.bf16 %v164_v27, %v160_v26  ;;  %v176_v49 = vld [vmem:[%s2257_s1 + $0x4d8] sm:$0xff]  ;;  %v177_v55 = vld [vmem:[%s2257_s1 + $0x4e0] sm:$0xff]  ;;  %v175_v56 = vld [vmem:[%s2257_s1 + $0x4d0] sm:$0xff] }
  0x35   :  { %v180_v50 = vld [vmem:[%s2257_s1 + $0x4f8] sm:$0xff]  ;;  %v179_v58 = vld [vmem:[%s2257_s1 + $0x4f0] sm:$0xff]  ;;  %v182_v59 = vld [vmem:[%s2257_s1 + $0x508] sm:$0xff] }
  0x36   :  { %947 = vmatpush1.bf16.msra.mxu0 %v946_v39  ;;  %v172_v39 = vld [vmem:[%s2257_s1 + $0x4b8] sm:$0xff]  ;;  %v186_v60 = vld [vmem:[%s2257_s1 + $0x528] sm:$0xff]  ;;  %v181_v3 = vld [vmem:[%s2257_s1 + $0x500] sm:$0xff] }
  0x37   :  { %1075 = vmatpush1.bf16.msra.mxu1 %v1074_v40  ;;  %949 = vmatprep.subr.bf16.mxu0 %v948_v41  ;;  %v966_v40 = vpack.c.bf16 %v161_v11, %v157_v31  ;;  %v1094_v41 = vpack.c.bf16 %v163_v34, %v159_v32  ;;  %v1096_v46 = vpack.c.bf16 %v172_v39, %v168_v38  ;;  %v184_v62 = vld [vmem:[%s2257_s1 + $0x518] sm:$0xff]  ;;  %v185_v4 = vld [vmem:[%s2257_s1 + $0x520] sm:$0xff]  ;;  %v183_v5 = vld [vmem:[%s2257_s1 + $0x510] sm:$0xff] }
  0x38   :  { %1077 = vmatprep.subr.bf16.mxu1 %v1076_v45  ;;  %v167_v45 = vld [vmem:[%s2257_s1 + $0x490] sm:$0xff]  ;;  %v188_v63 = vld [vmem:[%s2257_s1 + $0x538] sm:$0xff]  ;;  %v190_v8 = vld [vmem:[%s2257_s1 + $0x548] sm:$0xff]  ;;  %v978_v13 = vpack.c.bf16 %v185_v4, %v181_v3 }
  0x39   :  { %v187_v7 = vld [vmem:[%s2257_s1 + $0x530] sm:$0xff]  ;;  %v194_v9 = vld [vmem:[%s2257_s1 + $0x568] sm:$0xff]  ;;  %v192_v10 = vld [vmem:[%s2257_s1 + $0x558] sm:$0xff] }
  0x3a   :  { %951 = vmatpush1.bf16.msra.mxu0 %v950_v51  ;;  %v970_v51 = vpack.c.bf16 %v169_v44, %v165_v43  ;;  %v196_v12 = vld [vmem:[%s2257_s1 + $0x578] sm:$0xff]  ;;  %v193_v17 = vld [vmem:[%s2257_s1 + $0x560] sm:$0xff]  ;;  %v191_v18 = vld [vmem:[%s2257_s1 + $0x550] sm:$0xff] }
  0x3b   :  { %1079 = vmatpush1.bf16.msra.mxu1 %v1078_v52  ;;  %953 = vmatprep.subr.bf16.mxu0 %v952_v53  ;;  %v972_v53 = vpack.c.bf16 %v178_v48, %v174_v47  ;;  %v1108_v19 = vpack.c.bf16 %v196_v12, %v192_v10  ;;  %v198_v21 = vld [vmem:[%s2257_s1 + $0x588] sm:$0xff]  ;;  %v200_v23 = vld [vmem:[%s2257_s1 + $0x598] sm:$0xff]  ;;  %v201_v31 = vld [vmem:[%s2257_s1 + $0x5a0] sm:$0xff] }
  0x3c   :  { %1081 = vmatprep.subr.bf16.mxu1 %v1080_v57  ;;  %v1100_v57 = vpack.c.bf16 %v180_v50, %v176_v49  ;;  %v202_v22 = vld [vmem:[%s2257_s1 + $0x5a8] sm:$0xff]  ;;  %v204_v26 = vld [vmem:[%s2257_s1 + $0x5b8] sm:$0xff]  ;;  %v199_v11 = vld [vmem:[%s2257_s1 + $0x590] sm:$0xff] }
  0x3d   :  { %v1112_v32 = vpack.c.bf16 %v204_v26, %v200_v23  ;;  %v206_v34 = vld [vmem:[%s2257_s1 + $0x5c8] sm:$0xff]  ;;  %v208_v36 = vld [vmem:[%s2257_s1 + $0x5d8] sm:$0xff]  ;;  %v207_v43 = vld [vmem:[%s2257_s1 + $0x5d0] sm:$0xff] }
  0x3e   :  { %955 = vmatpush1.bf16.msra.mxu0 %v954_v0  ;;  %v974_v0 = vpack.c.bf16 %v177_v55, %v173_v54  ;;  %v210_v35 = vld [vmem:[%s2257_s1 + $0x5e8] sm:$0xff]  ;;  %v216_v47 = vld [vmem:[%s2257_s1 + $0x618] sm:$0xff]  ;;  %v215_v54 = vld [vmem:[%s2257_s1 + $0x610] sm:$0xff] }
  0x3f   :  { %1083 = vmatpush1.bf16.msra.mxu1 %v1082_v1  ;;  %957 = vmatprep.subr.bf16.mxu0 %v956_v2  ;;  %v1102_v1 = vpack.c.bf16 %v179_v58, %v175_v56  ;;  %v976_v2 = vpack.c.bf16 %v186_v60, %v182_v59  ;;  %v220_v48 = vld [vmem:[%s2257_s1 + $0x638] sm:$0xff]  ;;  %v219_v56 = vld [vmem:[%s2257_s1 + $0x630] sm:$0xff]  ;;  %v226_v58 = vld [vmem:[%s2257_s1 + $0x668] sm:$0xff] }
  0x40   :  { %1085 = vmatprep.subr.bf16.mxu1 %v1084_v6  ;;  %v1104_v6 = vpack.c.bf16 %v188_v63, %v184_v62  ;;  %v1120_v55 = vpack.c.bf16 %v220_v48, %v216_v47  ;;  %v224_v59 = vld [vmem:[%s2257_s1 + $0x658] sm:$0xff]  ;;  %v1122_v63 = vpack.c.bf16 %v219_v56, %v215_v54  ;;  %v223_v3 = vld [vmem:[%s2257_s1 + $0x650] sm:$0xff]  ;;  %v266_v56 = vld [vmem:[%s2257_s1 + $0x7a8] sm:$0xff] }
  0x41   :  { %v228_v60 = vld [vmem:[%s2257_s1 + $0x678] sm:$0xff]  ;;  %v259_v54 = vld [vmem:[%s2257_s1 + $0x770] sm:$0xff] }
  0x42   :  { %959 = vmatpush1.bf16.msra.mxu0 %v958_v14  ;;  %v1106_v14 = vpack.c.bf16 %v187_v7, %v183_v5  ;;  %v1124_v4 = vpack.c.bf16 %v228_v60, %v224_v59  ;;  %v227_v5 = vld [vmem:[%s2257_s1 + $0x670] sm:$0xff]  ;;  %v234_v7 = vld [vmem:[%s2257_s1 + $0x6a8] sm:$0xff] }
  0x43   :  { %1087 = vmatpush1.bf16.msra.mxu1 %v1086_v15  ;;  %961 = vmatprep.subr.bf16.mxu0 %v960_v16  ;;  %v980_v15 = vpack.c.bf16 %v194_v9, %v190_v8  ;;  %v189_v16 = vld [vmem:[%s2257_s1 + $0x540] sm:$0xff]  ;;  %v232_v8 = vld [vmem:[%s2257_s1 + $0x698] sm:$0xff]  ;;  %v1126_v12 = vpack.c.bf16 %v227_v5, %v223_v3  ;;  %v267_v3 = vld [vmem:[%s2257_s1 + $0x7b0] sm:$0xff] }
  0x44   :  { %1089 = vmatprep.subr.bf16.mxu1 %v1088_v20  ;;  %v195_v20 = vld [vmem:[%s2257_s1 + $0x570] sm:$0xff]  ;;  %v982_v27 = vpack.c.bf16 %v193_v17, %v189_v16  ;;  %v236_v9 = vld [vmem:[%s2257_s1 + $0x6b8] sm:$0xff]  ;;  %v274_v5 = vld [vmem:[%s2257_s1 + $0x7e8] sm:$0xff] }
  0x45   :  { %386 = vmatmul.mubr.f32.vlgmr.msra.gmra.mrb[0].mxu0 %v1569_v25  ;;  %v231_v16 = vld [vmem:[%s2257_s1 + $0x690] sm:$0xff]  ;;  %v1128_v17 = vpack.c.bf16 %v236_v9, %v232_v8 }
  0x46   :  { %963 = vmatpush1.bf16.msra.mxu0 %v962_v28  ;;  %528 = vmatmul.mubr.f32.vlgmr.msra.gmra.mrb[0].mxu1 %v1569_v25  ;;  %v171_v25 = vld [vmem:[%s2257_s1 + $0x4b0] sm:$0xff]  ;;  %v1110_v28 = vpack.c.bf16 %v195_v20, %v191_v18  ;;  %v242_v20 = vld [vmem:[%s2257_s1 + $0x6e8] sm:$0xff] }
  0x47   :  { %1091 = vmatpush1.bf16.msra.mxu1 %v1090_v29  ;;  %965 = vmatprep.subr.bf16.mxu0 %v964_v30  ;;  %v1098_v52 = vpack.c.bf16 %v171_v25, %v167_v45  ;;  %v984_v29 = vpack.c.bf16 %v202_v22, %v198_v21  ;;  %v197_v30 = vld [vmem:[%s2257_s1 + $0x580] sm:$0xff]  ;;  %v211_v45 = vld [vmem:[%s2257_s1 + $0x5f0] sm:$0xff]  ;;  %v218_v25 = vld [vmem:[%s2257_s1 + $0x628] sm:$0xff] }
  0x48   :  { %1093 = vmatprep.subr.bf16.mxu1 %v1092_v33  ;;  %456 = vmatprep.mubr.f32.mxu0 %v316_v37  ;;  %v203_v33 = vld [vmem:[%s2257_s1 + $0x5b0] sm:$0xff]  ;;  %v986_v38 = vpack.c.bf16 %v201_v31, %v197_v30  ;;  %v1118_v50 = vpack.c.bf16 %v211_v45, %v207_v43  ;;  %v240_v21 = vld [vmem:[%s2257_s1 + $0x6d8] sm:$0xff]  ;;  %v258_v45 = vld [vmem:[%s2257_s1 + $0x768] sm:$0xff] }
  0x49   :  { %598 = vmatprep.mubr.f32.mxu1 %v316_v37  ;;  %v212_v37 = vld [vmem:[%s2257_s1 + $0x5f8] sm:$0xff]  ;;  %v1114_v39 = vpack.c.bf16 %v203_v33, %v199_v11  ;;  %v235_v18 = vld [vmem:[%s2257_s1 + $0x6b0] sm:$0xff]  ;;  %v250_v33 = vld [vmem:[%s2257_s1 + $0x728] sm:$0xff] }
  0x4a   :  { %967 = vmatpush1.bf16.msra.mxu0 %v966_v40  ;;  %v988_v40 = vpack.c.bf16 %v210_v35, %v206_v34  ;;  %v1116_v44 = vpack.c.bf16 %v212_v37, %v208_v36  ;;  %v244_v22 = vld [vmem:[%s2257_s1 + $0x6f8] sm:$0xff]  ;;  %v1130_v26 = vpack.c.bf16 %v235_v18, %v231_v16  ;;  %v239_v30 = vld [vmem:[%s2257_s1 + $0x6d0] sm:$0xff]  ;;  %v626_v18 = vld [vmem:[%s2259_s3 + $0x88] sm:$0xff] }
  0x4b   :  { %1095 = vmatpush1.bf16.msra.mxu1 %v1094_v41  ;;  %969 = vmatprep.subr.bf16.mxu0 %v968_v42  ;;  %v205_v41 = vld [vmem:[%s2257_s1 + $0x5c0] sm:$0xff]  ;;  %v1132_v31 = vpack.c.bf16 %v244_v22, %v240_v21  ;;  %v243_v11 = vld [vmem:[%s2257_s1 + $0x6f0] sm:$0xff]  ;;  %v248_v34 = vld [vmem:[%s2257_s1 + $0x718] sm:$0xff] }
  0x4c   :  { %1097 = vmatprep.subr.bf16.mxu1 %v1096_v46  ;;  %v209_v42 = vld [vmem:[%s2257_s1 + $0x5e0] sm:$0xff]  ;;  %v214_v46 = vld [vmem:[%s2257_s1 + $0x608] sm:$0xff]  ;;  %v252_v35 = vld [vmem:[%s2257_s1 + $0x738] sm:$0xff]  ;;  %v1134_v37 = vpack.c.bf16 %v243_v11, %v239_v30 }
  0x4d   :  { %v990_v49 = vpack.c.bf16 %v209_v42, %v205_v41  ;;  %v247_v41 = vld [vmem:[%s2257_s1 + $0x710] sm:$0xff]  ;;  %v1136_v42 = vpack.c.bf16 %v252_v35, %v248_v34  ;;  %v642_v30 = vld [vmem:[%s2259_s3 + $0x108] sm:$0xff]  ;;  %v628_v11 = vld [vmem:[%s2259_s3 + $0x98] sm:$0xff] }
  0x4e   :  { %971 = vmatpush1.bf16.msra.mxu0 %v970_v51  ;;  %v992_v51 = vpack.c.bf16 %v218_v25, %v214_v46  ;;  %v251_v43 = vld [vmem:[%s2257_s1 + $0x730] sm:$0xff]  ;;  %v256_v46 = vld [vmem:[%s2257_s1 + $0x758] sm:$0xff] }
  0x4f   :  { %1099 = vmatpush1.bf16.msra.mxu1 %v1098_v52  ;;  %973 = vmatprep.subr.bf16.mxu0 %v972_v53  ;;  %v213_v52 = vld [vmem:[%s2257_s1 + $0x600] sm:$0xff]  ;;  %v260_v25 = vld [vmem:[%s2257_s1 + $0x778] sm:$0xff]  ;;  %v1138_v48 = vpack.c.bf16 %v251_v43, %v247_v41  ;;  %v275_v16 = vld [vmem:[%s2257_s1 + $0x7f0] sm:$0xff] }
  0x50   :  { %1101 = vmatprep.subr.bf16.mxu1 %v1100_v57  ;;  %v217_v53 = vld [vmem:[%s2257_s1 + $0x620] sm:$0xff]  ;;  %v222_v57 = vld [vmem:[%s2257_s1 + $0x648] sm:$0xff]  ;;  %v644_v41 = vld [vmem:[%s2259_s3 + $0x118] sm:$0xff] }
  0x51   :  { %v994_v62 = vpack.c.bf16 %v217_v53, %v213_v52  ;;  %v255_v52 = vld [vmem:[%s2257_s1 + $0x750] sm:$0xff]  ;;  %v1140_v53 = vpack.c.bf16 %v260_v25, %v256_v46  ;;  %v630_v43 = vld [vmem:[%s2259_s3 + $0xa8] sm:$0xff] }
  0x52   :  { %975 = vmatpush1.bf16.msra.mxu0 %v974_v0  ;;  %v996_v0 = vpack.c.bf16 %v226_v58, %v222_v57  ;;  %v264_v57 = vld [vmem:[%s2257_s1 + $0x798] sm:$0xff]  ;;  %v1142_v60 = vpack.c.bf16 %v259_v54, %v255_v52  ;;  %v631_v52 = vld [vmem:[%s2259_s3 + $0xb0] sm:$0xff] }
  0x53   :  { %1103 = vmatpush1.bf16.msra.mxu1 %v1102_v1  ;;  %977 = vmatprep.subr.bf16.mxu0 %v976_v2  ;;  %v221_v1 = vld [vmem:[%s2257_s1 + $0x640] sm:$0xff]  ;;  %v268_v58 = vld [vmem:[%s2257_s1 + $0x7b8] sm:$0xff]  ;;  %v663_v54 = vld [vmem:[%s2259_s3 + $0x1b0] sm:$0xff] }
  0x54   :  { %1105 = vmatprep.subr.bf16.mxu1 %v1104_v6  ;;  %v225_v2 = vld [vmem:[%s2257_s1 + $0x660] sm:$0xff]  ;;  %v230_v6 = vld [vmem:[%s2257_s1 + $0x688] sm:$0xff] }
  0x55   :  { %v998_v10 = vpack.c.bf16 %v225_v2, %v221_v1  ;;  %v263_v1 = vld [vmem:[%s2257_s1 + $0x790] sm:$0xff]  ;;  %v1144_v2 = vpack.c.bf16 %v268_v58, %v264_v57 }
  0x56   :  { %979 = vmatpush1.bf16.msra.mxu0 %v978_v13  ;;  %v1000_v13 = vpack.c.bf16 %v234_v7, %v230_v6  ;;  %v272_v6 = vld [vmem:[%s2257_s1 + $0x7d8] sm:$0xff]  ;;  %v1146_v9 = vpack.c.bf16 %v267_v3, %v263_v1  ;;  %v633_v1 = vld [vmem:[%s2259_s3 + $0xc0] sm:$0xff] }
  0x57   :  { %1107 = vmatpush1.bf16.msra.mxu1 %v1106_v14  ;;  %981 = vmatprep.subr.bf16.mxu0 %v980_v15  ;;  %v229_v14 = vld [vmem:[%s2257_s1 + $0x680] sm:$0xff]  ;;  %v276_v7 = vld [vmem:[%s2257_s1 + $0x7f8] sm:$0xff] }
  0x58   :  { %1109 = vmatprep.subr.bf16.mxu1 %v1108_v19  ;;  %v233_v15 = vld [vmem:[%s2257_s1 + $0x6a0] sm:$0xff]  ;;  %v238_v19 = vld [vmem:[%s2257_s1 + $0x6c8] sm:$0xff] }
  0x59   :  { %v1002_v23 = vpack.c.bf16 %v233_v15, %v229_v14  ;;  %v271_v14 = vld [vmem:[%s2257_s1 + $0x7d0] sm:$0xff]  ;;  %v1148_v15 = vpack.c.bf16 %v276_v7, %v272_v6  ;;  %v665_v3 = vld [vmem:[%s2259_s3 + $0x1c0] sm:$0xff] }
  0x5a   :  { %983 = vmatpush1.bf16.msra.mxu0 %v982_v27  ;;  %v1004_v27 = vpack.c.bf16 %v242_v20, %v238_v19  ;;  %v657_v19 = vld [vmem:[%s2259_s3 + $0x180] sm:$0xff]  ;;  %v658_v20 = vld [vmem:[%s2259_s3 + $0x188] sm:$0xff]  ;;  %v1150_v22 = vpack.c.bf16 %v275_v16, %v271_v14  ;;  %v635_v14 = vld [vmem:[%s2259_s3 + $0xd0] sm:$0xff] }
  0x5b   :  { %1111 = vmatpush1.bf16.msra.mxu1 %v1110_v28  ;;  %985 = vmatprep.subr.bf16.mxu0 %v984_v29  ;;  %v237_v28 = vld [vmem:[%s2257_s1 + $0x6c0] sm:$0xff]  ;;  %v667_v16 = vld [vmem:[%s2259_s3 + $0x1d0] sm:$0xff] }
  0x5c   :  { %1113 = vmatprep.subr.bf16.mxu1 %v1112_v32  ;;  %v241_v29 = vld [vmem:[%s2257_s1 + $0x6e0] sm:$0xff]  ;;  %v246_v32 = vld [vmem:[%s2257_s1 + $0x708] sm:$0xff] }
  0x5d   :  { %v1006_v36 = vpack.c.bf16 %v241_v29, %v237_v28  ;;  %v641_v28 = vld [vmem:[%s2259_s3 + $0x100] sm:$0xff]  ;;  %v1184_v29 = vpack.c.bf16 %v658_v20, %v657_v19 }
  0x5e   :  { %987 = vmatpush1.bf16.msra.mxu0 %v986_v38  ;;  %v1008_v38 = vpack.c.bf16 %v250_v33, %v246_v32  ;;  %v659_v32 = vld [vmem:[%s2259_s3 + $0x190] sm:$0xff]  ;;  %v660_v33 = vld [vmem:[%s2259_s3 + $0x198] sm:$0xff]  ;;  %v1186_v35 = vpack.c.bf16 %v642_v30, %v641_v28  ;;  %v637_v28 = vld [vmem:[%s2259_s3 + $0xe0] sm:$0xff] }
  0x5f   :  { %1115 = vmatpush1.bf16.msra.mxu1 %v1114_v39  ;;  %989 = vmatprep.subr.bf16.mxu0 %v988_v40  ;;  %v245_v39 = vld [vmem:[%s2257_s1 + $0x700] sm:$0xff] }
  0x60   :  { %1117 = vmatprep.subr.bf16.mxu1 %v1116_v44  ;;  %v249_v40 = vld [vmem:[%s2257_s1 + $0x720] sm:$0xff]  ;;  %v254_v44 = vld [vmem:[%s2257_s1 + $0x748] sm:$0xff] }
  0x61   :  { %v1010_v47 = vpack.c.bf16 %v249_v40, %v245_v39  ;;  %v643_v39 = vld [vmem:[%s2259_s3 + $0x110] sm:$0xff]  ;;  %v1188_v40 = vpack.c.bf16 %v660_v33, %v659_v32  ;;  %v669_v30 = vld [vmem:[%s2259_s3 + $0x1e0] sm:$0xff] }
  0x62   :  { %991 = vmatpush1.bf16.msra.mxu0 %v990_v49  ;;  %v1012_v49 = vpack.c.bf16 %v258_v45, %v254_v44  ;;  %v661_v44 = vld [vmem:[%s2259_s3 + $0x1a0] sm:$0xff]  ;;  %v662_v45 = vld [vmem:[%s2259_s3 + $0x1a8] sm:$0xff]  ;;  %v1190_v25 = vpack.c.bf16 %v644_v41, %v643_v39  ;;  %v639_v41 = vld [vmem:[%s2259_s3 + $0xf0] sm:$0xff] }
  0x63   :  { %1119 = vmatpush1.bf16.msra.mxu1 %v1118_v50  ;;  %993 = vmatprep.subr.bf16.mxu0 %v992_v51  ;;  %v253_v50 = vld [vmem:[%s2257_s1 + $0x740] sm:$0xff]  ;;  %v654_v39 = vld [vmem:[%s2259_s3 + $0x168] sm:$0xff] }
  0x64   :  { %1121 = vmatprep.subr.bf16.mxu1 %v1120_v55  ;;  %v257_v51 = vld [vmem:[%s2257_s1 + $0x760] sm:$0xff]  ;;  %v262_v55 = vld [vmem:[%s2257_s1 + $0x788] sm:$0xff] }
  0x65   :  { %v1014_v59 = vpack.c.bf16 %v257_v51, %v253_v50  ;;  %v645_v50 = vld [vmem:[%s2259_s3 + $0x120] sm:$0xff]  ;;  %v646_v51 = vld [vmem:[%s2259_s3 + $0x128] sm:$0xff] }
  0x66   :  { %995 = vmatpush1.bf16.msra.mxu0 %v994_v62  ;;  %v1016_v62 = vpack.c.bf16 %v266_v56, %v262_v55  ;;  %v664_v55 = vld [vmem:[%s2259_s3 + $0x1b8] sm:$0xff]  ;;  %v1194_v57 = vpack.c.bf16 %v646_v51, %v645_v50  ;;  %v281_v51 = vsub.s32 0, %v1509_v61 }
  0x67   :  { %1123 = vmatpush1.bf16.msra.mxu1 %v1122_v63  ;;  %997 = vmatprep.subr.bf16.mxu0 %v996_v0  ;;  %v261_v63 = vld [vmem:[%s2257_s1 + $0x780] sm:$0xff]  ;;  %v656_v50 = vld [vmem:[%s2259_s3 + $0x178] sm:$0xff] }
  0x68   :  { %1125 = vmatprep.subr.bf16.mxu1 %v1124_v4  ;;  %v265_v0 = vld [vmem:[%s2257_s1 + $0x7a0] sm:$0xff]  ;;  %v270_v4 = vld [vmem:[%s2257_s1 + $0x7c8] sm:$0xff] }
  0x69   :  { %v1018_v8 = vpack.c.bf16 %v265_v0, %v261_v63  ;;  %v1196_v63 = vpack.c.bf16 %v664_v55, %v663_v54  ;;  %v648_v0 = vld [vmem:[%s2259_s3 + $0x138] sm:$0xff]  ;;  %v285_v54 = vsub.s32 1, %v1509_v61  ;;  %v293_v55 = vsub.s32 3, %v1509_v61 }
  0x6a   :  { %999 = vmatpush1.bf16.msra.mxu0 %v998_v10  ;;  %v1020_v10 = vpack.c.bf16 %v274_v5, %v270_v4  ;;  %v666_v4 = vld [vmem:[%s2259_s3 + $0x1c8] sm:$0xff] }
  0x6b   :  { %1127 = vmatpush1.bf16.msra.mxu1 %v1126_v12  ;;  %1001 = vmatprep.subr.bf16.mxu0 %v1000_v13  ;;  %v269_v12 = vld [vmem:[%s2257_s1 + $0x7c0] sm:$0xff] }
  0x6c   :  { %1129 = vmatprep.subr.bf16.mxu1 %v1128_v17  ;;  %v273_v13 = vld [vmem:[%s2257_s1 + $0x7e0] sm:$0xff] }
  0x6d   :  { %v625_v17 = vld [vmem:[%s2259_s3 + $0x80] sm:$0xff]  ;;  %v1022_v21 = vpack.c.bf16 %v273_v13, %v269_v12  ;;  %v1200_v12 = vpack.c.bf16 %v666_v4, %v665_v3  ;;  %v650_v13 = vld [vmem:[%s2259_s3 + $0x148] sm:$0xff] }
  0x6e   :  { %1003 = vmatpush1.bf16.msra.mxu0 %v1002_v23  ;;  %v1152_v23 = vpack.c.bf16 %v626_v18, %v625_v17  ;;  %v668_v17 = vld [vmem:[%s2259_s3 + $0x1d8] sm:$0xff] }
  0x6f   :  { %1131 = vmatpush1.bf16.msra.mxu1 %v1130_v26  ;;  %1005 = vmatprep.subr.bf16.mxu0 %v1004_v27  ;;  %v609_v26 = vld [vmem:[%s2259_s3] sm:$0xff]  ;;  %v610_v27 = vld [vmem:[%s2259_s3 + $0x8] sm:$0xff] }
  0x70   :  { %1133 = vmatprep.subr.bf16.mxu1 %v1132_v31  ;;  %v627_v31 = vld [vmem:[%s2259_s3 + $0x90] sm:$0xff]  ;;  %v1154_v34 = vpack.c.bf16 %v610_v27, %v609_v26  ;;  %v1204_v26 = vpack.c.bf16 %v668_v17, %v667_v16  ;;  %v652_v27 = vld [vmem:[%s2259_s3 + $0x158] sm:$0xff] }
  0x72   :  { %1007 = vmatpush1.bf16.msra.mxu0 %v1006_v36  ;;  %v1156_v36 = vpack.c.bf16 %v628_v11, %v627_v31  ;;  %v670_v31 = vld [vmem:[%s2259_s3 + $0x1e8] sm:$0xff] }
  0x73   :  { %1135 = vmatpush1.bf16.msra.mxu1 %v1134_v37  ;;  %1009 = vmatprep.subr.bf16.mxu0 %v1008_v38  ;;  %v611_v37 = vld [vmem:[%s2259_s3 + $0x10] sm:$0xff]  ;;  %v612_v38 = vld [vmem:[%s2259_s3 + $0x18] sm:$0xff] }
  0x74   :  { %1137 = vmatprep.subr.bf16.mxu1 %v1136_v42  ;;  %v629_v42 = vld [vmem:[%s2259_s3 + $0xa0] sm:$0xff]  ;;  %v1158_v46 = vpack.c.bf16 %v612_v38, %v611_v37 }
  0x75   :  { %v653_v37 = vld [vmem:[%s2259_s3 + $0x160] sm:$0xff] }
  0x76   :  { %1011 = vmatpush1.bf16.msra.mxu0 %v1010_v47  ;;  %v1160_v47 = vpack.c.bf16 %v630_v43, %v629_v42  ;;  %v640_v42 = vld [vmem:[%s2259_s3 + $0xf8] sm:$0xff]  ;;  %v671_v43 = vld [vmem:[%s2259_s3 + $0x1f0] sm:$0xff] }
  0x77   :  { %1139 = vmatpush1.bf16.msra.mxu1 %v1138_v48  ;;  %1013 = vmatprep.subr.bf16.mxu0 %v1012_v49  ;;  %v613_v48 = vld [vmem:[%s2259_s3 + $0x20] sm:$0xff]  ;;  %v614_v49 = vld [vmem:[%s2259_s3 + $0x28] sm:$0xff] }
  0x78   :  { %1141 = vmatprep.subr.bf16.mxu1 %v1140_v53  ;;  %v632_v53 = vld [vmem:[%s2259_s3 + $0xb8] sm:$0xff]  ;;  %v1162_v56 = vpack.c.bf16 %v614_v49, %v613_v48  ;;  %v655_v49 = vld [vmem:[%s2259_s3 + $0x170] sm:$0xff] }
  0x79   :  { %v1164_v58 = vpack.c.bf16 %v632_v53, %v631_v52  ;;  %v277_v52 = vld [vmem:[%s2260_s2] sm:$0xf]  ;;  %v289_v53 = vsub.s32 2, %v1509_v61 }
  0x7a   :  { %1015 = vmatpush1.bf16.msra.mxu0 %v1014_v59  ;;  %v615_v59 = vld [vmem:[%s2259_s3 + $0x30] sm:$0xff] }
  0x7b   :  { %1143 = vmatpush1.bf16.msra.mxu1 %v1142_v60  ;;  %1017 = vmatprep.subr.bf16.mxu0 %v1016_v62  ;;  %v616_v60 = vld [vmem:[%s2259_s3 + $0x38] sm:$0xff]  ;;  %v647_v62 = vld [vmem:[%s2259_s3 + $0x130] sm:$0xff] }
  0x7c   :  { %1145 = vmatprep.subr.bf16.mxu1 %v1144_v2  ;;  %v634_v2 = vld [vmem:[%s2259_s3 + $0xc8] sm:$0xff]  ;;  %v1166_v5 = vpack.c.bf16 %v616_v60, %v615_v59  ;;  %v1198_v6 = vpack.c.bf16 %v648_v0, %v647_v62  ;;  %v294_v59 = vrot.slane %v277_v52, %v293_v55 }
  0x7d   :  { %v1168_v7 = vpack.c.bf16 %v634_v2, %v633_v1 }
  0x7e   :  { %1019 = vmatpush1.bf16.msra.mxu0 %v1018_v8  ;;  %v617_v8 = vld [vmem:[%s2259_s3 + $0x40] sm:$0xff] }
  0x7f   :  { %1147 = vmatpush1.bf16.msra.mxu1 %v1146_v9  ;;  %1021 = vmatprep.subr.bf16.mxu0 %v1020_v10  ;;  %v618_v9 = vld [vmem:[%s2259_s3 + $0x48] sm:$0xff]  ;;  %v649_v10 = vld [vmem:[%s2259_s3 + $0x140] sm:$0xff] }
  0x80   :  { %1149 = vmatprep.subr.bf16.mxu1 %v1148_v15  ;;  %v636_v15 = vld [vmem:[%s2259_s3 + $0xd8] sm:$0xff]  ;;  %v1170_v18 = vpack.c.bf16 %v618_v9, %v617_v8  ;;  %v1202_v19 = vpack.c.bf16 %v650_v13, %v649_v10  ;;  %v825_v10 = vld [vmem:[%s2261_s4] ss:$0 sm:$0xff] }
  0x81   :  { %v1172_v20 = vpack.c.bf16 %v636_v15, %v635_v14 }
  0x82   :  { %1023 = vmatpush1.bf16.msra.mxu0 %v1022_v21  ;;  %v619_v21 = vld [vmem:[%s2259_s3 + $0x50] sm:$0xff] }
  0x83   :  { %1151 = vmatpush1.bf16.msra.mxu1 %v1150_v22  ;;  %1153 = vmatprep.subr.bf16.mxu0 %v1152_v23  ;;  %v620_v22 = vld [vmem:[%s2259_s3 + $0x58] sm:$0xff]  ;;  %v651_v23 = vld [vmem:[%s2259_s3 + $0x150] sm:$0xff] }
  0x84   :  { %1185 = vmatprep.subr.bf16.mxu1 %v1184_v29  ;;  %v638_v29 = vld [vmem:[%s2259_s3 + $0xe8] sm:$0xff]  ;;  %v1174_v11 = vpack.c.bf16 %v620_v22, %v619_v21  ;;  %v1206_v32 = vpack.c.bf16 %v652_v27, %v651_v23 }
  0x85   :  { %457 = vmatmul.mubr.f32.vlgmr.msra.gmra.mrb[0].mxu0 %v1690_v24  ;;  %v1176_v33 = vpack.c.bf16 %v638_v29, %v637_v28 }
  0x86   :  { %599 = vmatmul.mubr.f32.vlgmr.msra.gmra.mrb[0].mxu1 %v1690_v24  ;;  %1155 = vmatpush3.bf16.msra.mxu0 %v1154_v34  ;;  %v1192_v24 = vpack.c.bf16 %v662_v45, %v661_v44  ;;  %v1208_v34 = vpack.c.bf16 %v670_v31, %v669_v30  ;;  %v1180_v44 = vpack.c.bf16 %v640_v42, %v639_v41  ;;  %v672_v45 = vld [vmem:[%s2259_s3 + $0x1f8] sm:$0xff] }
  0x87   :  { %1187 = vmatpush3.bf16.msra.mxu1 %v1186_v35  ;;  %1157 = vmatprep.subr.bf16.mxu0 %v1156_v36  ;;  %v621_v35 = vld [vmem:[%s2259_s3 + $0x60] sm:$0xff]  ;;  %v622_v36 = vld [vmem:[%s2259_s3 + $0x68] sm:$0xff] }
  0x88   :  { %1189 = vmatprep.subr.bf16.mxu1 %v1188_v40  ;;  %v1178_v38 = vpack.c.bf16 %v622_v36, %v621_v35  ;;  %v1210_v40 = vpack.c.bf16 %v654_v39, %v653_v37 }
  0x8a   :  { %1159 = vmatpush3.bf16.msra.mxu0 %v1158_v46  ;;  %v623_v46 = vld [vmem:[%s2259_s3 + $0x70] sm:$0xff] }
  0x8b   :  { %1191 = vmatpush3.bf16.msra.mxu1 %v1190_v25  ;;  %1161 = vmatprep.subr.bf16.mxu0 %v1160_v47  ;;  %v624_v25 = vld [vmem:[%s2259_s3 + $0x78] sm:$0xff]  ;;  %v1212_v47 = vpack.c.bf16 %v672_v45, %v671_v43 }
  0x8c   :  { %1193 = vmatprep.subr.bf16.mxu1 %v1192_v24  ;;  %v1182_v48 = vpack.c.bf16 %v624_v25, %v623_v46  ;;  %v1214_v24 = vpack.c.bf16 %v656_v50, %v655_v49 }
  0x8e   :  { %1163 = vmatpush3.bf16.msra.mxu0 %v1162_v56  ;;  %v282_v56 = vrot.slane %v277_v52, %v281_v51 }
  0x8f   :  { %1195 = vmatpush3.bf16.msra.mxu1 %v1194_v57  ;;  %1165 = vmatprep.subr.bf16.mxu0 %v1164_v58  ;;  %v290_v57 = vrot.slane %v277_v52, %v289_v53  ;;  %v286_v58 = vrot.slane %v277_v52, %v285_v54 }
  0x90   :  { %1197 = vmatprep.subr.bf16.mxu1 %v1196_v63 }
  0x92   :  { %1167 = vmatpush3.bf16.msra.mxu0 %v1166_v5 }
  0x93   :  { %1199 = vmatpush3.bf16.msra.mxu1 %v1198_v6  ;;  %1169 = vmatprep.subr.bf16.mxu0 %v1168_v7 }
  0x94   :  { %1201 = vmatprep.subr.bf16.mxu1 %v1200_v12 }
  0x96   :  { %1171 = vmatpush3.bf16.msra.mxu0 %v1170_v18 }
  0x97   :  { %1203 = vmatpush3.bf16.msra.mxu1 %v1202_v19  ;;  %1173 = vmatprep.subr.bf16.mxu0 %v1172_v20 }
  0x98   :  { %1205 = vmatprep.subr.bf16.mxu1 %v1204_v26 }
  0x9a   :  { %1175 = vmatpush3.bf16.msra.mxu0 %v1174_v11 }
  0x9b   :  { %1207 = vmatpush3.bf16.msra.mxu1 %v1206_v32  ;;  %1177 = vmatprep.subr.bf16.mxu0 %v1176_v33 }
  0x9c   :  { %1209 = vmatprep.subr.bf16.mxu1 %v1208_v34 }
  0x9e   :  { %1179 = vmatpush3.bf16.msra.mxu0 %v1178_v38 }
  0x9f   :  { %1211 = vmatpush3.bf16.msra.mxu1 %v1210_v40  ;;  %1181 = vmatprep.subr.bf16.mxu0 %v1180_v44 }
  0xa0   :  { %1213 = vmatprep.subr.bf16.mxu1 %v1212_v47 }
  0xa2   :  { %1183 = vmatpush3.bf16.msra.mxu0 %v1182_v48 }
  0xa3   :  { %1215 = vmatpush3.bf16.msra.mxu1 %v1214_v24 }
 0x158   :  { %v458_v60 = vpop.f32.mrb[0].mxu0 }
 0x159   :  { %v1216_v62 = vadd.f32 %v458_v60, %v282_v56  ;;  %v600_v63 = vpop.f32.mrb[0].mxu1  ;;  %v460_v0 = vpop.f32.mrb[1].mxu0 }
 0x15a   :  { %v1218_v1 = vadd.f32 %v600_v63, %v290_v57  ;;  %v1217_v2 = vadd.f32 %v460_v0, %v286_v58  ;;  %v602_v3 = vpop.f32.mrb[1].mxu1 }
 0x15b   :  { %v1219_v4 = vadd.f32 %v602_v3, %v294_v59  ;;  %v605_v6 = vmax.f32 %v1216_v62, 0.0 }
 0x15c   :  { %v606_v5 = vmax.f32 %v1217_v2, 0.0  ;;  %v607_v8 = vmax.f32 %v1218_v1, 0.0 }
 0x15d   :  { %v608_v7 = vmax.f32 %v1219_v4, 0.0 }
 0x15e   :  { %744 = vmatprep.mubr.f32.mxu0 %v606_v5 }
 0x15f   :  { %814 = vmatprep.mubr.f32.mxu1 %v608_v7  ;;  %745 = vmatmul.mubr.f32.vlgmr.msra.gmra.mrb[2].mxu0 %v605_v6 }
 0x160   :  { %815 = vmatmul.mubr.f32.vlgmr.msra.gmra.mrb[2].mxu1 %v607_v8 }
 0x232   :  { %v858_v61 = vpop.f32.mrb[2].mxu0 }
 0x233   :  { %v893_v9 = vpop.f32.mrb[2].mxu1  ;;  %v859_v12 = vpop.f32.mrb[3].mxu0 }
 0x234   :  { %v860_v13 = vadd.f32 %v859_v12, %v858_v61  ;;  %v894_v14 = vpop.f32.mrb[3].mxu1 }
 0x235   :  { %v895_v15 = vadd.f32 %v894_v14, %v893_v9 }
 0x236   :  { %v747_v16 = vadd.f32 %v860_v13, %v825_v10 }
 0x238   :  { %v817_v17 = vadd.f32 %v895_v15, %v747_v16 }
 0x23a   :  { %820 = vst [vmem:[%s2262_s5] sm:$0x3] %v817_v17 }

</bundles_post_ra>
